<compile_context>
chip_gen: v7x
topology: tpu7x:2x2x1
jax: 0.10.0
libtpu: 0.0.40
codegen_flags: <defaults>
</compile_context>

<pallas_src>
from typing import NamedTuple

import jax
import jax.numpy as jnp
from jax.experimental import pallas as pl
from jax.experimental.pallas import tpu as pltpu


class MAEConfig(NamedTuple):
    image_size: int = 16
    patch: int = 2
    emb: int = 48
    enc_layers: int = 2
    enc_heads: int = 3
    dec_layers: int = 1
    dec_heads: int = 3
    mask_ratio: float = 0.75


# ------------------------------ in-kernel helpers ------------------------------

def _mm(a, w):
    """MXU matmul: activations cast to bf16 (weights are already bf16), f32 accumulate."""
    return jnp.dot(a.astype(jnp.bfloat16), w, preferred_element_type=jnp.float32)


def _layernorm(x, g, b, eps=1e-5):
    """f32 LayerNorm over the last dim. x:(M,D), g/b:(1,D). eps matches torch default."""
    mu = jnp.mean(x, axis=-1, keepdims=True)
    var = jnp.mean(jnp.square(x - mu), axis=-1, keepdims=True)
    return (x - mu) * jax.lax.rsqrt(var + eps) * g + b


# ------------------------------ fused MAE kernel --------------------------------

def fused_mae_forward(x_patches, enc_idx, dec_idx, params, cfg):
    """Whole MAE forward in one pallas_call.

    x_patches: (B, Np, K) f32  patch pixel vectors (K = 3*p*p)
    enc_idx:   (B, T_enc) int32, row0 = Np (sentinel -> cls row), rows 1.. = visible patch ids
    dec_idx:   (B, T_dec) int32, row0 = 0 (cls feature), rows 1.. = backward_index + 1
    returns:   (B, T_dec, P) f32 head outputs (row 0 = cls token, dropped by the caller)
    """
    B, Np, K = x_patches.shape
    D = cfg.emb
    P = 3 * cfg.patch ** 2
    T_enc = enc_idx.shape[1]
    T_dec = dec_idx.shape[1]
    EL, DL = cfg.enc_layers, cfg.dec_layers
    EH, DH = cfg.enc_heads, cfg.dec_heads

    # Two grid steps (one per v7x TensorCore); on v5e/v6e this is a cheap 2-iter loop.
    BG = 2 if (B >= 2 and B % 2 == 0) else 1
    NB = B // BG

    xp4 = x_patches.reshape(BG, NB, Np, K)
    ei4 = enc_idx.reshape(BG, NB, T_enc, 1).astype(jnp.int32)
    di4 = dec_idx.reshape(BG, NB, T_dec, 1).astype(jnp.int32)

    ep, dp = params["enc"], params["dec"]

    def blk(bp):
        return [bp["norm1_g"], bp["norm1_b"], bp["qkv_w"], bp["qkv_b"],
                bp["proj_w"], bp["proj_b"], bp["norm2_g"], bp["norm2_b"],
                bp["fc1_w"], bp["fc1_b"], bp["fc2_w"], bp["fc2_b"]]

    weights = [ep["patch_w"], ep["patch_b"], ep["pos_emb"], ep["cls_token"]]
    for bp in ep["blocks"]:
        weights += blk(bp)
    weights += [ep["ln_g"], ep["ln_b"], dp["mask_token"], dp["pos_emb"]]
    for bp in dp["blocks"]:
        weights += blk(bp)
    weights += [dp["head_w"], dp["head_b"]]

    def transformer_block(xv, seq_t, nh, bw):
        """Pre-norm MHSA + MLP on the folded (NB*seq_t, D) activation slab."""
        (n1g, n1b, qkvw, qkvb, projw, projb,
         n2g, n2b, f1w, f1b, f2w, f2b) = bw
        Dh = D // nh
        scale = float(Dh) ** -0.5

        h = _layernorm(xv, n1g[...], n1b[...])
        qkv = _mm(h, qkvw[...]) + qkvb[...]              # (M, 3D) f32, one wide MXU pass
        qkv16 = qkv.astype(jnp.bfloat16)                 # single bf16 cast for all head slices

        ctx_rows = []
        for b in range(NB):                              # per-batch (T,T) attention
            qb = qkv16 if NB == 1 else qkv16[b * seq_t:(b + 1) * seq_t, :]
            heads = []
            for hd in range(nh):                         # static unroll; Dh=16 lane slices of
                q = qb[:, hd * Dh:(hd + 1) * Dh]         # a 2-vreg-wide slab (cheap relayout)
                k = qb[:, D + hd * Dh:D + (hd + 1) * Dh]
                v = qb[:, 2 * D + hd * Dh:2 * D + (hd + 1) * Dh]
                s = jnp.einsum("qd,kd->qk", q, k,
                               preferred_element_type=jnp.float32) * scale
                s = s - jnp.max(s, axis=-1, keepdims=True)
                e = jnp.exp(s)
                a = e / jnp.sum(e, axis=-1, keepdims=True)   # exact softmax denominator
                heads.append(jnp.dot(a.astype(jnp.bfloat16), v,
                                     preferred_element_type=jnp.float32))
            ctx_rows.append(jnp.concatenate(heads, axis=-1))     # (seq_t, D) f32
        ctx = ctx_rows[0] if NB == 1 else jnp.concatenate(ctx_rows, axis=0)

        xv = xv + _mm(ctx, projw[...]) + projb[...]      # single K=D projection matmul

        h = _layernorm(xv, n2g[...], n2b[...])
        # TODO(synk): torch nn.GELU defaults to exact erf-GELU; tanh approximation kept for
        # robust Mosaic lowering (~1e-3 level difference).
        h = jax.nn.gelu(_mm(h, f1w[...]) + f1b[...], approximate=True)
        return xv + _mm(h, f2w[...]) + f2b[...]

    def kernel(*refs):
        xp_ref, eidx_ref, didx_ref = refs[0], refs[1], refs[2]
        w = refs[3:-1]
        out_ref = refs[-1]

        patch_w, patch_b, enc_pos, cls_tok = w[0], w[1], w[2], w[3]
        off = 4
        enc_blocks = [w[off + 12 * l: off + 12 * (l + 1)] for l in range(EL)]
        off += 12 * EL
        enc_ln_g, enc_ln_b = w[off], w[off + 1]
        mask_tok, dec_pos = w[off + 2], w[off + 3]
        off += 4
        dec_blocks = [w[off + 12 * l: off + 12 * (l + 1)] for l in range(DL)]
        off += 12 * DL
        head_w, head_b = w[off], w[off + 1]

        # ---- encoder input: patch embed + pos + shuffle-gather + cls row (fused) ----
        slabs = []
        for b in range(NB):
            pix = xp_ref[0, b]                                           # (Np, K) f32
            emb = jnp.dot(pix, patch_w[...], preferred_element_type=jnp.float32)
            emb = emb + patch_b[...] + enc_pos[...]                      # (Np, D)
            idx = eidx_ref[0, b]                                         # (T_enc, 1) int32
            cols = jax.lax.broadcasted_iota(jnp.int32, (T_enc, Np), 1)
            onehot = (idx == cols).astype(jnp.float32)                   # row0 == sentinel -> zero row
            x0 = jnp.dot(onehot, emb, preferred_element_type=jnp.float32)
            is_cls = (jax.lax.broadcasted_iota(jnp.int32, (T_enc, 1), 0) == 0
                      ).astype(jnp.float32)
            x0 = x0 + is_cls * cls_tok[...]                              # cls row (no pos emb)
            slabs.append(x0)
        xv = slabs[0] if NB == 1 else jnp.concatenate(slabs, axis=0)     # (NB*T_enc, D)

        for bw in enc_blocks:
            xv = transformer_block(xv, T_enc, EH, bw)
        xv = _layernorm(xv, enc_ln_g[...], enc_ln_b[...])                # encoder final LN

        # ---- decoder input: un-shuffle gather + mask-token fill + pos add (fused) ----
        slabs = []
        for b in range(NB):
            feat = xv if NB == 1 else xv[b * T_enc:(b + 1) * T_enc, :]   # (T_enc, D)
            idx = didx_ref[0, b]                                         # (T_dec, 1) int32
            cols = jax.lax.broadcasted_iota(jnp.int32, (T_dec, T_enc), 1)
            onehot = (idx == cols).astype(jnp.float32)                   # idx >= T_enc -> zero row
            y0 = jnp.dot(onehot, feat, preferred_element_type=jnp.float32)
            not_vis = (idx >= T_enc).astype(jnp.float32)                 # masked positions
            y0 = y0 + not_vis * mask_tok[...] + dec_pos[...]
            slabs.append(y0)
        yv = slabs[0] if NB == 1 else jnp.concatenate(slabs, axis=0)     # (NB*T_dec, D)

        for bw in dec_blocks:
            yv = transformer_block(yv, T_dec, DH, bw)

        # ---- reconstruction head (fused) ----
        # TODO(synk): head output is only P=12 lanes (masked vst); pad to 128 lanes and
        # slice in JAX when scaling the model for lane-dense stores.
        out = _mm(yv, head_w[...]) + head_b[...]                         # (NB*T_dec, P)
        for b in range(NB):
            ob = out if NB == 1 else out[b * T_dec:(b + 1) * T_dec, :]
            out_ref[0, b] = ob.astype(out_ref.dtype)

    def whole(a):
        nd = a.ndim
        return pl.BlockSpec(a.shape, lambda i: (0,) * nd)

    in_specs = [
        pl.BlockSpec((1, NB, Np, K), lambda i: (i, 0, 0, 0)),
        pl.BlockSpec((1, NB, T_enc, 1), lambda i: (i, 0, 0, 0)),
        pl.BlockSpec((1, NB, T_dec, 1), lambda i: (i, 0, 0, 0)),
    ] + [whole(a) for a in weights]

    out = pl.pallas_call(
        kernel,
        out_shape=jax.ShapeDtypeStruct((BG, NB, T_dec, P), x_patches.dtype),
        grid=(BG,),
        in_specs=in_specs,
        out_specs=pl.BlockSpec((1, NB, T_dec, P), lambda i: (i, 0, 0, 0)),
        compiler_params=pltpu.CompilerParams(
            dimension_semantics=("parallel",),          # 2-way split across v7x TCs
            vmem_limit_bytes=32 * 1024 * 1024,
        ),
        # TODO(synk): when scaling emb/layers, stream one block's weights per step via an
        # "arbitrary" layer grid axis (or pipeline_mode=pl.Buffered(1) on the weight specs)
        # so the all-weights-resident design fits v7x's 64 MiB VMEM.
    )(xp4, ei4, di4, *weights)
    return out.reshape(B, T_dec, P)


# ------------------------------- JAX glue ---------------------------------------

def patch_pixels(img, p):
    """(B, 3, H, W) -> (B, Np, 3*p*p) patch pixel vectors (= Conv2d stride-p unfold)."""
    # TODO(synk): fold this unfold into the kernel (static p x p slices) to drop one XLA op.
    B, C, H, W = img.shape
    Hp, Wp = H // p, W // p
    x = img.reshape(B, C, Hp, p, Wp, p).transpose(0, 2, 4, 1, 3, 5)
    return x.reshape(B, Hp * Wp, C * p * p)


def patch2img(patches, cfg):
    """'(h w) (c p1 p2)' tokens -> (B, C, H, W) image."""
    p = cfg.patch
    Hp = cfg.image_size // p
    B, Np, CP = patches.shape
    C = CP // (p * p)
    x = patches.reshape(B, Hp, Hp, C, p, p)      # b h w c p1 p2
    x = x.transpose(0, 3, 1, 4, 2, 5)            # b c h p1 w p2
    return x.reshape(B, C, Hp * p, Hp * p)


def mae_forward(img, params, cfg, shuffle_key):
    B = img.shape[0]
    p = cfg.patch
    Np = (cfg.image_size // p) ** 2
    P = 3 * p * p
    remain = int(Np * (1 - cfg.mask_ratio))

    xp = patch_pixels(img, p)                                            # (B, Np, K)

    # per-batch random shuffle (data-dependent; stays in JAX)
    keys = jax.random.split(shuffle_key, B)
    forward = jax.vmap(lambda k: jax.random.permutation(k, Np))(keys).astype(jnp.int32)
    backward = jnp.argsort(forward, axis=1).astype(jnp.int32)            # (B, Np)

    # gather indexes consumed by the fused kernel (one-hot gathers in-kernel)
    enc_idx = jnp.concatenate(
        [jnp.full((B, 1), Np, jnp.int32), forward[:, :remain]], axis=1)  # (B, remain+1)
    dec_idx = jnp.concatenate(
        [jnp.zeros((B, 1), jnp.int32), backward + 1], axis=1)            # (B, Np+1)

    out = fused_mae_forward(xp, enc_idx, dec_idx, params, cfg)           # (B, Np+1, P)
    patches = out[:, 1:, :]                                              # drop cls token
    predicted_img = patch2img(patches, cfg)

    # 0/1 mask: patch i is masked iff its shuffled position >= number of visible patches
    masked = (backward >= remain).astype(img.dtype)                      # (B, Np)
    mask_img = patch2img(jnp.broadcast_to(masked[:, :, None], (B, Np, P)), cfg)
    return predicted_img, mask_img


# ------------------------------- parameter init ---------------------------------

def init_params(key, cfg):
    D = cfg.emb
    p = cfg.patch
    Np = (cfg.image_size // p) ** 2
    K = 3 * p * p
    keys = iter(jax.random.split(key, 256))

    def nrm(shape, std=0.02, dtype=jnp.float32):
        return (std * jax.random.normal(next(keys), shape)).astype(dtype)

    # matmul weights stored in bf16 (MXU operand dtype; f32 accumulation in-kernel);
    # biases / LayerNorm / pos / cls / mask tokens stay f32.
    wdt = jnp.bfloat16

    def block_params():
        return dict(
            norm1_g=jnp.ones((1, D), jnp.float32), norm1_b=jnp.zeros((1, D), jnp.float32),
            qkv_w=nrm((D, 3 * D), dtype=wdt), qkv_b=jnp.zeros((1, 3 * D), jnp.float32),
            proj_w=nrm((D, D), dtype=wdt), proj_b=jnp.zeros((1, D), jnp.float32),
            norm2_g=jnp.ones((1, D), jnp.float32), norm2_b=jnp.zeros((1, D), jnp.float32),
            fc1_w=nrm((D, 4 * D), dtype=wdt), fc1_b=jnp.zeros((1, 4 * D), jnp.float32),
            fc2_w=nrm((4 * D, D), dtype=wdt), fc2_b=jnp.zeros((1, D), jnp.float32),
        )

    enc = dict(
        cls_token=nrm((1, D)),
        pos_emb=nrm((Np, D)),
        patch_w=nrm((K, D)),                     # Conv2d(3, D, p, stride=p) weight as (K, D)
        patch_b=jnp.zeros((1, D), jnp.float32),
        blocks=[block_params() for _ in range(cfg.enc_layers)],
        ln_g=jnp.ones((1, D), jnp.float32), ln_b=jnp.zeros((1, D), jnp.float32),
    )
    dec = dict(
        mask_token=nrm((1, D)),
        pos_emb=nrm((Np + 1, D)),
        blocks=[block_params() for _ in range(cfg.dec_layers)],
        head_w=nrm((D, K), dtype=wdt),
        head_b=jnp.zeros((1, K), jnp.float32),
    )
    return dict(enc=enc, dec=dec)


# ------------------------------------ main ---------------------------------------

if __name__ == "__main__":
    cfg = MAEConfig(image_size=16, patch=2, emb=48,
                    enc_layers=2, enc_heads=3,
                    dec_layers=1, dec_heads=3,
                    mask_ratio=0.75)

    key = jax.random.PRNGKey(0)
    k_params, k_img, k_shuffle = jax.random.split(key, 3)

    params = init_params(k_params, cfg)
    img = jax.random.normal(k_img, (2, 3, cfg.image_size, cfg.image_size), jnp.float32)

    fwd = jax.jit(lambda im, pr, k: mae_forward(im, pr, cfg, k))
    predicted_img, mask = fwd(img, params, k_shuffle)
    predicted_img, mask = jax.block_until_ready((predicted_img, mask))

    assert predicted_img.shape == img.shape, predicted_img.shape
    assert mask.shape == img.shape, mask.shape
    assert bool(jnp.all(jnp.isfinite(predicted_img)))
    # mask must be exactly 0/1 and the masked fraction must equal mask_ratio
    assert bool(jnp.all((mask == 0.0) | (mask == 1.0)))
    assert abs(float(jnp.mean(mask)) - cfg.mask_ratio) < 1e-6

    print("KERNEL_OK")
</pallas_src>

<mosaic_0001>
module attributes {stable_mosaic.version = 11 : i64} {
  func.func @kernel(%arg0: i32, %arg1: memref<1x1x64x12xf32, #tpu.memory_space<vmem>>, %arg2: memref<1x1x17x1xi32, #tpu.memory_space<vmem>>, %arg3: memref<1x1x65x1xi32, #tpu.memory_space<vmem>>, %arg4: memref<12x48xf32, #tpu.memory_space<vmem>>, %arg5: memref<1x48xf32, #tpu.memory_space<vmem>>, %arg6: memref<64x48xf32, #tpu.memory_space<vmem>>, %arg7: memref<1x48xf32, #tpu.memory_space<vmem>>, %arg8: memref<1x48xf32, #tpu.memory_space<vmem>>, %arg9: memref<1x48xf32, #tpu.memory_space<vmem>>, %arg10: memref<48x144xbf16, #tpu.memory_space<vmem>>, %arg11: memref<1x144xf32, #tpu.memory_space<vmem>>, %arg12: memref<48x48xbf16, #tpu.memory_space<vmem>>, %arg13: memref<1x48xf32, #tpu.memory_space<vmem>>, %arg14: memref<1x48xf32, #tpu.memory_space<vmem>>, %arg15: memref<1x48xf32, #tpu.memory_space<vmem>>, %arg16: memref<48x192xbf16, #tpu.memory_space<vmem>>, %arg17: memref<1x192xf32, #tpu.memory_space<vmem>>, %arg18: memref<192x48xbf16, #tpu.memory_space<vmem>>, %arg19: memref<1x48xf32, #tpu.memory_space<vmem>>, %arg20: memref<1x48xf32, #tpu.memory_space<vmem>>, %arg21: memref<1x48xf32, #tpu.memory_space<vmem>>, %arg22: memref<48x144xbf16, #tpu.memory_space<vmem>>, %arg23: memref<1x144xf32, #tpu.memory_space<vmem>>, %arg24: memref<48x48xbf16, #tpu.memory_space<vmem>>, %arg25: memref<1x48xf32, #tpu.memory_space<vmem>>, %arg26: memref<1x48xf32, #tpu.memory_space<vmem>>, %arg27: memref<1x48xf32, #tpu.memory_space<vmem>>, %arg28: memref<48x192xbf16, #tpu.memory_space<vmem>>, %arg29: memref<1x192xf32, #tpu.memory_space<vmem>>, %arg30: memref<192x48xbf16, #tpu.memory_space<vmem>>, %arg31: memref<1x48xf32, #tpu.memory_space<vmem>>, %arg32: memref<1x48xf32, #tpu.memory_space<vmem>>, %arg33: memref<1x48xf32, #tpu.memory_space<vmem>>, %arg34: memref<1x48xf32, #tpu.memory_space<vmem>>, %arg35: memref<65x48xf32, #tpu.memory_space<vmem>>, %arg36: memref<1x48xf32, #tpu.memory_space<vmem>>, %arg37: memref<1x48xf32, #tpu.memory_space<vmem>>, %arg38: memref<48x144xbf16, #tpu.memory_space<vmem>>, %arg39: memref<1x144xf32, #tpu.memory_space<vmem>>, %arg40: memref<48x48xbf16, #tpu.memory_space<vmem>>, %arg41: memref<1x48xf32, #tpu.memory_space<vmem>>, %arg42: memref<1x48xf32, #tpu.memory_space<vmem>>, %arg43: memref<1x48xf32, #tpu.memory_space<vmem>>, %arg44: memref<48x192xbf16, #tpu.memory_space<vmem>>, %arg45: memref<1x192xf32, #tpu.memory_space<vmem>>, %arg46: memref<192x48xbf16, #tpu.memory_space<vmem>>, %arg47: memref<1x48xf32, #tpu.memory_space<vmem>>, %arg48: memref<48x12xbf16, #tpu.memory_space<vmem>>, %arg49: memref<1x12xf32, #tpu.memory_space<vmem>>, %arg50: memref<1x1x65x12xf32, #tpu.memory_space<vmem>>) attributes {dimension_semantics = [#tpu.dimension_semantics<parallel>], iteration_bounds = array<i64: 2>, scalar_prefetch = 0 : i64, scratch_operands = 0 : i64, tpu.core_type = #tpu.core_type<tc>, window_params = [{transform_indices = @transform_0, window_bounds = array<i64: 1, 1, 64, 12>}, {transform_indices = @transform_1, window_bounds = array<i64: 1, 1, 17, 1>}, {transform_indices = @transform_2, window_bounds = array<i64: 1, 1, 65, 1>}, {pipeline_mode = #tpu.pipeline_mode<synchronous>, transform_indices = @transform_3, window_bounds = array<i64: 12, 48>}, {pipeline_mode = #tpu.pipeline_mode<synchronous>, transform_indices = @transform_4, window_bounds = array<i64: 1, 48>}, {pipeline_mode = #tpu.pipeline_mode<synchronous>, transform_indices = @transform_5, window_bounds = array<i64: 64, 48>}, {pipeline_mode = #tpu.pipeline_mode<synchronous>, transform_indices = @transform_6, window_bounds = array<i64: 1, 48>}, {pipeline_mode = #tpu.pipeline_mode<synchronous>, transform_indices = @transform_7, window_bounds = array<i64: 1, 48>}, {pipeline_mode = #tpu.pipeline_mode<synchronous>, transform_indices = @transform_8, window_bounds = array<i64: 1, 48>}, {pipeline_mode = #tpu.pipeline_mode<synchronous>, transform_indices = @transform_9, window_bounds = array<i64: 48, 144>}, {pipeline_mode = #tpu.pipeline_mode<synchronous>, transform_indices = @transform_10, window_bounds = array<i64: 1, 144>}, {pipeline_mode = #tpu.pipeline_mode<synchronous>, transform_indices = @transform_11, window_bounds = array<i64: 48, 48>}, {pipeline_mode = #tpu.pipeline_mode<synchronous>, transform_indices = @transform_12, window_bounds = array<i64: 1, 48>}, {pipeline_mode = #tpu.pipeline_mode<synchronous>, transform_indices = @transform_13, window_bounds = array<i64: 1, 48>}, {pipeline_mode = #tpu.pipeline_mode<synchronous>, transform_indices = @transform_14, window_bounds = array<i64: 1, 48>}, {pipeline_mode = #tpu.pipeline_mode<synchronous>, transform_indices = @transform_15, window_bounds = array<i64: 48, 192>}, {pipeline_mode = #tpu.pipeline_mode<synchronous>, transform_indices = @transform_16, window_bounds = array<i64: 1, 192>}, {pipeline_mode = #tpu.pipeline_mode<synchronous>, transform_indices = @transform_17, window_bounds = array<i64: 192, 48>}, {pipeline_mode = #tpu.pipeline_mode<synchronous>, transform_indices = @transform_18, window_bounds = array<i64: 1, 48>}, {pipeline_mode = #tpu.pipeline_mode<synchronous>, transform_indices = @transform_19, window_bounds = array<i64: 1, 48>}, {pipeline_mode = #tpu.pipeline_mode<synchronous>, transform_indices = @transform_20, window_bounds = array<i64: 1, 48>}, {pipeline_mode = #tpu.pipeline_mode<synchronous>, transform_indices = @transform_21, window_bounds = array<i64: 48, 144>}, {pipeline_mode = #tpu.pipeline_mode<synchronous>, transform_indices = @transform_22, window_bounds = array<i64: 1, 144>}, {pipeline_mode = #tpu.pipeline_mode<synchronous>, transform_indices = @transform_23, window_bounds = array<i64: 48, 48>}, {pipeline_mode = #tpu.pipeline_mode<synchronous>, transform_indices = @transform_24, window_bounds = array<i64: 1, 48>}, {pipeline_mode = #tpu.pipeline_mode<synchronous>, transform_indices = @transform_25, window_bounds = array<i64: 1, 48>}, {pipeline_mode = #tpu.pipeline_mode<synchronous>, transform_indices = @transform_26, window_bounds = array<i64: 1, 48>}, {pipeline_mode = #tpu.pipeline_mode<synchronous>, transform_indices = @transform_27, window_bounds = array<i64: 48, 192>}, {pipeline_mode = #tpu.pipeline_mode<synchronous>, transform_indices = @transform_28, window_bounds = array<i64: 1, 192>}, {pipeline_mode = #tpu.pipeline_mode<synchronous>, transform_indices = @transform_29, window_bounds = array<i64: 192, 48>}, {pipeline_mode = #tpu.pipeline_mode<synchronous>, transform_indices = @transform_30, window_bounds = array<i64: 1, 48>}, {pipeline_mode = #tpu.pipeline_mode<synchronous>, transform_indices = @transform_31, window_bounds = array<i64: 1, 48>}, {pipeline_mode = #tpu.pipeline_mode<synchronous>, transform_indices = @transform_32, window_bounds = array<i64: 1, 48>}, {pipeline_mode = #tpu.pipeline_mode<synchronous>, transform_indices = @transform_33, window_bounds = array<i64: 1, 48>}, {pipeline_mode = #tpu.pipeline_mode<synchronous>, transform_indices = @transform_34, window_bounds = array<i64: 65, 48>}, {pipeline_mode = #tpu.pipeline_mode<synchronous>, transform_indices = @transform_35, window_bounds = array<i64: 1, 48>}, {pipeline_mode = #tpu.pipeline_mode<synchronous>, transform_indices = @transform_36, window_bounds = array<i64: 1, 48>}, {pipeline_mode = #tpu.pipeline_mode<synchronous>, transform_indices = @transform_37, window_bounds = array<i64: 48, 144>}, {pipeline_mode = #tpu.pipeline_mode<synchronous>, transform_indices = @transform_38, window_bounds = array<i64: 1, 144>}, {pipeline_mode = #tpu.pipeline_mode<synchronous>, transform_indices = @transform_39, window_bounds = array<i64: 48, 48>}, {pipeline_mode = #tpu.pipeline_mode<synchronous>, transform_indices = @transform_40, window_bounds = array<i64: 1, 48>}, {pipeline_mode = #tpu.pipeline_mode<synchronous>, transform_indices = @transform_41, window_bounds = array<i64: 1, 48>}, {pipeline_mode = #tpu.pipeline_mode<synchronous>, transform_indices = @transform_42, window_bounds = array<i64: 1, 48>}, {pipeline_mode = #tpu.pipeline_mode<synchronous>, transform_indices = @transform_43, window_bounds = array<i64: 48, 192>}, {pipeline_mode = #tpu.pipeline_mode<synchronous>, transform_indices = @transform_44, window_bounds = array<i64: 1, 192>}, {pipeline_mode = #tpu.pipeline_mode<synchronous>, transform_indices = @transform_45, window_bounds = array<i64: 192, 48>}, {pipeline_mode = #tpu.pipeline_mode<synchronous>, transform_indices = @transform_46, window_bounds = array<i64: 1, 48>}, {pipeline_mode = #tpu.pipeline_mode<synchronous>, transform_indices = @transform_47, window_bounds = array<i64: 48, 12>}, {pipeline_mode = #tpu.pipeline_mode<synchronous>, transform_indices = @transform_48, window_bounds = array<i64: 1, 12>}, {transform_indices = @transform_49, window_bounds = array<i64: 1, 1, 65, 12>}]} {
    %c0 = arith.constant 0 : index
    %c0_0 = arith.constant 0 : index
    %c0_1 = arith.constant 0 : index
    %c0_2 = arith.constant 0 : index
    %0 = vector.load %arg1[%c0, %c0_0, %c0_1, %c0_2] : memref<1x1x64x12xf32, #tpu.memory_space<vmem>>, vector<1x1x64x12xf32>
    %1 = vector.shape_cast %0 : vector<1x1x64x12xf32> to vector<64x12xf32>
    %c0_3 = arith.constant 0 : index
    %c0_4 = arith.constant 0 : index
    %2 = vector.load %arg4[%c0_3, %c0_4] : memref<12x48xf32, #tpu.memory_space<vmem>>, vector<12x48xf32>
    %cst = arith.constant dense<0.000000e+00> : vector<64x48xf32>
    %3 = tpu.matmul %1, %2, %cst {dimension_numbers = #tpu.dot_dimension_numbers<[1], [0], [0], [1], [0, 0, 1, 1], [], []>} : vector<64x12xf32>, vector<12x48xf32>, vector<64x48xf32> -> vector<64x48xf32>
    %c0_5 = arith.constant 0 : index
    %c0_6 = arith.constant 0 : index
    %4 = vector.load %arg5[%c0_5, %c0_6] : memref<1x48xf32, #tpu.memory_space<vmem>>, vector<1x48xf32>
    %5 = vector.broadcast %4 : vector<1x48xf32> to vector<64x48xf32>
    %6 = arith.addf %3, %5 : vector<64x48xf32>
    %c0_7 = arith.constant 0 : index
    %c0_8 = arith.constant 0 : index
    %7 = vector.load %arg6[%c0_7, %c0_8] : memref<64x48xf32, #tpu.memory_space<vmem>>, vector<64x48xf32>
    %8 = arith.addf %6, %7 : vector<64x48xf32>
    %c0_9 = arith.constant 0 : index
    %c0_10 = arith.constant 0 : index
    %c0_11 = arith.constant 0 : index
    %c0_12 = arith.constant 0 : index
    %9 = vector.load %arg2[%c0_9, %c0_10, %c0_11, %c0_12] : memref<1x1x17x1xi32, #tpu.memory_space<vmem>>, vector<1x1x17x1xi32>
    %10 = vector.shape_cast %9 : vector<1x1x17x1xi32> to vector<17x1xi32>
    %11 = tpu.iota {dimensions = array<i32: 1>} : vector<17x64xi32>
    %12 = vector.broadcast %10 : vector<17x1xi32> to vector<17x64xi32>
    %13 = arith.cmpi eq, %12, %11 : vector<17x64xi32>
    %14 = arith.extui %13 : vector<17x64xi1> to vector<17x64xi32>
    %15 = arith.sitofp %14 : vector<17x64xi32> to vector<17x64xf32>
    %cst_13 = arith.constant dense<0.000000e+00> : vector<17x48xf32>
    %16 = tpu.matmul %15, %8, %cst_13 {dimension_numbers = #tpu.dot_dimension_numbers<[1], [0], [0], [1], [0, 0, 1, 1], [], []>} : vector<17x64xf32>, vector<64x48xf32>, vector<17x48xf32> -> vector<17x48xf32>
    %17 = tpu.iota {dimensions = array<i32: 0>} : vector<17x1xi32>
    %c0_i32 = arith.constant 0 : i32
    %18 = vector.broadcast %c0_i32 : i32 to vector<17x1xi32>
    %19 = arith.cmpi eq, %17, %18 : vector<17x1xi32>
    %20 = arith.extui %19 : vector<17x1xi1> to vector<17x1xi32>
    %21 = arith.sitofp %20 : vector<17x1xi32> to vector<17x1xf32>
    %c0_14 = arith.constant 0 : index
    %c0_15 = arith.constant 0 : index
    %22 = vector.load %arg7[%c0_14, %c0_15] : memref<1x48xf32, #tpu.memory_space<vmem>>, vector<1x48xf32>
    %23 = vector.broadcast %21 : vector<17x1xf32> to vector<17x48xf32>
    %24 = vector.broadcast %22 : vector<1x48xf32> to vector<17x48xf32>
    %25 = arith.mulf %23, %24 : vector<17x48xf32>
    %26 = arith.addf %16, %25 : vector<17x48xf32>
    %c0_16 = arith.constant 0 : index
    %c0_17 = arith.constant 0 : index
    %27 = vector.load %arg8[%c0_16, %c0_17] : memref<1x48xf32, #tpu.memory_space<vmem>>, vector<1x48xf32>
    %c0_18 = arith.constant 0 : index
    %c0_19 = arith.constant 0 : index
    %28 = vector.load %arg9[%c0_18, %c0_19] : memref<1x48xf32, #tpu.memory_space<vmem>>, vector<1x48xf32>
    %cst_20 = arith.constant dense<0.000000e+00> : vector<17xf32>
    %29 = vector.multi_reduction <add>, %26, %cst_20 [1] : vector<17x48xf32> to vector<17xf32>
    %30 = vector.shape_cast %29 : vector<17xf32> to vector<17x1xf32>
    %cst_21 = arith.constant 4.800000e+01 : f32
    %31 = vector.broadcast %cst_21 : f32 to vector<17x1xf32>
    %32 = arith.divf %30, %31 : vector<17x1xf32>
    %33 = vector.broadcast %32 : vector<17x1xf32> to vector<17x48xf32>
    %34 = arith.subf %26, %33 : vector<17x48xf32>
    %35 = arith.mulf %34, %34 : vector<17x48xf32>
    %cst_22 = arith.constant dense<0.000000e+00> : vector<17xf32>
    %36 = vector.multi_reduction <add>, %35, %cst_22 [1] : vector<17x48xf32> to vector<17xf32>
    %37 = vector.shape_cast %36 : vector<17xf32> to vector<17x1xf32>
    %cst_23 = arith.constant 4.800000e+01 : f32
    %38 = vector.broadcast %cst_23 : f32 to vector<17x1xf32>
    %39 = arith.divf %37, %38 : vector<17x1xf32>
    %40 = vector.broadcast %32 : vector<17x1xf32> to vector<17x48xf32>
    %41 = arith.subf %26, %40 : vector<17x48xf32>
    %cst_24 = arith.constant 9.99999974E-6 : f32
    %42 = vector.broadcast %cst_24 : f32 to vector<17x1xf32>
    %43 = arith.addf %39, %42 : vector<17x1xf32>
    %44 = math.rsqrt %43 : vector<17x1xf32>
    %45 = vector.broadcast %44 : vector<17x1xf32> to vector<17x48xf32>
    %46 = arith.mulf %41, %45 : vector<17x48xf32>
    %47 = vector.broadcast %27 : vector<1x48xf32> to vector<17x48xf32>
    %48 = arith.mulf %46, %47 : vector<17x48xf32>
    %49 = vector.broadcast %28 : vector<1x48xf32> to vector<17x48xf32>
    %50 = arith.addf %48, %49 : vector<17x48xf32>
    %c0_25 = arith.constant 0 : index
    %c0_26 = arith.constant 0 : index
    %51 = vector.load %arg10[%c0_25, %c0_26] : memref<48x144xbf16, #tpu.memory_space<vmem>>, vector<48x144xbf16>
    %52 = arith.truncf %50 : vector<17x48xf32> to vector<17x48xbf16>
    %cst_27 = arith.constant dense<0.000000e+00> : vector<17x144xf32>
    %53 = tpu.matmul %52, %51, %cst_27 {dimension_numbers = #tpu.dot_dimension_numbers<[1], [0], [0], [1], [0, 0, 1, 1], [], []>} : vector<17x48xbf16>, vector<48x144xbf16>, vector<17x144xf32> -> vector<17x144xf32>
    %c0_28 = arith.constant 0 : index
    %c0_29 = arith.constant 0 : index
    %54 = vector.load %arg11[%c0_28, %c0_29] : memref<1x144xf32, #tpu.memory_space<vmem>>, vector<1x144xf32>
    %55 = vector.broadcast %54 : vector<1x144xf32> to vector<17x144xf32>
    %56 = arith.addf %53, %55 : vector<17x144xf32>
    %57 = arith.truncf %56 : vector<17x144xf32> to vector<17x144xbf16>
    %58 = vector.extract_strided_slice %57 {offsets = [0, 0], sizes = [17, 16], strides = [1, 1]} : vector<17x144xbf16> to vector<17x16xbf16>
    %59 = vector.extract_strided_slice %57 {offsets = [0, 48], sizes = [17, 16], strides = [1, 1]} : vector<17x144xbf16> to vector<17x16xbf16>
    %60 = vector.extract_strided_slice %57 {offsets = [0, 96], sizes = [17, 16], strides = [1, 1]} : vector<17x144xbf16> to vector<17x16xbf16>
    "tpu.trace_start"() <{level = 10 : i32, message = "qd,kd->qk"}> : () -> ()
    %cst_30 = arith.constant dense<0.000000e+00> : vector<17x17xf32>
    %61 = tpu.matmul %58, %59, %cst_30 {dimension_numbers = #tpu.dot_dimension_numbers<[1], [1], [0], [0], [0, 0, 1, 0], [], []>} : vector<17x16xbf16>, vector<17x16xbf16>, vector<17x17xf32> -> vector<17x17xf32>
    "tpu.trace_stop"() : () -> ()
    %cst_31 = arith.constant 2.500000e-01 : f32
    %62 = vector.broadcast %cst_31 : f32 to vector<17x17xf32>
    %63 = arith.mulf %61, %62 : vector<17x17xf32>
    %cst_32 = arith.constant dense<0xFF800000> : vector<17xf32>
    %64 = vector.multi_reduction <maximumf>, %63, %cst_32 [1] : vector<17x17xf32> to vector<17xf32>
    %65 = vector.shape_cast %64 : vector<17xf32> to vector<17x1xf32>
    %66 = vector.broadcast %65 : vector<17x1xf32> to vector<17x17xf32>
    %67 = arith.subf %63, %66 : vector<17x17xf32>
    %68 = math.exp %67 : vector<17x17xf32>
    %cst_33 = arith.constant dense<0.000000e+00> : vector<17xf32>
    %69 = vector.multi_reduction <add>, %68, %cst_33 [1] : vector<17x17xf32> to vector<17xf32>
    %70 = vector.shape_cast %69 : vector<17xf32> to vector<17x1xf32>
    %71 = vector.broadcast %70 : vector<17x1xf32> to vector<17x17xf32>
    %72 = arith.divf %68, %71 : vector<17x17xf32>
    %73 = arith.truncf %72 : vector<17x17xf32> to vector<17x17xbf16>
    %cst_34 = arith.constant dense<0.000000e+00> : vector<17x16xf32>
    %74 = tpu.matmul %73, %60, %cst_34 {dimension_numbers = #tpu.dot_dimension_numbers<[1], [0], [0], [1], [0, 0, 1, 1], [], []>} : vector<17x17xbf16>, vector<17x16xbf16>, vector<17x16xf32> -> vector<17x16xf32>
    %75 = vector.extract_strided_slice %57 {offsets = [0, 16], sizes = [17, 16], strides = [1, 1]} : vector<17x144xbf16> to vector<17x16xbf16>
    %76 = vector.extract_strided_slice %57 {offsets = [0, 64], sizes = [17, 16], strides = [1, 1]} : vector<17x144xbf16> to vector<17x16xbf16>
    %77 = vector.extract_strided_slice %57 {offsets = [0, 112], sizes = [17, 16], strides = [1, 1]} : vector<17x144xbf16> to vector<17x16xbf16>
    "tpu.trace_start"() <{level = 10 : i32, message = "qd,kd->qk"}> : () -> ()
    %cst_35 = arith.constant dense<0.000000e+00> : vector<17x17xf32>
    %78 = tpu.matmul %75, %76, %cst_35 {dimension_numbers = #tpu.dot_dimension_numbers<[1], [1], [0], [0], [0, 0, 1, 0], [], []>} : vector<17x16xbf16>, vector<17x16xbf16>, vector<17x17xf32> -> vector<17x17xf32>
    "tpu.trace_stop"() : () -> ()
    %cst_36 = arith.constant 2.500000e-01 : f32
    %79 = vector.broadcast %cst_36 : f32 to vector<17x17xf32>
    %80 = arith.mulf %78, %79 : vector<17x17xf32>
    %cst_37 = arith.constant dense<0xFF800000> : vector<17xf32>
    %81 = vector.multi_reduction <maximumf>, %80, %cst_37 [1] : vector<17x17xf32> to vector<17xf32>
    %82 = vector.shape_cast %81 : vector<17xf32> to vector<17x1xf32>
    %83 = vector.broadcast %82 : vector<17x1xf32> to vector<17x17xf32>
    %84 = arith.subf %80, %83 : vector<17x17xf32>
    %85 = math.exp %84 : vector<17x17xf32>
    %cst_38 = arith.constant dense<0.000000e+00> : vector<17xf32>
    %86 = vector.multi_reduction <add>, %85, %cst_38 [1] : vector<17x17xf32> to vector<17xf32>
    %87 = vector.shape_cast %86 : vector<17xf32> to vector<17x1xf32>
    %88 = vector.broadcast %87 : vector<17x1xf32> to vector<17x17xf32>
    %89 = arith.divf %85, %88 : vector<17x17xf32>
    %90 = arith.truncf %89 : vector<17x17xf32> to vector<17x17xbf16>
    %cst_39 = arith.constant dense<0.000000e+00> : vector<17x16xf32>
    %91 = tpu.matmul %90, %77, %cst_39 {dimension_numbers = #tpu.dot_dimension_numbers<[1], [0], [0], [1], [0, 0, 1, 1], [], []>} : vector<17x17xbf16>, vector<17x16xbf16>, vector<17x16xf32> -> vector<17x16xf32>
    %92 = vector.extract_strided_slice %57 {offsets = [0, 32], sizes = [17, 16], strides = [1, 1]} : vector<17x144xbf16> to vector<17x16xbf16>
    %93 = vector.extract_strided_slice %57 {offsets = [0, 80], sizes = [17, 16], strides = [1, 1]} : vector<17x144xbf16> to vector<17x16xbf16>
    %94 = vector.extract_strided_slice %57 {offsets = [0, 128], sizes = [17, 16], strides = [1, 1]} : vector<17x144xbf16> to vector<17x16xbf16>
    "tpu.trace_start"() <{level = 10 : i32, message = "qd,kd->qk"}> : () -> ()
    %cst_40 = arith.constant dense<0.000000e+00> : vector<17x17xf32>
    %95 = tpu.matmul %92, %93, %cst_40 {dimension_numbers = #tpu.dot_dimension_numbers<[1], [1], [0], [0], [0, 0, 1, 0], [], []>} : vector<17x16xbf16>, vector<17x16xbf16>, vector<17x17xf32> -> vector<17x17xf32>
    "tpu.trace_stop"() : () -> ()
    %cst_41 = arith.constant 2.500000e-01 : f32
    %96 = vector.broadcast %cst_41 : f32 to vector<17x17xf32>
    %97 = arith.mulf %95, %96 : vector<17x17xf32>
    %cst_42 = arith.constant dense<0xFF800000> : vector<17xf32>
    %98 = vector.multi_reduction <maximumf>, %97, %cst_42 [1] : vector<17x17xf32> to vector<17xf32>
    %99 = vector.shape_cast %98 : vector<17xf32> to vector<17x1xf32>
    %100 = vector.broadcast %99 : vector<17x1xf32> to vector<17x17xf32>
    %101 = arith.subf %97, %100 : vector<17x17xf32>
    %102 = math.exp %101 : vector<17x17xf32>
    %cst_43 = arith.constant dense<0.000000e+00> : vector<17xf32>
    %103 = vector.multi_reduction <add>, %102, %cst_43 [1] : vector<17x17xf32> to vector<17xf32>
    %104 = vector.shape_cast %103 : vector<17xf32> to vector<17x1xf32>
    %105 = vector.broadcast %104 : vector<17x1xf32> to vector<17x17xf32>
    %106 = arith.divf %102, %105 : vector<17x17xf32>
    %107 = arith.truncf %106 : vector<17x17xf32> to vector<17x17xbf16>
    %cst_44 = arith.constant dense<0.000000e+00> : vector<17x16xf32>
    %108 = tpu.matmul %107, %94, %cst_44 {dimension_numbers = #tpu.dot_dimension_numbers<[1], [0], [0], [1], [0, 0, 1, 1], [], []>} : vector<17x17xbf16>, vector<17x16xbf16>, vector<17x16xf32> -> vector<17x16xf32>
    %109 = tpu.concatenate %74, %91, %108 in 1 : vector<17x16xf32>, vector<17x16xf32>, vector<17x16xf32> -> vector<17x48xf32>
    %c0_45 = arith.constant 0 : index
    %c0_46 = arith.constant 0 : index
    %110 = vector.load %arg12[%c0_45, %c0_46] : memref<48x48xbf16, #tpu.memory_space<vmem>>, vector<48x48xbf16>
    %111 = arith.truncf %109 : vector<17x48xf32> to vector<17x48xbf16>
    %cst_47 = arith.constant dense<0.000000e+00> : vector<17x48xf32>
    %112 = tpu.matmul %111, %110, %cst_47 {dimension_numbers = #tpu.dot_dimension_numbers<[1], [0], [0], [1], [0, 0, 1, 1], [], []>} : vector<17x48xbf16>, vector<48x48xbf16>, vector<17x48xf32> -> vector<17x48xf32>
    %113 = arith.addf %26, %112 : vector<17x48xf32>
    %c0_48 = arith.constant 0 : index
    %c0_49 = arith.constant 0 : index
    %114 = vector.load %arg13[%c0_48, %c0_49] : memref<1x48xf32, #tpu.memory_space<vmem>>, vector<1x48xf32>
    %115 = vector.broadcast %114 : vector<1x48xf32> to vector<17x48xf32>
    %116 = arith.addf %113, %115 : vector<17x48xf32>
    %c0_50 = arith.constant 0 : index
    %c0_51 = arith.constant 0 : index
    %117 = vector.load %arg14[%c0_50, %c0_51] : memref<1x48xf32, #tpu.memory_space<vmem>>, vector<1x48xf32>
    %c0_52 = arith.constant 0 : index
    %c0_53 = arith.constant 0 : index
    %118 = vector.load %arg15[%c0_52, %c0_53] : memref<1x48xf32, #tpu.memory_space<vmem>>, vector<1x48xf32>
    %cst_54 = arith.constant dense<0.000000e+00> : vector<17xf32>
    %119 = vector.multi_reduction <add>, %116, %cst_54 [1] : vector<17x48xf32> to vector<17xf32>
    %120 = vector.shape_cast %119 : vector<17xf32> to vector<17x1xf32>
    %cst_55 = arith.constant 4.800000e+01 : f32
    %121 = vector.broadcast %cst_55 : f32 to vector<17x1xf32>
    %122 = arith.divf %120, %121 : vector<17x1xf32>
    %123 = vector.broadcast %122 : vector<17x1xf32> to vector<17x48xf32>
    %124 = arith.subf %116, %123 : vector<17x48xf32>
    %125 = arith.mulf %124, %124 : vector<17x48xf32>
    %cst_56 = arith.constant dense<0.000000e+00> : vector<17xf32>
    %126 = vector.multi_reduction <add>, %125, %cst_56 [1] : vector<17x48xf32> to vector<17xf32>
    %127 = vector.shape_cast %126 : vector<17xf32> to vector<17x1xf32>
    %cst_57 = arith.constant 4.800000e+01 : f32
    %128 = vector.broadcast %cst_57 : f32 to vector<17x1xf32>
    %129 = arith.divf %127, %128 : vector<17x1xf32>
    %130 = vector.broadcast %122 : vector<17x1xf32> to vector<17x48xf32>
    %131 = arith.subf %116, %130 : vector<17x48xf32>
    %cst_58 = arith.constant 9.99999974E-6 : f32
    %132 = vector.broadcast %cst_58 : f32 to vector<17x1xf32>
    %133 = arith.addf %129, %132 : vector<17x1xf32>
    %134 = math.rsqrt %133 : vector<17x1xf32>
    %135 = vector.broadcast %134 : vector<17x1xf32> to vector<17x48xf32>
    %136 = arith.mulf %131, %135 : vector<17x48xf32>
    %137 = vector.broadcast %117 : vector<1x48xf32> to vector<17x48xf32>
    %138 = arith.mulf %136, %137 : vector<17x48xf32>
    %139 = vector.broadcast %118 : vector<1x48xf32> to vector<17x48xf32>
    %140 = arith.addf %138, %139 : vector<17x48xf32>
    %c0_59 = arith.constant 0 : index
    %c0_60 = arith.constant 0 : index
    %141 = vector.load %arg16[%c0_59, %c0_60] : memref<48x192xbf16, #tpu.memory_space<vmem>>, vector<48x192xbf16>
    %142 = arith.truncf %140 : vector<17x48xf32> to vector<17x48xbf16>
    %cst_61 = arith.constant dense<0.000000e+00> : vector<17x192xf32>
    %143 = tpu.matmul %142, %141, %cst_61 {dimension_numbers = #tpu.dot_dimension_numbers<[1], [0], [0], [1], [0, 0, 1, 1], [], []>} : vector<17x48xbf16>, vector<48x192xbf16>, vector<17x192xf32> -> vector<17x192xf32>
    %c0_62 = arith.constant 0 : index
    %c0_63 = arith.constant 0 : index
    %144 = vector.load %arg17[%c0_62, %c0_63] : memref<1x192xf32, #tpu.memory_space<vmem>>, vector<1x192xf32>
    %145 = vector.broadcast %144 : vector<1x192xf32> to vector<17x192xf32>
    %146 = arith.addf %143, %145 : vector<17x192xf32>
    %147 = arith.mulf %146, %146 : vector<17x192xf32>
    %148 = arith.mulf %146, %147 : vector<17x192xf32>
    %cst_64 = arith.constant 4.471500e-02 : f32
    %149 = vector.broadcast %cst_64 : f32 to vector<17x192xf32>
    %150 = arith.mulf %149, %148 : vector<17x192xf32>
    %151 = arith.addf %146, %150 : vector<17x192xf32>
    %cst_65 = arith.constant 0.797884583 : f32
    %152 = vector.broadcast %cst_65 : f32 to vector<17x192xf32>
    %153 = arith.mulf %152, %151 : vector<17x192xf32>
    %154 = math.tanh %153 : vector<17x192xf32>
    %cst_66 = arith.constant 1.000000e+00 : f32
    %155 = vector.broadcast %cst_66 : f32 to vector<17x192xf32>
    %156 = arith.addf %155, %154 : vector<17x192xf32>
    %cst_67 = arith.constant 5.000000e-01 : f32
    %157 = vector.broadcast %cst_67 : f32 to vector<17x192xf32>
    %158 = arith.mulf %157, %156 : vector<17x192xf32>
    %159 = arith.mulf %146, %158 : vector<17x192xf32>
    %c0_68 = arith.constant 0 : index
    %c0_69 = arith.constant 0 : index
    %160 = vector.load %arg18[%c0_68, %c0_69] : memref<192x48xbf16, #tpu.memory_space<vmem>>, vector<192x48xbf16>
    %161 = arith.truncf %159 : vector<17x192xf32> to vector<17x192xbf16>
    %cst_70 = arith.constant dense<0.000000e+00> : vector<17x48xf32>
    %162 = tpu.matmul %161, %160, %cst_70 {dimension_numbers = #tpu.dot_dimension_numbers<[1], [0], [0], [1], [0, 0, 1, 1], [], []>} : vector<17x192xbf16>, vector<192x48xbf16>, vector<17x48xf32> -> vector<17x48xf32>
    %163 = arith.addf %116, %162 : vector<17x48xf32>
    %c0_71 = arith.constant 0 : index
    %c0_72 = arith.constant 0 : index
    %164 = vector.load %arg19[%c0_71, %c0_72] : memref<1x48xf32, #tpu.memory_space<vmem>>, vector<1x48xf32>
    %165 = vector.broadcast %164 : vector<1x48xf32> to vector<17x48xf32>
    %166 = arith.addf %163, %165 : vector<17x48xf32>
    %c0_73 = arith.constant 0 : index
    %c0_74 = arith.constant 0 : index
    %167 = vector.load %arg20[%c0_73, %c0_74] : memref<1x48xf32, #tpu.memory_space<vmem>>, vector<1x48xf32>
    %c0_75 = arith.constant 0 : index
    %c0_76 = arith.constant 0 : index
    %168 = vector.load %arg21[%c0_75, %c0_76] : memref<1x48xf32, #tpu.memory_space<vmem>>, vector<1x48xf32>
    %cst_77 = arith.constant dense<0.000000e+00> : vector<17xf32>
    %169 = vector.multi_reduction <add>, %166, %cst_77 [1] : vector<17x48xf32> to vector<17xf32>
    %170 = vector.shape_cast %169 : vector<17xf32> to vector<17x1xf32>
    %cst_78 = arith.constant 4.800000e+01 : f32
    %171 = vector.broadcast %cst_78 : f32 to vector<17x1xf32>
    %172 = arith.divf %170, %171 : vector<17x1xf32>
    %173 = vector.broadcast %172 : vector<17x1xf32> to vector<17x48xf32>
    %174 = arith.subf %166, %173 : vector<17x48xf32>
    %175 = arith.mulf %174, %174 : vector<17x48xf32>
    %cst_79 = arith.constant dense<0.000000e+00> : vector<17xf32>
    %176 = vector.multi_reduction <add>, %175, %cst_79 [1] : vector<17x48xf32> to vector<17xf32>
    %177 = vector.shape_cast %176 : vector<17xf32> to vector<17x1xf32>
    %cst_80 = arith.constant 4.800000e+01 : f32
    %178 = vector.broadcast %cst_80 : f32 to vector<17x1xf32>
    %179 = arith.divf %177, %178 : vector<17x1xf32>
    %180 = vector.broadcast %172 : vector<17x1xf32> to vector<17x48xf32>
    %181 = arith.subf %166, %180 : vector<17x48xf32>
    %cst_81 = arith.constant 9.99999974E-6 : f32
    %182 = vector.broadcast %cst_81 : f32 to vector<17x1xf32>
    %183 = arith.addf %179, %182 : vector<17x1xf32>
    %184 = math.rsqrt %183 : vector<17x1xf32>
    %185 = vector.broadcast %184 : vector<17x1xf32> to vector<17x48xf32>
    %186 = arith.mulf %181, %185 : vector<17x48xf32>
    %187 = vector.broadcast %167 : vector<1x48xf32> to vector<17x48xf32>
    %188 = arith.mulf %186, %187 : vector<17x48xf32>
    %189 = vector.broadcast %168 : vector<1x48xf32> to vector<17x48xf32>
    %190 = arith.addf %188, %189 : vector<17x48xf32>
    %c0_82 = arith.constant 0 : index
    %c0_83 = arith.constant 0 : index
    %191 = vector.load %arg22[%c0_82, %c0_83] : memref<48x144xbf16, #tpu.memory_space<vmem>>, vector<48x144xbf16>
    %192 = arith.truncf %190 : vector<17x48xf32> to vector<17x48xbf16>
    %cst_84 = arith.constant dense<0.000000e+00> : vector<17x144xf32>
    %193 = tpu.matmul %192, %191, %cst_84 {dimension_numbers = #tpu.dot_dimension_numbers<[1], [0], [0], [1], [0, 0, 1, 1], [], []>} : vector<17x48xbf16>, vector<48x144xbf16>, vector<17x144xf32> -> vector<17x144xf32>
    %c0_85 = arith.constant 0 : index
    %c0_86 = arith.constant 0 : index
    %194 = vector.load %arg23[%c0_85, %c0_86] : memref<1x144xf32, #tpu.memory_space<vmem>>, vector<1x144xf32>
    %195 = vector.broadcast %194 : vector<1x144xf32> to vector<17x144xf32>
    %196 = arith.addf %193, %195 : vector<17x144xf32>
    %197 = arith.truncf %196 : vector<17x144xf32> to vector<17x144xbf16>
    %198 = vector.extract_strided_slice %197 {offsets = [0, 0], sizes = [17, 16], strides = [1, 1]} : vector<17x144xbf16> to vector<17x16xbf16>
    %199 = vector.extract_strided_slice %197 {offsets = [0, 48], sizes = [17, 16], strides = [1, 1]} : vector<17x144xbf16> to vector<17x16xbf16>
    %200 = vector.extract_strided_slice %197 {offsets = [0, 96], sizes = [17, 16], strides = [1, 1]} : vector<17x144xbf16> to vector<17x16xbf16>
    "tpu.trace_start"() <{level = 10 : i32, message = "qd,kd->qk"}> : () -> ()
    %cst_87 = arith.constant dense<0.000000e+00> : vector<17x17xf32>
    %201 = tpu.matmul %198, %199, %cst_87 {dimension_numbers = #tpu.dot_dimension_numbers<[1], [1], [0], [0], [0, 0, 1, 0], [], []>} : vector<17x16xbf16>, vector<17x16xbf16>, vector<17x17xf32> -> vector<17x17xf32>
    "tpu.trace_stop"() : () -> ()
    %cst_88 = arith.constant 2.500000e-01 : f32
    %202 = vector.broadcast %cst_88 : f32 to vector<17x17xf32>
    %203 = arith.mulf %201, %202 : vector<17x17xf32>
    %cst_89 = arith.constant dense<0xFF800000> : vector<17xf32>
    %204 = vector.multi_reduction <maximumf>, %203, %cst_89 [1] : vector<17x17xf32> to vector<17xf32>
    %205 = vector.shape_cast %204 : vector<17xf32> to vector<17x1xf32>
    %206 = vector.broadcast %205 : vector<17x1xf32> to vector<17x17xf32>
    %207 = arith.subf %203, %206 : vector<17x17xf32>
    %208 = math.exp %207 : vector<17x17xf32>
    %cst_90 = arith.constant dense<0.000000e+00> : vector<17xf32>
    %209 = vector.multi_reduction <add>, %208, %cst_90 [1] : vector<17x17xf32> to vector<17xf32>
    %210 = vector.shape_cast %209 : vector<17xf32> to vector<17x1xf32>
    %211 = vector.broadcast %210 : vector<17x1xf32> to vector<17x17xf32>
    %212 = arith.divf %208, %211 : vector<17x17xf32>
    %213 = arith.truncf %212 : vector<17x17xf32> to vector<17x17xbf16>
    %cst_91 = arith.constant dense<0.000000e+00> : vector<17x16xf32>
    %214 = tpu.matmul %213, %200, %cst_91 {dimension_numbers = #tpu.dot_dimension_numbers<[1], [0], [0], [1], [0, 0, 1, 1], [], []>} : vector<17x17xbf16>, vector<17x16xbf16>, vector<17x16xf32> -> vector<17x16xf32>
    %215 = vector.extract_strided_slice %197 {offsets = [0, 16], sizes = [17, 16], strides = [1, 1]} : vector<17x144xbf16> to vector<17x16xbf16>
    %216 = vector.extract_strided_slice %197 {offsets = [0, 64], sizes = [17, 16], strides = [1, 1]} : vector<17x144xbf16> to vector<17x16xbf16>
    %217 = vector.extract_strided_slice %197 {offsets = [0, 112], sizes = [17, 16], strides = [1, 1]} : vector<17x144xbf16> to vector<17x16xbf16>
    "tpu.trace_start"() <{level = 10 : i32, message = "qd,kd->qk"}> : () -> ()
    %cst_92 = arith.constant dense<0.000000e+00> : vector<17x17xf32>
    %218 = tpu.matmul %215, %216, %cst_92 {dimension_numbers = #tpu.dot_dimension_numbers<[1], [1], [0], [0], [0, 0, 1, 0], [], []>} : vector<17x16xbf16>, vector<17x16xbf16>, vector<17x17xf32> -> vector<17x17xf32>
    "tpu.trace_stop"() : () -> ()
    %cst_93 = arith.constant 2.500000e-01 : f32
    %219 = vector.broadcast %cst_93 : f32 to vector<17x17xf32>
    %220 = arith.mulf %218, %219 : vector<17x17xf32>
    %cst_94 = arith.constant dense<0xFF800000> : vector<17xf32>
    %221 = vector.multi_reduction <maximumf>, %220, %cst_94 [1] : vector<17x17xf32> to vector<17xf32>
    %222 = vector.shape_cast %221 : vector<17xf32> to vector<17x1xf32>
    %223 = vector.broadcast %222 : vector<17x1xf32> to vector<17x17xf32>
    %224 = arith.subf %220, %223 : vector<17x17xf32>
    %225 = math.exp %224 : vector<17x17xf32>
    %cst_95 = arith.constant dense<0.000000e+00> : vector<17xf32>
    %226 = vector.multi_reduction <add>, %225, %cst_95 [1] : vector<17x17xf32> to vector<17xf32>
    %227 = vector.shape_cast %226 : vector<17xf32> to vector<17x1xf32>
    %228 = vector.broadcast %227 : vector<17x1xf32> to vector<17x17xf32>
    %229 = arith.divf %225, %228 : vector<17x17xf32>
    %230 = arith.truncf %229 : vector<17x17xf32> to vector<17x17xbf16>
    %cst_96 = arith.constant dense<0.000000e+00> : vector<17x16xf32>
    %231 = tpu.matmul %230, %217, %cst_96 {dimension_numbers = #tpu.dot_dimension_numbers<[1], [0], [0], [1], [0, 0, 1, 1], [], []>} : vector<17x17xbf16>, vector<17x16xbf16>, vector<17x16xf32> -> vector<17x16xf32>
    %232 = vector.extract_strided_slice %197 {offsets = [0, 32], sizes = [17, 16], strides = [1, 1]} : vector<17x144xbf16> to vector<17x16xbf16>
    %233 = vector.extract_strided_slice %197 {offsets = [0, 80], sizes = [17, 16], strides = [1, 1]} : vector<17x144xbf16> to vector<17x16xbf16>
    %234 = vector.extract_strided_slice %197 {offsets = [0, 128], sizes = [17, 16], strides = [1, 1]} : vector<17x144xbf16> to vector<17x16xbf16>
    "tpu.trace_start"() <{level = 10 : i32, message = "qd,kd->qk"}> : () -> ()
    %cst_97 = arith.constant dense<0.000000e+00> : vector<17x17xf32>
    %235 = tpu.matmul %232, %233, %cst_97 {dimension_numbers = #tpu.dot_dimension_numbers<[1], [1], [0], [0], [0, 0, 1, 0], [], []>} : vector<17x16xbf16>, vector<17x16xbf16>, vector<17x17xf32> -> vector<17x17xf32>
    "tpu.trace_stop"() : () -> ()
    %cst_98 = arith.constant 2.500000e-01 : f32
    %236 = vector.broadcast %cst_98 : f32 to vector<17x17xf32>
    %237 = arith.mulf %235, %236 : vector<17x17xf32>
    %cst_99 = arith.constant dense<0xFF800000> : vector<17xf32>
    %238 = vector.multi_reduction <maximumf>, %237, %cst_99 [1] : vector<17x17xf32> to vector<17xf32>
    %239 = vector.shape_cast %238 : vector<17xf32> to vector<17x1xf32>
    %240 = vector.broadcast %239 : vector<17x1xf32> to vector<17x17xf32>
    %241 = arith.subf %237, %240 : vector<17x17xf32>
    %242 = math.exp %241 : vector<17x17xf32>
    %cst_100 = arith.constant dense<0.000000e+00> : vector<17xf32>
    %243 = vector.multi_reduction <add>, %242, %cst_100 [1] : vector<17x17xf32> to vector<17xf32>
    %244 = vector.shape_cast %243 : vector<17xf32> to vector<17x1xf32>
    %245 = vector.broadcast %244 : vector<17x1xf32> to vector<17x17xf32>
    %246 = arith.divf %242, %245 : vector<17x17xf32>
    %247 = arith.truncf %246 : vector<17x17xf32> to vector<17x17xbf16>
    %cst_101 = arith.constant dense<0.000000e+00> : vector<17x16xf32>
    %248 = tpu.matmul %247, %234, %cst_101 {dimension_numbers = #tpu.dot_dimension_numbers<[1], [0], [0], [1], [0, 0, 1, 1], [], []>} : vector<17x17xbf16>, vector<17x16xbf16>, vector<17x16xf32> -> vector<17x16xf32>
    %249 = tpu.concatenate %214, %231, %248 in 1 : vector<17x16xf32>, vector<17x16xf32>, vector<17x16xf32> -> vector<17x48xf32>
    %c0_102 = arith.constant 0 : index
    %c0_103 = arith.constant 0 : index
    %250 = vector.load %arg24[%c0_102, %c0_103] : memref<48x48xbf16, #tpu.memory_space<vmem>>, vector<48x48xbf16>
    %251 = arith.truncf %249 : vector<17x48xf32> to vector<17x48xbf16>
    %cst_104 = arith.constant dense<0.000000e+00> : vector<17x48xf32>
    %252 = tpu.matmul %251, %250, %cst_104 {dimension_numbers = #tpu.dot_dimension_numbers<[1], [0], [0], [1], [0, 0, 1, 1], [], []>} : vector<17x48xbf16>, vector<48x48xbf16>, vector<17x48xf32> -> vector<17x48xf32>
    %253 = arith.addf %166, %252 : vector<17x48xf32>
    %c0_105 = arith.constant 0 : index
    %c0_106 = arith.constant 0 : index
    %254 = vector.load %arg25[%c0_105, %c0_106] : memref<1x48xf32, #tpu.memory_space<vmem>>, vector<1x48xf32>
    %255 = vector.broadcast %254 : vector<1x48xf32> to vector<17x48xf32>
    %256 = arith.addf %253, %255 : vector<17x48xf32>
    %c0_107 = arith.constant 0 : index
    %c0_108 = arith.constant 0 : index
    %257 = vector.load %arg26[%c0_107, %c0_108] : memref<1x48xf32, #tpu.memory_space<vmem>>, vector<1x48xf32>
    %c0_109 = arith.constant 0 : index
    %c0_110 = arith.constant 0 : index
    %258 = vector.load %arg27[%c0_109, %c0_110] : memref<1x48xf32, #tpu.memory_space<vmem>>, vector<1x48xf32>
    %cst_111 = arith.constant dense<0.000000e+00> : vector<17xf32>
    %259 = vector.multi_reduction <add>, %256, %cst_111 [1] : vector<17x48xf32> to vector<17xf32>
    %260 = vector.shape_cast %259 : vector<17xf32> to vector<17x1xf32>
    %cst_112 = arith.constant 4.800000e+01 : f32
    %261 = vector.broadcast %cst_112 : f32 to vector<17x1xf32>
    %262 = arith.divf %260, %261 : vector<17x1xf32>
    %263 = vector.broadcast %262 : vector<17x1xf32> to vector<17x48xf32>
    %264 = arith.subf %256, %263 : vector<17x48xf32>
    %265 = arith.mulf %264, %264 : vector<17x48xf32>
    %cst_113 = arith.constant dense<0.000000e+00> : vector<17xf32>
    %266 = vector.multi_reduction <add>, %265, %cst_113 [1] : vector<17x48xf32> to vector<17xf32>
    %267 = vector.shape_cast %266 : vector<17xf32> to vector<17x1xf32>
    %cst_114 = arith.constant 4.800000e+01 : f32
    %268 = vector.broadcast %cst_114 : f32 to vector<17x1xf32>
    %269 = arith.divf %267, %268 : vector<17x1xf32>
    %270 = vector.broadcast %262 : vector<17x1xf32> to vector<17x48xf32>
    %271 = arith.subf %256, %270 : vector<17x48xf32>
    %cst_115 = arith.constant 9.99999974E-6 : f32
    %272 = vector.broadcast %cst_115 : f32 to vector<17x1xf32>
    %273 = arith.addf %269, %272 : vector<17x1xf32>
    %274 = math.rsqrt %273 : vector<17x1xf32>
    %275 = vector.broadcast %274 : vector<17x1xf32> to vector<17x48xf32>
    %276 = arith.mulf %271, %275 : vector<17x48xf32>
    %277 = vector.broadcast %257 : vector<1x48xf32> to vector<17x48xf32>
    %278 = arith.mulf %276, %277 : vector<17x48xf32>
    %279 = vector.broadcast %258 : vector<1x48xf32> to vector<17x48xf32>
    %280 = arith.addf %278, %279 : vector<17x48xf32>
    %c0_116 = arith.constant 0 : index
    %c0_117 = arith.constant 0 : index
    %281 = vector.load %arg28[%c0_116, %c0_117] : memref<48x192xbf16, #tpu.memory_space<vmem>>, vector<48x192xbf16>
    %282 = arith.truncf %280 : vector<17x48xf32> to vector<17x48xbf16>
    %cst_118 = arith.constant dense<0.000000e+00> : vector<17x192xf32>
    %283 = tpu.matmul %282, %281, %cst_118 {dimension_numbers = #tpu.dot_dimension_numbers<[1], [0], [0], [1], [0, 0, 1, 1], [], []>} : vector<17x48xbf16>, vector<48x192xbf16>, vector<17x192xf32> -> vector<17x192xf32>
    %c0_119 = arith.constant 0 : index
    %c0_120 = arith.constant 0 : index
    %284 = vector.load %arg29[%c0_119, %c0_120] : memref<1x192xf32, #tpu.memory_space<vmem>>, vector<1x192xf32>
    %285 = vector.broadcast %284 : vector<1x192xf32> to vector<17x192xf32>
    %286 = arith.addf %283, %285 : vector<17x192xf32>
    %287 = arith.mulf %286, %286 : vector<17x192xf32>
    %288 = arith.mulf %286, %287 : vector<17x192xf32>
    %cst_121 = arith.constant 4.471500e-02 : f32
    %289 = vector.broadcast %cst_121 : f32 to vector<17x192xf32>
    %290 = arith.mulf %289, %288 : vector<17x192xf32>
    %291 = arith.addf %286, %290 : vector<17x192xf32>
    %cst_122 = arith.constant 0.797884583 : f32
    %292 = vector.broadcast %cst_122 : f32 to vector<17x192xf32>
    %293 = arith.mulf %292, %291 : vector<17x192xf32>
    %294 = math.tanh %293 : vector<17x192xf32>
    %cst_123 = arith.constant 1.000000e+00 : f32
    %295 = vector.broadcast %cst_123 : f32 to vector<17x192xf32>
    %296 = arith.addf %295, %294 : vector<17x192xf32>
    %cst_124 = arith.constant 5.000000e-01 : f32
    %297 = vector.broadcast %cst_124 : f32 to vector<17x192xf32>
    %298 = arith.mulf %297, %296 : vector<17x192xf32>
    %299 = arith.mulf %286, %298 : vector<17x192xf32>
    %c0_125 = arith.constant 0 : index
    %c0_126 = arith.constant 0 : index
    %300 = vector.load %arg30[%c0_125, %c0_126] : memref<192x48xbf16, #tpu.memory_space<vmem>>, vector<192x48xbf16>
    %301 = arith.truncf %299 : vector<17x192xf32> to vector<17x192xbf16>
    %cst_127 = arith.constant dense<0.000000e+00> : vector<17x48xf32>
    %302 = tpu.matmul %301, %300, %cst_127 {dimension_numbers = #tpu.dot_dimension_numbers<[1], [0], [0], [1], [0, 0, 1, 1], [], []>} : vector<17x192xbf16>, vector<192x48xbf16>, vector<17x48xf32> -> vector<17x48xf32>
    %303 = arith.addf %256, %302 : vector<17x48xf32>
    %c0_128 = arith.constant 0 : index
    %c0_129 = arith.constant 0 : index
    %304 = vector.load %arg31[%c0_128, %c0_129] : memref<1x48xf32, #tpu.memory_space<vmem>>, vector<1x48xf32>
    %305 = vector.broadcast %304 : vector<1x48xf32> to vector<17x48xf32>
    %306 = arith.addf %303, %305 : vector<17x48xf32>
    %c0_130 = arith.constant 0 : index
    %c0_131 = arith.constant 0 : index
    %307 = vector.load %arg32[%c0_130, %c0_131] : memref<1x48xf32, #tpu.memory_space<vmem>>, vector<1x48xf32>
    %c0_132 = arith.constant 0 : index
    %c0_133 = arith.constant 0 : index
    %308 = vector.load %arg33[%c0_132, %c0_133] : memref<1x48xf32, #tpu.memory_space<vmem>>, vector<1x48xf32>
    %cst_134 = arith.constant dense<0.000000e+00> : vector<17xf32>
    %309 = vector.multi_reduction <add>, %306, %cst_134 [1] : vector<17x48xf32> to vector<17xf32>
    %310 = vector.shape_cast %309 : vector<17xf32> to vector<17x1xf32>
    %cst_135 = arith.constant 4.800000e+01 : f32
    %311 = vector.broadcast %cst_135 : f32 to vector<17x1xf32>
    %312 = arith.divf %310, %311 : vector<17x1xf32>
    %313 = vector.broadcast %312 : vector<17x1xf32> to vector<17x48xf32>
    %314 = arith.subf %306, %313 : vector<17x48xf32>
    %315 = arith.mulf %314, %314 : vector<17x48xf32>
    %cst_136 = arith.constant dense<0.000000e+00> : vector<17xf32>
    %316 = vector.multi_reduction <add>, %315, %cst_136 [1] : vector<17x48xf32> to vector<17xf32>
    %317 = vector.shape_cast %316 : vector<17xf32> to vector<17x1xf32>
    %cst_137 = arith.constant 4.800000e+01 : f32
    %318 = vector.broadcast %cst_137 : f32 to vector<17x1xf32>
    %319 = arith.divf %317, %318 : vector<17x1xf32>
    %320 = vector.broadcast %312 : vector<17x1xf32> to vector<17x48xf32>
    %321 = arith.subf %306, %320 : vector<17x48xf32>
    %cst_138 = arith.constant 9.99999974E-6 : f32
    %322 = vector.broadcast %cst_138 : f32 to vector<17x1xf32>
    %323 = arith.addf %319, %322 : vector<17x1xf32>
    %324 = math.rsqrt %323 : vector<17x1xf32>
    %325 = vector.broadcast %324 : vector<17x1xf32> to vector<17x48xf32>
    %326 = arith.mulf %321, %325 : vector<17x48xf32>
    %327 = vector.broadcast %307 : vector<1x48xf32> to vector<17x48xf32>
    %328 = arith.mulf %326, %327 : vector<17x48xf32>
    %329 = vector.broadcast %308 : vector<1x48xf32> to vector<17x48xf32>
    %330 = arith.addf %328, %329 : vector<17x48xf32>
    %c0_139 = arith.constant 0 : index
    %c0_140 = arith.constant 0 : index
    %c0_141 = arith.constant 0 : index
    %c0_142 = arith.constant 0 : index
    %331 = vector.load %arg3[%c0_139, %c0_140, %c0_141, %c0_142] : memref<1x1x65x1xi32, #tpu.memory_space<vmem>>, vector<1x1x65x1xi32>
    %332 = vector.shape_cast %331 : vector<1x1x65x1xi32> to vector<65x1xi32>
    %333 = tpu.iota {dimensions = array<i32: 1>} : vector<65x17xi32>
    %334 = vector.broadcast %332 : vector<65x1xi32> to vector<65x17xi32>
    %335 = arith.cmpi eq, %334, %333 : vector<65x17xi32>
    %336 = arith.extui %335 : vector<65x17xi1> to vector<65x17xi32>
    %337 = arith.sitofp %336 : vector<65x17xi32> to vector<65x17xf32>
    %cst_143 = arith.constant dense<0.000000e+00> : vector<65x48xf32>
    %338 = tpu.matmul %337, %330, %cst_143 {dimension_numbers = #tpu.dot_dimension_numbers<[1], [0], [0], [1], [0, 0, 1, 1], [], []>} : vector<65x17xf32>, vector<17x48xf32>, vector<65x48xf32> -> vector<65x48xf32>
    %c17_i32 = arith.constant 17 : i32
    %339 = vector.broadcast %c17_i32 : i32 to vector<65x1xi32>
    %340 = arith.cmpi sge, %332, %339 : vector<65x1xi32>
    %341 = arith.extui %340 : vector<65x1xi1> to vector<65x1xi32>
    %342 = arith.sitofp %341 : vector<65x1xi32> to vector<65x1xf32>
    %c0_144 = arith.constant 0 : index
    %c0_145 = arith.constant 0 : index
    %343 = vector.load %arg34[%c0_144, %c0_145] : memref<1x48xf32, #tpu.memory_space<vmem>>, vector<1x48xf32>
    %344 = vector.broadcast %342 : vector<65x1xf32> to vector<65x48xf32>
    %345 = vector.broadcast %343 : vector<1x48xf32> to vector<65x48xf32>
    %346 = arith.mulf %344, %345 : vector<65x48xf32>
    %347 = arith.addf %338, %346 : vector<65x48xf32>
    %c0_146 = arith.constant 0 : index
    %c0_147 = arith.constant 0 : index
    %348 = vector.load %arg35[%c0_146, %c0_147] : memref<65x48xf32, #tpu.memory_space<vmem>>, vector<65x48xf32>
    %349 = arith.addf %347, %348 : vector<65x48xf32>
    %c0_148 = arith.constant 0 : index
    %c0_149 = arith.constant 0 : index
    %350 = vector.load %arg36[%c0_148, %c0_149] : memref<1x48xf32, #tpu.memory_space<vmem>>, vector<1x48xf32>
    %c0_150 = arith.constant 0 : index
    %c0_151 = arith.constant 0 : index
    %351 = vector.load %arg37[%c0_150, %c0_151] : memref<1x48xf32, #tpu.memory_space<vmem>>, vector<1x48xf32>
    %cst_152 = arith.constant dense<0.000000e+00> : vector<65xf32>
    %352 = vector.multi_reduction <add>, %349, %cst_152 [1] : vector<65x48xf32> to vector<65xf32>
    %353 = vector.shape_cast %352 : vector<65xf32> to vector<65x1xf32>
    %cst_153 = arith.constant 4.800000e+01 : f32
    %354 = vector.broadcast %cst_153 : f32 to vector<65x1xf32>
    %355 = arith.divf %353, %354 : vector<65x1xf32>
    %356 = vector.broadcast %355 : vector<65x1xf32> to vector<65x48xf32>
    %357 = arith.subf %349, %356 : vector<65x48xf32>
    %358 = arith.mulf %357, %357 : vector<65x48xf32>
    %cst_154 = arith.constant dense<0.000000e+00> : vector<65xf32>
    %359 = vector.multi_reduction <add>, %358, %cst_154 [1] : vector<65x48xf32> to vector<65xf32>
    %360 = vector.shape_cast %359 : vector<65xf32> to vector<65x1xf32>
    %cst_155 = arith.constant 4.800000e+01 : f32
    %361 = vector.broadcast %cst_155 : f32 to vector<65x1xf32>
    %362 = arith.divf %360, %361 : vector<65x1xf32>
    %363 = vector.broadcast %355 : vector<65x1xf32> to vector<65x48xf32>
    %364 = arith.subf %349, %363 : vector<65x48xf32>
    %cst_156 = arith.constant 9.99999974E-6 : f32
    %365 = vector.broadcast %cst_156 : f32 to vector<65x1xf32>
    %366 = arith.addf %362, %365 : vector<65x1xf32>
    %367 = math.rsqrt %366 : vector<65x1xf32>
    %368 = vector.broadcast %367 : vector<65x1xf32> to vector<65x48xf32>
    %369 = arith.mulf %364, %368 : vector<65x48xf32>
    %370 = vector.broadcast %350 : vector<1x48xf32> to vector<65x48xf32>
    %371 = arith.mulf %369, %370 : vector<65x48xf32>
    %372 = vector.broadcast %351 : vector<1x48xf32> to vector<65x48xf32>
    %373 = arith.addf %371, %372 : vector<65x48xf32>
    %c0_157 = arith.constant 0 : index
    %c0_158 = arith.constant 0 : index
    %374 = vector.load %arg38[%c0_157, %c0_158] : memref<48x144xbf16, #tpu.memory_space<vmem>>, vector<48x144xbf16>
    %375 = arith.truncf %373 : vector<65x48xf32> to vector<65x48xbf16>
    %cst_159 = arith.constant dense<0.000000e+00> : vector<65x144xf32>
    %376 = tpu.matmul %375, %374, %cst_159 {dimension_numbers = #tpu.dot_dimension_numbers<[1], [0], [0], [1], [0, 0, 1, 1], [], []>} : vector<65x48xbf16>, vector<48x144xbf16>, vector<65x144xf32> -> vector<65x144xf32>
    %c0_160 = arith.constant 0 : index
    %c0_161 = arith.constant 0 : index
    %377 = vector.load %arg39[%c0_160, %c0_161] : memref<1x144xf32, #tpu.memory_space<vmem>>, vector<1x144xf32>
    %378 = vector.broadcast %377 : vector<1x144xf32> to vector<65x144xf32>
    %379 = arith.addf %376, %378 : vector<65x144xf32>
    %380 = arith.truncf %379 : vector<65x144xf32> to vector<65x144xbf16>
    %381 = vector.extract_strided_slice %380 {offsets = [0, 0], sizes = [65, 16], strides = [1, 1]} : vector<65x144xbf16> to vector<65x16xbf16>
    %382 = vector.extract_strided_slice %380 {offsets = [0, 48], sizes = [65, 16], strides = [1, 1]} : vector<65x144xbf16> to vector<65x16xbf16>
    %383 = vector.extract_strided_slice %380 {offsets = [0, 96], sizes = [65, 16], strides = [1, 1]} : vector<65x144xbf16> to vector<65x16xbf16>
    "tpu.trace_start"() <{level = 10 : i32, message = "qd,kd->qk"}> : () -> ()
    %cst_162 = arith.constant dense<0.000000e+00> : vector<65x65xf32>
    %384 = tpu.matmul %381, %382, %cst_162 {dimension_numbers = #tpu.dot_dimension_numbers<[1], [1], [0], [0], [0, 0, 1, 0], [], []>} : vector<65x16xbf16>, vector<65x16xbf16>, vector<65x65xf32> -> vector<65x65xf32>
    "tpu.trace_stop"() : () -> ()
    %cst_163 = arith.constant 2.500000e-01 : f32
    %385 = vector.broadcast %cst_163 : f32 to vector<65x65xf32>
    %386 = arith.mulf %384, %385 : vector<65x65xf32>
    %cst_164 = arith.constant dense<0xFF800000> : vector<65xf32>
    %387 = vector.multi_reduction <maximumf>, %386, %cst_164 [1] : vector<65x65xf32> to vector<65xf32>
    %388 = vector.shape_cast %387 : vector<65xf32> to vector<65x1xf32>
    %389 = vector.broadcast %388 : vector<65x1xf32> to vector<65x65xf32>
    %390 = arith.subf %386, %389 : vector<65x65xf32>
    %391 = math.exp %390 : vector<65x65xf32>
    %cst_165 = arith.constant dense<0.000000e+00> : vector<65xf32>
    %392 = vector.multi_reduction <add>, %391, %cst_165 [1] : vector<65x65xf32> to vector<65xf32>
    %393 = vector.shape_cast %392 : vector<65xf32> to vector<65x1xf32>
    %394 = vector.broadcast %393 : vector<65x1xf32> to vector<65x65xf32>
    %395 = arith.divf %391, %394 : vector<65x65xf32>
    %396 = arith.truncf %395 : vector<65x65xf32> to vector<65x65xbf16>
    %cst_166 = arith.constant dense<0.000000e+00> : vector<65x16xf32>
    %397 = tpu.matmul %396, %383, %cst_166 {dimension_numbers = #tpu.dot_dimension_numbers<[1], [0], [0], [1], [0, 0, 1, 1], [], []>} : vector<65x65xbf16>, vector<65x16xbf16>, vector<65x16xf32> -> vector<65x16xf32>
    %398 = vector.extract_strided_slice %380 {offsets = [0, 16], sizes = [65, 16], strides = [1, 1]} : vector<65x144xbf16> to vector<65x16xbf16>
    %399 = vector.extract_strided_slice %380 {offsets = [0, 64], sizes = [65, 16], strides = [1, 1]} : vector<65x144xbf16> to vector<65x16xbf16>
    %400 = vector.extract_strided_slice %380 {offsets = [0, 112], sizes = [65, 16], strides = [1, 1]} : vector<65x144xbf16> to vector<65x16xbf16>
    "tpu.trace_start"() <{level = 10 : i32, message = "qd,kd->qk"}> : () -> ()
    %cst_167 = arith.constant dense<0.000000e+00> : vector<65x65xf32>
    %401 = tpu.matmul %398, %399, %cst_167 {dimension_numbers = #tpu.dot_dimension_numbers<[1], [1], [0], [0], [0, 0, 1, 0], [], []>} : vector<65x16xbf16>, vector<65x16xbf16>, vector<65x65xf32> -> vector<65x65xf32>
    "tpu.trace_stop"() : () -> ()
    %cst_168 = arith.constant 2.500000e-01 : f32
    %402 = vector.broadcast %cst_168 : f32 to vector<65x65xf32>
    %403 = arith.mulf %401, %402 : vector<65x65xf32>
    %cst_169 = arith.constant dense<0xFF800000> : vector<65xf32>
    %404 = vector.multi_reduction <maximumf>, %403, %cst_169 [1] : vector<65x65xf32> to vector<65xf32>
    %405 = vector.shape_cast %404 : vector<65xf32> to vector<65x1xf32>
    %406 = vector.broadcast %405 : vector<65x1xf32> to vector<65x65xf32>
    %407 = arith.subf %403, %406 : vector<65x65xf32>
    %408 = math.exp %407 : vector<65x65xf32>
    %cst_170 = arith.constant dense<0.000000e+00> : vector<65xf32>
    %409 = vector.multi_reduction <add>, %408, %cst_170 [1] : vector<65x65xf32> to vector<65xf32>
    %410 = vector.shape_cast %409 : vector<65xf32> to vector<65x1xf32>
    %411 = vector.broadcast %410 : vector<65x1xf32> to vector<65x65xf32>
    %412 = arith.divf %408, %411 : vector<65x65xf32>
    %413 = arith.truncf %412 : vector<65x65xf32> to vector<65x65xbf16>
    %cst_171 = arith.constant dense<0.000000e+00> : vector<65x16xf32>
    %414 = tpu.matmul %413, %400, %cst_171 {dimension_numbers = #tpu.dot_dimension_numbers<[1], [0], [0], [1], [0, 0, 1, 1], [], []>} : vector<65x65xbf16>, vector<65x16xbf16>, vector<65x16xf32> -> vector<65x16xf32>
    %415 = vector.extract_strided_slice %380 {offsets = [0, 32], sizes = [65, 16], strides = [1, 1]} : vector<65x144xbf16> to vector<65x16xbf16>
    %416 = vector.extract_strided_slice %380 {offsets = [0, 80], sizes = [65, 16], strides = [1, 1]} : vector<65x144xbf16> to vector<65x16xbf16>
    %417 = vector.extract_strided_slice %380 {offsets = [0, 128], sizes = [65, 16], strides = [1, 1]} : vector<65x144xbf16> to vector<65x16xbf16>
    "tpu.trace_start"() <{level = 10 : i32, message = "qd,kd->qk"}> : () -> ()
    %cst_172 = arith.constant dense<0.000000e+00> : vector<65x65xf32>
    %418 = tpu.matmul %415, %416, %cst_172 {dimension_numbers = #tpu.dot_dimension_numbers<[1], [1], [0], [0], [0, 0, 1, 0], [], []>} : vector<65x16xbf16>, vector<65x16xbf16>, vector<65x65xf32> -> vector<65x65xf32>
    "tpu.trace_stop"() : () -> ()
    %cst_173 = arith.constant 2.500000e-01 : f32
    %419 = vector.broadcast %cst_173 : f32 to vector<65x65xf32>
    %420 = arith.mulf %418, %419 : vector<65x65xf32>
    %cst_174 = arith.constant dense<0xFF800000> : vector<65xf32>
    %421 = vector.multi_reduction <maximumf>, %420, %cst_174 [1] : vector<65x65xf32> to vector<65xf32>
    %422 = vector.shape_cast %421 : vector<65xf32> to vector<65x1xf32>
    %423 = vector.broadcast %422 : vector<65x1xf32> to vector<65x65xf32>
    %424 = arith.subf %420, %423 : vector<65x65xf32>
    %425 = math.exp %424 : vector<65x65xf32>
    %cst_175 = arith.constant dense<0.000000e+00> : vector<65xf32>
    %426 = vector.multi_reduction <add>, %425, %cst_175 [1] : vector<65x65xf32> to vector<65xf32>
    %427 = vector.shape_cast %426 : vector<65xf32> to vector<65x1xf32>
    %428 = vector.broadcast %427 : vector<65x1xf32> to vector<65x65xf32>
    %429 = arith.divf %425, %428 : vector<65x65xf32>
    %430 = arith.truncf %429 : vector<65x65xf32> to vector<65x65xbf16>
    %cst_176 = arith.constant dense<0.000000e+00> : vector<65x16xf32>
    %431 = tpu.matmul %430, %417, %cst_176 {dimension_numbers = #tpu.dot_dimension_numbers<[1], [0], [0], [1], [0, 0, 1, 1], [], []>} : vector<65x65xbf16>, vector<65x16xbf16>, vector<65x16xf32> -> vector<65x16xf32>
    %432 = tpu.concatenate %397, %414, %431 in 1 : vector<65x16xf32>, vector<65x16xf32>, vector<65x16xf32> -> vector<65x48xf32>
    %c0_177 = arith.constant 0 : index
    %c0_178 = arith.constant 0 : index
    %433 = vector.load %arg40[%c0_177, %c0_178] : memref<48x48xbf16, #tpu.memory_space<vmem>>, vector<48x48xbf16>
    %434 = arith.truncf %432 : vector<65x48xf32> to vector<65x48xbf16>
    %cst_179 = arith.constant dense<0.000000e+00> : vector<65x48xf32>
    %435 = tpu.matmul %434, %433, %cst_179 {dimension_numbers = #tpu.dot_dimension_numbers<[1], [0], [0], [1], [0, 0, 1, 1], [], []>} : vector<65x48xbf16>, vector<48x48xbf16>, vector<65x48xf32> -> vector<65x48xf32>
    %436 = arith.addf %349, %435 : vector<65x48xf32>
    %c0_180 = arith.constant 0 : index
    %c0_181 = arith.constant 0 : index
    %437 = vector.load %arg41[%c0_180, %c0_181] : memref<1x48xf32, #tpu.memory_space<vmem>>, vector<1x48xf32>
    %438 = vector.broadcast %437 : vector<1x48xf32> to vector<65x48xf32>
    %439 = arith.addf %436, %438 : vector<65x48xf32>
    %c0_182 = arith.constant 0 : index
    %c0_183 = arith.constant 0 : index
    %440 = vector.load %arg42[%c0_182, %c0_183] : memref<1x48xf32, #tpu.memory_space<vmem>>, vector<1x48xf32>
    %c0_184 = arith.constant 0 : index
    %c0_185 = arith.constant 0 : index
    %441 = vector.load %arg43[%c0_184, %c0_185] : memref<1x48xf32, #tpu.memory_space<vmem>>, vector<1x48xf32>
    %cst_186 = arith.constant dense<0.000000e+00> : vector<65xf32>
    %442 = vector.multi_reduction <add>, %439, %cst_186 [1] : vector<65x48xf32> to vector<65xf32>
    %443 = vector.shape_cast %442 : vector<65xf32> to vector<65x1xf32>
    %cst_187 = arith.constant 4.800000e+01 : f32
    %444 = vector.broadcast %cst_187 : f32 to vector<65x1xf32>
    %445 = arith.divf %443, %444 : vector<65x1xf32>
    %446 = vector.broadcast %445 : vector<65x1xf32> to vector<65x48xf32>
    %447 = arith.subf %439, %446 : vector<65x48xf32>
    %448 = arith.mulf %447, %447 : vector<65x48xf32>
    %cst_188 = arith.constant dense<0.000000e+00> : vector<65xf32>
    %449 = vector.multi_reduction <add>, %448, %cst_188 [1] : vector<65x48xf32> to vector<65xf32>
    %450 = vector.shape_cast %449 : vector<65xf32> to vector<65x1xf32>
    %cst_189 = arith.constant 4.800000e+01 : f32
    %451 = vector.broadcast %cst_189 : f32 to vector<65x1xf32>
    %452 = arith.divf %450, %451 : vector<65x1xf32>
    %453 = vector.broadcast %445 : vector<65x1xf32> to vector<65x48xf32>
    %454 = arith.subf %439, %453 : vector<65x48xf32>
    %cst_190 = arith.constant 9.99999974E-6 : f32
    %455 = vector.broadcast %cst_190 : f32 to vector<65x1xf32>
    %456 = arith.addf %452, %455 : vector<65x1xf32>
    %457 = math.rsqrt %456 : vector<65x1xf32>
    %458 = vector.broadcast %457 : vector<65x1xf32> to vector<65x48xf32>
    %459 = arith.mulf %454, %458 : vector<65x48xf32>
    %460 = vector.broadcast %440 : vector<1x48xf32> to vector<65x48xf32>
    %461 = arith.mulf %459, %460 : vector<65x48xf32>
    %462 = vector.broadcast %441 : vector<1x48xf32> to vector<65x48xf32>
    %463 = arith.addf %461, %462 : vector<65x48xf32>
    %c0_191 = arith.constant 0 : index
    %c0_192 = arith.constant 0 : index
    %464 = vector.load %arg44[%c0_191, %c0_192] : memref<48x192xbf16, #tpu.memory_space<vmem>>, vector<48x192xbf16>
    %465 = arith.truncf %463 : vector<65x48xf32> to vector<65x48xbf16>
    %cst_193 = arith.constant dense<0.000000e+00> : vector<65x192xf32>
    %466 = tpu.matmul %465, %464, %cst_193 {dimension_numbers = #tpu.dot_dimension_numbers<[1], [0], [0], [1], [0, 0, 1, 1], [], []>} : vector<65x48xbf16>, vector<48x192xbf16>, vector<65x192xf32> -> vector<65x192xf32>
    %c0_194 = arith.constant 0 : index
    %c0_195 = arith.constant 0 : index
    %467 = vector.load %arg45[%c0_194, %c0_195] : memref<1x192xf32, #tpu.memory_space<vmem>>, vector<1x192xf32>
    %468 = vector.broadcast %467 : vector<1x192xf32> to vector<65x192xf32>
    %469 = arith.addf %466, %468 : vector<65x192xf32>
    %470 = arith.mulf %469, %469 : vector<65x192xf32>
    %471 = arith.mulf %469, %470 : vector<65x192xf32>
    %cst_196 = arith.constant 4.471500e-02 : f32
    %472 = vector.broadcast %cst_196 : f32 to vector<65x192xf32>
    %473 = arith.mulf %472, %471 : vector<65x192xf32>
    %474 = arith.addf %469, %473 : vector<65x192xf32>
    %cst_197 = arith.constant 0.797884583 : f32
    %475 = vector.broadcast %cst_197 : f32 to vector<65x192xf32>
    %476 = arith.mulf %475, %474 : vector<65x192xf32>
    %477 = math.tanh %476 : vector<65x192xf32>
    %cst_198 = arith.constant 1.000000e+00 : f32
    %478 = vector.broadcast %cst_198 : f32 to vector<65x192xf32>
    %479 = arith.addf %478, %477 : vector<65x192xf32>
    %cst_199 = arith.constant 5.000000e-01 : f32
    %480 = vector.broadcast %cst_199 : f32 to vector<65x192xf32>
    %481 = arith.mulf %480, %479 : vector<65x192xf32>
    %482 = arith.mulf %469, %481 : vector<65x192xf32>
    %c0_200 = arith.constant 0 : index
    %c0_201 = arith.constant 0 : index
    %483 = vector.load %arg46[%c0_200, %c0_201] : memref<192x48xbf16, #tpu.memory_space<vmem>>, vector<192x48xbf16>
    %484 = arith.truncf %482 : vector<65x192xf32> to vector<65x192xbf16>
    %cst_202 = arith.constant dense<0.000000e+00> : vector<65x48xf32>
    %485 = tpu.matmul %484, %483, %cst_202 {dimension_numbers = #tpu.dot_dimension_numbers<[1], [0], [0], [1], [0, 0, 1, 1], [], []>} : vector<65x192xbf16>, vector<192x48xbf16>, vector<65x48xf32> -> vector<65x48xf32>
    %486 = arith.addf %439, %485 : vector<65x48xf32>
    %c0_203 = arith.constant 0 : index
    %c0_204 = arith.constant 0 : index
    %487 = vector.load %arg47[%c0_203, %c0_204] : memref<1x48xf32, #tpu.memory_space<vmem>>, vector<1x48xf32>
    %488 = vector.broadcast %487 : vector<1x48xf32> to vector<65x48xf32>
    %489 = arith.addf %486, %488 : vector<65x48xf32>
    %c0_205 = arith.constant 0 : index
    %c0_206 = arith.constant 0 : index
    %490 = vector.load %arg48[%c0_205, %c0_206] : memref<48x12xbf16, #tpu.memory_space<vmem>>, vector<48x12xbf16>
    %491 = arith.truncf %489 : vector<65x48xf32> to vector<65x48xbf16>
    %cst_207 = arith.constant dense<0.000000e+00> : vector<65x12xf32>
    %492 = tpu.matmul %491, %490, %cst_207 {dimension_numbers = #tpu.dot_dimension_numbers<[1], [0], [0], [1], [0, 0, 1, 1], [], []>} : vector<65x48xbf16>, vector<48x12xbf16>, vector<65x12xf32> -> vector<65x12xf32>
    %c0_208 = arith.constant 0 : index
    %c0_209 = arith.constant 0 : index
    %493 = vector.load %arg49[%c0_208, %c0_209] : memref<1x12xf32, #tpu.memory_space<vmem>>, vector<1x12xf32>
    %494 = vector.broadcast %493 : vector<1x12xf32> to vector<65x12xf32>
    %495 = arith.addf %492, %494 : vector<65x12xf32>
    %c0_210 = arith.constant 0 : index
    %c0_211 = arith.constant 0 : index
    %c0_212 = arith.constant 0 : index
    %c0_213 = arith.constant 0 : index
    %496 = vector.load %arg50[%c0_210, %c0_211, %c0_212, %c0_213] : memref<1x1x65x12xf32, #tpu.memory_space<vmem>>, vector<1x1x65x12xf32>
    %497 = vector.shape_cast %496 : vector<1x1x65x12xf32> to vector<65x12xf32>
    %498 = vector.shape_cast %495 : vector<65x12xf32> to vector<1x1x65x12xf32>
    tpu.vector_store %arg50[%c0_210, %c0_211, %c0_212, %c0_213], %498 {strides = array<i32>} : memref<1x1x65x12xf32, #tpu.memory_space<vmem>>, vector<1x1x65x12xf32>,
    return
  }
  func.func @transform_0(%arg0: i32) -> (i32, i32, i32, i32) {
    %c0_i32 = arith.constant 0 : i32
    %c0_i32_0 = arith.constant 0 : i32
    %c0_i32_1 = arith.constant 0 : i32
    %c0_i32_2 = arith.constant 0 : i32
    return %arg0, %c0_i32, %c0_i32_0, %c0_i32_1 : i32, i32, i32, i32
  }
  func.func @transform_1(%arg0: i32) -> (i32, i32, i32, i32) {
    %c0_i32 = arith.constant 0 : i32
    %c0_i32_0 = arith.constant 0 : i32
    %c0_i32_1 = arith.constant 0 : i32
    %c0_i32_2 = arith.constant 0 : i32
    return %arg0, %c0_i32, %c0_i32_0, %c0_i32_1 : i32, i32, i32, i32
  }
  func.func @transform_2(%arg0: i32) -> (i32, i32, i32, i32) {
    %c0_i32 = arith.constant 0 : i32
    %c0_i32_0 = arith.constant 0 : i32
    %c0_i32_1 = arith.constant 0 : i32
    %c0_i32_2 = arith.constant 0 : i32
    return %arg0, %c0_i32, %c0_i32_0, %c0_i32_1 : i32, i32, i32, i32
  }
  func.func @transform_3(%arg0: i32) -> (i32, i32) {
    %c0_i32 = arith.constant 0 : i32
    %c0_i32_0 = arith.constant 0 : i32
    %c0_i32_1 = arith.constant 0 : i32
    return %c0_i32, %c0_i32_0 : i32, i32
  }
  func.func @transform_4(%arg0: i32) -> (i32, i32) {
    %c0_i32 = arith.constant 0 : i32
    %c0_i32_0 = arith.constant 0 : i32
    %c0_i32_1 = arith.constant 0 : i32
    return %c0_i32, %c0_i32_0 : i32, i32
  }
  func.func @transform_5(%arg0: i32) -> (i32, i32) {
    %c0_i32 = arith.constant 0 : i32
    %c0_i32_0 = arith.constant 0 : i32
    %c0_i32_1 = arith.constant 0 : i32
    return %c0_i32, %c0_i32_0 : i32, i32
  }
  func.func @transform_6(%arg0: i32) -> (i32, i32) {
    %c0_i32 = arith.constant 0 : i32
    %c0_i32_0 = arith.constant 0 : i32
    %c0_i32_1 = arith.constant 0 : i32
    return %c0_i32, %c0_i32_0 : i32, i32
  }
  func.func @transform_7(%arg0: i32) -> (i32, i32) {
    %c0_i32 = arith.constant 0 : i32
    %c0_i32_0 = arith.constant 0 : i32
    %c0_i32_1 = arith.constant 0 : i32
    return %c0_i32, %c0_i32_0 : i32, i32
  }
  func.func @transform_8(%arg0: i32) -> (i32, i32) {
    %c0_i32 = arith.constant 0 : i32
    %c0_i32_0 = arith.constant 0 : i32
    %c0_i32_1 = arith.constant 0 : i32
    return %c0_i32, %c0_i32_0 : i32, i32
  }
  func.func @transform_9(%arg0: i32) -> (i32, i32) {
    %c0_i32 = arith.constant 0 : i32
    %c0_i32_0 = arith.constant 0 : i32
    %c0_i32_1 = arith.constant 0 : i32
    return %c0_i32, %c0_i32_0 : i32, i32
  }
  func.func @transform_10(%arg0: i32) -> (i32, i32) {
    %c0_i32 = arith.constant 0 : i32
    %c0_i32_0 = arith.constant 0 : i32
    %c0_i32_1 = arith.constant 0 : i32
    return %c0_i32, %c0_i32_0 : i32, i32
  }
  func.func @transform_11(%arg0: i32) -> (i32, i32) {
    %c0_i32 = arith.constant 0 : i32
    %c0_i32_0 = arith.constant 0 : i32
    %c0_i32_1 = arith.constant 0 : i32
    return %c0_i32, %c0_i32_0 : i32, i32
  }
  func.func @transform_12(%arg0: i32) -> (i32, i32) {
    %c0_i32 = arith.constant 0 : i32
    %c0_i32_0 = arith.constant 0 : i32
    %c0_i32_1 = arith.constant 0 : i32
    return %c0_i32, %c0_i32_0 : i32, i32
  }
  func.func @transform_13(%arg0: i32) -> (i32, i32) {
    %c0_i32 = arith.constant 0 : i32
    %c0_i32_0 = arith.constant 0 : i32
    %c0_i32_1 = arith.constant 0 : i32
    return %c0_i32, %c0_i32_0 : i32, i32
  }
  func.func @transform_14(%arg0: i32) -> (i32, i32) {
    %c0_i32 = arith.constant 0 : i32
    %c0_i32_0 = arith.constant 0 : i32
    %c0_i32_1 = arith.constant 0 : i32
    return %c0_i32, %c0_i32_0 : i32, i32
  }
  func.func @transform_15(%arg0: i32) -> (i32, i32) {
    %c0_i32 = arith.constant 0 : i32
    %c0_i32_0 = arith.constant 0 : i32
    %c0_i32_1 = arith.constant 0 : i32
    return %c0_i32, %c0_i32_0 : i32, i32
  }
  func.func @transform_16(%arg0: i32) -> (i32, i32) {
    %c0_i32 = arith.constant 0 : i32
    %c0_i32_0 = arith.constant 0 : i32
    %c0_i32_1 = arith.constant 0 : i32
    return %c0_i32, %c0_i32_0 : i32, i32
  }
  func.func @transform_17(%arg0: i32) -> (i32, i32) {
    %c0_i32 = arith.constant 0 : i32
    %c0_i32_0 = arith.constant 0 : i32
    %c0_i32_1 = arith.constant 0 : i32
    return %c0_i32, %c0_i32_0 : i32, i32
  }
  func.func @transform_18(%arg0: i32) -> (i32, i32) {
    %c0_i32 = arith.constant 0 : i32
    %c0_i32_0 = arith.constant 0 : i32
    %c0_i32_1 = arith.constant 0 : i32
    return %c0_i32, %c0_i32_0 : i32, i32
  }
  func.func @transform_19(%arg0: i32) -> (i32, i32) {
    %c0_i32 = arith.constant 0 : i32
    %c0_i32_0 = arith.constant 0 : i32
    %c0_i32_1 = arith.constant 0 : i32
    return %c0_i32, %c0_i32_0 : i32, i32
  }
  func.func @transform_20(%arg0: i32) -> (i32, i32) {
    %c0_i32 = arith.constant 0 : i32
    %c0_i32_0 = arith.constant 0 : i32
    %c0_i32_1 = arith.constant 0 : i32
    return %c0_i32, %c0_i32_0 : i32, i32
  }
  func.func @transform_21(%arg0: i32) -> (i32, i32) {
    %c0_i32 = arith.constant 0 : i32
    %c0_i32_0 = arith.constant 0 : i32
    %c0_i32_1 = arith.constant 0 : i32
    return %c0_i32, %c0_i32_0 : i32, i32
  }
  func.func @transform_22(%arg0: i32) -> (i32, i32) {
    %c0_i32 = arith.constant 0 : i32
    %c0_i32_0 = arith.constant 0 : i32
    %c0_i32_1 = arith.constant 0 : i32
    return %c0_i32, %c0_i32_0 : i32, i32
  }
  func.func @transform_23(%arg0: i32) -> (i32, i32) {
    %c0_i32 = arith.constant 0 : i32
    %c0_i32_0 = arith.constant 0 : i32
    %c0_i32_1 = arith.constant 0 : i32
    return %c0_i32, %c0_i32_0 : i32, i32
  }
  func.func @transform_24(%arg0: i32) -> (i32, i32) {
    %c0_i32 = arith.constant 0 : i32
    %c0_i32_0 = arith.constant 0 : i32
    %c0_i32_1 = arith.constant 0 : i32
    return %c0_i32, %c0_i32_0 : i32, i32
  }
  func.func @transform_25(%arg0: i32) -> (i32, i32) {
    %c0_i32 = arith.constant 0 : i32
    %c0_i32_0 = arith.constant 0 : i32
    %c0_i32_1 = arith.constant 0 : i32
    return %c0_i32, %c0_i32_0 : i32, i32
  }
  func.func @transform_26(%arg0: i32) -> (i32, i32) {
    %c0_i32 = arith.constant 0 : i32
    %c0_i32_0 = arith.constant 0 : i32
    %c0_i32_1 = arith.constant 0 : i32
    return %c0_i32, %c0_i32_0 : i32, i32
  }
  func.func @transform_27(%arg0: i32) -> (i32, i32) {
    %c0_i32 = arith.constant 0 : i32
    %c0_i32_0 = arith.constant 0 : i32
    %c0_i32_1 = arith.constant 0 : i32
    return %c0_i32, %c0_i32_0 : i32, i32
  }
  func.func @transform_28(%arg0: i32) -> (i32, i32) {
    %c0_i32 = arith.constant 0 : i32
    %c0_i32_0 = arith.constant 0 : i32
    %c0_i32_1 = arith.constant 0 : i32
    return %c0_i32, %c0_i32_0 : i32, i32
  }
  func.func @transform_29(%arg0: i32) -> (i32, i32) {
    %c0_i32 = arith.constant 0 : i32
    %c0_i32_0 = arith.constant 0 : i32
    %c0_i32_1 = arith.constant 0 : i32
    return %c0_i32, %c0_i32_0 : i32, i32
  }
  func.func @transform_30(%arg0: i32) -> (i32, i32) {
    %c0_i32 = arith.constant 0 : i32
    %c0_i32_0 = arith.constant 0 : i32
    %c0_i32_1 = arith.constant 0 : i32
    return %c0_i32, %c0_i32_0 : i32, i32
  }
  func.func @transform_31(%arg0: i32) -> (i32, i32) {
    %c0_i32 = arith.constant 0 : i32
    %c0_i32_0 = arith.constant 0 : i32
    %c0_i32_1 = arith.constant 0 : i32
    return %c0_i32, %c0_i32_0 : i32, i32
  }
  func.func @transform_32(%arg0: i32) -> (i32, i32) {
    %c0_i32 = arith.constant 0 : i32
    %c0_i32_0 = arith.constant 0 : i32
    %c0_i32_1 = arith.constant 0 : i32
    return %c0_i32, %c0_i32_0 : i32, i32
  }
  func.func @transform_33(%arg0: i32) -> (i32, i32) {
    %c0_i32 = arith.constant 0 : i32
    %c0_i32_0 = arith.constant 0 : i32
    %c0_i32_1 = arith.constant 0 : i32
    return %c0_i32, %c0_i32_0 : i32, i32
  }
  func.func @transform_34(%arg0: i32) -> (i32, i32) {
    %c0_i32 = arith.constant 0 : i32
    %c0_i32_0 = arith.constant 0 : i32
    %c0_i32_1 = arith.constant 0 : i32
    return %c0_i32, %c0_i32_0 : i32, i32
  }
  func.func @transform_35(%arg0: i32) -> (i32, i32) {
    %c0_i32 = arith.constant 0 : i32
    %c0_i32_0 = arith.constant 0 : i32
    %c0_i32_1 = arith.constant 0 : i32
    return %c0_i32, %c0_i32_0 : i32, i32
  }
  func.func @transform_36(%arg0: i32) -> (i32, i32) {
    %c0_i32 = arith.constant 0 : i32
    %c0_i32_0 = arith.constant 0 : i32
    %c0_i32_1 = arith.constant 0 : i32
    return %c0_i32, %c0_i32_0 : i32, i32
  }
  func.func @transform_37(%arg0: i32) -> (i32, i32) {
    %c0_i32 = arith.constant 0 : i32
    %c0_i32_0 = arith.constant 0 : i32
    %c0_i32_1 = arith.constant 0 : i32
    return %c0_i32, %c0_i32_0 : i32, i32
  }
  func.func @transform_38(%arg0: i32) -> (i32, i32) {
    %c0_i32 = arith.constant 0 : i32
    %c0_i32_0 = arith.constant 0 : i32
    %c0_i32_1 = arith.constant 0 : i32
    return %c0_i32, %c0_i32_0 : i32, i32
  }
  func.func @transform_39(%arg0: i32) -> (i32, i32) {
    %c0_i32 = arith.constant 0 : i32
    %c0_i32_0 = arith.constant 0 : i32
    %c0_i32_1 = arith.constant 0 : i32
    return %c0_i32, %c0_i32_0 : i32, i32
  }
  func.func @transform_40(%arg0: i32) -> (i32, i32) {
    %c0_i32 = arith.constant 0 : i32
    %c0_i32_0 = arith.constant 0 : i32
    %c0_i32_1 = arith.constant 0 : i32
    return %c0_i32, %c0_i32_0 : i32, i32
  }
  func.func @transform_41(%arg0: i32) -> (i32, i32) {
    %c0_i32 = arith.constant 0 : i32
    %c0_i32_0 = arith.constant 0 : i32
    %c0_i32_1 = arith.constant 0 : i32
    return %c0_i32, %c0_i32_0 : i32, i32
  }
  func.func @transform_42(%arg0: i32) -> (i32, i32) {
    %c0_i32 = arith.constant 0 : i32
    %c0_i32_0 = arith.constant 0 : i32
    %c0_i32_1 = arith.constant 0 : i32
    return %c0_i32, %c0_i32_0 : i32, i32
  }
  func.func @transform_43(%arg0: i32) -> (i32, i32) {
    %c0_i32 = arith.constant 0 : i32
    %c0_i32_0 = arith.constant 0 : i32
    %c0_i32_1 = arith.constant 0 : i32
    return %c0_i32, %c0_i32_0 : i32, i32
  }
  func.func @transform_44(%arg0: i32) -> (i32, i32) {
    %c0_i32 = arith.constant 0 : i32
    %c0_i32_0 = arith.constant 0 : i32
    %c0_i32_1 = arith.constant 0 : i32
    return %c0_i32, %c0_i32_0 : i32, i32
  }
  func.func @transform_45(%arg0: i32) -> (i32, i32) {
    %c0_i32 = arith.constant 0 : i32
    %c0_i32_0 = arith.constant 0 : i32
    %c0_i32_1 = arith.constant 0 : i32
    return %c0_i32, %c0_i32_0 : i32, i32
  }
  func.func @transform_46(%arg0: i32) -> (i32, i32) {
    %c0_i32 = arith.constant 0 : i32
    %c0_i32_0 = arith.constant 0 : i32
    %c0_i32_1 = arith.constant 0 : i32
    return %c0_i32, %c0_i32_0 : i32, i32
  }
  func.func @transform_47(%arg0: i32) -> (i32, i32) {
    %c0_i32 = arith.constant 0 : i32
    %c0_i32_0 = arith.constant 0 : i32
    %c0_i32_1 = arith.constant 0 : i32
    return %c0_i32, %c0_i32_0 : i32, i32
  }
  func.func @transform_48(%arg0: i32) -> (i32, i32) {
    %c0_i32 = arith.constant 0 : i32
    %c0_i32_0 = arith.constant 0 : i32
    %c0_i32_1 = arith.constant 0 : i32
    return %c0_i32, %c0_i32_0 : i32, i32
  }
  func.func @transform_49(%arg0: i32) -> (i32, i32, i32, i32) {
    %c0_i32 = arith.constant 0 : i32
    %c0_i32_0 = arith.constant 0 : i32
    %c0_i32_1 = arith.constant 0 : i32
    %c0_i32_2 = arith.constant 0 : i32
    return %arg0, %c0_i32, %c0_i32_0, %c0_i32_1 : i32, i32, i32, i32
  }
}

</mosaic_0001>

<bundles_post_ra>
// kernel: _lambda_.1
= control target key start
LH: loop header
LB: loop body
LE: loop exit
PB: predicated region body
PF: predicated region fallthrough
CT: control target
= control target key end

     0   :  { %s8861_s6 = smov 1   ;;  %s8862_s10 = smov 2   ;;  %s11040_s0 = inlined_call_operand.smem [shape: u32[50], index: -1, kind: input, shape index: {}] }
   0x1   :  { %s8936_s5 = sld [smem:[%s11040_s0]]   ;;  %s8863_s14 = smov 3  }
   0x2   :  { %s8941_s9 = sld [smem:[%s11040_s0 + %s8861_s6]]   ;;  %s8864_s18 = smov 4  }
   0x3   :  { %s8946_s13 = sld [smem:[%s11040_s0 + %s8862_s10]]   ;;  %s8865_s22 = smov 5  }
   0x4   :  { %s8951_s17 = sld [smem:[%s11040_s0 + %s8863_s14]]   ;;  %s8866_s26 = smov 6  }
   0x5   :  { %s8956_s21 = sld [smem:[%s11040_s0 + %s8864_s18]]   ;;  %s8867_s30 = smov 7  }
   0x6   :  { %s8961_s25 = sld [smem:[%s11040_s0 + %s8865_s22]]   ;;  %s8868_s4 = smov 8  }
   0x7   :  { %s8966_s29 = sld [smem:[%s11040_s0 + %s8866_s26]]   ;;  %s8869_s10 = smov 9  }
   0x8   :  { %s8971_s3 = sld [smem:[%s11040_s0 + %s8867_s30]]   ;;  %s8870_s15 = smov 10  }
   0x9   :  { %11085 = sst [smem:[#allocation16_spill]] %s8946_s13  ;;  %s8871_s20 = smov 11  }
   0xa   :  { %s8976_s8 = sld [smem:[%s11040_s0 + %s8868_s4]]   ;;  %s8872_s26 = smov 12  }
   0xb   :  { %s8981_s14 = sld [smem:[%s11040_s0 + %s8869_s10]]   ;;  %s8873_s1 = smov 13  }
   0xc   :  { %s8986_s19 = sld [smem:[%s11040_s0 + %s8870_s15]]   ;;  %s8874_s7 = smov 14  }
   0xd   :  { %s8991_s24 = sld [smem:[%s11040_s0 + %s8871_s20]]   ;;  %s8875_s15 = smov 15  }
   0xe   :  { %11086 = sst [smem:[#allocation17_spill]] %s8971_s3  ;;  %s8876_s22 = smov 16  }
   0xf   :  { %s8996_s30 = sld [smem:[%s11040_s0 + %s8872_s26]]   ;;  %s8877_s28 = smov 17  }
  0x10   :  { %s9001_s6 = sld [smem:[%s11040_s0 + %s8873_s1]]  }
  0x11   :  { %s9006_s12 = sld [smem:[%s11040_s0 + %s8874_s7]]   ;;  %s8878_s7 = smov 18  }
  0x12   :  { %s9011_s20 = sld [smem:[%s11040_s0 + %s8875_s15]]   ;;  %s8879_s15 = smov 19  }
  0x13   :  { %11087 = sst [smem:[#allocation18_spill]] %s8991_s24 }
  0x14   :  { %s9016_s27 = sld [smem:[%s11040_s0 + %s8876_s22]]   ;;  %s8880_s22 = smov 20  }
  0x15   :  { %11088 = sst [smem:[#allocation19_spill]] %s8996_s30 }
  0x16   :  { %11089 = sst [smem:[#allocation20_spill]] %s9001_s6 }
  0x17   :  { %11090 = sst [smem:[#allocation21_spill]] %s9006_s12 }
  0x18   :  { %11091 = sst [smem:[#allocation22_spill]] %s9011_s20 }
  0x19   :  { %s9021_s4 = sld [smem:[%s11040_s0 + %s8877_s28]]   ;;  %s8881_s28 = smov 21  }
  0x1a   :  { %11092 = sst [smem:[#allocation23_spill]] %s9016_s27 }
  0x1b   :  { %s9026_s13 = sld [smem:[%s11040_s0 + %s8878_s7]]   ;;  %s8882_s7 = smov 22  }
  0x1c   :  { %s9031_s12 = sld [smem:[%s11040_s0 + %s8879_s15]]   ;;  %s8883_s15 = smov 23  }
  0x1d   :  { %s9036_s27 = sld [smem:[%s11040_s0 + %s8880_s22]]   ;;  %s8884_s22 = smov 24  }
  0x1e   :  { %s9041_s6 = sld [smem:[%s11040_s0 + %s8881_s28]]   ;;  %s8885_s28 = smov 25  }
  0x1f   :  { %11093 = sst [smem:[#allocation24_spill]] %s9021_s4 }
  0x21   :  { %11094 = sst [smem:[#allocation25_spill]] %s9026_s13 }
  0x22   :  { %11095 = sst [smem:[#allocation26_spill]] %s9031_s12 }
  0x23   :  { %11096 = sst [smem:[#allocation27_spill]] %s9036_s27 }
  0x24   :  { %11097 = sst [smem:[#allocation28_spill]] %s9041_s6 }
  0x25   :  { %s9046_s13 = sld [smem:[%s11040_s0 + %s8882_s7]]   ;;  %s8886_s7 = smov 26  }
  0x26   :  { %s9051_s12 = sld [smem:[%s11040_s0 + %s8883_s15]]   ;;  %s8887_s15 = smov 27  }
  0x27   :  { %s9056_s27 = sld [smem:[%s11040_s0 + %s8884_s22]]   ;;  %s8888_s22 = smov 28  }
  0x28   :  { %s9061_s6 = sld [smem:[%s11040_s0 + %s8885_s28]]   ;;  %s8889_s28 = smov 29  }
  0x2b   :  { %11098 = sst [smem:[#allocation29_spill]] %s9046_s13 }
  0x2c   :  { %11099 = sst [smem:[#allocation30_spill]] %s9051_s12 }
  0x2d   :  { %11100 = sst [smem:[#allocation31_spill]] %s9056_s27 }
  0x2e   :  { %11101 = sst [smem:[#allocation32_spill]] %s9061_s6 }
  0x2f   :  { %s9066_s13 = sld [smem:[%s11040_s0 + %s8886_s7]]   ;;  %s8890_s7 = smov 30  }
  0x30   :  { %s9071_s12 = sld [smem:[%s11040_s0 + %s8887_s15]]   ;;  %s8891_s15 = smov 31  }
  0x31   :  { %s9076_s27 = sld [smem:[%s11040_s0 + %s8888_s22]]   ;;  %s8892_s22 = smov 32  }
  0x32   :  { %s9081_s6 = sld [smem:[%s11040_s0 + %s8889_s28]]   ;;  %s8893_s28 = smov 33  }
  0x35   :  { %11102 = sst [smem:[#allocation33_spill]] %s9066_s13 }
  0x36   :  { %11103 = sst [smem:[#allocation34_spill]] %s9071_s12 }
  0x37   :  { %11104 = sst [smem:[#allocation35_spill]] %s9076_s27 }
  0x38   :  { %11105 = sst [smem:[#allocation36_spill]] %s9081_s6 }
  0x39   :  { %s9086_s13 = sld [smem:[%s11040_s0 + %s8890_s7]]   ;;  %s8894_s7 = smov 34  }
  0x3a   :  { %s9091_s12 = sld [smem:[%s11040_s0 + %s8891_s15]]   ;;  %s8895_s15 = smov 35  }
  0x3b   :  { %s9096_s27 = sld [smem:[%s11040_s0 + %s8892_s22]]   ;;  %s8896_s22 = smov 36  }
  0x3c   :  { %s9101_s6 = sld [smem:[%s11040_s0 + %s8893_s28]]   ;;  %s8897_s28 = smov 37  }
  0x3f   :  { %11106 = sst [smem:[#allocation37_spill]] %s9086_s13 }
  0x40   :  { %11107 = sst [smem:[#allocation38_spill]] %s9091_s12 }
  0x41   :  { %11108 = sst [smem:[#allocation39_spill]] %s9096_s27 }
  0x42   :  { %11109 = sst [smem:[#allocation40_spill]] %s9101_s6 }
  0x43   :  { %s9106_s13 = sld [smem:[%s11040_s0 + %s8894_s7]]   ;;  %s8898_s7 = smov 38  }
  0x44   :  { %s9111_s12 = sld [smem:[%s11040_s0 + %s8895_s15]]   ;;  %s8899_s15 = smov 39  }
  0x45   :  { %s9116_s27 = sld [smem:[%s11040_s0 + %s8896_s22]]   ;;  %s8900_s22 = smov 40  }
  0x46   :  { %s9121_s6 = sld [smem:[%s11040_s0 + %s8897_s28]]   ;;  %s8901_s28 = smov 41  }
  0x47   :  { %s9136_s4 = sld [smem:[%s11040_s0 + %s8900_s22]]   ;;  %s8904_s22 = smov 44  }
  0x48   :  { %s9156_s20 = sld [smem:[%s11040_s0 + %s8904_s22]]   ;;  %s8908_s22 = smov 48  }
  0x49   :  { %11110 = sst [smem:[#allocation41_spill]] %s9106_s13 }
  0x4a   :  { %11111 = sst [smem:[#allocation42_spill]] %s9111_s12 }
  0x4b   :  { %s9126_s13 = sld [smem:[%s11040_s0 + %s8898_s7]]   ;;  %s8902_s7 = smov 42  }
  0x4c   :  { %11112 = sst [smem:[#allocation43_spill]] %s9121_s6 }
  0x4d   :  { %s9131_s12 = sld [smem:[%s11040_s0 + %s8899_s15]]   ;;  %s8903_s15 = smov 43  }
  0x4e   :  { %s9141_s6 = sld [smem:[%s11040_s0 + %s8901_s28]]   ;;  %s8905_s28 = smov 45  }
  0x4f   :  { %11116 = sst [smem:[#allocation47_spill]] %s9156_s20 }
  0x50   :  { %s9161_s30 = sld [smem:[%s11040_s0 + %s8905_s28]]   ;;  %s8909_s28 = smov 49  }
  0x51   :  { %11113 = sst [smem:[#allocation44_spill]] %s9126_s13 }
  0x52   :  { %s9146_s13 = sld [smem:[%s11040_s0 + %s8902_s7]]   ;;  %s8906_s7 = smov 46  }
  0x53   :  { %11114 = sst [smem:[#allocation45_spill]] %s9131_s12 }
  0x54   :  { %s9151_s12 = sld [smem:[%s11040_s0 + %s8903_s15]]   ;;  %s8907_s15 = smov 47  }
  0x55   :  { %s9166_s24 = sld [smem:[%s11040_s0 + %s8906_s7]]  }
  0x56   :  { %11117 = sst [smem:[#allocation48_spill]] %s9161_s30 }
  0x57   :  { %s9176_s20 = sld [smem:[%s11040_s0 + %s8908_s22]]  }
  0x58   :  { %s9181_s30 = sld [smem:[%s11040_s0 + %s8909_s28]]  }
  0x5a   :  { %11115 = sst [smem:[#allocation46_spill]] %s9151_s12 }
  0x5b   :  { %s9171_s12 = sld [smem:[%s11040_s0 + %s8907_s15]]  }
  0x5c   :  { %104 = vsyncpa [#allocation3], 0 }
  0x5d   :  { %105 = vsyncpa [#allocation5], 0 }
  0x5e   :  { %106 = vsyncpa [#allocation8], 0 }
  0x5f   :  { %107 = vsyncpa [#allocation11], 0  ;;  %s9183_s7 = smov 0  }
  0x60 LB: > { %s8910_s10 = smov [#allocation4]   ;;  %s9189_s15 = sadd.s32 4294967295, %s8859_s7   ;;  %s8859_s7 = sphi %s9183_s7, %s113_s7  }
  0x61   : > { %s1320_s11 = sshll.u32 %s8910_s10, 4  ;;  %p7155_p0 = scmp.ge.s32.totalorder %s8859_s7, 1  ;;  %s9194_s11 = int_to_ptr.vmem [resolvable:$true] %s1320_s11 }
  0x62   : > { %p1188_p1 = scmp.lt.s32.totalorder %s8859_s7, 3  ;;  %p11053_p2 = scmp.eq.s32.totalorder %s9189_s15, 0 }
  0x63   : > { %s8911_s16 = smov [#allocation7]   ;;  %s8912_s22 = smov [#allocation2]  }
  0x64   : > { %p9196_p3 = pnand %p7155_p0, %p1188_p1  ;;  %s1342_s18 = sshll.u32 %s8911_s16, 4  ;;  %s9202_s18 = int_to_ptr.vmem [resolvable:$true] %s1342_s18 }
  0x65   : > { %s1300_s23 = sshll.u32 %s8912_s22, 4  ;;  %s8913_s28 = smov [#allocation6]   ;;  %s9210_s23 = int_to_ptr.vmem [resolvable:$true] %s1300_s23 }
  0x66   : > { %s11118_s0 = scalar_select %p9196_p3, 1, 0 }
  0x67   : > { %p8073_p4 = pneg %p9196_p3  ;;  %s1331_s1 = sshll.u32 %s8913_s28, 4  ;;  %s9212_s1 = int_to_ptr.vmem [resolvable:$true] %s1331_s1 }
  0x68   : > { %s8669_s2 = scalar_lea.hbm %s9136_s4, 16 }
  0x69   : > { %p9206_p5 = pnand %p11053_p2, %p8073_p4  ;;  %p8670_p6 = scmp.ne.s32.totalorder %s9136_s4, %s8669_s2 }
  0x6a   : > { %p8676_p10 = scmp.lt.u32.totalorder %s8669_s2, %s9136_s4 }
  0x6b   : > { %p9218_p7 = pneg %p9206_p5 }
  0x6d   : > { %p8672_p8 = pnand %p9218_p7, %p8670_p6 }
  0x6f   : > { %p8673_p9 = pneg %p8672_p8 }
  0x71   : > { %p8678_p11 = pnand %p8676_p10, %p8673_p9 }
  0x73   : > { %8681 = shalt.err (!%p8678_p11)
}
  0x74   : > { %s8682_s16 = scalar_lea.vmem %s9194_s11, 16  ;;  %s8689_s22 = scalar_lea.vmem %s9194_s11, 32 }
  0x75   : > { %p8683_p12 = scmp.ne.s32.totalorder %s9194_s11, %s8682_s16  ;;  %p8690_p1 = scmp.lt.s32.totalorder %s9194_s11, %s9194_s11 }
  0x76   : > { %p8691_p4 = scmp.lt.s32.totalorder %s8689_s22, %s8682_s16 }
  0x77   : > { %p8685_p13 = pnand %p8683_p12, %p9218_p7 }
  0x78   : > { %p8692_p2 = por %p8691_p4, %p8690_p1 }
  0x79   : > { %p8686_p0 = pneg %p8685_p13 }
  0x7b   : > { %p8693_p6 = pnand %p8692_p2, %p8686_p0 }
  0x7d   : > { %8696 = shalt.err (!%p8693_p6)
}
  0x7e   : > { %8079 = dma.hbm_to_vmem [thread:$0]  (!%p9206_p5), %s9136_s4, 16, %s9194_s11, [#allocation5]  }
  0x7f   : > { %s8697_s28 = scalar_lea.hbm %s9146_s13, 16 }
  0x80   : > { %p8698_p8 = scmp.ne.s32.totalorder %s9146_s13, %s8697_s28  ;;  %p8704_p11 = scmp.lt.u32.totalorder %s8697_s28, %s9146_s13 }
  0x82   : > { %p8700_p9 = pnand %p8698_p8, %p9218_p7 }
  0x84   : > { %p8701_p10 = pneg %p8700_p9 }
  0x86   : > { %p8706_p12 = pnand %p8704_p11, %p8701_p10 }
  0x88   : > { %8709 = shalt.err (!%p8706_p12)
}
  0x89   : > { %s8710_s2 = scalar_lea.vmem %s9202_s18, 16  ;;  %s8717_s16 = scalar_lea.vmem %s9202_s18, 32 }
  0x8a   : > { %p8711_p2 = scmp.ne.s32.totalorder %s9202_s18, %s8710_s2  ;;  %p8718_p1 = scmp.lt.s32.totalorder %s9202_s18, %s9202_s18 }
  0x8b   : > { %p8719_p4 = scmp.lt.s32.totalorder %s8717_s16, %s8710_s2 }
  0x8c   : > { %p8713_p13 = pnand %p8711_p2, %p9218_p7 }
  0x8d   : > { %p8720_p6 = por %p8719_p4, %p8718_p1 }
  0x8e   : > { %p8714_p0 = pneg %p8713_p13 }
  0x90   : > { %p8721_p8 = pnand %p8720_p6, %p8714_p0 }
  0x92   : > { %8724 = shalt.err (!%p8721_p8)
}
  0x93   : > { %8085 = dma.hbm_to_vmem [thread:$0]  (!%p9206_p5), %s9146_s13, 16, %s9202_s18, [#allocation8]  }
  0x94   : > { %s8725_s11 = scalar_lea.hbm %s9116_s27, 16 }
  0x95   : > { %p8726_p9 = scmp.ne.s32.totalorder %s9116_s27, %s8725_s11  ;;  %p8732_p12 = scmp.lt.u32.totalorder %s8725_s11, %s9116_s27 }
  0x97   : > { %p8728_p10 = pnand %p8726_p9, %p9218_p7 }
  0x99   : > { %p8729_p11 = pneg %p8728_p10 }
  0x9b   : > { %p8734_p2 = pnand %p8732_p12, %p8729_p11 }
  0x9d   : > { %8737 = shalt.err (!%p8734_p2)
}
  0x9e   : > { %s8738_s22 = scalar_lea.vmem %s9210_s23, 16  ;;  %s8745_s28 = scalar_lea.vmem %s9210_s23, 32 }
  0x9f   : > { %p8739_p13 = scmp.ne.s32.totalorder %s9210_s23, %s8738_s22  ;;  %p8746_p4 = scmp.lt.s32.totalorder %s9210_s23, %s9210_s23 }
  0xa0   : > { %p8747_p6 = scmp.lt.s32.totalorder %s8745_s28, %s8738_s22 }
  0xa1   : > { %p8741_p0 = pnand %p8739_p13, %p9218_p7 }
  0xa2   : > { %p8748_p8 = por %p8747_p6, %p8746_p4 }
  0xa3   : > { %p8742_p1 = pneg %p8741_p0 }
  0xa5   : > { %p8749_p9 = pnand %p8748_p8, %p8742_p1 }
  0xa7   : > { %8752 = shalt.err (!%p8749_p9)
}
  0xa8   : > { %8076 = dma.hbm_to_vmem [thread:$0]  (!%p9206_p5), %s9116_s27, 16, %s9210_s23, [#allocation3]  }
  0xa9   : > { %s8753_s18 = scalar_lea.hbm %s9141_s6, 16 }
  0xaa   : > { %p8754_p10 = scmp.ne.s32.totalorder %s9141_s6, %s8753_s18  ;;  %p8760_p2 = scmp.lt.u32.totalorder %s8753_s18, %s9141_s6 }
  0xac   : > { %p8756_p11 = pnand %p8754_p10, %p9218_p7 }
  0xae   : > { %p8757_p12 = pneg %p8756_p11 }
  0xb0   : > { %p8762_p13 = pnand %p8760_p2, %p8757_p12 }
  0xb2   : > { %8765 = shalt.err (!%p8762_p13)
}
  0xb3   : > { %s8766_s2 = scalar_lea.vmem %s9212_s1, 16  ;;  %s8773_s16 = scalar_lea.vmem %s9212_s1, 32 }
  0xb4   : > { %p8767_p0 = scmp.ne.s32.totalorder %s9212_s1, %s8766_s2  ;;  %p8774_p6 = scmp.lt.s32.totalorder %s9212_s1, %s9212_s1 }
  0xb5   : > { %p8775_p8 = scmp.lt.s32.totalorder %s8773_s16, %s8766_s2 }
  0xb6   : > { %p8769_p1 = pnand %p8767_p0, %p9218_p7 }
  0xb7   : > { %p8776_p9 = por %p8775_p8, %p8774_p6 }
  0xb8   : > { %p8770_p4 = pneg %p8769_p1 }
  0xba   : > { %p8777_p10 = pnand %p8776_p9, %p8770_p4 }
  0xbc   : > { %8780 = shalt.err (!%p8777_p10)
}
  0xbd   : > { %8082 = dma.hbm_to_vmem [thread:$0]  (!%p9206_p5), %s9141_s6, 16, %s9212_s1, [#allocation5]  }
  0xbe   : > { %s8914_s23 = smov [#allocation9]   ;;  %s8915_s22 = smov [#allocation10]  }
  0xbf   : > { %s1362_s11 = sshll.u32 %s8914_s23, 4  ;;  %s1376_s28 = sshll.u32 %s8915_s22, 4  ;;  %s1363_s11 = int_to_ptr.vmem [resolvable:$true] %s1362_s11  ;;  %s1377_s28 = int_to_ptr.vmem [resolvable:$true] %s1376_s28 }
  0xc0   : > { %s8781_s18 = scalar_lea.hbm %s9166_s24, 16 }
  0xc1   : > { %p8782_p11 = scmp.ne.s32.totalorder %s9166_s24, %s8781_s18  ;;  %p8788_p13 = scmp.lt.u32.totalorder %s8781_s18, %s9166_s24 }
  0xc3   : > { %p8784_p12 = pnand %p8782_p11, %p9218_p7 }
  0xc5   : > { %p8785_p2 = pneg %p8784_p12 }
  0xc7   : > { %p8790_p0 = pnand %p8788_p13, %p8785_p2 }
  0xc9   : > { %8793 = shalt.err (!%p8790_p0)
}
  0xca   : > { %s8794_s2 = scalar_lea.vmem %s1363_s11, 16  ;;  %s8801_s1 = scalar_lea.vmem %s1363_s11, 32 }
  0xcb   : > { %p8795_p1 = scmp.ne.s32.totalorder %s1363_s11, %s8794_s2  ;;  %p8802_p8 = scmp.lt.s32.totalorder %s1363_s11, %s1363_s11 }
  0xcc   : > { %p8803_p9 = scmp.lt.s32.totalorder %s8801_s1, %s8794_s2 }
  0xcd   : > { %p8797_p4 = pnand %p8795_p1, %p9218_p7 }
  0xce   : > { %p8804_p10 = por %p8803_p9, %p8802_p8 }
  0xcf   : > { %p8798_p6 = pneg %p8797_p4 }
  0xd1   : > { %p8805_p3 = pnand %p8804_p10, %p8798_p6 }
  0xd3   : > { %8808 = shalt.err (!%p8805_p3)
}
  0xd4   : > { %8088 = dma.hbm_to_vmem [thread:$0]  (!%p9206_p5), %s9166_s24, 16, %s1363_s11, [#allocation8]  }
  0xd5   : > { %s8809_s16 = scalar_lea.hbm %s9176_s20, 16 }
  0xd6   : > { %p8810_p11 = scmp.ne.s32.totalorder %s9176_s20, %s8809_s16  ;;  %p8816_p13 = scmp.lt.u32.totalorder %s8809_s16, %s9176_s20 }
  0xd8   : > { %p8812_p12 = pnand %p8810_p11, %p9218_p7 }
  0xda   : > { %p8813_p2 = pneg %p8812_p12 }
  0xdc   : > { %p8818_p0 = pnand %p8816_p13, %p8813_p2 }
  0xde   : > { %8821 = shalt.err (!%p8818_p0)
}
  0xdf   : > { %s8822_s23 = scalar_lea.vmem %s1377_s28, 16  ;;  %s8829_s22 = scalar_lea.vmem %s1377_s28, 32 }
  0xe0   : > { %p8823_p3 = scmp.ne.s32.totalorder %s1377_s28, %s8822_s23  ;;  %p8830_p6 = scmp.lt.s32.totalorder %s1377_s28, %s1377_s28 }
  0xe1   : > { %p8831_p8 = scmp.lt.s32.totalorder %s8829_s22, %s8822_s23 }
  0xe2   : > { %p8825_p1 = pnand %p8823_p3, %p9218_p7 }
  0xe3   : > { %p8832_p9 = por %p8831_p8, %p8830_p6 }
  0xe4   : > { %p8826_p4 = pneg %p8825_p1 }
  0xe6   : > { %p8833_p10 = pnand %p8832_p9, %p8826_p4 }
  0xe8   : > { %8836 = shalt.err (!%p8833_p10)
}
  0xe9   : > { %8091 = dma.hbm_to_vmem [thread:$0]  (!%p9206_p5), %s9176_s20, 16, %s1377_s28, [#allocation11]  }
  0xea   : > { %p11121_p11 = scmp.ne.s32.totalorder %s11118_s0, 0 }
  0xec   : > { %1413 = sbr.rel (%p11121_p11) target bundleno = 10508 (0x290c), region = 216 }
  0xf3   : > { %p11122_p12 = scmp.eq.s32.totalorder %s9189_s15, 0 }
  0xf5   : > { %8842 = dma.done.wait (%p11122_p12), [#allocation3], 16   ;;  %p11123_p2 = pmov %p11122_p12 }
  0xf7   : > { %8844 = vsyncadd (%p11123_p2), [#allocation3], 4294967280  ;;  %p11124_p7 = pmov %p11123_p2 }
  0xf8   : > { %p11125_p13 = pmov %p11123_p2 }
  0xf9   : > { %8846 = dma.done.wait (%p11124_p7), [#allocation5], 32  }
  0xfa   : > { %8848 = vsyncadd (%p11125_p13), [#allocation5], 4294967264  ;;  %p11126_p0 = pmov %p11123_p2 }
  0xfc   : > { %8850 = dma.done.wait (%p11126_p0), [#allocation8], 32   ;;  %p11127_p5 = pmov %p11126_p0 }
  0xfd   : > { %p11128_p3 = pmov %p11126_p0 }
  0xfe   : > { %8852 = vsyncadd (%p11127_p5), [#allocation8], 4294967264 }
  0xff   : > { %8854 = dma.done.wait (%p11128_p3), [#allocation11], 16   ;;  %p11129_p1 = pmov %p11126_p0 }
 0x100   : > { %p1559_p4 = scmp.lt.s32.totalorder %s9189_s15, 1  ;;  %v11073_v0 = vmov 0   ;;  %vm1622_vm0 = vcmask 1043456   ;;  %vm1597_vm1 = vcmask 97280   ;;  %vm8917_vm2 = vmmov 1   ;;  %v1588_v1 = vld [vmem:[%s8951_s17] sm:$0xff] }
 0x101   : > { %8856 = vsyncadd (%p11129_p1), [#allocation11], 4294967280  ;;  %8179 = vset.pattern.permute.xlu0 %v11073_v0  ;;  %8180 = vset.pattern.permute.xlu1 %v11073_v0  ;;  %v1589_v2 = vld [vmem:[%s8951_s17 + $0x8] sm:$0xf]  ;;  %v8918_v15 = vmov 0.0|0.0   ;;  %vm8919_vm4 = vmmov 0   ;;  %v1750_v40 = vlaneseq }
 0x102   : > { %s11194_s15 = smov (!%p1559_p4, %s9189_s15), 1  ;;  %vm8015_vm3 = vmpackc.low %vm1622_vm0, %vm8917_vm2  ;;  %v8014_v4 = vpack.c.bf16 %v1589_v2, %v1588_v1  ;;  %8020 = vmatprep.subr.bf16.mxu1 %v8918_v15  ;;  %v11075_v16 = vmov 0.0   ;;  %v7175_v17 = vld [vmem:[%s8956_s21] ss:$0 sm:$0xff]  ;;  %v1732_v19 = vld [vmem:[%s8961_s25 + $0x8] sm:$0xff]  ;;  %vm1793_vm6 = vcmask 523264  }
 0x103   : > { %s7424_s0 = sshll.u32 %s11194_s15, 6  ;;  %s8047_s26 = smul.u32 24, %s11194_s15  ;;  %7624 = vmatprep.mubr.msk.f32.mxu1 %vm8919_vm4, %v11075_v16  ;;  %v1731_v22 = vld [vmem:[%s8961_s25] sm:$0xff]  ;;  %v1734_v27 = vld [vmem:[%s8961_s25 + $0x18] sm:$0xff]  ;;  %v1733_v30 = vld [vmem:[%s8961_s25 + $0x10] sm:$0xff]  ;;  %v9357_v50 = vand.u32 127, %v1750_v40 }
 0x104   : > { %s1563_s10 = scalar_lea.vmem %s8936_s5, %s7424_s0  ;;  %8016 = vmatprep.subr.msk.bf16.mxu0 %vm8015_vm3, %v8014_v4  ;;  %v1736_v36 = vld [vmem:[%s8961_s25 + $0x28] sm:$0xff]  ;;  %v1735_v39 = vld [vmem:[%s8961_s25 + $0x20] sm:$0xff]  ;;  %v1738_v46 = vld [vmem:[%s8961_s25 + $0x38] sm:$0xff]  ;;  %v9373_v62 = vshrl.u32 %v1750_v40, 7  ;;  %vm1885_vm10 = vcmask 392192   ;;  %vm1892_vm11 = vcmask 385024  }
 0x105   : > { %v1580_v3 = vld [vmem:[%s1563_s10] sm:$0xff]  ;;  %s1568_s11 = scalar_lea.vmem %s8941_s9, %s8047_s26  ;;  %v1581_v5 = vld [vmem:[%s1563_s10 + $0x8] sm:$0xff]  ;;  %v1582_v6 = vld [vmem:[%s1563_s10 + $0x10] sm:$0xff]  ;;  %8019 = vmatpush3.bf16.msk.msra.mxu0 %vm8015_vm3, %v8014_v4  ;;  %s11130_s3 = sld [smem:[#allocation17_spill]]  ;;  %vm2062_vm12 = vcmask 130048   ;;  %vm2174_vm13 = vcmask 1040384  }
 0x106   : > { %7596 = vmatprep.mubr.msk.f32.mxu0 %vm1597_vm1, %v1580_v3  ;;  %v1747_v7 = vld [vmem:[%s1568_s11] sm:$0xff]  ;;  %v1748_v8 = vld [vmem:[%s1568_s11 + $0x8] sm:$0xff]  ;;  %v1749_v9 = vld [vmem:[%s1568_s11 + $0x10] sm:$0x1]  ;;  %vm1774_vm9 = vcmp.eq.s32.totalorder %v9373_v62, 0  ;;  %s11067_s28 = smov 80  }
 0x107   : > { %1753 = vperm.xlu0 %8179, %v1747_v7   ;;  %1759 = vperm.xlu1 %8180, %v1749_v9   ;;  %v1583_v10 = vld [vmem:[%s1563_s10 + $0x18] sm:$0xff]  ;;  %v1584_v11 = vld [vmem:[%s1563_s10 + $0x20] sm:$0xff]  ;;  %v1585_v12 = vld [vmem:[%s1563_s10 + $0x28] sm:$0xff]  ;;  %v7188_v63 = vsel %vm1774_vm9, 1.0, %v11075_v16  ;;  %s11063_s18 = smov 64   ;;  %s11059_s2 = smov 112  }
 0x108   : > { %7597 = vmatmul.mubr.msk.f32.vlgmr.msra.gmra.mrb[0].mxu0 %vm1597_vm1, %v1581_v5  ;;  %v1586_v13 = vld [vmem:[%s1563_s10 + $0x30] sm:$0xff]  ;;  %v1587_v14 = vld [vmem:[%s1563_s10 + $0x38] sm:$0xff]  ;;  %v7189_v1 = vld [vmem:[%s8966_s29] ss:$0 sm:$0xff]  ;;  %vm2126_vm14 = vcmask 138240   ;;  %vm2133_vm15 = vcmask 131072  }
 0x109   : > { %7599 = vmatprep.mubr.msk.f32.mxu0 %vm1597_vm1, %v1582_v6  ;;  %v1737_v49 = vld [vmem:[%s8961_s25 + $0x30] sm:$0xff]  ;;  %v1790_v2 = vmul.f32 %v7189_v1, %v7188_v63  ;;  %v1791_v6 = vmul.f32 0.0, %v7189_v1  ;;  %s11065_s1 = smov 32   ;;  %s11055_s16 = smov 16   ;;  %vm2586_vm0 = vcmask 261120  }
 0x10a   : > { %s11061_s23 = smov 48   ;;  %s11057_s22 = smov 96  }
 0x10b   : > { %1756 = vperm.xlu0 %8179, %v1748_v8   ;;  %s11133_s0 = sld [smem:[#allocation18_spill]]  ;;  %s11134_s26 = sld [smem:[#allocation19_spill]] }
 0x10c   : > { %7600 = vmatmul.mubr.msk.f32.gmra.mrb[2].mxu0 %vm1597_vm1, %v1583_v10  ;;  %s11135_s10 = sld [smem:[#allocation22_spill]]  ;;  %s11136_s11 = sld [smem:[#allocation24_spill]] }
 0x10d   : > { %7602 = vmatprep.mubr.msk.f32.mxu0 %vm1597_vm1, %v1584_v11 }
 0x110   : > { %7603 = vmatmul.mubr.msk.f32.gmra.mrb[4].mxu0 %vm1597_vm1, %v1585_v12 }
 0x111   : > { %7605 = vmatprep.mubr.msk.f32.mxu0 %vm1597_vm1, %v1586_v13 }
 0x114   : > { %7606 = vmatmul.mubr.msk.f32.gmra.mrb[6].mxu0 %vm1597_vm1, %v1587_v14 }
 0x115   : > { %2033 = vmatprep.mubr.bf16.mxu0 %v11073_v0 }
 0x186   : > { %v1754_v52 = vpop.permute.xlu0 %1753  ;;  %v1760_v59 = vpop.permute.xlu1 %1759 }
 0x187   : > { %vm1761_vm5 = vcmp.eq.s32.totalorder %v1754_v52, %v9357_v50  ;;  %vm1763_vm8 = vcmp.eq.s32.totalorder %v1760_v59, %v9357_v50 }
 0x188   : > { %v7185_v57 = vsel %vm1761_vm5, 1.0, %v11075_v16  ;;  %v7187_v61 = vsel %vm1763_vm8, 1.0, %v11075_v16 }
 0x18a   : > { %v1757_v58 = vpop.permute.xlu0 %1756 }
 0x18b   : > { %vm1762_vm7 = vcmp.eq.s32.totalorder %v1757_v58, %v9357_v50 }
 0x18c   : > { %v7186_v60 = vsel %vm1762_vm7, 1.0, %v11075_v16 }
 0x1db   : > { %v7598_v18 = vpop.f32.mrb[0].mxu0 }
 0x1dc   : > { %v1698_v20 = vadd.f32 %v7598_v18, %v7175_v17  ;;  %v1692_v21 = vpop.f32.mrb[1].mxu0 }
 0x1dd   : > { %v1693_v23 = vadd.f32 %v7175_v17, %v1692_v21 }
 0x1de   : > { %v1740_v24 = vadd.f32 %v1732_v19, %v1698_v20 }
 0x1df   : > { %v1739_v25 = vadd.f32 %v1731_v22, %v1693_v23  ;;  %v7601_v26 = vpop.f32.mrb[2].mxu0 }
 0x1e0   : > { %v1708_v28 = vadd.f32 %v7601_v26, %v7175_v17  ;;  %v1702_v29 = vpop.f32.mrb[3].mxu0 }
 0x1e1   : > { %v1703_v31 = vadd.f32 %v7175_v17, %v1702_v29  ;;  %v8021_v32 = vpack.c.bf16 %v1740_v24, %v1739_v25 }
 0x1e2   : > { %v1742_v33 = vadd.f32 %v1734_v27, %v1708_v28 }
 0x1e3   : > { %v1741_v34 = vadd.f32 %v1733_v30, %v1703_v31  ;;  %v7604_v35 = vpop.f32.mrb[4].mxu0  ;;  %8022 = vmatpush3.bf16.msra.mxu1 %v8021_v32 }
 0x1e4   : > { %v1718_v37 = vadd.f32 %v7604_v35, %v7175_v17  ;;  %v1712_v38 = vpop.f32.mrb[5].mxu0  ;;  %8023 = vmatprep.subr.bf16.mxu1 %v8918_v15  ;;  %v8266_v35 = vld [vmem:[%s8981_s14 + $0x14] ss:$8 sps:$4 sm:$0xff]  }
 0x1e5   : > { %v1713_v41 = vadd.f32 %v7175_v17, %v1712_v38  ;;  %v8024_v42 = vpack.c.bf16 %v1742_v33, %v1741_v34  ;;  %v8263_v33 = vld [vmem:[%s8981_s14 + $0x4] ss:$8 sps:$4 sm:$0xff]   ;;  %v8261_v34 = vld [vmem:[%s8981_s14] ss:$8 sps:$4 sm:$0xff]  }
 0x1e6   : > { %v1744_v43 = vadd.f32 %v1736_v36, %v1718_v37  ;;  %2001 = vmatprep.subr.bf16.mxu0 %v8263_v33  ;;  %v8264_v36 = vld [vmem:[%s8981_s14 + $0x10] ss:$8 sps:$4 sm:$0xff]   ;;  %v8269_v37 = vld [vmem:[%s8981_s14 + $0x24] ss:$8 sps:$4 sm:$0xff]   ;;  %v8267_v38 = vld [vmem:[%s8981_s14 + $0x20] ss:$8 sps:$4 sm:$0xff]  }
 0x1e7   : > { %v1743_v44 = vadd.f32 %v1735_v39, %v1713_v41  ;;  %v7607_v45 = vpop.f32.mrb[6].mxu0  ;;  %8025 = vmatpush3.bf16.msra.mxu1 %v8024_v42  ;;  %2002 = vmatpush1.bf16.msra.mxu0 %v8261_v34 }
 0x1e8   : > { %v1728_v47 = vadd.f32 %v7607_v45, %v7175_v17  ;;  %v1722_v48 = vpop.f32.mrb[7].mxu0  ;;  %8026 = vmatprep.subr.bf16.mxu1 %v8918_v15  ;;  %2003 = vmatprep.subr.bf16.mxu0 %v8266_v35 }
 0x1e9   : > { %v1723_v51 = vadd.f32 %v7175_v17, %v1722_v48  ;;  %v8027_v53 = vpack.c.bf16 %v1744_v43, %v1743_v44 }
 0x1ea   : > { %v1746_v54 = vadd.f32 %v1738_v46, %v1728_v47 }
 0x1eb   : > { %v1745_v55 = vadd.f32 %v1737_v49, %v1723_v51  ;;  %8028 = vmatpush3.bf16.msra.mxu1 %v8027_v53  ;;  %2004 = vmatpush1.bf16.msra.mxu0 %v8264_v36  ;;  %v7193_v51 = vld [vmem:[%s11130_s3] ss:$0 sm:$0xff]  ;;  %s11172_s3 = smov 48  }
 0x1ec   : > { %8029 = vmatprep.subr.bf16.mxu1 %v8918_v15  ;;  %2005 = vmatprep.subr.bf16.mxu0 %v8269_v37 }
 0x1ed   : > { %v8030_v56 = vpack.c.bf16 %v1746_v54, %v1745_v55  ;;  %v7194_v55 = vld [vmem:[%s8976_s8] ss:$0 sm:$0xff] }
 0x1ef   : > { %8031 = vmatpush3.bf16.msra.mxu1 %v8030_v56  ;;  %2006 = vmatpush1.bf16.msra.mxu0 %v8267_v38 }
 0x1f2   : > { %7625 = vmatmul.mubr.msk.f32.vlgmr.msra.gmra.mrb[0].mxu1 %vm1793_vm6, %v7185_v57 }
 0x1f3   : > { %7627 = vmatprep.mubr.msk.f32.mxu1 %vm8919_vm4, %v11075_v16 }
 0x1f6   : > { %7628 = vmatmul.mubr.msk.f32.gmra.mrb[2].mxu1 %vm1793_vm6, %v7186_v60 }
 0x1f7   : > { %7630 = vmatprep.mubr.msk.f32.mxu1 %vm8919_vm4, %v11075_v16 }
 0x1fa   : > { %7631 = vmatmul.mubr.msk.f32.gmra.mrb[4].mxu1 %vm1793_vm6, %v7187_v61 }
 0x2c5   : > { %v1869_v3 = vpop.f32.mrb[0].mxu1 }
 0x2c6   : > { %v9378_v4 = vadd.f32 %v1869_v3, %v1790_v2  ;;  %v7626_v5 = vpop.f32.mrb[1].mxu1  ;;  %v9408_v3 = vsub.s32 0, %v9373_v62 }
 0x2c7   : > { %v9411_v5 = vsub.s32 1, %v9373_v62 }
 0x2c8   : > { %v1886_v7 = vsel %vm1885_vm10, %v9378_v4, 0.0  ;;  %11131 = vst [vmem:[#allocation49_spill] sm:$0xff] %v9408_v3 }
 0x2c9   : > { %1887 = vadd.xlane.f32.xlu1 %v1886_v7  ;;  %v1874_v8 = vpop.f32.mrb[2].mxu1  ;;  %11132 = vst [vmem:[#allocation50_spill] sm:$0xff] %v9411_v5 }
 0x2ca   : > { %v9382_v9 = vadd.f32 %v1874_v8, %v1791_v6  ;;  %v7629_v10 = vpop.f32.mrb[3].mxu1 }
 0x2cc   : > { %v1889_v11 = vsel %vm1885_vm10, %v9382_v9, 0.0 }
 0x2cd   : > { %1890 = vadd.xlane.f32.xlu0 %v1889_v11  ;;  %v1879_v12 = vpop.f32.mrb[4].mxu1 }
 0x2ce   : > { %v9386_v13 = vadd.f32 %v1879_v12, %v1791_v6  ;;  %v7632_v14 = vpop.f32.mrb[5].mxu1  ;;  %v1953_v6 = vld [vmem:[%s8986_s19] sm:$0x3] }
 0x2cf   : > { %v1958_v7 = vrot.slane %v1953_v6, %v9408_v3  ;;  %v1962_v10 = vrot.slane %v1953_v6, %v9411_v5 }
 0x2d0   : > { %v1893_v17 = vsel %vm1892_vm11, %v9386_v13, 0.0 }
 0x2d1   : > { %1894 = vadd.xlane.f32.xlu0 %v1893_v17 }
 0x356   : > { %v1888_v18 = vpop.xlane.xlu1 %1887 }
 0x357   : > { %v1897_v19 = vmul.f32 0.020833334, %v1888_v18 }
 0x359   : > { %v1900_v20 = vsub.f32 %v9378_v4, %v1897_v19 }
 0x35a   : > { %v1891_v21 = vpop.xlane.xlu0 %1890 }
 0x35b   : > { %v1898_v22 = vmul.f32 0.020833334, %v1891_v21  ;;  %v1903_v23 = vmul.f32 %v1900_v20, %v1900_v20 }
 0x35d   : > { %v1901_v24 = vsub.f32 %v9382_v9, %v1898_v22  ;;  %v1906_v25 = vsel %vm1885_vm10, %v1903_v23, 0.0 }
 0x35e   : > { %1907 = vadd.xlane.f32.xlu1 %v1906_v25  ;;  %v1895_v26 = vpop.xlane.xlu0 %1894 }
 0x35f   : > { %v1899_v27 = vmul.f32 0.020833334, %v1895_v26  ;;  %v1904_v28 = vmul.f32 %v1901_v24, %v1901_v24 }
 0x361   : > { %v1902_v29 = vsub.f32 %v9386_v13, %v1899_v27  ;;  %v1909_v30 = vsel %vm1885_vm10, %v1904_v28, 0.0 }
 0x362   : > { %1910 = vadd.xlane.f32.xlu0 %v1909_v30 }
 0x363   : > { %v1905_v31 = vmul.f32 %v1902_v29, %v1902_v29 }
 0x365   : > { %v1912_v32 = vsel %vm1892_vm11, %v1905_v31, 0.0 }
 0x366   : > { %1913 = vadd.xlane.f32.xlu1 %v1912_v32 }
 0x3eb   : > { %v1908_v39 = vpop.xlane.xlu1 %1907 }
 0x3ec   : > { %v1915_v40 = vmul.f32 0.020833334, %v1908_v39  ;;  %v9447_v39 = vsel %vm2174_vm13, 65535, %v11073_v0 }
 0x3ee   : > { %v1918_v41 = vadd.f32 1e-05, %v1915_v40 }
 0x3ef   : > { %v1911_v42 = vpop.xlane.xlu0 %1910 }
 0x3f0   : > { %8363 = vrsqrt.f32 %v1918_v41  ;;  %v1916_v43 = vmul.f32 0.020833334, %v1911_v42 }
 0x3f2   : > { %v1919_v44 = vadd.f32 1e-05, %v1916_v43 }
 0x3f3   : > { %v1914_v45 = vpop.xlane.xlu1 %1913 }
 0x3f4   : > { %8365 = vrsqrt.f32 %v1919_v44  ;;  %v1917_v46 = vmul.f32 0.020833334, %v1914_v45 }
 0x3f6   : > { %v1920_v47 = vadd.f32 1e-05, %v1917_v46 }
 0x3f8   : > { %8367 = vrsqrt.f32 %v1920_v47 }
 0x3fa   : > { %v8364_v48 = vpop.eup %8363 }
 0x3fb   : > { %v1924_v49 = vmul.f32 %v8364_v48, %v1900_v20 }
 0x3fd   : > { %v1933_v53 = vmul.f32 %v7193_v51, %v1924_v49 }
 0x3fe   : > { %v8366_v52 = vpop.eup %8365 }
 0x3ff   : > { %v1925_v54 = vmul.f32 %v8366_v52, %v1901_v24  ;;  %v1942_v58 = vadd.f32 %v7194_v55, %v1933_v53 }
 0x401   : > { %v1934_v56 = vmul.f32 %v7193_v51, %v1925_v54 }
 0x402   : > { %v8368_v57 = vpop.eup %8367 }
 0x403   : > { %v1943_v59 = vadd.f32 %v7194_v55, %v1934_v56  ;;  %v1926_v60 = vmul.f32 %v8368_v57, %v1902_v29 }
 0x405   : > { %v1951_v61 = vpack.c.bf16 %v1943_v59, %v1942_v58  ;;  %v1935_v63 = vmul.f32 %v7193_v51, %v1926_v60 }
 0x407   : > { %7201 = vmatmul.mubr.msk.bf16.vlgmr.msra.gmra.mrb[8].mxu0 %vm1885_vm10, %v1951_v61  ;;  %v1944_v1 = vadd.f32 %v7194_v55, %v1935_v63 }
 0x408   : > { %2043 = vmatprep.mubr.bf16.mxu0 %v11073_v0 }
 0x409   : > { %v1952_v2 = vpack.c.bf16 %v1944_v1, %v1944_v1 }
 0x40f   : > { %7202 = vmatmul.mubr.msk.bf16.gmra.mrb[12].mxu0 %vm1885_vm10, %v1952_v2 }
 0x4da   : > { %v2035_v8 = vpop.f32.mrb[8].mxu0 }
 0x4db   : > { %v2037_v11 = vpop.f32.mrb[9].mxu0  ;;  %v2036_v14 = vadd.f32 %v2035_v8, %v1958_v7 }
 0x4dc   : > { %v2039_v12 = vpop.f32.mrb[10].mxu0  ;;  %v2038_v19 = vadd.f32 %v2037_v11, %v1962_v10 }
 0x4dd   : > { %v2040_v17 = vadd.f32 %v2039_v12, %v1958_v7  ;;  %v2041_v18 = vpop.f32.mrb[11].mxu0 }
 0x4de   : > { %v2042_v20 = vadd.f32 %v2041_v18, %v1962_v10 }
 0x4df   : > { %v9416_v21 = vpack.c.bf16 %v2040_v17, %v2036_v14 }
 0x4e0   : > { %v2053_v22 = vpack.c.bf16 %v2042_v20, %v2038_v19 }
 0x4e1   : > { %2058 = vrot.lane.b32.xlu0 %v9416_v21, %s11067_s28  ;;  %7637 = vmatprep.mubr.msk.bf16.mxu1 %vm2062_vm12, %v9416_v21 }
 0x4e2   : > { %v2045_v62 = vpop.f32.mrb[12].mxu0 }
 0x4e3   : > { %v2046_v23 = vadd.f32 %v2045_v62, %v1958_v7  ;;  %v2047_v24 = vpop.f32.mrb[13].mxu0 }
 0x4e4   : > { %v2049_v25 = vpop.f32.mrb[14].mxu0  ;;  %v2048_v36 = vadd.f32 %v2047_v24, %v1962_v10 }
 0x4e5   : > { %v9422_v26 = vpack.c.bf16 %v2046_v23, %v2046_v23  ;;  %v2050_v27 = vpop.f32.mrb[15].mxu0 }
 0x4e6   : > { %v2055_v38 = vpack.c.bf16 %v2048_v36, %v2048_v36 }
 0x4e7   : > { %2060 = vrot.lane.b32.xlu1 %v9422_v26, %s11067_s28  ;;  %2234 = vrot.lane.b32.xlu0 %v9422_v26, %s11063_s18 }
 0x4e8   : > { %v2509_v41 = vand.u32 %v9447_v39, %v2055_v38 }
 0x4eb   : > { %2232 = vrot.lane.b32.xlu1 %v9416_v21, %s11063_s18  ;;  %2230 = vrot.lane.b32.xlu0 %v9422_v26, %s11059_s2 }
 0x4ef   : > { %2228 = vrot.lane.b32.xlu1 %v9416_v21, %s11059_s2  ;;  %s11144_s2 = sld [smem:[#allocation29_spill]] }
 0x553   : > { %v2059_v28 = vpop.permute.xlu0 %2058 }
 0x554   : > { %8035 = vmatprep.subr.msk.bf16.mxu1 %vm2062_vm12, %v2059_v28  ;;  %v2070_v29 = vsel %vm2062_vm12, %v2059_v28, 0 }
 0x555   : > { %7634 = vmatpush3.bf16.xpose.msra.mxu1 %v2070_v29 }
 0x559   : > { %v2061_v30 = vpop.permute.xlu1 %2060  ;;  %v2235_v35 = vpop.permute.xlu0 %2234 }
 0x55a   : > { %8036 = vmatprep.subr.msk.bf16.mxu1 %vm2062_vm12, %v2061_v30  ;;  %v2073_v31 = vsel %vm2062_vm12, %v2061_v30, 0  ;;  %v2246_v37 = vsel %vm2062_vm12, %v2235_v35, 0 }
 0x55d   : > { %v2233_v32 = vpop.permute.xlu1 %2232  ;;  %7636 = vmatpush3.bf16.xpose.msra.mxu1 %v2073_v31  ;;  %v2231_v40 = vpop.permute.xlu0 %2230 }
 0x55e   : > { %8037 = vmatprep.subr.msk.bf16.mxu1 %vm2062_vm12, %v2233_v32  ;;  %v2243_v34 = vsel %vm2062_vm12, %v2233_v32, 0 }
 0x561   : > { %v2229_v33 = vpop.permute.xlu1 %2228 }
 0x564   : > { %7638 = vmatmul.mubr.msk.bf16.vlgmr.msra.gmra.mrb[8].mxu1 %vm2062_vm12, %v9422_v26 }
 0x565   : > { %7650 = vmatpush3.bf16.xpose.msra.mxu1 %v2243_v34  ;;  %7653 = vmatprep.mubr.msk.bf16.mxu1 %vm2062_vm12, %v2229_v33 }
 0x566   : > { %8038 = vmatprep.subr.msk.bf16.mxu1 %vm2062_vm12, %v2235_v35 }
 0x56d   : > { %7652 = vmatpush3.bf16.xpose.msra.mxu1 %v2246_v37 }
 0x56e   : > { %7673 = vmatprep.subr.bf16.mxu1 %v2053_v22 }
 0x574   : > { %7654 = vmatmul.mubr.msk.bf16.vlgmr.msra.gmra.mrb[12].mxu1 %vm2062_vm12, %v2231_v40 }
 0x575   : > { %7674 = vmatpush3.bf16.msra.mxu1 %v2053_v22 }
 0x576   : > { %7675 = vmatprep.subr.bf16.mxu1 %v2509_v41 }
 0x579   : > { %7676 = vmatpush3.bf16.msra.mxu1 %v2509_v41 }
 0x637   : > { %v7639_v42 = vpop.f32.mrb[8].mxu1 }
 0x638   : > { %v2109_v43 = vpop.f32.mrb[9].mxu1  ;;  %v2125_v49 = vmul.f32 0.25, %v7639_v42 }
 0x639   : > { %v2123_v44 = vmul.f32 0.25, %v2109_v43  ;;  %v7640_v45 = vpop.f32.mrb[10].mxu1 }
 0x63a   : > { %v2112_v46 = vpop.f32.mrb[11].mxu1  ;;  %v2134_v52 = vsel %vm2133_vm15, %v2125_v49, -inf }
 0x63b   : > { %v2124_v47 = vmul.f32 0.25, %v2112_v46  ;;  %v2127_v48 = vsel %vm2126_vm14, %v2123_v44, -inf }
 0x63c   : > { %2128 = vmax.xlane.f32.xlu1 %v2127_v48 }
 0x63d   : > { %v2130_v51 = vsel %vm2126_vm14, %v2124_v47, -inf }
 0x63e   : > { %2131 = vmax.xlane.f32.xlu0 %v2130_v51 }
 0x642   : > { %2135 = vmax.xlane.f32.xlu0 %v2134_v52 }
 0x647   : > { %v7655_v53 = vpop.f32.mrb[12].mxu1 }
 0x648   : > { %v2282_v54 = vpop.f32.mrb[13].mxu1  ;;  %v2298_v58 = vmul.f32 0.25, %v7655_v53 }
 0x649   : > { %v2296_v55 = vmul.f32 0.25, %v2282_v54  ;;  %v7656_v56 = vpop.f32.mrb[14].mxu1 }
 0x64a   : > { %v2285_v57 = vpop.f32.mrb[15].mxu1  ;;  %v2305_v63 = vsel %vm2133_vm15, %v2298_v58, -inf }
 0x64b   : > { %v2297_v59 = vmul.f32 0.25, %v2285_v57  ;;  %v2299_v60 = vsel %vm2126_vm14, %v2296_v55, -inf }
 0x64c   : > { %2300 = vmax.xlane.f32.xlu1 %v2299_v60 }
 0x64d   : > { %v2302_v61 = vsel %vm2126_vm14, %v2297_v59, -inf }
 0x64e   : > { %2303 = vmax.xlane.f32.xlu0 %v2302_v61 }
 0x650   : > { %2306 = vmax.xlane.f32.xlu1 %v2305_v63 }
 0x661   : > { %2165 = vrot.lane.b32.xlu1 %v9422_v26, %s11065_s1 }
 0x664   : > { %2163 = vrot.lane.b32.xlu0 %v9416_v21, %s11065_s1 }
 0x665   : > { %2334 = vrot.lane.b32.xlu1 %v9416_v21, %s11055_s16 }
 0x6c9   : > { %v2129_v1 = vpop.xlane.xlu1 %2128 }
 0x6ca   : > { %v2137_v7 = vsub.f32 %v2123_v44, %v2129_v1 }
 0x6cb   : > { %v2132_v2 = vpop.xlane.xlu0 %2131 }
 0x6cc   : > { %v2138_v6 = vsub.f32 %v2124_v47, %v2132_v2  ;;  %v2140_v12 = vmul.f32 1.442695, %v2137_v7 }
 0x6ce   : > { %v2142_v8 = vmul.f32 1.442695, %v2138_v6 }
 0x6cf   : > { %v2136_v10 = vpop.xlane.xlu0 %2135 }
 0x6d0   : > { %8369 = vpow2.f32 %v2142_v8  ;;  %v2139_v11 = vsub.f32 %v2125_v49, %v2136_v10 }
 0x6d2   : > { %v2144_v14 = vmul.f32 1.442695, %v2139_v11 }
 0x6d4   : > { %8371 = vpow2.f32 %v2144_v14 }
 0x6d5   : > { %8373 = vpow2.f32 %v2140_v12 }
 0x6d9   : > { %v2301_v17 = vpop.xlane.xlu1 %2300 }
 0x6da   : > { %v8370_v18 = vpop.eup %8369  ;;  %v2308_v22 = vsub.f32 %v2296_v55, %v2301_v17 }
 0x6db   : > { %v2304_v19 = vpop.xlane.xlu0 %2303  ;;  %v2149_v20 = vsel %vm2126_vm14, %v8370_v18, 0.0 }
 0x6dc   : > { %v2309_v62 = vsub.f32 %v2297_v59, %v2304_v19  ;;  %2150 = vadd.xlane.f32.xlu1 %v2149_v20  ;;  %v2311_v31 = vmul.f32 1.442695, %v2308_v22 }
 0x6dd   : > { %v2307_v23 = vpop.xlane.xlu1 %2306 }
 0x6de   : > { %v8372_v24 = vpop.eup %8371  ;;  %v2313_v25 = vmul.f32 1.442695, %v2309_v62  ;;  %v2310_v27 = vsub.f32 %v2298_v58, %v2307_v23 }
 0x6df   : > { %v2164_v28 = vpop.permute.xlu0 %2163  ;;  %v2152_v29 = vsel %vm2133_vm15, %v8372_v24, 0.0  ;;  %v8374_v30 = vpop.eup %8373 }
 0x6e0   : > { %8375 = vpow2.f32 %v2313_v25  ;;  %v2315_v32 = vmul.f32 1.442695, %v2310_v27  ;;  %2153 = vadd.xlane.f32.xlu0 %v2152_v29  ;;  %7641 = vmatprep.subr.bf16.mxu0 %v2164_v28  ;;  %v2146_v35 = vsel %vm2126_vm14, %v8374_v30, 0.0 }
 0x6e1   : > { %v2166_v33 = vpop.permute.xlu1 %2165  ;;  %7642 = vmatpush3.bf16.msra.mxu0 %v2164_v28 }
 0x6e2   : > { %8377 = vpow2.f32 %v2315_v32  ;;  %v2178_v34 = vand.u32 %v9447_v39, %v2166_v33 }
 0x6e3   : > { %8379 = vpow2.f32 %v2311_v31 }
 0x6e4   : > { %2147 = vadd.xlane.f32.xlu0 %v2146_v35  ;;  %7643 = vmatprep.subr.bf16.mxu0 %v2178_v34 }
 0x6e5   : > { %v2335_v36 = vpop.permute.xlu1 %2334  ;;  %7644 = vmatpush3.bf16.msra.mxu0 %v2178_v34 }
 0x6e6   : > { %7657 = vmatprep.subr.bf16.mxu0 %v2335_v36 }
 0x6ea   : > { %v8376_v37 = vpop.eup %8375 }
 0x6eb   : > { %v2320_v38 = vsel %vm2126_vm14, %v8376_v37, 0.0 }
 0x6ec   : > { %v8378_v40 = vpop.eup %8377  ;;  %2321 = vadd.xlane.f32.xlu0 %v2320_v38 }
 0x6ed   : > { %v2323_v41 = vsel %vm2133_vm15, %v8378_v40, 0.0  ;;  %v8380_v42 = vpop.eup %8379 }
 0x6ee   : > { %2324 = vadd.xlane.f32.xlu1 %v2323_v41  ;;  %v2317_v43 = vsel %vm2126_vm14, %v8380_v42, 0.0 }
 0x6f2   : > { %2318 = vadd.xlane.f32.xlu1 %v2317_v43 }
 0x702   : > { %2336 = vrot.lane.b32.xlu0 %v9422_v26, %s11055_s16 }
 0x703   : > { %2400 = vrot.lane.b32.xlu1 %v9416_v21, %s11061_s23 }
 0x706   : > { %2402 = vrot.lane.b32.xlu0 %v9422_v26, %s11061_s23 }
 0x707   : > { %2396 = vrot.lane.b32.xlu1 %v9416_v21, %s11057_s22 }
 0x70a   : > { %2398 = vrot.lane.b32.xlu0 %v9422_v26, %s11057_s22  ;;  %s11143_s22 = sld [smem:[#allocation27_spill]] }
 0x769   : > { %v2151_v44 = vpop.xlane.xlu1 %2150 }
 0x76d   : > { %v2154_v45 = vpop.xlane.xlu0 %2153 }
 0x76e   : > { %8381 = vrcp.f32 %v2154_v45 }
 0x76f   : > { %8383 = vrcp.f32 %v2151_v44 }
 0x771   : > { %v2148_v46 = vpop.xlane.xlu0 %2147 }
 0x772   : > { %8385 = vrcp.f32 %v2148_v46 }
 0x778   : > { %v8382_v47 = vpop.eup %8381 }
 0x779   : > { %v2322_v48 = vpop.xlane.xlu0 %2321  ;;  %v8384_v49 = vpop.eup %8383  ;;  %v2160_v53 = vmul.f32 %v8382_v47, %v8372_v24 }
 0x77a   : > { %v2158_v55 = vmul.f32 %v8384_v49, %v8370_v18 }
 0x77b   : > { %v2325_v51 = vpop.xlane.xlu1 %2324  ;;  %v2162_v26 = vpack.c.bf16 %v2160_v53, %v2160_v53 }
 0x77c   : > { %v8386_v52 = vpop.eup %8385  ;;  %8387 = vrcp.f32 %v2325_v51 }
 0x77d   : > { %v2156_v54 = vmul.f32 %v8386_v52, %v8374_v30  ;;  %8389 = vrcp.f32 %v2322_v48  ;;  %v2337_v21 = vpop.permute.xlu0 %2336 }
 0x77e   : > { %v2346_v58 = vand.u32 %v2337_v21, %v9447_v39 }
 0x77f   : > { %v2319_v56 = vpop.xlane.xlu1 %2318  ;;  %v2161_v57 = vpack.c.bf16 %v2158_v55, %v2156_v54 }
 0x780   : > { %8391 = vrcp.f32 %v2319_v56 }
 0x781   : > { %7645 = vmatprep.mubr.msk.bf16.mxu0 %vm2126_vm14, %v2161_v57  ;;  %v2403_v12 = vpop.permute.xlu0 %2402 }
 0x782   : > { %7646 = vmatmul.mubr.msk.bf16.vlgmr.msra.gmra.mrb[16].mxu0 %vm2126_vm14, %v2162_v26  ;;  %v2414_v14 = vsel %vm2062_vm12, %v2403_v12, 0 }
 0x783   : > { %7658 = vmatpush3.bf16.msra.mxu0 %v2335_v36  ;;  %v2401_v60 = vpop.permute.xlu1 %2400 }
 0x784   : > { %7659 = vmatprep.subr.bf16.mxu0 %v2346_v58  ;;  %v2411_v11 = vsel %vm2062_vm12, %v2401_v60, 0 }
 0x785   : > { %v2399_v17 = vpop.permute.xlu0 %2398 }
 0x786   : > { %v8388_v59 = vpop.eup %8387 }
 0x787   : > { %7660 = vmatpush3.bf16.msra.mxu0 %v2346_v58  ;;  %v8390_v61 = vpop.eup %8389  ;;  %v2331_v1 = vmul.f32 %v8388_v59, %v8378_v40  ;;  %v2397_v10 = vpop.permute.xlu1 %2396 }
 0x788   : > { %8039 = vmatprep.subr.msk.bf16.mxu0 %vm2062_vm12, %v2401_v60  ;;  %v2329_v6 = vmul.f32 %v8390_v61, %v8376_v37 }
 0x789   : > { %v2333_v8 = vpack.c.bf16 %v2331_v1, %v2331_v1 }
 0x78a   : > { %v8392_v63 = vpop.eup %8391 }
 0x78b   : > { %v2327_v2 = vmul.f32 %v8392_v63, %v8380_v42 }
 0x78d   : > { %v2332_v7 = vpack.c.bf16 %v2329_v6, %v2327_v2  ;;  %v8270_v2 = vld [vmem:[%s11133_s0] sm:$0xff]   ;;  %v8271_v6 = vld [vmem:[%s11133_s0 + $0x8] sm:$0xff]  }
 0x78e   : > { %7681 = vmatprep.subr.bf16.mxu1 %v8270_v2 }
 0x78f   : > { %7661 = vmatprep.mubr.msk.bf16.mxu0 %vm2126_vm14, %v2332_v7  ;;  %v8272_v7 = vld [vmem:[%s11133_s0 + $0x10] sm:$0xff]   ;;  %s11153_s0 = sld [smem:[#allocation33_spill]] }
 0x790   : > { %7662 = vmatmul.mubr.msk.bf16.vlgmr.msra.gmra.mrb[20].mxu0 %vm2126_vm14, %v2333_v8 }
 0x791   : > { %7666 = vmatpush3.bf16.xpose.msra.mxu0 %v2411_v11  ;;  %7669 = vmatprep.mubr.msk.bf16.mxu0 %vm2062_vm12, %v2397_v10 }
 0x792   : > { %8040 = vmatprep.subr.msk.bf16.mxu0 %vm2062_vm12, %v2403_v12 }
 0x799   : > { %7668 = vmatpush3.bf16.xpose.msra.mxu0 %v2414_v14 }
 0x7a0   : > { %7670 = vmatmul.mubr.msk.bf16.vlgmr.msra.gmra.mrb[24].mxu0 %vm2062_vm12, %v2399_v17 }
 0x7a1   : > { %2830 = vmatprep.mubr.bf16.mxu0 %v11073_v0 }
 0x855   : > { %v9492_v18 = vpop.f32.mrb[16].mxu0 }
 0x856   : > { %v9494_v19 = vpop.f32.mrb[17].mxu0 }
 0x857   : > { %v7648_v20 = vpop.f32.mrb[18].mxu0 }
 0x858   : > { %v9496_v22 = vpop.f32.mrb[19].mxu0 }
 0x863   : > { %v7663_v62 = vpop.f32.mrb[20].mxu0 }
 0x864   : > { %v2382_v23 = vpop.f32.mrb[21].mxu0 }
 0x865   : > { %v7664_v24 = vpop.f32.mrb[22].mxu0 }
 0x866   : > { %v2385_v25 = vpop.f32.mrb[23].mxu0 }
 0x867   : > { %v8181_v27 = vpack.i.bf16 %v2385_v25, %v2382_v23 }
 0x873   : > { %v7671_v28 = vpop.f32.mrb[24].mxu0 }
 0x874   : > { %v2450_v29 = vpop.f32.mrb[25].mxu0  ;;  %v2466_v35 = vmul.f32 0.25, %v7671_v28 }
 0x875   : > { %v2464_v30 = vmul.f32 0.25, %v2450_v29  ;;  %v7672_v31 = vpop.f32.mrb[26].mxu0 }
 0x876   : > { %v2453_v32 = vpop.f32.mrb[27].mxu0  ;;  %v2473_v37 = vsel %vm2133_vm15, %v2466_v35, -inf }
 0x877   : > { %v2465_v33 = vmul.f32 0.25, %v2453_v32  ;;  %v2467_v34 = vsel %vm2126_vm14, %v2464_v30, -inf }
 0x878   : > { %2468 = vmax.xlane.f32.xlu1 %v2467_v34 }
 0x879   : > { %v2470_v36 = vsel %vm2126_vm14, %v2465_v33, -inf }
 0x87a   : > { %2471 = vmax.xlane.f32.xlu0 %v2470_v36 }
 0x87e   : > { %2474 = vmax.xlane.f32.xlu0 %v2473_v37  ;;  %v7220_v37 = vld [vmem:[%s11134_s26] ss:$0 sm:$0xff]  ;;  %s11137_s26 = sld [smem:[#allocation20_spill]] }
 0x905   : > { %v2469_v38 = vpop.xlane.xlu1 %2468 }
 0x906   : > { %v2476_v40 = vsub.f32 %v2464_v30, %v2469_v38 }
 0x907   : > { %v2472_v41 = vpop.xlane.xlu0 %2471 }
 0x908   : > { %v2479_v42 = vmul.f32 1.442695, %v2476_v40  ;;  %v2477_v43 = vsub.f32 %v2465_v33, %v2472_v41 }
 0x90a   : > { %8393 = vpow2.f32 %v2479_v42  ;;  %v2481_v44 = vmul.f32 1.442695, %v2477_v43 }
 0x90b   : > { %v2475_v45 = vpop.xlane.xlu0 %2474 }
 0x90c   : > { %8395 = vpow2.f32 %v2481_v44  ;;  %v2478_v46 = vsub.f32 %v2466_v35, %v2475_v45 }
 0x90e   : > { %v2483_v47 = vmul.f32 1.442695, %v2478_v46 }
 0x910   : > { %8397 = vpow2.f32 %v2483_v47 }
 0x914   : > { %v8394_v48 = vpop.eup %8393 }
 0x915   : > { %v2485_v49 = vsel %vm2126_vm14, %v8394_v48, 0.0 }
 0x916   : > { %v8396_v51 = vpop.eup %8395  ;;  %2486 = vadd.xlane.f32.xlu1 %v2485_v49 }
 0x917   : > { %v2488_v52 = vsel %vm2126_vm14, %v8396_v51, 0.0 }
 0x918   : > { %2489 = vadd.xlane.f32.xlu0 %v2488_v52 }
 0x91a   : > { %v8398_v53 = vpop.eup %8397 }
 0x91b   : > { %v2491_v54 = vsel %vm2133_vm15, %v8398_v53, 0.0 }
 0x91c   : > { %2492 = vadd.xlane.f32.xlu1 %v2491_v54 }
 0x92d   : > { %2566 = vrot.lane.b32.xlu1 %v7663_v62, %s11055_s16 }
 0x92e   : > { %8182 = vrot.lane.b32.xlu0 %v8181_v27, %s11055_s16  ;;  %s11138_s16 = sld [smem:[#allocation21_spill]] }
 0x9a3   : > { %v2487_v55 = vpop.xlane.xlu1 %2486 }
 0x9a4   : > { %8399 = vrcp.f32 %v2487_v55 }
 0x9a5   : > { %v2490_v21 = vpop.xlane.xlu0 %2489 }
 0x9a6   : > { %8401 = vrcp.f32 %v2490_v21 }
 0x9a9   : > { %v2493_v56 = vpop.xlane.xlu1 %2492  ;;  %v8183_v17 = vpop.permute.xlu0 %8182 }
 0x9aa   : > { %8403 = vrcp.f32 %v2493_v56  ;;  %v8185_v62 = vunpack.i.h.bf16 %v8183_v17  ;;  %v8184_v23 = vunpack.i.l.bf16 %v8183_v17 }
 0x9ac   : > { %v2584_v30 = vsel %vm2062_vm12, %v9496_v22, %v8185_v62  ;;  %v2583_v31 = vsel %vm2062_vm12, %v9494_v19, %v8184_v23 }
 0x9ad   : > { %v2567_v20 = vpop.permute.xlu1 %2566 }
 0x9ae   : > { %v8400_v57 = vpop.eup %8399  ;;  %v2585_v27 = vsel %vm2062_vm12, %v9492_v18, %v2567_v20 }
 0x9af   : > { %v2495_v58 = vmul.f32 %v8400_v57, %v8394_v48 }
 0x9b0   : > { %v8402_v26 = vpop.eup %8401 }
 0x9b1   : > { %v2497_v59 = vmul.f32 %v8402_v26, %v8396_v51 }
 0x9b3   : > { %v2500_v60 = vpack.c.bf16 %v2497_v59, %v2495_v58 }
 0x9b4   : > { %v8404_v61 = vpop.eup %8403 }
 0x9b5   : > { %7677 = vmatprep.mubr.msk.bf16.mxu1 %vm2126_vm14, %v2500_v60  ;;  %v2499_v63 = vmul.f32 %v8404_v61, %v8398_v53  ;;  %v8275_v60 = vld [vmem:[%s11135_s10 + $0x4] ss:$8 sps:$4 sm:$0xff]   ;;  %v8273_v61 = vld [vmem:[%s11135_s10] ss:$8 sps:$4 sm:$0xff]  }
 0x9b6   : > { %2798 = vmatprep.subr.bf16.mxu0 %v8275_v60 }
 0x9b7   : > { %v2501_v1 = vpack.c.bf16 %v2499_v63, %v2499_v63  ;;  %2799 = vmatpush1.bf16.msra.mxu0 %v8273_v61  ;;  %v8278_v63 = vld [vmem:[%s11135_s10 + $0x14] ss:$8 sps:$4 sm:$0xff]  }
 0x9b8   : > { %2800 = vmatprep.subr.bf16.mxu0 %v8278_v63 }
 0x9b9   : > { %7678 = vmatmul.mubr.msk.bf16.vlgmr.msra.gmra.mrb[16].mxu1 %vm2126_vm14, %v2501_v1  ;;  %v8276_v1 = vld [vmem:[%s11135_s10 + $0x10] ss:$8 sps:$4 sm:$0xff]  }
 0x9ba   : > { %7682 = vmatpush3.bf16.msra.mxu1 %v8270_v2  ;;  %v8279_v2 = vld [vmem:[%s11135_s10 + $0x20] ss:$8 sps:$4 sm:$0xff]  }
 0x9bb   : > { %7683 = vmatprep.subr.bf16.mxu1 %v8271_v6  ;;  %2801 = vmatpush1.bf16.msra.mxu0 %v8276_v1 }
 0x9be   : > { %7684 = vmatpush3.bf16.msra.mxu1 %v8271_v6  ;;  %v8281_v6 = vld [vmem:[%s11135_s10 + $0x24] ss:$8 sps:$4 sm:$0xff]  }
 0x9bf   : > { %7685 = vmatprep.subr.bf16.mxu1 %v8272_v7  ;;  %2802 = vmatprep.subr.bf16.mxu0 %v8281_v6 }
 0x9c0   : > { %2803 = vmatpush1.bf16.msra.mxu0 %v8279_v2 }
 0x9c2   : > { %7686 = vmatpush3.bf16.msra.mxu1 %v8272_v7  ;;  %v8282_v7 = vld [vmem:[%s11136_s11] sm:$0xff]  }
 0x9c3   : > { %3009 = vmatprep.subr.bf16.mxu1 %v11073_v0 }
 0xa8c   : > { %v7679_v8 = vpop.f32.mrb[16].mxu1 }
 0xa8d   : > { %2578 = vrot.lane.b32.xlu0 %v7679_v8, %s11065_s1  ;;  %v2545_v10 = vpop.f32.mrb[17].mxu1  ;;  %v8283_v8 = vld [vmem:[%s11136_s11 + $0x8] sm:$0xff]  }
 0xa8e   : > { %v7680_v11 = vpop.f32.mrb[18].mxu1 }
 0xa8f   : > { %v2548_v12 = vpop.f32.mrb[19].mxu1 }
 0xa90   : > { %v8186_v14 = vpack.i.bf16 %v2548_v12, %v2545_v10  ;;  %v8284_v10 = vld [vmem:[%s11136_s11 + $0x10] sm:$0xff]  }
 0xa92   : > { %8187 = vrot.lane.b32.xlu1 %v8186_v14, %s11065_s1 }
 0xaff   : > { %v2579_v24 = vpop.permute.xlu0 %2578 }
 0xb00   : > { %v2589_v32 = vsel %vm2586_vm0, %v2585_v27, %v2579_v24 }
 0xb01   : > { %v2597_v36 = vpack.c.bf16 %v2589_v32, %v2589_v32 }
 0xb04   : > { %v8188_v25 = vpop.permute.xlu1 %8187 }
 0xb05   : > { %v8190_v28 = vunpack.i.h.bf16 %v8188_v25  ;;  %v8189_v29 = vunpack.i.l.bf16 %v8188_v25 }
 0xb07   : > { %v2587_v33 = vsel %vm2586_vm0, %v2583_v31, %v8189_v29  ;;  %v2588_v34 = vsel %vm2586_vm0, %v2584_v30, %v8190_v28  ;;  %v7221_v28 = vld [vmem:[%s11137_s26] ss:$0 sm:$0xff]  ;;  %s11140_s26 = sld [smem:[#allocation25_spill]] }
 0xb08   : > { %v2596_v35 = vpack.c.bf16 %v2588_v34, %v2587_v33  ;;  %v7222_v33 = vld [vmem:[%s11138_s16] ss:$0 sm:$0xff]  ;;  %s11139_s16 = sld [smem:[#allocation23_spill]] }
 0xb0a   : > { %7687 = vmatprep.mubr.msk.bf16.mxu1 %vm1885_vm10, %v2596_v35 }
 0xb0b   : > { %7688 = vmatmul.mubr.msk.bf16.vlgmr.msra.gmra.mrb[20].mxu1 %vm1885_vm10, %v2597_v36 }
 0xb0c   : > { %3010 = vmatpush1.bf16.msra.mxu1 %v8282_v7 }
 0xb0d   : > { %3011 = vmatprep.subr.bf16.mxu1 %v11073_v0 }
 0xb10   : > { %3012 = vmatpush1.bf16.msra.mxu1 %v8283_v8 }
 0xb11   : > { %3013 = vmatprep.subr.bf16.mxu1 %v11073_v0 }
 0xb14   : > { %3014 = vmatpush1.bf16.msra.mxu1 %v8284_v10 }
 0xb15   : > { %3015 = vmatprep.subr.bf16.mxu1 %v11073_v0 }
 0xbde   : > { %v7689_v18 = vpop.f32.mrb[20].mxu1 }
 0xbdf   : > { %v2656_v38 = vpop.f32.mrb[21].mxu1  ;;  %v2672_v19 = vadd.f32 %v7689_v18, %v9386_v13 }
 0xbe0   : > { %v2670_v22 = vadd.f32 %v2656_v38, %v9378_v4  ;;  %v7690_v40 = vpop.f32.mrb[22].mxu1 }
 0xbe1   : > { %v2659_v41 = vpop.f32.mrb[23].mxu1  ;;  %v9535_v46 = vadd.f32 %v7220_v37, %v2672_v19  ;;  %v8285_v19 = vld [vmem:[%s11136_s11 + $0x18] sm:$0xff]  }
 0xbe2   : > { %v9528_v42 = vadd.f32 %v7220_v37, %v2670_v22  ;;  %v2671_v43 = vadd.f32 %v2659_v41, %v9382_v9  ;;  %3016 = vmatpush1.bf16.msra.mxu1 %v8285_v19 }
 0xbe3   : > { %v2691_v4 = vsel %vm1892_vm11, %v9535_v46, 0.0  ;;  %3017 = vmatprep.subr.bf16.mxu1 %v11073_v0 }
 0xbe4   : > { %v9531_v44 = vadd.f32 %v7220_v37, %v2671_v43  ;;  %v2685_v45 = vsel %vm1885_vm10, %v9528_v42, 0.0  ;;  %v8286_v43 = vld [vmem:[%s11136_s11 + $0x20] sm:$0xff]  }
 0xbe5   : > { %2686 = vadd.xlane.f32.xlu1 %v2685_v45  ;;  %v8287_v45 = vld [vmem:[%s11136_s11 + $0x28] sm:$0xff]  }
 0xbe6   : > { %v2688_v47 = vsel %vm1885_vm10, %v9531_v44, 0.0  ;;  %3018 = vmatpush1.bf16.msra.mxu1 %v8286_v43 }
 0xbe7   : > { %2689 = vadd.xlane.f32.xlu0 %v2688_v47  ;;  %3019 = vmatprep.subr.bf16.mxu1 %v11073_v0  ;;  %v8288_v47 = vld [vmem:[%s11136_s11 + $0x30] sm:$0xff]  }
 0xbea   : > { %3020 = vmatpush1.bf16.msra.mxu1 %v8287_v45 }
 0xbeb   : > { %2692 = vadd.xlane.f32.xlu0 %v2691_v4  ;;  %3021 = vmatprep.subr.bf16.mxu1 %v11073_v0  ;;  %v8289_v4 = vld [vmem:[%s11136_s11 + $0x38] sm:$0xff]  }
 0xbee   : > { %3022 = vmatpush1.bf16.msra.mxu1 %v8288_v47 }
 0xbef   : > { %3023 = vmatprep.subr.bf16.mxu1 %v11073_v0 }
 0xbf2   : > { %3024 = vmatpush1.bf16.msra.mxu1 %v8289_v4 }
 0xbf3   : > { %3025 = vmatprep.subr.bf16.mxu1 %v11073_v0 }
 0xc72   : > { %v2687_v13 = vpop.xlane.xlu1 %2686 }
 0xc73   : > { %v2694_v48 = vmul.f32 0.020833334, %v2687_v13  ;;  %v8290_v13 = vld [vmem:[%s11136_s11 + $0x40] sm:$0xff]  }
 0xc74   : > { %v2690_v49 = vpop.xlane.xlu0 %2689  ;;  %3026 = vmatpush1.bf16.msra.mxu1 %v8290_v13 }
 0xc75   : > { %v2697_v9 = vsub.f32 %v9528_v42, %v2694_v48  ;;  %v2695_v51 = vmul.f32 0.020833334, %v2690_v49  ;;  %3027 = vmatprep.subr.bf16.mxu1 %v11073_v0  ;;  %v8291_v48 = vld [vmem:[%s11136_s11 + $0x48] sm:$0xff]   ;;  %v8292_v49 = vld [vmem:[%s11136_s11 + $0x50] sm:$0xff]  }
 0xc77   : > { %v2698_v52 = vsub.f32 %v9531_v44, %v2695_v51  ;;  %v2700_v53 = vmul.f32 %v2697_v9, %v2697_v9  ;;  %v2750_v51 = vld [vmem:[%s11139_s16] sm:$0x3]  ;;  %s11141_s16 = sld [smem:[#allocation28_spill]] }
 0xc78   : > { %v2693_v54 = vpop.xlane.xlu0 %2692  ;;  %3028 = vmatpush1.bf16.msra.mxu1 %v8291_v48 }
 0xc79   : > { %v2696_v55 = vmul.f32 0.020833334, %v2693_v54  ;;  %v2703_v21 = vsel %vm1885_vm10, %v2700_v53, 0.0  ;;  %v2701_v56 = vmul.f32 %v2698_v52, %v2698_v52  ;;  %3029 = vmatprep.subr.bf16.mxu1 %v11073_v0  ;;  %v2759_v53 = vrot.slane %v2750_v51, %v9411_v5 }
 0xc7a   : > { %2704 = vadd.xlane.f32.xlu1 %v2703_v21 }
 0xc7b   : > { %v2699_v57 = vsub.f32 %v9535_v46, %v2696_v55  ;;  %v2706_v26 = vsel %vm1885_vm10, %v2701_v56, 0.0 }
 0xc7c   : > { %2707 = vadd.xlane.f32.xlu0 %v2706_v26  ;;  %3030 = vmatpush1.bf16.msra.mxu1 %v8292_v49 }
 0xc7d   : > { %v2702_v58 = vmul.f32 %v2699_v57, %v2699_v57  ;;  %3031 = vmatprep.subr.bf16.mxu1 %v11073_v0 }
 0xc7f   : > { %v2709_v59 = vsel %vm1892_vm11, %v2702_v58, 0.0 }
 0xc80   : > { %2710 = vadd.xlane.f32.xlu1 %v2709_v59 }
 0xd07   : > { %v2705_v11 = vpop.xlane.xlu1 %2704 }
 0xd08   : > { %v2712_v12 = vmul.f32 0.020833334, %v2705_v11 }
 0xd09   : > { %v2708_v14 = vpop.xlane.xlu0 %2707 }
 0xd0a   : > { %v2715_v17 = vadd.f32 1e-05, %v2712_v12  ;;  %v2713_v20 = vmul.f32 0.020833334, %v2708_v14 }
 0xd0c   : > { %8405 = vrsqrt.f32 %v2715_v17  ;;  %v2716_v62 = vadd.f32 1e-05, %v2713_v20 }
 0xd0d   : > { %v2711_v23 = vpop.xlane.xlu1 %2710 }
 0xd0e   : > { %8407 = vrsqrt.f32 %v2716_v62  ;;  %v2714_v24 = vmul.f32 0.020833334, %v2711_v23 }
 0xd10   : > { %v2717_v25 = vadd.f32 1e-05, %v2714_v24 }
 0xd12   : > { %8409 = vrsqrt.f32 %v2717_v25 }
 0xd16   : > { %v8406_v27 = vpop.eup %8405 }
 0xd17   : > { %v2721_v29 = vmul.f32 %v8406_v27, %v2697_v9  ;;  %v8293_v9 = vld [vmem:[%s11136_s11 + $0x58] sm:$0xff]  }
 0xd18   : > { %v8408_v30 = vpop.eup %8407  ;;  %3032 = vmatpush1.bf16.msra.mxu1 %v8293_v9 }
 0xd19   : > { %v2730_v31 = vmul.f32 %v7221_v28, %v2721_v29  ;;  %v2722_v32 = vmul.f32 %v8408_v30, %v2698_v52  ;;  %v2755_v52 = vrot.slane %v2750_v51, %v9408_v3 }
 0xd1b   : > { %v2731_v34 = vmul.f32 %v7221_v28, %v2722_v32  ;;  %v2739_v36 = vadd.f32 %v7222_v33, %v2730_v31 }
 0xd1c   : > { %v8410_v35 = vpop.eup %8409 }
 0xd1d   : > { %v2740_v18 = vadd.f32 %v7222_v33, %v2731_v34  ;;  %v2723_v37 = vmul.f32 %v8410_v35, %v2699_v57 }
 0xd1f   : > { %v2748_v38 = vpack.c.bf16 %v2740_v18, %v2739_v36  ;;  %v2732_v22 = vmul.f32 %v7221_v28, %v2723_v37 }
 0xd21   : > { %7229 = vmatmul.mubr.msk.bf16.vlgmr.msra.gmra.mrb[28].mxu0 %vm1885_vm10, %v2748_v38  ;;  %v2741_v40 = vadd.f32 %v7222_v33, %v2732_v22 }
 0xd22   : > { %2840 = vmatprep.mubr.bf16.mxu0 %v11073_v0 }
 0xd23   : > { %v2749_v41 = vpack.c.bf16 %v2741_v40, %v2741_v40 }
 0xd29   : > { %7230 = vmatmul.mubr.msk.bf16.gmra.mrb[32].mxu0 %vm1885_vm10, %v2749_v41 }
 0xd2a   : > { %3217 = vmatprep.mubr.bf16.mxu0 %v11073_v0 }
 0xdf4   : > { %v2832_v54 = vpop.f32.mrb[28].mxu0 }
 0xdf5   : > { %v2833_v55 = vadd.f32 %v2832_v54, %v2755_v52  ;;  %v2834_v21 = vpop.f32.mrb[29].mxu0 }
 0xdf6   : > { %v2835_v56 = vadd.f32 %v2834_v21, %v2759_v53  ;;  %v2836_v57 = vpop.f32.mrb[30].mxu0 }
 0xdf7   : > { %v2849_v26 = vmul.f32 %v2833_v55, %v2833_v55  ;;  %v2837_v58 = vadd.f32 %v2836_v57, %v2755_v52  ;;  %v2838_v59 = vpop.f32.mrb[31].mxu0 }
 0xdf8   : > { %v2850_v60 = vmul.f32 %v2835_v56, %v2835_v56  ;;  %v2839_v61 = vadd.f32 %v2838_v59, %v2759_v53 }
 0xdf9   : > { %v2855_v63 = vmul.f32 %v2849_v26, %v2833_v55  ;;  %v2851_v1 = vmul.f32 %v2837_v58, %v2837_v58 }
 0xdfa   : > { %v2856_v2 = vmul.f32 %v2850_v60, %v2835_v56  ;;  %v2852_v6 = vmul.f32 %v2839_v61, %v2839_v61 }
 0xdfb   : > { %v2861_v7 = vmul.f32 0.044715, %v2855_v63  ;;  %v2857_v8 = vmul.f32 %v2851_v1, %v2837_v58 }
 0xdfc   : > { %v2862_v10 = vmul.f32 0.044715, %v2856_v2  ;;  %v2858_v11 = vmul.f32 %v2852_v6, %v2839_v61  ;;  %v2842_v12 = vpop.f32.mrb[32].mxu0 }
 0xdfd   : > { %v2867_v14 = vadd.f32 %v2861_v7, %v2833_v55  ;;  %v2863_v17 = vmul.f32 0.044715, %v2857_v8  ;;  %v2843_v20 = vadd.f32 %v2842_v12, %v2755_v52  ;;  %v2844_v62 = vpop.f32.mrb[33].mxu0 }
 0xdfe   : > { %v2868_v23 = vadd.f32 %v2862_v10, %v2835_v56  ;;  %v2864_v24 = vmul.f32 0.044715, %v2858_v11  ;;  %v2845_v25 = vadd.f32 %v2844_v62, %v2759_v53  ;;  %v2846_v27 = vpop.f32.mrb[34].mxu0 }
 0xdff   : > { %v2873_v28 = vmul.f32 0.7978846, %v2867_v14  ;;  %v2869_v29 = vadd.f32 %v2863_v17, %v2837_v58  ;;  %v2853_v30 = vmul.f32 %v2843_v20, %v2843_v20  ;;  %v2847_v31 = vpop.f32.mrb[35].mxu0 }
 0xe00   : > { %v2874_v32 = vmul.f32 0.7978846, %v2868_v23  ;;  %v2870_v33 = vadd.f32 %v2864_v24, %v2839_v61  ;;  %v2854_v34 = vmul.f32 %v2845_v25, %v2845_v25 }
 0xe01   : > { %8411 = vtanh.f32 %v2873_v28  ;;  %v2875_v35 = vmul.f32 0.7978846, %v2869_v29  ;;  %v2859_v36 = vmul.f32 %v2853_v30, %v2843_v20 }
 0xe02   : > { %8413 = vtanh.f32 %v2874_v32  ;;  %v2876_v18 = vmul.f32 0.7978846, %v2870_v33  ;;  %v2860_v37 = vmul.f32 %v2854_v34, %v2845_v25 }
 0xe03   : > { %8415 = vtanh.f32 %v2875_v35  ;;  %v2865_v38 = vmul.f32 0.044715, %v2859_v36 }
 0xe04   : > { %8417 = vtanh.f32 %v2876_v18  ;;  %v2866_v22 = vmul.f32 0.044715, %v2860_v37 }
 0xe05   : > { %v2871_v40 = vadd.f32 %v2865_v38, %v2843_v20 }
 0xe06   : > { %v2872_v41 = vadd.f32 %v2866_v22, %v2845_v25 }
 0xe07   : > { %v2877_v19 = vmul.f32 0.7978846, %v2871_v40 }
 0xe08   : > { %v2878_v43 = vmul.f32 0.7978846, %v2872_v41 }
 0xe09   : > { %8419 = vtanh.f32 %v2877_v19 }
 0xe0a   : > { %8421 = vtanh.f32 %v2878_v43 }
 0xe0b   : > { %v8412_v45 = vpop.eup %8411 }
 0xe0c   : > { %v8414_v47 = vpop.eup %8413  ;;  %v2885_v4 = vadd.f32 1.0, %v8412_v45 }
 0xe0d   : > { %v8416_v13 = vpop.eup %8415  ;;  %v2886_v48 = vadd.f32 1.0, %v8414_v47 }
 0xe0e   : > { %v8418_v49 = vpop.eup %8417  ;;  %v2891_v9 = vmul.f32 0.5, %v2885_v4  ;;  %v2887_v51 = vadd.f32 1.0, %v8416_v13 }
 0xe0f   : > { %v2892_v52 = vmul.f32 0.5, %v2886_v48  ;;  %v2888_v53 = vadd.f32 1.0, %v8418_v49  ;;  %v8296_v48 = vld [vmem:[%s11141_s16 + $0x4] ss:$8 sps:$4 sm:$0xff]   ;;  %v8294_v49 = vld [vmem:[%s11141_s16] ss:$8 sps:$4 sm:$0xff]  }
 0xe10   : > { %v2893_v54 = vmul.f32 0.5, %v2887_v51  ;;  %v2897_v57 = vmul.f32 %v2891_v9, %v2833_v55  ;;  %3185 = vmatprep.subr.bf16.mxu0 %v8296_v48  ;;  %v8299_v9 = vld [vmem:[%s11141_s16 + $0x14] ss:$8 sps:$4 sm:$0xff]   ;;  %v8297_v51 = vld [vmem:[%s11141_s16 + $0x10] ss:$8 sps:$4 sm:$0xff]  }
 0xe11   : > { %v2894_v21 = vmul.f32 0.5, %v2888_v53  ;;  %v2898_v60 = vmul.f32 %v2892_v52, %v2835_v56  ;;  %3186 = vmatpush1.bf16.msra.mxu0 %v8294_v49  ;;  %v8302_v52 = vld [vmem:[%s11141_s16 + $0x24] ss:$8 sps:$4 sm:$0xff]   ;;  %v8300_v53 = vld [vmem:[%s11141_s16 + $0x20] ss:$8 sps:$4 sm:$0xff]  }
 0xe12   : > { %v2899_v26 = vmul.f32 %v2893_v54, %v2837_v58  ;;  %v7245_v58 = vld [vmem:[%s11140_s26] ss:$0 sm:$0xff]  ;;  %3187 = vmatprep.subr.bf16.mxu0 %v8299_v9  ;;  %s11142_s26 = sld [smem:[#allocation26_spill]] }
 0xe13   : > { %v8420_v59 = vpop.eup %8419  ;;  %v2900_v63 = vmul.f32 %v2894_v21, %v2839_v61 }
 0xe14   : > { %v8422_v1 = vpop.eup %8421  ;;  %v2927_v2 = vpack.c.bf16 %v2899_v26, %v2897_v57  ;;  %v2889_v6 = vadd.f32 1.0, %v8420_v59 }
 0xe15   : > { %v2928_v7 = vpack.c.bf16 %v2900_v63, %v2898_v60  ;;  %v2890_v8 = vadd.f32 1.0, %v8422_v1  ;;  %3188 = vmatpush1.bf16.msra.mxu0 %v8297_v51 }
 0xe16   : > { %v2895_v10 = vmul.f32 0.5, %v2889_v6  ;;  %3189 = vmatprep.subr.bf16.mxu0 %v8302_v52 }
 0xe17   : > { %7243 = vmatprep.mubr.msk.bf16.mxu1 %vm1793_vm6, %v2928_v7  ;;  %v2896_v11 = vmul.f32 0.5, %v2890_v8 }
 0xe18   : > { %3042 = vmatmul.mubr.bf16.vlgmr.msra.gmra.mrb[24].mxu1 %v2927_v2  ;;  %v2901_v14 = vmul.f32 %v2895_v10, %v2843_v20  ;;  %v7246_v7 = vld [vmem:[%s11142_s26] ss:$0 sm:$0xff]  ;;  %s11147_s26 = smov 16  }
 0xe19   : > { %v2902_v12 = vmul.f32 %v2896_v11, %v2845_v25  ;;  %3190 = vmatpush1.bf16.msra.mxu0 %v8300_v53 }
 0xe1a   : > { %v2929_v55 = vpack.c.bf16 %v2901_v14, %v2901_v14  ;;  %v7247_v14 = vld [vmem:[%s11143_s22] ss:$0 sm:$0xff]  ;;  %s11146_s22 = smov 96  }
 0xe1b   : > { %v2930_v17 = vpack.c.bf16 %v2902_v12, %v2902_v12 }
 0xe1d   : > { %7244 = vmatprep.mubr.msk.bf16.mxu1 %vm1793_vm6, %v2930_v17 }
 0xe20   : > { %3050 = vmatmul.mubr.bf16.gmra.mrb[28].mxu1 %v2929_v55 }
 0xeeb   : > { %v3043_v56 = vpop.f32.mrb[24].mxu1 }
 0xeec   : > { %v3057_v61 = vadd.f32 %v3043_v56, %v9528_v42  ;;  %v3045_v62 = vpop.f32.mrb[25].mxu1 }
 0xeed   : > { %v3046_v23 = vpop.f32.mrb[26].mxu1 }
 0xeee   : > { %v9589_v24 = vadd.f32 %v7245_v58, %v3057_v61  ;;  %v3058_v27 = vadd.f32 %v3046_v23, %v9531_v44  ;;  %v3048_v28 = vpop.f32.mrb[27].mxu1 }
 0xef0   : > { %v9592_v29 = vadd.f32 %v7245_v58, %v3058_v27  ;;  %v3072_v20 = vsel %vm1885_vm10, %v9589_v24, 0.0 }
 0xef1   : > { %3073 = vadd.xlane.f32.xlu0 %v3072_v20  ;;  %v3137_v20 = vld [vmem:[%s11144_s2] sm:$0x3]  ;;  %s11145_s2 = smov 112  }
 0xef2   : > { %v3075_v25 = vsel %vm1885_vm10, %v9592_v29, 0.0 }
 0xef3   : > { %3076 = vadd.xlane.f32.xlu1 %v3075_v25  ;;  %v3051_v30 = vpop.f32.mrb[28].mxu1  ;;  %v3142_v25 = vrot.slane %v3137_v20, %v9408_v3 }
 0xef4   : > { %v3059_v42 = vadd.f32 %v3051_v30, %v9535_v46  ;;  %v3053_v31 = vpop.f32.mrb[29].mxu1 }
 0xef5   : > { %v3054_v32 = vpop.f32.mrb[30].mxu1 }
 0xef6   : > { %v9599_v33 = vadd.f32 %v7245_v58, %v3059_v42  ;;  %v3055_v34 = vpop.f32.mrb[31].mxu1  ;;  %v9623_v42 = vrot.slane %v3137_v20, %v9411_v5 }
 0xef8   : > { %v3078_v44 = vsel %vm1892_vm11, %v9599_v33, 0.0 }
 0xef9   : > { %3079 = vadd.xlane.f32.xlu0 %v3078_v44 }
 0xf7e   : > { %v3074_v35 = vpop.xlane.xlu0 %3073 }
 0xf7f   : > { %v3081_v36 = vmul.f32 0.020833334, %v3074_v35 }
 0xf80   : > { %v3077_v18 = vpop.xlane.xlu1 %3076 }
 0xf81   : > { %v3084_v37 = vsub.f32 %v9589_v24, %v3081_v36  ;;  %v3082_v38 = vmul.f32 0.020833334, %v3077_v18 }
 0xf83   : > { %v3085_v22 = vsub.f32 %v9592_v29, %v3082_v38  ;;  %v3087_v46 = vmul.f32 %v3084_v37, %v3084_v37 }
 0xf85   : > { %v3090_v40 = vsel %vm1885_vm10, %v3087_v46, 0.0  ;;  %v3088_v41 = vmul.f32 %v3085_v22, %v3085_v22 }
 0xf86   : > { %3091 = vadd.xlane.f32.xlu1 %v3090_v40  ;;  %v3080_v19 = vpop.xlane.xlu0 %3079 }
 0xf87   : > { %v3083_v43 = vmul.f32 0.020833334, %v3080_v19  ;;  %v3093_v45 = vsel %vm1885_vm10, %v3088_v41, 0.0 }
 0xf88   : > { %3094 = vadd.xlane.f32.xlu0 %v3093_v45 }
 0xf89   : > { %v3086_v47 = vsub.f32 %v9599_v33, %v3083_v43 }
 0xf8b   : > { %v3089_v4 = vmul.f32 %v3086_v47, %v3086_v47 }
 0xf8d   : > { %v3096_v13 = vsel %vm1892_vm11, %v3089_v4, 0.0 }
 0xf8e   : > { %3097 = vadd.xlane.f32.xlu1 %v3096_v13 }
0x1013   : > { %v3092_v54 = vpop.xlane.xlu1 %3091 }
0x1014   : > { %v3099_v21 = vmul.f32 0.020833334, %v3092_v54 }
0x1015   : > { %v3095_v57 = vpop.xlane.xlu0 %3094 }
0x1016   : > { %v3102_v26 = vadd.f32 1e-05, %v3099_v21  ;;  %v3100_v59 = vmul.f32 0.020833334, %v3095_v57 }
0x1018   : > { %8423 = vrsqrt.f32 %v3102_v26  ;;  %v3103_v60 = vadd.f32 1e-05, %v3100_v59 }
0x101a   : > { %8425 = vrsqrt.f32 %v3103_v60 }
0x101b   : > { %v3098_v63 = vpop.xlane.xlu1 %3097 }
0x101c   : > { %v3101_v1 = vmul.f32 0.020833334, %v3098_v63 }
0x101e   : > { %v3104_v2 = vadd.f32 1e-05, %v3101_v1 }
0x1020   : > { %8427 = vrsqrt.f32 %v3104_v2 }
0x1022   : > { %v8424_v6 = vpop.eup %8423 }
0x1023   : > { %v3108_v8 = vmul.f32 %v8424_v6, %v3084_v37 }
0x1024   : > { %v8426_v10 = vpop.eup %8425 }
0x1025   : > { %v3117_v11 = vmul.f32 %v7246_v7, %v3108_v8  ;;  %v3109_v12 = vmul.f32 %v8426_v10, %v3085_v22 }
0x1027   : > { %v3118_v17 = vmul.f32 %v7246_v7, %v3109_v12  ;;  %v3126_v55 = vadd.f32 %v7247_v14, %v3117_v11 }
0x1029   : > { %v3127_v56 = vadd.f32 %v7247_v14, %v3118_v17 }
0x102a   : > { %v8428_v58 = vpop.eup %8427 }
0x102b   : > { %v3135_v61 = vpack.c.bf16 %v3127_v56, %v3126_v55  ;;  %v3110_v62 = vmul.f32 %v8428_v58, %v3086_v47 }
0x102d   : > { %7254 = vmatmul.mubr.msk.bf16.vlgmr.msra.gmra.mrb[36].mxu0 %vm1885_vm10, %v3135_v61  ;;  %v3119_v23 = vmul.f32 %v7246_v7, %v3110_v62 }
0x102e   : > { %3227 = vmatprep.mubr.bf16.mxu0 %v11073_v0 }
0x102f   : > { %v3128_v27 = vadd.f32 %v7247_v14, %v3119_v23 }
0x1031   : > { %v3136_v28 = vpack.c.bf16 %v3128_v27, %v3128_v27 }
0x1035   : > { %7255 = vmatmul.mubr.msk.bf16.gmra.mrb[40].mxu0 %vm1885_vm10, %v3136_v28 }
0x1100   : > { %v3219_v30 = vpop.f32.mrb[36].mxu0 }
0x1101   : > { %v3221_v31 = vpop.f32.mrb[37].mxu0  ;;  %v3220_v34 = vadd.f32 %v3219_v30, %v3142_v25 }
0x1102   : > { %v3223_v32 = vpop.f32.mrb[38].mxu0  ;;  %v3222_v36 = vadd.f32 %v3221_v31, %v9623_v42 }
0x1103   : > { %v3224_v44 = vadd.f32 %v3223_v32, %v3142_v25  ;;  %v3225_v35 = vpop.f32.mrb[39].mxu0 }
0x1104   : > { %v3226_v18 = vadd.f32 %v3225_v35, %v9623_v42 }
0x1105   : > { %v9627_v37 = vpack.c.bf16 %v3224_v44, %v3220_v34 }
0x1106   : > { %v9629_v38 = vpack.c.bf16 %v3226_v18, %v3222_v36 }
0x1107   : > { %3242 = vrot.lane.b32.xlu0 %v9627_v37, %s11067_s28  ;;  %7695 = vmatprep.mubr.msk.bf16.mxu0 %vm2062_vm12, %v9627_v37 }
0x1108   : > { %v3229_v22 = vpop.f32.mrb[40].mxu0 }
0x1109   : > { %v3230_v46 = vadd.f32 %v3229_v22, %v3142_v25  ;;  %v9635_v40 = vpop.f32.mrb[41].mxu0 }
0x110a   : > { %v3233_v41 = vpop.f32.mrb[42].mxu0 }
0x110b   : > { %v9637_v19 = vpack.c.bf16 %v3230_v46, %v3230_v46  ;;  %v3234_v43 = vpop.f32.mrb[43].mxu0 }
0x110d   : > { %3244 = vrot.lane.b32.xlu1 %v9637_v19, %s11067_s28  ;;  %s11152_s28 = sld [smem:[#allocation32_spill]] }
0x1179   : > { %v3243_v45 = vpop.permute.xlu0 %3242 }
0x117a   : > { %8041 = vmatprep.subr.msk.bf16.mxu0 %vm2062_vm12, %v3243_v45  ;;  %v3253_v47 = vsel %vm2062_vm12, %v3243_v45, 0 }
0x117b   : > { %7692 = vmatpush3.bf16.xpose.msra.mxu0 %v3253_v47 }
0x117f   : > { %v3245_v4 = vpop.permute.xlu1 %3244 }
0x1180   : > { %8042 = vmatprep.subr.msk.bf16.mxu0 %vm2062_vm12, %v3245_v4  ;;  %v3256_v13 = vsel %vm2062_vm12, %v3245_v4, 0 }
0x1183   : > { %7694 = vmatpush3.bf16.xpose.msra.mxu0 %v3256_v13 }
0x118a   : > { %7696 = vmatmul.mubr.msk.bf16.vlgmr.msra.gmra.mrb[44].mxu0 %vm2062_vm12, %v9637_v19 }
0x125d   : > { %v7697_v48 = vpop.f32.mrb[44].mxu0 }
0x125e   : > { %v3292_v49 = vpop.f32.mrb[45].mxu0  ;;  %v3308_v21 = vmul.f32 0.25, %v7697_v48 }
0x125f   : > { %v3306_v9 = vmul.f32 0.25, %v3292_v49  ;;  %v7698_v51 = vpop.f32.mrb[46].mxu0 }
0x1260   : > { %v3295_v52 = vpop.f32.mrb[47].mxu0  ;;  %v3315_v26 = vsel %vm2133_vm15, %v3308_v21, -inf }
0x1261   : > { %v3307_v53 = vmul.f32 0.25, %v3295_v52  ;;  %v3309_v54 = vsel %vm2126_vm14, %v3306_v9, -inf }
0x1262   : > { %3310 = vmax.xlane.f32.xlu1 %v3309_v54 }
0x1263   : > { %v3312_v57 = vsel %vm2126_vm14, %v3307_v53, -inf }
0x1264   : > { %3313 = vmax.xlane.f32.xlu0 %v3312_v57 }
0x1268   : > { %3316 = vmax.xlane.f32.xlu0 %v3315_v26 }
0x12ef   : > { %v3311_v59 = vpop.xlane.xlu1 %3310 }
0x12f0   : > { %v3318_v1 = vsub.f32 %v3306_v9, %v3311_v59 }
0x12f1   : > { %v3314_v60 = vpop.xlane.xlu0 %3313 }
0x12f2   : > { %v3319_v63 = vsub.f32 %v3307_v53, %v3314_v60  ;;  %v3321_v8 = vmul.f32 1.442695, %v3318_v1 }
0x12f4   : > { %v3323_v2 = vmul.f32 1.442695, %v3319_v63 }
0x12f5   : > { %v3317_v6 = vpop.xlane.xlu0 %3316 }
0x12f6   : > { %8429 = vpow2.f32 %v3323_v2  ;;  %v3320_v7 = vsub.f32 %v3308_v21, %v3317_v6 }
0x12f8   : > { %v3325_v10 = vmul.f32 1.442695, %v3320_v7 }
0x12fa   : > { %8431 = vpow2.f32 %v3325_v10 }
0x12fb   : > { %8433 = vpow2.f32 %v3321_v8 }
0x1300   : > { %v8430_v11 = vpop.eup %8429 }
0x1301   : > { %v3330_v12 = vsel %vm2126_vm14, %v8430_v11, 0.0 }
0x1302   : > { %3331 = vadd.xlane.f32.xlu0 %v3330_v12 }
0x1304   : > { %v8432_v14 = vpop.eup %8431 }
0x1305   : > { %v3333_v17 = vsel %vm2133_vm15, %v8432_v14, 0.0  ;;  %v8434_v55 = vpop.eup %8433 }
0x1306   : > { %3334 = vadd.xlane.f32.xlu1 %v3333_v17  ;;  %v3327_v56 = vsel %vm2126_vm14, %v8434_v55, 0.0 }
0x130a   : > { %3328 = vadd.xlane.f32.xlu1 %v3327_v56 }
0x1318   : > { %3344 = vrot.lane.b32.xlu0 %v9627_v37, %s11065_s1 }
0x131b   : > { %3346 = vrot.lane.b32.xlu1 %v9637_v19, %s11065_s1 }
0x131c   : > { %3412 = vrot.lane.b32.xlu0 %v9637_v19, %s11063_s18 }
0x131f   : > { %3410 = vrot.lane.b32.xlu1 %v9627_v37, %s11063_s18  ;;  %s11149_s18 = sld [smem:[#allocation31_spill]] }
0x1320   : > { %3578 = vrot.lane.b32.xlu0 %v9627_v37, %s11061_s23 }
0x1323   : > { %3406 = vrot.lane.b32.xlu1 %v9627_v37, %s11145_s2 }
0x1324   : > { %3580 = vrot.lane.b32.xlu0 %v9637_v19, %s11061_s23  ;;  %s11148_s23 = sld [smem:[#allocation30_spill]] }
0x1327   : > { %3408 = vrot.lane.b32.xlu1 %v9637_v19, %s11145_s2 }
0x1328   : > { %3576 = vrot.lane.b32.xlu0 %v9637_v19, %s11146_s22 }
0x132b   : > { %3574 = vrot.lane.b32.xlu1 %v9627_v37, %s11146_s22 }
0x138f   : > { %v3332_v58 = vpop.xlane.xlu0 %3331 }
0x1393   : > { %v3335_v61 = vpop.xlane.xlu1 %3334  ;;  %v3345_v62 = vpop.permute.xlu0 %3344 }
0x1394   : > { %7699 = vmatprep.subr.bf16.mxu0 %v3345_v62  ;;  %8435 = vrcp.f32 %v3335_v61 }
0x1395   : > { %7700 = vmatpush3.bf16.msra.mxu0 %v3345_v62  ;;  %8437 = vrcp.f32 %v3332_v58 }
0x1397   : > { %v3329_v23 = vpop.xlane.xlu1 %3328  ;;  %v3413_v46 = vpop.permute.xlu0 %3412 }
0x1398   : > { %8439 = vrcp.f32 %v3329_v23  ;;  %v3424_v41 = vsel %vm2062_vm12, %v3413_v46, 0 }
0x139b   : > { %v3347_v27 = vpop.permute.xlu1 %3346  ;;  %v3579_v43 = vpop.permute.xlu0 %3578 }
0x139c   : > { %v3356_v28 = vand.u32 %v3347_v27, %v9447_v39  ;;  %v3589_v4 = vsel %vm2062_vm12, %v3579_v43, 0 }
0x139e   : > { %7701 = vmatprep.subr.bf16.mxu0 %v3356_v28  ;;  %v8436_v20 = vpop.eup %8435 }
0x139f   : > { %v3411_v25 = vpop.permute.xlu1 %3410  ;;  %7702 = vmatpush3.bf16.msra.mxu0 %v3356_v28  ;;  %v8438_v30 = vpop.eup %8437  ;;  %v3341_v32 = vmul.f32 %v8436_v20, %v8432_v14 }
0x13a0   : > { %8043 = vmatprep.subr.msk.bf16.mxu0 %vm2062_vm12, %v3411_v25  ;;  %v3339_v44 = vmul.f32 %v8438_v30, %v8430_v11  ;;  %v3421_v22 = vsel %vm2062_vm12, %v3411_v25, 0  ;;  %v3581_v13 = vpop.permute.xlu0 %3580 }
0x13a1   : > { %v3343_v36 = vpack.c.bf16 %v3341_v32, %v3341_v32  ;;  %v3592_v48 = vsel %vm2062_vm12, %v3581_v13, 0 }
0x13a2   : > { %v8440_v31 = vpop.eup %8439 }
0x13a3   : > { %v3337_v34 = vmul.f32 %v8440_v31, %v8434_v55  ;;  %v3407_v18 = vpop.permute.xlu1 %3406 }
0x13a4   : > { %v3577_v49 = vpop.permute.xlu0 %3576 }
0x13a5   : > { %v3342_v35 = vpack.c.bf16 %v3339_v44, %v3337_v34 }
0x13a7   : > { %7703 = vmatprep.mubr.msk.bf16.mxu0 %vm2126_vm14, %v3342_v35  ;;  %v3409_v45 = vpop.permute.xlu1 %3408 }
0x13a8   : > { %7704 = vmatmul.mubr.msk.bf16.vlgmr.msra.gmra.mrb[48].mxu0 %vm2126_vm14, %v3343_v36 }
0x13a9   : > { %7708 = vmatpush3.bf16.xpose.msra.mxu0 %v3421_v22  ;;  %7711 = vmatprep.mubr.msk.bf16.mxu0 %vm2062_vm12, %v3407_v18 }
0x13aa   : > { %8044 = vmatprep.subr.msk.bf16.mxu0 %vm2062_vm12, %v3413_v46 }
0x13ab   : > { %v3575_v47 = vpop.permute.xlu1 %3574 }
0x13b1   : > { %7710 = vmatpush3.bf16.xpose.msra.mxu0 %v3424_v41 }
0x13b2   : > { %8045 = vmatprep.subr.msk.bf16.mxu0 %vm2062_vm12, %v3579_v43 }
0x13b8   : > { %7712 = vmatmul.mubr.msk.bf16.vlgmr.msra.gmra.mrb[52].mxu0 %vm2062_vm12, %v3409_v45 }
0x13b9   : > { %7724 = vmatpush3.bf16.xpose.msra.mxu0 %v3589_v4  ;;  %7727 = vmatprep.mubr.msk.bf16.mxu0 %vm2062_vm12, %v3575_v47 }
0x13ba   : > { %8046 = vmatprep.subr.msk.bf16.mxu0 %vm2062_vm12, %v3581_v13 }
0x13c1   : > { %7726 = vmatpush3.bf16.xpose.msra.mxu0 %v3592_v48 }
0x13c8   : > { %7728 = vmatmul.mubr.msk.bf16.vlgmr.msra.gmra.mrb[56].mxu0 %vm2062_vm12, %v3577_v49 }
0x13c9   : > { %4007 = vmatprep.mubr.bf16.mxu0 %v11073_v0 }
0x147b   : > { %v9689_v9 = vpop.f32.mrb[48].mxu0 }
0x147c   : > { %v9691_v51 = vpop.f32.mrb[49].mxu0 }
0x147d   : > { %v7706_v52 = vpop.f32.mrb[50].mxu0 }
0x147e   : > { %v9693_v53 = vpop.f32.mrb[51].mxu0 }
0x148b   : > { %v7713_v54 = vpop.f32.mrb[52].mxu0 }
0x148c   : > { %v3460_v21 = vpop.f32.mrb[53].mxu0  ;;  %v3476_v1 = vmul.f32 0.25, %v7713_v54 }
0x148d   : > { %v3474_v57 = vmul.f32 0.25, %v3460_v21  ;;  %v7714_v26 = vpop.f32.mrb[54].mxu0 }
0x148e   : > { %v3463_v59 = vpop.f32.mrb[55].mxu0  ;;  %v3483_v6 = vsel %vm2133_vm15, %v3476_v1, -inf }
0x148f   : > { %v3475_v60 = vmul.f32 0.25, %v3463_v59  ;;  %v3477_v63 = vsel %vm2126_vm14, %v3474_v57, -inf }
0x1490   : > { %3478 = vmax.xlane.f32.xlu1 %v3477_v63 }
0x1491   : > { %v3480_v2 = vsel %vm2126_vm14, %v3475_v60, -inf }
0x1492   : > { %3481 = vmax.xlane.f32.xlu0 %v3480_v2 }
0x1496   : > { %3484 = vmax.xlane.f32.xlu0 %v3483_v6 }
0x149b   : > { %v7729_v7 = vpop.f32.mrb[56].mxu0 }
0x149c   : > { %v3628_v8 = vpop.f32.mrb[57].mxu0  ;;  %v3644_v14 = vmul.f32 0.25, %v7729_v7 }
0x149d   : > { %v3642_v10 = vmul.f32 0.25, %v3628_v8  ;;  %v7730_v11 = vpop.f32.mrb[58].mxu0 }
0x149e   : > { %v3631_v12 = vpop.f32.mrb[59].mxu0  ;;  %v3651_v58 = vsel %vm2133_vm15, %v3644_v14, -inf }
0x149f   : > { %v3643_v17 = vmul.f32 0.25, %v3631_v12  ;;  %v3645_v55 = vsel %vm2126_vm14, %v3642_v10, -inf }
0x14a0   : > { %3646 = vmax.xlane.f32.xlu1 %v3645_v55 }
0x14a1   : > { %v3648_v56 = vsel %vm2126_vm14, %v3643_v17, -inf }
0x14a2   : > { %3649 = vmax.xlane.f32.xlu0 %v3648_v56 }
0x14a4   : > { %3652 = vmax.xlane.f32.xlu1 %v3651_v58 }
0x151d   : > { %v3479_v61 = vpop.xlane.xlu1 %3478 }
0x151e   : > { %v3486_v27 = vsub.f32 %v3474_v57, %v3479_v61 }
0x151f   : > { %v3482_v62 = vpop.xlane.xlu0 %3481 }
0x1520   : > { %v3487_v23 = vsub.f32 %v3475_v60, %v3482_v62  ;;  %v3489_v30 = vmul.f32 1.442695, %v3486_v27 }
0x1522   : > { %v3491_v28 = vmul.f32 1.442695, %v3487_v23 }
0x1523   : > { %v3485_v20 = vpop.xlane.xlu0 %3484 }
0x1524   : > { %8441 = vpow2.f32 %v3491_v28  ;;  %v3488_v25 = vsub.f32 %v3476_v1, %v3485_v20 }
0x1526   : > { %v3493_v31 = vmul.f32 1.442695, %v3488_v25 }
0x1528   : > { %8443 = vpow2.f32 %v3493_v31  ;;  %v8303_v31 = vld [vmem:[%s11148_s23] sm:$0xff]  }
0x1529   : > { %8445 = vpow2.f32 %v3489_v30 }
0x152d   : > { %v3647_v32 = vpop.xlane.xlu1 %3646 }
0x152e   : > { %v8442_v34 = vpop.eup %8441  ;;  %v3654_v36 = vsub.f32 %v3642_v10, %v3647_v32  ;;  %v8304_v32 = vld [vmem:[%s11148_s23 + $0x8] sm:$0xff]  }
0x152f   : > { %v3650_v44 = vpop.xlane.xlu0 %3649  ;;  %v3498_v35 = vsel %vm2126_vm14, %v8442_v34, 0.0 }
0x1530   : > { %v3655_v18 = vsub.f32 %v3643_v17, %v3650_v44  ;;  %3499 = vadd.xlane.f32.xlu1 %v3498_v35  ;;  %v3657_v4 = vmul.f32 1.442695, %v3654_v36  ;;  %v8305_v44 = vld [vmem:[%s11148_s23 + $0x10] sm:$0xff]  }
0x1531   : > { %v3653_v22 = vpop.xlane.xlu1 %3652 }
0x1532   : > { %v8444_v46 = vpop.eup %8443  ;;  %v3659_v41 = vmul.f32 1.442695, %v3655_v18  ;;  %v3656_v43 = vsub.f32 %v3644_v14, %v3653_v22  ;;  %v3232_v14 = vadd.f32 %v9635_v40, %v9623_v42 }
0x1533   : > { %v3501_v45 = vsel %vm2133_vm15, %v8444_v46, 0.0  ;;  %v8446_v47 = vpop.eup %8445 }
0x1534   : > { %8447 = vpow2.f32 %v3659_v41  ;;  %v3661_v13 = vmul.f32 1.442695, %v3656_v43  ;;  %3502 = vadd.xlane.f32.xlu0 %v3501_v45  ;;  %v3495_v48 = vsel %vm2126_vm14, %v8446_v47, 0.0  ;;  %v3239_v58 = vpack.c.bf16 %v3232_v14, %v3232_v14 }
0x1536   : > { %8449 = vpow2.f32 %v3661_v13  ;;  %v3687_v28 = vand.u32 %v3239_v58, %v9447_v39 }
0x1537   : > { %8451 = vpow2.f32 %v3657_v4 }
0x1538   : > { %3496 = vadd.xlane.f32.xlu0 %v3495_v48 }
0x153e   : > { %v8448_v49 = vpop.eup %8447 }
0x153f   : > { %v3666_v52 = vsel %vm2126_vm14, %v8448_v49, 0.0 }
0x1540   : > { %v8450_v54 = vpop.eup %8449  ;;  %3667 = vadd.xlane.f32.xlu0 %v3666_v52 }
0x1541   : > { %v3669_v21 = vsel %vm2133_vm15, %v8450_v54, 0.0  ;;  %v8452_v57 = vpop.eup %8451 }
0x1542   : > { %3670 = vadd.xlane.f32.xlu1 %v3669_v21  ;;  %v3663_v26 = vsel %vm2126_vm14, %v8452_v57, 0.0 }
0x1546   : > { %3664 = vadd.xlane.f32.xlu1 %v3663_v26 }
0x1556   : > { %3512 = vrot.lane.b32.xlu0 %v9627_v37, %s11147_s26 }
0x1557   : > { %3514 = vrot.lane.b32.xlu1 %v9637_v19, %s11147_s26 }
0x15bd   : > { %v3500_v59 = vpop.xlane.xlu1 %3499 }
0x15be   : > { %8453 = vrcp.f32 %v3500_v59 }
0x15c1   : > { %v3503_v60 = vpop.xlane.xlu0 %3502 }
0x15c5   : > { %v3497_v63 = vpop.xlane.xlu0 %3496 }
0x15c6   : > { %8455 = vrcp.f32 %v3497_v63 }
0x15c7   : > { %8457 = vrcp.f32 %v3503_v60 }
0x15c8   : > { %v8454_v2 = vpop.eup %8453 }
0x15c9   : > { %v3507_v11 = vmul.f32 %v8454_v2, %v8442_v34 }
0x15cd   : > { %v3668_v1 = vpop.xlane.xlu0 %3667 }
0x15ce   : > { %8459 = vrcp.f32 %v3668_v1 }
0x15cf   : > { %v3671_v6 = vpop.xlane.xlu1 %3670 }
0x15d0   : > { %v8456_v7 = vpop.eup %8455  ;;  %8461 = vrcp.f32 %v3671_v6 }
0x15d1   : > { %v3513_v8 = vpop.permute.xlu0 %3512  ;;  %v3505_v10 = vmul.f32 %v8456_v7, %v8446_v47  ;;  %v8458_v19 = vpop.eup %8457  ;;  %v7273_v7 = vld [vmem:[%s11149_s18] ss:$0 sm:$0xff]  ;;  %s11150_s18 = sld [smem:[#allocation34_spill]] }
0x15d2   : > { %7715 = vmatprep.subr.bf16.mxu1 %v3513_v8  ;;  %v3509_v55 = vmul.f32 %v8458_v19, %v8444_v46 }
0x15d3   : > { %v3665_v37 = vpop.xlane.xlu1 %3664  ;;  %7716 = vmatpush3.bf16.msra.mxu1 %v3513_v8  ;;  %v3510_v12 = vpack.c.bf16 %v3507_v11, %v3505_v10 }
0x15d4   : > { %8463 = vrcp.f32 %v3665_v37  ;;  %v3511_v62 = vpack.c.bf16 %v3509_v55, %v3509_v55 }
0x15d5   : > { %7719 = vmatprep.mubr.msk.bf16.mxu1 %vm2126_vm14, %v3510_v12 }
0x15d7   : > { %v3515_v17 = vpop.permute.xlu1 %3514 }
0x15d8   : > { %v3524_v56 = vand.u32 %v3515_v17, %v9447_v39  ;;  %v8460_v61 = vpop.eup %8459 }
0x15d9   : > { %v3675_v40 = vmul.f32 %v8460_v61, %v8448_v49 }
0x15da   : > { %7717 = vmatprep.subr.bf16.mxu1 %v3524_v56  ;;  %v8462_v23 = vpop.eup %8461 }
0x15db   : > { %7718 = vmatpush3.bf16.msra.mxu1 %v3524_v56  ;;  %v3677_v20 = vmul.f32 %v8462_v23, %v8450_v54 }
0x15dc   : > { %7731 = vmatprep.subr.bf16.mxu1 %v9629_v38 }
0x15dd   : > { %v3679_v30 = vpack.c.bf16 %v3677_v20, %v3677_v20 }
0x15de   : > { %v8464_v27 = vpop.eup %8463  ;;  %7720 = vmatmul.mubr.msk.bf16.vlgmr.msra.gmra.mrb[32].mxu1 %vm2126_vm14, %v3511_v62 }
0x15df   : > { %7732 = vmatpush3.bf16.msra.mxu1 %v9629_v38  ;;  %v3673_v42 = vmul.f32 %v8464_v27, %v8452_v57 }
0x15e0   : > { %7733 = vmatprep.subr.bf16.mxu1 %v3687_v28 }
0x15e1   : > { %v3678_v25 = vpack.c.bf16 %v3675_v40, %v3673_v42 }
0x15e3   : > { %7734 = vmatpush3.bf16.msra.mxu1 %v3687_v28  ;;  %7735 = vmatprep.mubr.msk.bf16.mxu1 %vm2126_vm14, %v3678_v25 }
0x15e4   : > { %7739 = vmatprep.subr.bf16.mxu1 %v8303_v31 }
0x15e6   : > { %7736 = vmatmul.mubr.msk.bf16.vlgmr.msra.gmra.mrb[36].mxu1 %vm2126_vm14, %v3679_v30 }
0x15e7   : > { %7740 = vmatpush3.bf16.msra.mxu1 %v8303_v31 }
0x15e8   : > { %7741 = vmatprep.subr.bf16.mxu1 %v8304_v32 }
0x15eb   : > { %7742 = vmatpush3.bf16.msra.mxu1 %v8304_v32  ;;  %v8308_v32 = vld [vmem:[%s11150_s18 + $0x4] ss:$8 sps:$4 sm:$0xff]  }
0x15ec   : > { %7743 = vmatprep.subr.bf16.mxu1 %v8305_v44  ;;  %3975 = vmatprep.subr.bf16.mxu0 %v8308_v32 }
0x15ef   : > { %7744 = vmatpush3.bf16.msra.mxu1 %v8305_v44  ;;  %v8309_v44 = vld [vmem:[%s11150_s18 + $0x10] ss:$8 sps:$4 sm:$0xff]  }
0x15f0   : > { %4186 = vmatprep.subr.bf16.mxu1 %v11073_v0 }
0x16b1   : > { %v7721_v34 = vpop.f32.mrb[32].mxu1 }
0x16b2   : > { %3744 = vrot.lane.b32.xlu0 %v7721_v34, %s11147_s26  ;;  %v3560_v38 = vpop.f32.mrb[33].mxu1  ;;  %v8306_v34 = vld [vmem:[%s11150_s18] ss:$8 sps:$4 sm:$0xff]  }
0x16b3   : > { %v7722_v35 = vpop.f32.mrb[34].mxu1  ;;  %3976 = vmatpush1.bf16.msra.mxu0 %v8306_v34 }
0x16b4   : > { %v3563_v36 = vpop.f32.mrb[35].mxu1  ;;  %v8312_v35 = vld [vmem:[%s11150_s18 + $0x20] ss:$8 sps:$4 sm:$0xff]  }
0x16b5   : > { %v8191_v18 = vpack.i.bf16 %v3563_v36, %v3560_v38  ;;  %v8311_v38 = vld [vmem:[%s11150_s18 + $0x14] ss:$8 sps:$4 sm:$0xff]   ;;  %v8314_v36 = vld [vmem:[%s11150_s18 + $0x24] ss:$8 sps:$4 sm:$0xff]  }
0x16b6   : > { %3977 = vmatprep.subr.bf16.mxu0 %v8311_v38 }
0x16b7   : > { %8192 = vrot.lane.b32.xlu1 %v8191_v18, %s11147_s26  ;;  %3978 = vmatpush1.bf16.msra.mxu0 %v8309_v44 }
0x16b8   : > { %3979 = vmatprep.subr.bf16.mxu0 %v8314_v36 }
0x16b9   : > { %v7737_v22 = vpop.f32.mrb[36].mxu1 }
0x16ba   : > { %3756 = vrot.lane.b32.xlu0 %v7737_v22, %s11065_s1  ;;  %v3723_v46 = vpop.f32.mrb[37].mxu1 }
0x16bb   : > { %v7738_v41 = vpop.f32.mrb[38].mxu1  ;;  %3980 = vmatpush1.bf16.msra.mxu0 %v8312_v35 }
0x16bc   : > { %v3726_v43 = vpop.f32.mrb[39].mxu1  ;;  %8032 = vmatprep.subr.bf16.mxu0 %v8918_v15 }
0x16bd   : > { %v8196_v45 = vpack.i.bf16 %v3726_v43, %v3723_v46 }
0x16bf   : > { %8197 = vrot.lane.b32.xlu1 %v8196_v45, %s11065_s1  ;;  %s11151_s1 = sld [smem:[#allocation36_spill]] }
0x16c5   : > { %v8315_v18 = vld [vmem:[%s11151_s1] sm:$0xff]   ;;  %v8316_v22 = vld [vmem:[%s11151_s1 + $0x8] sm:$0xff]   ;;  %v8317_v46 = vld [vmem:[%s11151_s1 + $0x10] sm:$0xff]  }
0x1724   : > { %v3745_v47 = vpop.permute.xlu0 %3744 }
0x1725   : > { %v3763_v54 = vsel %vm2062_vm12, %v9689_v9, %v3745_v47 }
0x1729   : > { %v8193_v4 = vpop.permute.xlu1 %8192 }
0x172a   : > { %v8195_v13 = vunpack.i.h.bf16 %v8193_v4  ;;  %v8194_v48 = vunpack.i.l.bf16 %v8193_v4 }
0x172c   : > { %v3757_v49 = vpop.permute.xlu0 %3756  ;;  %v3762_v26 = vsel %vm2062_vm12, %v9693_v53, %v8195_v13  ;;  %v3761_v59 = vsel %vm2062_vm12, %v9691_v51, %v8194_v48 }
0x172d   : > { %v3766_v60 = vsel %vm2586_vm0, %v3763_v54, %v3757_v49  ;;  %v7274_v54 = vld [vmem:[%s11152_s28] ss:$0 sm:$0xff]  ;;  %s11154_s28 = sld [smem:[#allocation35_spill]] }
0x172e   : > { %v3774_v6 = vpack.c.bf16 %v3766_v60, %v3766_v60  ;;  %v7275_v60 = vld [vmem:[%s11153_s0] ss:$0 sm:$0xff]  ;;  %s11155_s0 = sld [smem:[#allocation37_spill]] }
0x1731   : > { %v8198_v52 = vpop.permute.xlu1 %8197 }
0x1732   : > { %v8200_v21 = vunpack.i.h.bf16 %v8198_v52  ;;  %v8199_v57 = vunpack.i.l.bf16 %v8198_v52 }
0x1734   : > { %v3765_v63 = vsel %vm2586_vm0, %v3762_v26, %v8200_v21  ;;  %v3764_v1 = vsel %vm2586_vm0, %v3761_v59, %v8199_v57 }
0x1735   : > { %v3773_v2 = vpack.c.bf16 %v3765_v63, %v3764_v1 }
0x1737   : > { %7745 = vmatprep.mubr.msk.bf16.mxu1 %vm1885_vm10, %v3773_v2 }
0x1738   : > { %7746 = vmatmul.mubr.msk.bf16.vlgmr.msra.gmra.mrb[40].mxu1 %vm1885_vm10, %v3774_v6 }
0x1739   : > { %4187 = vmatpush1.bf16.msra.mxu1 %v8315_v18 }
0x173a   : > { %4188 = vmatprep.subr.bf16.mxu1 %v11073_v0 }
0x173d   : > { %4189 = vmatpush1.bf16.msra.mxu1 %v8316_v22 }
0x173e   : > { %4190 = vmatprep.subr.bf16.mxu1 %v11073_v0 }
0x1741   : > { %4191 = vmatpush1.bf16.msra.mxu1 %v8317_v46 }
0x1742   : > { %4192 = vmatprep.subr.bf16.mxu1 %v11073_v0 }
0x180b   : > { %v7747_v9 = vpop.f32.mrb[40].mxu1 }
0x180c   : > { %v3833_v8 = vpop.f32.mrb[41].mxu1  ;;  %v3849_v51 = vadd.f32 %v7747_v9, %v9599_v33 }
0x180d   : > { %v3847_v53 = vadd.f32 %v3833_v8, %v9589_v24  ;;  %v7748_v10 = vpop.f32.mrb[42].mxu1 }
0x180e   : > { %v3836_v11 = vpop.f32.mrb[43].mxu1  ;;  %v9750_v17 = vadd.f32 %v7273_v7, %v3849_v51  ;;  %v8319_v51 = vld [vmem:[%s11151_s1 + $0x20] sm:$0xff]  }
0x180f   : > { %v9743_v37 = vadd.f32 %v7273_v7, %v3847_v53  ;;  %v3848_v12 = vadd.f32 %v3836_v11, %v9592_v29  ;;  %v8318_v11 = vld [vmem:[%s11151_s1 + $0x18] sm:$0xff]  }
0x1810   : > { %v3868_v24 = vsel %vm1892_vm11, %v9750_v17, 0.0  ;;  %4193 = vmatpush1.bf16.msra.mxu1 %v8318_v11 }
0x1811   : > { %v9746_v19 = vadd.f32 %v7273_v7, %v3848_v12  ;;  %v3862_v14 = vsel %vm1885_vm10, %v9743_v37, 0.0  ;;  %4194 = vmatprep.subr.bf16.mxu1 %v11073_v0  ;;  %v8320_v12 = vld [vmem:[%s11151_s1 + $0x28] sm:$0xff]  }
0x1812   : > { %3863 = vadd.xlane.f32.xlu1 %v3862_v14  ;;  %v8321_v14 = vld [vmem:[%s11151_s1 + $0x30] sm:$0xff]  }
0x1813   : > { %v3865_v55 = vsel %vm1885_vm10, %v9746_v19, 0.0 }
0x1814   : > { %3866 = vadd.xlane.f32.xlu0 %v3865_v55  ;;  %4195 = vmatpush1.bf16.msra.mxu1 %v8319_v51  ;;  %v8322_v55 = vld [vmem:[%s11151_s1 + $0x38] sm:$0xff]  }
0x1815   : > { %4196 = vmatprep.subr.bf16.mxu1 %v11073_v0 }
0x1818   : > { %3869 = vadd.xlane.f32.xlu0 %v3868_v24  ;;  %4197 = vmatpush1.bf16.msra.mxu1 %v8320_v12  ;;  %v8323_v24 = vld [vmem:[%s11151_s1 + $0x40] sm:$0xff]  }
0x1819   : > { %4198 = vmatprep.subr.bf16.mxu1 %v11073_v0 }
0x181c   : > { %4199 = vmatpush1.bf16.msra.mxu1 %v8321_v14 }
0x181d   : > { %4200 = vmatprep.subr.bf16.mxu1 %v11073_v0 }
0x1820   : > { %4201 = vmatpush1.bf16.msra.mxu1 %v8322_v55 }
0x1821   : > { %4202 = vmatprep.subr.bf16.mxu1 %v11073_v0 }
0x1824   : > { %4203 = vmatpush1.bf16.msra.mxu1 %v8323_v24 }
0x1825   : > { %4204 = vmatprep.subr.bf16.mxu1 %v11073_v0 }
0x189f   : > { %v3864_v33 = vpop.xlane.xlu1 %3863 }
0x18a0   : > { %v3871_v56 = vmul.f32 0.020833334, %v3864_v33  ;;  %v8324_v33 = vld [vmem:[%s11151_s1 + $0x48] sm:$0xff]  }
0x18a1   : > { %v3867_v58 = vpop.xlane.xlu0 %3866  ;;  %4205 = vmatpush1.bf16.msra.mxu1 %v8324_v33 }
0x18a2   : > { %v3874_v29 = vsub.f32 %v9743_v37, %v3871_v56  ;;  %v3872_v61 = vmul.f32 0.020833334, %v3867_v58  ;;  %4206 = vmatprep.subr.bf16.mxu1 %v11073_v0  ;;  %v8325_v56 = vld [vmem:[%s11151_s1 + $0x50] sm:$0xff]   ;;  %v8326_v58 = vld [vmem:[%s11151_s1 + $0x58] sm:$0xff]  }
0x18a4   : > { %v3875_v62 = vsub.f32 %v9746_v19, %v3872_v61  ;;  %v3877_v23 = vmul.f32 %v3874_v29, %v3874_v29 }
0x18a5   : > { %v3870_v27 = vpop.xlane.xlu0 %3869  ;;  %4207 = vmatpush1.bf16.msra.mxu1 %v8325_v56 }
0x18a6   : > { %v3873_v28 = vmul.f32 0.020833334, %v3870_v27  ;;  %v3880_v42 = vsel %vm1885_vm10, %v3877_v23, 0.0  ;;  %v3878_v40 = vmul.f32 %v3875_v62, %v3875_v62  ;;  %4208 = vmatprep.subr.bf16.mxu1 %v11073_v0 }
0x18a7   : > { %3881 = vadd.xlane.f32.xlu1 %v3880_v42 }
0x18a8   : > { %v3876_v20 = vsub.f32 %v9750_v17, %v3873_v28  ;;  %v3883_v25 = vsel %vm1885_vm10, %v3878_v40, 0.0 }
0x18a9   : > { %3884 = vadd.xlane.f32.xlu0 %v3883_v25  ;;  %4209 = vmatpush1.bf16.msra.mxu1 %v8326_v58 }
0x18aa   : > { %v3879_v30 = vmul.f32 %v3876_v20, %v3876_v20  ;;  %7782 = vmatprep.subr.bf16.mxu1 %v11075_v16 }
0x18ac   : > { %v3886_v31 = vsel %vm1892_vm11, %v3879_v30, 0.0 }
0x18ad   : > { %3887 = vadd.xlane.f32.xlu1 %v3886_v31 }
0x1934   : > { %v3882_v41 = vpop.xlane.xlu1 %3881 }
0x1935   : > { %v3889_v43 = vmul.f32 0.020833334, %v3882_v41 }
0x1936   : > { %v3885_v45 = vpop.xlane.xlu0 %3884 }
0x1937   : > { %v3892_v47 = vadd.f32 1e-05, %v3889_v43  ;;  %v3890_v4 = vmul.f32 0.020833334, %v3885_v45 }
0x1939   : > { %8465 = vrsqrt.f32 %v3892_v47  ;;  %v3893_v15 = vadd.f32 1e-05, %v3890_v4 }
0x193a   : > { %v3888_v13 = vpop.xlane.xlu1 %3887 }
0x193b   : > { %8467 = vrsqrt.f32 %v3893_v15  ;;  %v3891_v48 = vmul.f32 0.020833334, %v3888_v13 }
0x193d   : > { %v3894_v49 = vadd.f32 1e-05, %v3891_v48 }
0x193f   : > { %8469 = vrsqrt.f32 %v3894_v49 }
0x1943   : > { %v8466_v52 = vpop.eup %8465 }
0x1944   : > { %v3898_v21 = vmul.f32 %v8466_v52, %v3874_v29  ;;  %v3927_v29 = vld [vmem:[%s11154_s28] sm:$0x3]  ;;  %s11156_s28 = sld [smem:[#allocation16_spill]] }
0x1945   : > { %v8468_v57 = vpop.eup %8467  ;;  %v3932_v61 = vrot.slane %v3927_v29, %v9408_v3 }
0x1946   : > { %v3907_v26 = vmul.f32 %v7274_v54, %v3898_v21  ;;  %v3899_v59 = vmul.f32 %v8468_v57, %v3875_v62  ;;  %v3936_v62 = vrot.slane %v3927_v29, %v9411_v5 }
0x1948   : > { %v3908_v63 = vmul.f32 %v7274_v54, %v3899_v59  ;;  %v3916_v2 = vadd.f32 %v7275_v60, %v3907_v26 }
0x1949   : > { %v8470_v1 = vpop.eup %8469 }
0x194a   : > { %v3917_v6 = vadd.f32 %v7275_v60, %v3908_v63  ;;  %v3900_v9 = vmul.f32 %v8470_v1, %v3876_v20 }
0x194c   : > { %v3925_v7 = vpack.c.bf16 %v3917_v6, %v3916_v2  ;;  %v3909_v8 = vmul.f32 %v7274_v54, %v3900_v9 }
0x194e   : > { %7282 = vmatmul.mubr.msk.bf16.vlgmr.msra.gmra.mrb[60].mxu0 %vm1885_vm10, %v3925_v7  ;;  %v3918_v53 = vadd.f32 %v7275_v60, %v3909_v8 }
0x194f   : > { %4017 = vmatprep.mubr.bf16.mxu0 %v11073_v0 }
0x1950   : > { %v3926_v10 = vpack.c.bf16 %v3918_v53, %v3918_v53 }
0x1956   : > { %7283 = vmatmul.mubr.msk.bf16.gmra.mrb[64].mxu0 %vm1885_vm10, %v3926_v10 }
0x1957   : > { %7755 = vmatprep.mubr.msk.f32.mxu0 %vm8919_vm4, %v11075_v16 }
0x1a21   : > { %v4009_v23 = vpop.f32.mrb[60].mxu0 }
0x1a22   : > { %v4010_v27 = vadd.f32 %v4009_v23, %v3932_v61  ;;  %v4011_v28 = vpop.f32.mrb[61].mxu0 }
0x1a23   : > { %v4012_v42 = vadd.f32 %v4011_v28, %v3936_v62  ;;  %v4013_v40 = vpop.f32.mrb[62].mxu0 }
0x1a24   : > { %v4026_v20 = vmul.f32 %v4010_v27, %v4010_v27  ;;  %v4014_v25 = vadd.f32 %v4013_v40, %v3932_v61  ;;  %v4015_v30 = vpop.f32.mrb[63].mxu0 }
0x1a25   : > { %v4027_v31 = vmul.f32 %v4012_v42, %v4012_v42  ;;  %v4016_v32 = vadd.f32 %v4015_v30, %v3936_v62 }
0x1a26   : > { %v4032_v34 = vmul.f32 %v4026_v20, %v4010_v27  ;;  %v4028_v38 = vmul.f32 %v4014_v25, %v4014_v25 }
0x1a27   : > { %v4033_v44 = vmul.f32 %v4027_v31, %v4012_v42  ;;  %v4029_v35 = vmul.f32 %v4016_v32, %v4016_v32 }
0x1a28   : > { %v4038_v36 = vmul.f32 0.044715, %v4032_v34  ;;  %v4034_v18 = vmul.f32 %v4028_v38, %v4014_v25 }
0x1a29   : > { %v4039_v22 = vmul.f32 0.044715, %v4033_v44  ;;  %v4035_v46 = vmul.f32 %v4029_v35, %v4016_v32  ;;  %v4019_v41 = vpop.f32.mrb[64].mxu0 }
0x1a2a   : > { %v4044_v43 = vadd.f32 %v4038_v36, %v4010_v27  ;;  %v4040_v45 = vmul.f32 0.044715, %v4034_v18  ;;  %v4020_v47 = vadd.f32 %v4019_v41, %v3932_v61  ;;  %v4021_v4 = vpop.f32.mrb[65].mxu0 }
0x1a2b   : > { %v4045_v15 = vadd.f32 %v4039_v22, %v4012_v42  ;;  %v4041_v13 = vmul.f32 0.044715, %v4035_v46  ;;  %v4022_v48 = vadd.f32 %v4021_v4, %v3936_v62  ;;  %v4023_v49 = vpop.f32.mrb[66].mxu0 }
0x1a2c   : > { %v4050_v52 = vmul.f32 0.7978846, %v4044_v43  ;;  %v4046_v54 = vadd.f32 %v4040_v45, %v4014_v25  ;;  %v4030_v21 = vmul.f32 %v4020_v47, %v4020_v47  ;;  %v4024_v57 = vpop.f32.mrb[67].mxu0 }
0x1a2d   : > { %v4051_v26 = vmul.f32 0.7978846, %v4045_v15  ;;  %v4047_v59 = vadd.f32 %v4041_v13, %v4016_v32  ;;  %v4031_v60 = vmul.f32 %v4022_v48, %v4022_v48 }
0x1a2e   : > { %8471 = vtanh.f32 %v4050_v52  ;;  %v4052_v63 = vmul.f32 0.7978846, %v4046_v54  ;;  %v4036_v1 = vmul.f32 %v4030_v21, %v4020_v47 }
0x1a2f   : > { %8473 = vtanh.f32 %v4051_v26  ;;  %v4053_v2 = vmul.f32 0.7978846, %v4047_v59  ;;  %v4037_v6 = vmul.f32 %v4031_v60, %v4022_v48 }
0x1a30   : > { %8475 = vtanh.f32 %v4052_v63  ;;  %v4042_v9 = vmul.f32 0.044715, %v4036_v1 }
0x1a31   : > { %8477 = vtanh.f32 %v4053_v2  ;;  %v4043_v7 = vmul.f32 0.044715, %v4037_v6 }
0x1a32   : > { %v4048_v8 = vadd.f32 %v4042_v9, %v4020_v47 }
0x1a33   : > { %v4049_v53 = vadd.f32 %v4043_v7, %v4022_v48 }
0x1a34   : > { %v4054_v10 = vmul.f32 0.7978846, %v4048_v8 }
0x1a35   : > { %v4055_v11 = vmul.f32 0.7978846, %v4049_v53 }
0x1a36   : > { %8479 = vtanh.f32 %v4054_v10 }
0x1a37   : > { %8481 = vtanh.f32 %v4055_v11 }
0x1a38   : > { %v8472_v51 = vpop.eup %8471 }
0x1a39   : > { %v8474_v12 = vpop.eup %8473  ;;  %v4062_v14 = vadd.f32 1.0, %v8472_v51 }
0x1a3a   : > { %v8476_v55 = vpop.eup %8475  ;;  %v4063_v24 = vadd.f32 1.0, %v8474_v12 }
0x1a3b   : > { %v8478_v33 = vpop.eup %8477  ;;  %v4068_v56 = vmul.f32 0.5, %v4062_v14  ;;  %v4064_v58 = vadd.f32 1.0, %v8476_v55 }
0x1a3c   : > { %v4069_v29 = vmul.f32 0.5, %v4063_v24  ;;  %v4065_v61 = vadd.f32 1.0, %v8478_v33 }
0x1a3d   : > { %v4070_v62 = vmul.f32 0.5, %v4064_v58  ;;  %v4074_v28 = vmul.f32 %v4068_v56, %v4010_v27 }
0x1a3e   : > { %v4071_v23 = vmul.f32 0.5, %v4065_v61  ;;  %v4075_v30 = vmul.f32 %v4069_v29, %v4012_v42 }
0x1a3f   : > { %v4076_v40 = vmul.f32 %v4070_v62, %v4014_v25  ;;  %v7298_v25 = vld [vmem:[%s11155_s0] ss:$0 sm:$0xff]  ;;  %s11071_s0 = smul.u32 72, %s11194_s15 }
0x1a40   : > { %v8480_v20 = vpop.eup %8479  ;;  %v4077_v31 = vmul.f32 %v4071_v23, %v4016_v32 }
0x1a41   : > { %v8482_v34 = vpop.eup %8481  ;;  %v4104_v38 = vpack.c.bf16 %v4076_v40, %v4074_v28  ;;  %v4066_v44 = vadd.f32 1.0, %v8480_v20  ;;  %s9828_s1 = scalar_lea.vmem %s11156_s28, %s11071_s0  ;;  %s11157_s28 = sld [smem:[#allocation38_spill]] }
0x1a42   : > { %v4105_v35 = vpack.c.bf16 %v4077_v31, %v4075_v30  ;;  %v4067_v36 = vadd.f32 1.0, %v8482_v34  ;;  %v4307_v10 = vld [vmem:[%s9828_s1 + $0x8] sm:$0xff]  ;;  %v4306_v11 = vld [vmem:[%s9828_s1] sm:$0xff]  ;;  %v4309_v51 = vld [vmem:[%s9828_s1 + $0x18] sm:$0xff]  ;;  %s11158_s0 = sld [smem:[#allocation39_spill]] }
0x1a43   : > { %v4072_v18 = vmul.f32 0.5, %v4066_v44  ;;  %v4311_v12 = vld [vmem:[%s9828_s1 + $0x28] sm:$0xff]  ;;  %vm4370_vm2 = vcmp.ge.s32.totalorder %v4307_v10, 17  ;;  %vm4369_vm3 = vcmp.ge.s32.totalorder %v4306_v11, 17  ;;  %v4310_v14 = vld [vmem:[%s9828_s1 + $0x20] sm:$0xff]  ;;  %v4313_v33 = vld [vmem:[%s9828_s1 + $0x38] sm:$0xff] }
0x1a44   : > { %7296 = vmatprep.mubr.msk.bf16.mxu1 %vm1793_vm6, %v4105_v35  ;;  %v4073_v22 = vmul.f32 0.5, %v4067_v36  ;;  %v7311_v55 = vsel %vm4370_vm2, 1.0, %v11075_v16  ;;  %v7310_v24 = vsel %vm4369_vm3, 1.0, %v11075_v16  ;;  %vm4373_vm5 = vcmp.ge.s32.totalorder %v4310_v14, 17  ;;  %v4314_v62 = vld [vmem:[%s9828_s1 + $0x40] sm:$0x1] }
0x1a45   : > { %4219 = vmatmul.mubr.bf16.vlgmr.msra.gmra.mrb[44].mxu1 %v4104_v38  ;;  %v4078_v41 = vmul.f32 %v4072_v18, %v4020_v47  ;;  %vm4374_vm7 = vcmp.ge.s32.totalorder %v4311_v12, 17  ;;  %v8201_v56 = vpack.i.bf16 %v7311_v55, %v7310_v24  ;;  %v7314_v29 = vsel %vm4373_vm5, 1.0, %v11075_v16  ;;  %v4308_v34 = vld [vmem:[%s9828_s1 + $0x10] sm:$0xff] }
0x1a46   : > { %v4079_v46 = vmul.f32 %v4073_v22, %v4022_v48  ;;  %v7315_v61 = vsel %vm4374_vm7, 1.0, %v11075_v16  ;;  %vm4377_vm8 = vcmp.ge.s32.totalorder %v4314_v62, 17  ;;  %v4312_v38 = vld [vmem:[%s9828_s1 + $0x30] sm:$0xff]  ;;  %vm4372_vm9 = vcmp.ge.s32.totalorder %v4309_v51, 17  ;;  %s11159_s1 = sld [smem:[#allocation40_spill]] }
0x1a47   : > { %v4106_v27 = vpack.c.bf16 %v4078_v41, %v4078_v41  ;;  %v8211_v28 = vpack.i.bf16 %v7315_v61, %v7314_v29  ;;  %v7318_v20 = vsel %vm4377_vm8, 1.0, %v11075_v16  ;;  %vm4371_vm15 = vcmp.ge.s32.totalorder %v4308_v34, 17 }
0x1a48   : > { %v4107_v43 = vpack.c.bf16 %v4079_v46, %v4079_v46  ;;  %v7313_v44 = vsel %vm4372_vm9, 1.0, %v11075_v16  ;;  %v7312_v35 = vsel %vm4371_vm15, 1.0, %v11075_v16  ;;  %vm4376_vm2 = vcmp.ge.s32.totalorder %v4313_v33, 17 }
0x1a49   : > { %vm4375_vm3 = vcmp.ge.s32.totalorder %v4312_v38, 17  ;;  %v8206_v36 = vpack.i.bf16 %v7313_v44, %v7312_v35  ;;  %v7317_v18 = vsel %vm4376_vm2, 1.0, %v11075_v16 }
0x1a4a   : > { %7297 = vmatprep.mubr.msk.bf16.mxu1 %vm1793_vm6, %v4107_v43  ;;  %v7316_v22 = vsel %vm4375_vm3, 1.0, %v11075_v16 }
0x1a4b   : > { %v8216_v46 = vpack.i.bf16 %v7317_v18, %v7316_v22 }
0x1a4d   : > { %4227 = vmatmul.mubr.bf16.gmra.mrb[48].mxu1 %v4106_v27 }
0x1a4e   : > { %7792 = vmatprep.mubr.msk.bf16.mxu1 %vm8919_vm4, %v11075_v16 }
0x1b18   : > { %v4220_v42 = vpop.f32.mrb[44].mxu1 }
0x1b19   : > { %v4234_v32 = vadd.f32 %v4220_v42, %v9743_v37  ;;  %v4222_v45 = vpop.f32.mrb[45].mxu1 }
0x1b1a   : > { %v4223_v4 = vpop.f32.mrb[46].mxu1 }
0x1b1b   : > { %v4244_v15 = vadd.f32 %v7298_v25, %v4234_v32  ;;  %v4235_v13 = vadd.f32 %v4223_v4, %v9746_v19  ;;  %v4225_v49 = vpop.f32.mrb[47].mxu1  ;;  %v7299_v4 = vld [vmem:[%s11157_s28] ss:$0 sm:$0xff]  ;;  %s11165_s28 = sld [smem:[#allocation43_spill]] }
0x1b1d   : > { %v4245_v48 = vadd.f32 %v7298_v25, %v4235_v13  ;;  %v4249_v47 = vsel %vm1885_vm10, %v4244_v15, 0.0 }
0x1b1e   : > { %4250 = vadd.xlane.f32.xlu0 %v4249_v47  ;;  %v7300_v47 = vld [vmem:[%s11158_s0] ss:$0 sm:$0xff]  ;;  %s11160_s0 = sld [smem:[#allocation41_spill]] }
0x1b1f   : > { %v4252_v52 = vsel %vm1885_vm10, %v4245_v48, 0.0 }
0x1b20   : > { %4253 = vadd.xlane.f32.xlu1 %v4252_v52  ;;  %v4228_v54 = vpop.f32.mrb[48].mxu1 }
0x1b21   : > { %v4236_v21 = vadd.f32 %v4228_v54, %v9750_v17  ;;  %v4230_v57 = vpop.f32.mrb[49].mxu1 }
0x1b22   : > { %v4231_v26 = vpop.f32.mrb[50].mxu1 }
0x1b23   : > { %v4246_v59 = vadd.f32 %v7298_v25, %v4236_v21  ;;  %v4232_v37 = vpop.f32.mrb[51].mxu1 }
0x1b24   : > { %v4598_v18 = vld [vmem:[%s11160_s0 + $0x8] sm:$0xff] }
0x1b25   : > { %v4255_v19 = vsel %vm1892_vm11, %v4246_v59, 0.0 }
0x1b26   : > { %4256 = vadd.xlane.f32.xlu0 %v4255_v19 }
0x1bab   : > { %v4251_v60 = vpop.xlane.xlu0 %4250 }
0x1bac   : > { %v4258_v63 = vmul.f32 0.020833334, %v4251_v60 }
0x1bad   : > { %v4254_v1 = vpop.xlane.xlu1 %4253 }
0x1bae   : > { %v9814_v2 = vsub.f32 %v4244_v15, %v4258_v63  ;;  %v4259_v6 = vmul.f32 0.020833334, %v4254_v1 }
0x1bb0   : > { %v9816_v9 = vsub.f32 %v4245_v48, %v4259_v6  ;;  %v4264_v17 = vmul.f32 %v9814_v2, %v9814_v2 }
0x1bb2   : > { %v4267_v7 = vsel %vm1885_vm10, %v4264_v17, 0.0  ;;  %v4265_v8 = vmul.f32 %v9816_v9, %v9816_v9 }
0x1bb3   : > { %4268 = vadd.xlane.f32.xlu1 %v4267_v7  ;;  %v4257_v58 = vpop.xlane.xlu0 %4256 }
0x1bb4   : > { %v4270_v53 = vsel %vm1885_vm10, %v4265_v8, 0.0  ;;  %v4260_v23 = vmul.f32 0.020833334, %v4257_v58 }
0x1bb5   : > { %4271 = vadd.xlane.f32.xlu0 %v4270_v53 }
0x1bb6   : > { %v4263_v40 = vsub.f32 %v4246_v59, %v4260_v23  ;;  %v9900_v23 = vld [vmem:[%s11159_s1] ss:$0 sm:$0xff]  ;;  %s11168_s1 = sld [smem:[#allocation42_spill]] }
0x1bb8   : > { %v4266_v30 = vmul.f32 %v4263_v40, %v4263_v40 }
0x1bba   : > { %v4273_v31 = vsel %vm1892_vm11, %v4266_v30, 0.0  ;;  %v4597_v30 = vld [vmem:[%s11160_s0] sm:$0xff] }
0x1bc4   : > { %4319 = vperm.xlu1 %8180, %v4307_v10  }
0x1bcb   : > { %4316 = vperm.xlu0 %8179, %v4306_v11  }
0x1bcf   : > { %4325 = vperm.xlu0 %8179, %v4309_v51  }
0x1bd3   : > { %4331 = vperm.xlu0 %8179, %v4311_v12  }
0x1bd7   : > { %4337 = vperm.xlu0 %8179, %v4313_v33  }
0x1bdb   : > { %8202 = vperm.xlu0 %8179, %v8201_v56  }
0x1bdf   : > { %8212 = vperm.xlu0 %8179, %v8211_v28  }
0x1be3   : > { %4439 = vperm.xlu0 %8179, %v7318_v20  }
0x1be8   : > { %4274 = vadd.xlane.f32.xlu1 %v4273_v31 }
0x1bf9   : > { %4322 = vperm.xlu1 %8180, %v4308_v34  }
0x1bfd   : > { %4328 = vperm.xlu1 %8180, %v4310_v14  }
0x1c01   : > { %4334 = vperm.xlu1 %8180, %v4312_v38  }
0x1c05   : > { %4340 = vperm.xlu1 %8180, %v4314_v62  }
0x1c09   : > { %8207 = vperm.xlu1 %8180, %v8206_v36  }
0x1c0d   : > { %8217 = vperm.xlu1 %8180, %v8216_v46  }
0x1c40   : > { %v4269_v41 = vpop.xlane.xlu1 %4268 }
0x1c41   : > { %v4276_v43 = vmul.f32 0.020833334, %v4269_v41 }
0x1c42   : > { %v4272_v27 = vpop.xlane.xlu0 %4271 }
0x1c43   : > { %v4279_v42 = vadd.f32 1e-05, %v4276_v43  ;;  %v4277_v25 = vmul.f32 0.020833334, %v4272_v27 }
0x1c44   : > { %v4320_v26 = vpop.permute.xlu1 %4319 }
0x1c45   : > { %8483 = vrsqrt.f32 %v4279_v42  ;;  %v4280_v32 = vadd.f32 1e-05, %v4277_v25  ;;  %vm4343_vm7 = vcmp.eq.s32.totalorder %v4320_v26, %v9357_v50 }
0x1c46   : > { %v7302_v7 = vsel %vm4343_vm7, 1.0, %v11075_v16  ;;  %vm5074_vm7 = vcmask 524288  }
0x1c47   : > { %8485 = vrsqrt.f32 %v4280_v32 }
0x1c4a   : > { %v4317_v63 = vpop.permute.xlu0 %4316 }
0x1c4b   : > { %vm4342_vm5 = vcmp.eq.s32.totalorder %v4317_v63, %v9357_v50 }
0x1c4e   : > { %v4326_v8 = vpop.permute.xlu0 %4325 }
0x1c4f   : > { %v8484_v45 = vpop.eup %8483 }
0x1c50   : > { %v4285_v15 = vmul.f32 %v8484_v45, %v9814_v2  ;;  %v4599_v45 = vld [vmem:[%s11160_s0 + $0x10] sm:$0xff] }
0x1c51   : > { %v8486_v13 = vpop.eup %8485 }
0x1c52   : > { %v4286_v49 = vmul.f32 %v8486_v13, %v9816_v9  ;;  %v4294_v48 = vmul.f32 %v7299_v4, %v4285_v15  ;;  %v7301_v9 = vsel %vm4342_vm5, 1.0, %v11075_v16  ;;  %v4332_v51 = vpop.permute.xlu0 %4331 }
0x1c53   : > { %vm4347_vm15 = vcmp.eq.s32.totalorder %v4332_v51, %v9357_v50 }
0x1c54   : > { %v4295_v52 = vmul.f32 %v7299_v4, %v4286_v49  ;;  %v4303_v54 = vadd.f32 %v7300_v47, %v4294_v48  ;;  %v7306_v55 = vsel %vm4347_vm15, 1.0, %v11075_v16 }
0x1c56   : > { %v4304_v21 = vadd.f32 %v7300_v47, %v4295_v52  ;;  %v4338_v24 = vpop.permute.xlu0 %4337 }
0x1c57   : > { %vm4349_vm3 = vcmp.eq.s32.totalorder %v4338_v24, %v9357_v50 }
0x1c58   : > { %v8033_v57 = vpack.c.bf16 %v4304_v21, %v4303_v54  ;;  %v7308_v58 = vsel %vm4349_vm3, 1.0, %v11075_v16  ;;  %v4600_v54 = vld [vmem:[%s11160_s0 + $0x18] sm:$0xff] }
0x1c5a   : > { %8034 = vmatpush3.bf16.msra.mxu0 %v8033_v57  ;;  %v8203_v61 = vpop.permute.xlu0 %8202 }
0x1c5b   : > { %7753 = vmatprep.subr.mxu0 %v11075_v16  ;;  %v8204_v62 = vunpack.i.l.bf16 %v8203_v61  ;;  %v8205_v28 = vunpack.i.h.bf16 %v8203_v61 }
0x1c5d   : > { %v4449_v35 = vmul.f32 %v8205_v28, %v9900_v23 }
0x1c5e   : > { %v8213_v25 = vpop.permute.xlu0 %8212 }
0x1c5f   : > { %v8214_v49 = vunpack.i.l.bf16 %v8213_v25 }
0x1c75   : > { %v4275_v59 = vpop.xlane.xlu1 %4274 }
0x1c76   : > { %v4278_v37 = vmul.f32 0.020833334, %v4275_v59  ;;  %v8215_v59 = vunpack.i.h.bf16 %v8213_v25  ;;  %v8327_v25 = vld [vmem:[%s11165_s28] ss:$8 sps:$4 sm:$0xff]  }
0x1c78   : > { %v4281_v19 = vadd.f32 1e-05, %v4278_v37 }
0x1c79   : > { %v4323_v17 = vpop.permute.xlu1 %4322 }
0x1c7a   : > { %8487 = vrsqrt.f32 %v4281_v19  ;;  %vm4344_vm8 = vcmp.eq.s32.totalorder %v4323_v17, %v9357_v50  ;;  %v4452_v19 = vmul.f32 %v8214_v49, %v9900_v23 }
0x1c7b   : > { %v7303_v53 = vsel %vm4344_vm8, 1.0, %v11075_v16 }
0x1c7d   : > { %v4329_v10 = vpop.permute.xlu1 %4328 }
0x1c7e   : > { %vm4346_vm9 = vcmp.eq.s32.totalorder %v4329_v10, %v9357_v50  ;;  %v4602_v10 = vld [vmem:[%s11160_s0 + $0x28] sm:$0xff] }
0x1c7f   : > { %v7305_v12 = vsel %vm4346_vm9, 1.0, %v11075_v16 }
0x1c81   : > { %v4335_v14 = vpop.permute.xlu1 %4334 }
0x1c82   : > { %vm4348_vm2 = vcmp.eq.s32.totalorder %v4335_v14, %v9357_v50 }
0x1c83   : > { %v7307_v33 = vsel %vm4348_vm2, 1.0, %v11075_v16 }
0x1c84   : > { %v8488_v60 = vpop.eup %8487 }
0x1c85   : > { %v4287_v1 = vmul.f32 %v8488_v60, %v4263_v40  ;;  %v4341_v56 = vpop.permute.xlu1 %4340  ;;  %v4448_v40 = vmul.f32 %v8204_v62, %v9900_v23 }
0x1c86   : > { %vm4350_vm5 = vcmp.eq.s32.totalorder %v4341_v56, %v9357_v50  ;;  %v4603_v56 = vld [vmem:[%s11160_s0 + $0x30] sm:$0xff] }
0x1c87   : > { %v4296_v2 = vmul.f32 %v7299_v4, %v4287_v1  ;;  %v7309_v29 = vsel %vm4350_vm5, 1.0, %v11075_v16  ;;  %v4601_v1 = vld [vmem:[%s11160_s0 + $0x20] sm:$0xff] }
0x1c89   : > { %v4305_v6 = vadd.f32 %v7300_v47, %v4296_v2 }
0x1c8b   : > { %7754 = vmatpush3.msk.msra.mxu0 %vm2174_vm13, %v4305_v6  ;;  %vm4345_vm13 = vcmp.eq.s32.totalorder %v4326_v8, %v9357_v50  ;;  %v8208_v50 = vpop.permute.xlu1 %8207  ;;  %v4453_v8 = vmul.f32 %v8215_v59, %v9900_v23 }
0x1c8c   : > { %7756 = vmatmul.mubr.msk.f32.vlgmr.msra.gmra.mrb[68].mxu0 %vm2126_vm14, %v7301_v9  ;;  %v7304_v11 = vsel %vm4345_vm13, 1.0, %v11075_v16  ;;  %v8209_v38 = vunpack.i.l.bf16 %v8208_v50  ;;  %v8210_v43 = vunpack.i.h.bf16 %v8208_v50 }
0x1c8d   : > { %7758 = vmatprep.mubr.msk.f32.mxu0 %vm8919_vm4, %v11075_v16 }
0x1c8e   : > { %v4450_v42 = vmul.f32 %v8209_v38, %v9900_v23  ;;  %v4451_v47 = vmul.f32 %v8210_v43, %v9900_v23 }
0x1c8f   : > { %v8218_v60 = vpop.permute.xlu1 %8217 }
0x1c90   : > { %7759 = vmatmul.mubr.msk.f32.gmra.mrb[70].mxu0 %vm2126_vm14, %v7302_v7  ;;  %v8219_v17 = vunpack.i.l.bf16 %v8218_v60  ;;  %v8220_v14 = vunpack.i.h.bf16 %v8218_v60 }
0x1c91   : > { %7761 = vmatprep.mubr.msk.f32.mxu0 %vm8919_vm4, %v11075_v16 }
0x1c92   : > { %v4454_v24 = vmul.f32 %v8219_v17, %v9900_v23  ;;  %v4455_v28 = vmul.f32 %v8220_v14, %v9900_v23 }
0x1c94   : > { %7762 = vmatmul.mubr.msk.f32.gmra.mrb[72].mxu0 %vm2126_vm14, %v7303_v53 }
0x1c95   : > { %7764 = vmatprep.mubr.msk.f32.mxu0 %vm8919_vm4, %v11075_v16 }
0x1c98   : > { %7765 = vmatmul.mubr.msk.f32.gmra.mrb[74].mxu0 %vm2126_vm14, %v7304_v11 }
0x1c99   : > { %7767 = vmatprep.mubr.msk.f32.mxu0 %vm8919_vm4, %v11075_v16 }
0x1c9c   : > { %7768 = vmatmul.mubr.msk.f32.gmra.mrb[76].mxu0 %vm2126_vm14, %v7305_v12 }
0x1c9d   : > { %7770 = vmatprep.mubr.msk.f32.mxu0 %vm8919_vm4, %v11075_v16 }
0x1ca0   : > { %7771 = vmatmul.mubr.msk.f32.gmra.mrb[78].mxu0 %vm2126_vm14, %v7306_v55 }
0x1ca1   : > { %7773 = vmatprep.mubr.msk.f32.mxu0 %vm8919_vm4, %v11075_v16 }
0x1ca4   : > { %7774 = vmatmul.mubr.msk.f32.gmra.mrb[80].mxu0 %vm2126_vm14, %v7307_v33 }
0x1ca5   : > { %7776 = vmatprep.mubr.msk.f32.mxu0 %vm8919_vm4, %v11075_v16 }
0x1ca8   : > { %7777 = vmatmul.mubr.msk.f32.gmra.mrb[82].mxu0 %vm2126_vm14, %v7308_v58 }
0x1ca9   : > { %7779 = vmatprep.mubr.msk.f32.mxu0 %vm8919_vm4, %v11075_v16 }
0x1cac   : > { %7780 = vmatmul.mubr.msk.f32.gmra.mrb[84].mxu0 %vm2126_vm14, %v7309_v29  ;;  %vm5049_vm14 = vcmask 531456  }
0x1cad   : > { %4864 = vmatprep.mubr.bf16.mxu0 %v11073_v0 }
0x1d5f   : > { %v4553_v20 = vpop.f32.mrb[68].mxu0 }
0x1d60   : > { %v4554_v31 = vadd.f32 %v4553_v20, %v4448_v40  ;;  %v7757_v34 = vpop.f32.mrb[69].mxu0  ;;  %v4440_v40 = vpop.permute.xlu0 %4439  ;;  %v4604_v20 = vld [vmem:[%s11160_s0 + $0x38] sm:$0xff] }
0x1d61   : > { %v4456_v38 = vmul.f32 %v9900_v23, %v4440_v40 }
0x1d62   : > { %v9904_v44 = vadd.f32 %v4597_v30, %v4554_v31 }
0x1d63   : > { %v4558_v36 = vpop.f32.mrb[70].mxu0 }
0x1d64   : > { %v4559_v22 = vadd.f32 %v4558_v36, %v4449_v35  ;;  %v7760_v46 = vpop.f32.mrb[71].mxu0  ;;  %v4617_v41 = vsel %vm1885_vm10, %v9904_v44, 0.0 }
0x1d65   : > { %4618 = vadd.xlane.f32.xlu1 %v4617_v41 }
0x1d66   : > { %v9910_v27 = vadd.f32 %v4598_v18, %v4559_v22  ;;  %v4605_v18 = vld [vmem:[%s11160_s0 + $0x40] sm:$0x1]  ;;  %s11171_s0 = smov 64  }
0x1d67   : > { %v4563_v32 = vpop.f32.mrb[72].mxu0 }
0x1d68   : > { %v4564_v4 = vadd.f32 %v4563_v32, %v4450_v42  ;;  %v7763_v15 = vpop.f32.mrb[73].mxu0  ;;  %v4620_v13 = vsel %vm1885_vm10, %v9910_v27, 0.0  ;;  %v8329_v32 = vld [vmem:[%s11165_s28 + $0x4] ss:$8 sps:$4 sm:$0xff]  }
0x1d69   : > { %4621 = vadd.xlane.f32.xlu0 %v4620_v13  ;;  %4832 = vmatprep.subr.bf16.mxu0 %v8329_v32 }
0x1d6a   : > { %v9916_v48 = vadd.f32 %v4599_v45, %v4564_v4  ;;  %4833 = vmatpush1.bf16.msra.mxu0 %v8327_v25  ;;  %v8333_v25 = vld [vmem:[%s11165_s28 + $0x20] ss:$8 sps:$4 sm:$0xff]  }
0x1d6b   : > { %v4568_v52 = vpop.f32.mrb[74].mxu0 }
0x1d6c   : > { %v4569_v21 = vadd.f32 %v4568_v52, %v4451_v47  ;;  %v7766_v57 = vpop.f32.mrb[75].mxu0  ;;  %v4623_v26 = vsel %vm1885_vm10, %v9916_v48, 0.0 }
0x1d6d   : > { %4624 = vadd.xlane.f32.xlu0 %v4623_v26 }
0x1d6e   : > { %v9922_v37 = vadd.f32 %v4600_v54, %v4569_v21 }
0x1d6f   : > { %v4573_v63 = vpop.f32.mrb[76].mxu0 }
0x1d70   : > { %11161 = vst [vmem:[#allocation51_spill] sm:$0xff] %v9922_v37  ;;  %v4574_v2 = vadd.f32 %v4573_v63, %v4452_v19  ;;  %v7769_v6 = vpop.f32.mrb[77].mxu0  ;;  %v4626_v9 = vsel %vm1885_vm10, %v9922_v37, 0.0 }
0x1d71   : > { %4627 = vadd.xlane.f32.xlu1 %v4626_v9 }
0x1d72   : > { %v9928_v7 = vadd.f32 %v4601_v1, %v4574_v2 }
0x1d73   : > { %v4578_v53 = vpop.f32.mrb[78].mxu0 }
0x1d74   : > { %11162 = vst [vmem:[#allocation52_spill] sm:$0xff] %v9928_v7  ;;  %v4579_v11 = vadd.f32 %v4578_v53, %v4453_v8  ;;  %v7772_v51 = vpop.f32.mrb[79].mxu0  ;;  %v4629_v12 = vsel %vm1885_vm10, %v9928_v7, 0.0 }
0x1d75   : > { %4630 = vadd.xlane.f32.xlu0 %v4629_v12 }
0x1d76   : > { %v9934_v55 = vadd.f32 %v4602_v10, %v4579_v11 }
0x1d77   : > { %v4583_v33 = vpop.f32.mrb[80].mxu0 }
0x1d78   : > { %11163 = vst [vmem:[#allocation53_spill] sm:$0xff] %v9934_v55  ;;  %v4584_v58 = vadd.f32 %v4583_v33, %v4454_v24  ;;  %v7775_v29 = vpop.f32.mrb[81].mxu0  ;;  %v4632_v61 = vsel %vm1885_vm10, %v9934_v55, 0.0 }
0x1d79   : > { %4633 = vadd.xlane.f32.xlu1 %v4632_v61 }
0x1d7a   : > { %v9940_v62 = vadd.f32 %v4603_v56, %v4584_v58 }
0x1d7b   : > { %v4588_v50 = vpop.f32.mrb[82].mxu0 }
0x1d7c   : > { %11164 = vst [vmem:[#allocation54_spill] sm:$0xff] %v9940_v62  ;;  %v4589_v30 = vadd.f32 %v4588_v50, %v4455_v28  ;;  %v7778_v31 = vpop.f32.mrb[83].mxu0  ;;  %v4635_v34 = vsel %vm1885_vm10, %v9940_v62, 0.0 }
0x1d7d   : > { %4636 = vadd.xlane.f32.xlu0 %v4635_v34 }
0x1d7e   : > { %v9947_v35 = vadd.f32 %v4604_v20, %v4589_v30 }
0x1d7f   : > { %v4593_v36 = vpop.f32.mrb[84].mxu0 }
0x1d80   : > { %11166 = vst [vmem:[#allocation55_spill] sm:$0xff] %v9947_v35  ;;  %v4594_v22 = vadd.f32 %v4593_v36, %v4456_v38  ;;  %v7781_v46 = vpop.f32.mrb[85].mxu0  ;;  %v4638_v41 = vsel %vm1885_vm10, %v9947_v35, 0.0 }
0x1d81   : > { %4639 = vadd.xlane.f32.xlu1 %v4638_v41  ;;  %v8332_v46 = vld [vmem:[%s11165_s28 + $0x14] ss:$8 sps:$4 sm:$0xff]   ;;  %v8330_v41 = vld [vmem:[%s11165_s28 + $0x10] ss:$8 sps:$4 sm:$0xff]  }
0x1d82   : > { %v9952_v43 = vadd.f32 %v4605_v18, %v4594_v22  ;;  %4834 = vmatprep.subr.bf16.mxu0 %v8332_v46 }
0x1d83   : > { %4835 = vmatpush1.bf16.msra.mxu0 %v8330_v41 }
0x1d84   : > { %11167 = vst [vmem:[#allocation56_spill] sm:$0xff] %v9952_v43  ;;  %v4641_v42 = vsel %vm1892_vm11, %v9952_v43, 0.0 }
0x1d85   : > { %4642 = vadd.xlane.f32.xlu0 %v4641_v42  ;;  %v8335_v42 = vld [vmem:[%s11165_s28 + $0x24] ss:$8 sps:$4 sm:$0xff]  }
0x1d86   : > { %4836 = vmatprep.subr.bf16.mxu0 %v8335_v42 }
0x1d87   : > { %4837 = vmatpush1.bf16.msra.mxu0 %v8333_v25 }
0x1d88   : > { %7812 = vmatprep.subr.bf16.mxu0 %v11075_v16 }
0x1df2   : > { %v4619_v23 = vpop.xlane.xlu1 %4618 }
0x1df3   : > { %v4644_v45 = vmul.f32 0.020833334, %v4619_v23 }
0x1df5   : > { %v9959_v4 = vsub.f32 %v9904_v44, %v4644_v45 }
0x1df6   : > { %v4622_v15 = vpop.xlane.xlu0 %4621 }
0x1df7   : > { %v4645_v13 = vmul.f32 0.020833334, %v4622_v15  ;;  %v4662_v49 = vmul.f32 %v9959_v4, %v9959_v4 }
0x1df9   : > { %v9964_v47 = vsub.f32 %v9910_v27, %v4645_v13  ;;  %v4671_v52 = vsel %vm1885_vm10, %v4662_v49, 0.0 }
0x1dfa   : > { %v4625_v54 = vpop.xlane.xlu0 %4624  ;;  %4672 = vadd.xlane.f32.xlu1 %v4671_v52 }
0x1dfb   : > { %v4646_v21 = vmul.f32 0.020833334, %v4625_v54  ;;  %v4663_v57 = vmul.f32 %v9964_v47, %v9964_v47 }
0x1dfd   : > { %v9970_v26 = vsub.f32 %v9916_v48, %v4646_v21  ;;  %v4674_v59 = vsel %vm1885_vm10, %v4663_v57, 0.0 }
0x1dfe   : > { %4675 = vadd.xlane.f32.xlu0 %v4674_v59  ;;  %v4628_v19 = vpop.xlane.xlu1 %4627 }
0x1dff   : > { %v4647_v60 = vmul.f32 0.020833334, %v4628_v19  ;;  %v4664_v63 = vmul.f32 %v9970_v26, %v9970_v26 }
0x1e01   : > { %v9976_v1 = vsub.f32 %v9922_v37, %v4647_v60  ;;  %v4677_v2 = vsel %vm1885_vm10, %v4664_v63, 0.0 }
0x1e02   : > { %v4631_v6 = vpop.xlane.xlu0 %4630  ;;  %4678 = vadd.xlane.f32.xlu1 %v4677_v2 }
0x1e03   : > { %v4648_v9 = vmul.f32 0.020833334, %v4631_v6  ;;  %v4665_v17 = vmul.f32 %v9976_v1, %v9976_v1  ;;  %v10019_v6 = vld [vmem:[%s11168_s1] ss:$0 sm:$0xff]  ;;  %s11169_s1 = sld [smem:[#allocation44_spill]] }
0x1e05   : > { %v9982_v8 = vsub.f32 %v9928_v7, %v4648_v9  ;;  %v4680_v53 = vsel %vm1885_vm10, %v4665_v17, 0.0 }
0x1e06   : > { %4681 = vadd.xlane.f32.xlu0 %v4680_v53  ;;  %v4634_v10 = vpop.xlane.xlu1 %4633 }
0x1e07   : > { %v4649_v11 = vmul.f32 0.020833334, %v4634_v10  ;;  %v4666_v51 = vmul.f32 %v9982_v8, %v9982_v8 }
0x1e09   : > { %v9988_v12 = vsub.f32 %v9934_v55, %v4649_v11  ;;  %v4683_v14 = vsel %vm1885_vm10, %v4666_v51, 0.0 }
0x1e0a   : > { %v4637_v24 = vpop.xlane.xlu0 %4636  ;;  %4684 = vadd.xlane.f32.xlu1 %v4683_v14  ;;  %v7331_v14 = vld [vmem:[#allocation2] ss:$0 sm:$0xff] }
0x1e0b   : > { %v4650_v33 = vmul.f32 0.020833334, %v4637_v24  ;;  %v4667_v56 = vmul.f32 %v9988_v12, %v9988_v12 }
0x1e0d   : > { %v9994_v58 = vsub.f32 %v9940_v62, %v4650_v33  ;;  %v4686_v29 = vsel %vm1885_vm10, %v4667_v56, 0.0 }
0x1e0e   : > { %4687 = vadd.xlane.f32.xlu0 %v4686_v29  ;;  %v4640_v61 = vpop.xlane.xlu1 %4639 }
0x1e0f   : > { %v4651_v28 = vmul.f32 0.020833334, %v4640_v61  ;;  %v4668_v40 = vmul.f32 %v9994_v58, %v9994_v58 }
0x1e11   : > { %v10000_v50 = vsub.f32 %v9947_v35, %v4651_v28  ;;  %v4689_v20 = vsel %vm1885_vm10, %v4668_v40, 0.0 }
0x1e12   : > { %v4643_v30 = vpop.xlane.xlu0 %4642  ;;  %4690 = vadd.xlane.f32.xlu1 %v4689_v20 }
0x1e13   : > { %v4652_v31 = vmul.f32 0.020833334, %v4643_v30  ;;  %v4669_v34 = vmul.f32 %v10000_v50, %v10000_v50 }
0x1e15   : > { %v10006_v38 = vsub.f32 %v9952_v43, %v4652_v31  ;;  %v4692_v36 = vsel %vm1885_vm10, %v4669_v34, 0.0 }
0x1e16   : > { %4693 = vadd.xlane.f32.xlu0 %v4692_v36 }
0x1e17   : > { %v4670_v18 = vmul.f32 %v10006_v38, %v10006_v38 }
0x1e19   : > { %v4695_v22 = vsel %vm1892_vm11, %v4670_v18, 0.0 }
0x1e1a   : > { %4696 = vadd.xlane.f32.xlu1 %v4695_v22 }
0x1e87   : > { %v4673_v32 = vpop.xlane.xlu1 %4672 }
0x1e88   : > { %v4698_v23 = vmul.f32 0.020833334, %v4673_v32 }
0x1e8a   : > { %v4707_v45 = vadd.f32 1e-05, %v4698_v23 }
0x1e8b   : > { %v4676_v15 = vpop.xlane.xlu0 %4675 }
0x1e8c   : > { %8489 = vrsqrt.f32 %v4707_v45  ;;  %v4699_v13 = vmul.f32 0.020833334, %v4676_v15 }
0x1e8e   : > { %v4708_v49 = vadd.f32 1e-05, %v4699_v13 }
0x1e8f   : > { %v4679_v52 = vpop.xlane.xlu1 %4678 }
0x1e90   : > { %8491 = vrsqrt.f32 %v4708_v49  ;;  %v4700_v54 = vmul.f32 0.020833334, %v4679_v52 }
0x1e92   : > { %v4709_v21 = vadd.f32 1e-05, %v4700_v54 }
0x1e93   : > { %v4682_v57 = vpop.xlane.xlu0 %4681 }
0x1e94   : > { %8493 = vrsqrt.f32 %v4709_v21  ;;  %v4701_v59 = vmul.f32 0.020833334, %v4682_v57 }
0x1e96   : > { %v8490_v19 = vpop.eup %8489  ;;  %v4710_v60 = vadd.f32 1e-05, %v4701_v59 }
0x1e97   : > { %v4725_v63 = vmul.f32 %v8490_v19, %v9959_v4  ;;  %v4685_v2 = vpop.xlane.xlu1 %4684 }
0x1e98   : > { %8495 = vrsqrt.f32 %v4710_v60  ;;  %v4702_v9 = vmul.f32 0.020833334, %v4685_v2 }
0x1e99   : > { %v4740_v10 = vmul.f32 %v10019_v6, %v4725_v63 }
0x1e9a   : > { %v8492_v17 = vpop.eup %8491  ;;  %v4711_v53 = vadd.f32 1e-05, %v4702_v9 }
0x1e9b   : > { %v4726_v11 = vmul.f32 %v8492_v17, %v9964_v47  ;;  %v4688_v51 = vpop.xlane.xlu0 %4687  ;;  %v4755_v4 = vadd.f32 %v7331_v14, %v4740_v10 }
0x1e9c   : > { %8497 = vrsqrt.f32 %v4711_v53  ;;  %v4703_v24 = vmul.f32 0.020833334, %v4688_v51 }
0x1e9d   : > { %v4741_v33 = vmul.f32 %v10019_v6, %v4726_v11 }
0x1e9e   : > { %v8494_v56 = vpop.eup %8493  ;;  %v4712_v29 = vadd.f32 1e-05, %v4703_v24  ;;  %v4775_v24 = vld [vmem:[%s11169_s1] sm:$0x3]  ;;  %s11170_s1 = smov 80  }
0x1e9f   : > { %v4756_v61 = vadd.f32 %v7331_v14, %v4741_v33  ;;  %v4691_v28 = vpop.xlane.xlu1 %4690  ;;  %v4727_v40 = vmul.f32 %v8494_v56, %v9970_v26  ;;  %v4784_v33 = vrot.slane %v4775_v24, %v9411_v5  ;;  %v4780_v56 = vrot.slane %v4775_v24, %v9408_v3 }
0x1ea0   : > { %8499 = vrsqrt.f32 %v4712_v29  ;;  %v4704_v20 = vmul.f32 0.020833334, %v4691_v28 }
0x1ea1   : > { %v4770_v30 = vpack.c.bf16 %v4756_v61, %v4755_v4  ;;  %v4742_v18 = vmul.f32 %v10019_v6, %v4727_v40 }
0x1ea2   : > { %v8496_v31 = vpop.eup %8495  ;;  %v4713_v34 = vadd.f32 1e-05, %v4704_v20 }
0x1ea3   : > { %v4694_v36 = vpop.xlane.xlu0 %4693  ;;  %7338 = vmatmul.mubr.msk.bf16.vlgmr.msra.gmra.mrb[88].mxu0 %vm1885_vm10, %v4770_v30  ;;  %v4728_v47 = vmul.f32 %v8496_v31, %v9976_v1  ;;  %v4757_v25 = vadd.f32 %v7331_v14, %v4742_v18 }
0x1ea4   : > { %8501 = vrsqrt.f32 %v4713_v34  ;;  %v4705_v22 = vmul.f32 0.020833334, %v4694_v36  ;;  %4874 = vmatprep.mubr.bf16.mxu0 %v11073_v0 }
0x1ea5   : > { %v4743_v46 = vmul.f32 %v10019_v6, %v4728_v47 }
0x1ea6   : > { %v8498_v41 = vpop.eup %8497  ;;  %v4714_v26 = vadd.f32 1e-05, %v4705_v22 }
0x1ea7   : > { %v4697_v42 = vpop.xlane.xlu1 %4696  ;;  %v4758_v32 = vadd.f32 %v7331_v14, %v4743_v46  ;;  %v4729_v23 = vmul.f32 %v8498_v41, %v9982_v8 }
0x1ea8   : > { %8503 = vrsqrt.f32 %v4714_v26  ;;  %v4706_v45 = vmul.f32 0.020833334, %v4697_v42 }
0x1ea9   : > { %v4771_v15 = vpack.c.bf16 %v4758_v32, %v4757_v25  ;;  %v4744_v52 = vmul.f32 %v10019_v6, %v4729_v23 }
0x1eaa   : > { %v8500_v13 = vpop.eup %8499  ;;  %v4715_v1 = vadd.f32 1e-05, %v4706_v45 }
0x1eab   : > { %7339 = vmatmul.mubr.msk.bf16.gmra.mrb[92].mxu0 %vm1885_vm10, %v4771_v15  ;;  %v4730_v49 = vmul.f32 %v8500_v13, %v9988_v12  ;;  %v4759_v57 = vadd.f32 %v7331_v14, %v4744_v52 }
0x1eac   : > { %8505 = vrsqrt.f32 %v4715_v1  ;;  %4884 = vmatprep.mubr.bf16.mxu0 %v11073_v0 }
0x1ead   : > { %v4745_v54 = vmul.f32 %v10019_v6, %v4730_v49 }
0x1eae   : > { %v8502_v21 = vpop.eup %8501 }
0x1eaf   : > { %v4760_v59 = vadd.f32 %v7331_v14, %v4745_v54  ;;  %v4731_v8 = vmul.f32 %v8502_v21, %v9994_v58 }
0x1eb1   : > { %v4772_v19 = vpack.c.bf16 %v4760_v59, %v4759_v57  ;;  %v4746_v12 = vmul.f32 %v10019_v6, %v4731_v8 }
0x1eb2   : > { %v8504_v60 = vpop.eup %8503 }
0x1eb3   : > { %7340 = vmatmul.mubr.msk.bf16.gmra.mrb[96].mxu0 %vm1885_vm10, %v4772_v19  ;;  %v4732_v63 = vmul.f32 %v8504_v60, %v10000_v50  ;;  %v4761_v17 = vadd.f32 %v7331_v14, %v4746_v12 }
0x1eb4   : > { %4894 = vmatprep.mubr.bf16.mxu0 %v11073_v0 }
0x1eb5   : > { %v4747_v2 = vmul.f32 %v10019_v6, %v4732_v63 }
0x1eb6   : > { %v8506_v9 = vpop.eup %8505 }
0x1eb7   : > { %v4762_v53 = vadd.f32 %v7331_v14, %v4747_v2  ;;  %v4733_v10 = vmul.f32 %v8506_v9, %v10006_v38 }
0x1eb9   : > { %v4773_v11 = vpack.c.bf16 %v4762_v53, %v4761_v17  ;;  %v4748_v58 = vmul.f32 %v10019_v6, %v4733_v10 }
0x1ebb   : > { %7341 = vmatmul.mubr.msk.bf16.gmra.mrb[100].mxu0 %vm1885_vm10, %v4773_v11  ;;  %v4763_v50 = vadd.f32 %v7331_v14, %v4748_v58 }
0x1ebc   : > { %4904 = vmatprep.mubr.bf16.mxu0 %v11073_v0 }
0x1ebd   : > { %v4774_v51 = vpack.c.bf16 %v4763_v50, %v4763_v50 }
0x1ec3   : > { %7342 = vmatmul.mubr.msk.bf16.gmra.mrb[104].mxu0 %vm1885_vm10, %v4774_v51 }
0x1ec4   : > { %7822 = vmatprep.mubr.msk.bf16.mxu0 %vm8919_vm4, %v11075_v16 }
0x1f76   : > { %v4866_v38 = vpop.f32.mrb[88].mxu0 }
0x1f77   : > { %v4868_v29 = vpop.f32.mrb[89].mxu0  ;;  %v4867_v61 = vadd.f32 %v4866_v38, %v4780_v56 }
0x1f78   : > { %v10052_v4 = vadd.f32 %v4868_v29, %v4784_v33  ;;  %v4870_v6 = vpop.f32.mrb[90].mxu0 }
0x1f79   : > { %v4871_v28 = vadd.f32 %v4870_v6, %v4780_v56  ;;  %v4872_v40 = vpop.f32.mrb[91].mxu0 }
0x1f7a   : > { %v10054_v14 = vadd.f32 %v4872_v40, %v4784_v33 }
0x1f7b   : > { %v10056_v20 = vpack.c.bf16 %v4871_v28, %v4867_v61 }
0x1f7d   : > { %4928 = vrot.lane.b32.xlu0 %v10056_v20, %s11170_s1 }
0x1f7e   : > { %v4876_v31 = vpop.f32.mrb[92].mxu0 }
0x1f7f   : > { %v4878_v34 = vpop.f32.mrb[93].mxu0  ;;  %v4877_v18 = vadd.f32 %v4876_v31, %v4780_v56 }
0x1f80   : > { %v10062_v36 = vadd.f32 %v4878_v34, %v4784_v33  ;;  %v4880_v47 = vpop.f32.mrb[94].mxu0 }
0x1f81   : > { %v4881_v22 = vadd.f32 %v4880_v47, %v4780_v56  ;;  %v4882_v46 = vpop.f32.mrb[95].mxu0 }
0x1f82   : > { %v10064_v41 = vadd.f32 %v4882_v46, %v4784_v33 }
0x1f83   : > { %v10066_v26 = vpack.c.bf16 %v4881_v22, %v4877_v18 }
0x1f85   : > { %4930 = vrot.lane.b32.xlu1 %v10066_v26, %s11170_s1 }
0x1f86   : > { %v4886_v25 = vpop.f32.mrb[96].mxu0 }
0x1f87   : > { %v4888_v32 = vpop.f32.mrb[97].mxu0  ;;  %v4887_v15 = vadd.f32 %v4886_v25, %v4780_v56 }
0x1f88   : > { %v10072_v23 = vadd.f32 %v4888_v32, %v4784_v33  ;;  %v4890_v45 = vpop.f32.mrb[98].mxu0 }
0x1f89   : > { %v4891_v13 = vadd.f32 %v4890_v45, %v4780_v56  ;;  %v4892_v1 = vpop.f32.mrb[99].mxu0 }
0x1f8a   : > { %v10074_v49 = vadd.f32 %v4892_v1, %v4784_v33 }
0x1f8b   : > { %v10076_v52 = vpack.c.bf16 %v4891_v13, %v4887_v15 }
0x1f8d   : > { %4932 = vrot.lane.b32.xlu1 %v10076_v52, %s11170_s1 }
0x1f8e   : > { %v4896_v21 = vpop.f32.mrb[100].mxu0 }
0x1f8f   : > { %v4898_v57 = vpop.f32.mrb[101].mxu0  ;;  %v4897_v19 = vadd.f32 %v4896_v21, %v4780_v56 }
0x1f90   : > { %v10082_v59 = vadd.f32 %v4898_v57, %v4784_v33  ;;  %v4900_v8 = vpop.f32.mrb[102].mxu0 }
0x1f91   : > { %v4901_v60 = vadd.f32 %v4900_v8, %v4780_v56  ;;  %v4902_v63 = vpop.f32.mrb[103].mxu0 }
0x1f92   : > { %v10084_v12 = vadd.f32 %v4902_v63, %v4784_v33 }
0x1f93   : > { %v10086_v2 = vpack.c.bf16 %v4901_v60, %v4897_v19 }
0x1f95   : > { %4934 = vrot.lane.b32.xlu0 %v10086_v2, %s11170_s1 }
0x1f96   : > { %v4906_v17 = vpop.f32.mrb[104].mxu0 }
0x1f97   : > { %v4907_v53 = vadd.f32 %v4906_v17, %v4780_v56  ;;  %v4908_v10 = vpop.f32.mrb[105].mxu0 }
0x1f98   : > { %v10092_v11 = vadd.f32 %v4908_v10, %v4784_v33  ;;  %v4910_v58 = vpop.f32.mrb[106].mxu0 }
0x1f99   : > { %v10094_v50 = vpack.c.bf16 %v4907_v53, %v4907_v53  ;;  %5269 = vrot.lane.b32.xlu0 %v10056_v20, %s11171_s0  ;;  %v4911_v51 = vpop.f32.mrb[107].mxu0 }
0x1f9b   : > { %4936 = vrot.lane.b32.xlu1 %v10094_v50, %s11170_s1  ;;  %s11192_s1 = smul.u32 72, %s11194_s15 }
0x1f9d   : > { %5273 = vrot.lane.b32.xlu0 %v10076_v52, %s11171_s0 }
0x1f9f   : > { %5271 = vrot.lane.b32.xlu1 %v10066_v26, %s11171_s0 }
0x1fa1   : > { %5277 = vrot.lane.b32.xlu0 %v10094_v50, %s11171_s0 }
0x1fa3   : > { %5275 = vrot.lane.b32.xlu1 %v10086_v2, %s11171_s0  ;;  %s11173_s0 = smov 32  }
0x1fa5   : > { %5608 = vrot.lane.b32.xlu0 %v10056_v20, %s11172_s3 }
0x1fa7   : > { %5259 = vrot.lane.b32.xlu1 %v10056_v20, %s11145_s2 }
0x1fa9   : > { %5610 = vrot.lane.b32.xlu0 %v10066_v26, %s11172_s3 }
0x1fab   : > { %5261 = vrot.lane.b32.xlu1 %v10066_v26, %s11145_s2 }
0x1fad   : > { %5612 = vrot.lane.b32.xlu0 %v10076_v52, %s11172_s3 }
0x1faf   : > { %5263 = vrot.lane.b32.xlu1 %v10076_v52, %s11145_s2 }
0x1fb1   : > { %5614 = vrot.lane.b32.xlu0 %v10086_v2, %s11172_s3 }
0x1fb3   : > { %5265 = vrot.lane.b32.xlu1 %v10086_v2, %s11145_s2 }
0x1fb5   : > { %5616 = vrot.lane.b32.xlu0 %v10094_v50, %s11172_s3  ;;  %s11180_s3 = sld [smem:[#allocation45_spill]] }
0x1fb7   : > { %5267 = vrot.lane.b32.xlu1 %v10094_v50, %s11145_s2  ;;  %s11186_s2 = sld [smem:[#allocation46_spill]] }
0x1fb9   : > { %5600 = vrot.lane.b32.xlu0 %v10066_v26, %s11146_s22 }
0x1fbb   : > { %5598 = vrot.lane.b32.xlu1 %v10056_v20, %s11146_s22 }
0x1fbd   : > { %5604 = vrot.lane.b32.xlu0 %v10086_v2, %s11146_s22 }
0x1fbf   : > { %5602 = vrot.lane.b32.xlu1 %v10076_v52, %s11146_s22 }
0x1fc1   : > { %5157 = vrot.lane.b32.xlu0 %v10066_v26, %s11173_s0 }
0x1fc3   : > { %5606 = vrot.lane.b32.xlu1 %v10094_v50, %s11146_s22  ;;  %s11188_s22 = sld [smem:[#allocation48_spill]] }
0x1fc5   : > { %5161 = vrot.lane.b32.xlu0 %v10086_v2, %s11173_s0 }
0x1fc7   : > { %5155 = vrot.lane.b32.xlu1 %v10056_v20, %s11173_s0 }
0x1fc9   : > { %5494 = vrot.lane.b32.xlu0 %v10056_v20, %s11147_s26 }
0x1fcb   : > { %5159 = vrot.lane.b32.xlu1 %v10076_v52, %s11173_s0 }
0x1fcf   : > { %5163 = vrot.lane.b32.xlu1 %v10094_v50, %s11173_s0 }
0x1fef   : > { %v4929_v24 = vpop.permute.xlu0 %4928 }
0x1ff0   : > { %v4954_v33 = vsel %vm2062_vm12, %v4929_v24, 0 }
0x1ff1   : > { %7783 = vmatpush3.bf16.xpose.msra.mxu1 %v4954_v33 }
0x1ff2   : > { %7784 = vmatprep.subr.bf16.mxu1 %v11075_v16 }
0x1ff7   : > { %v4931_v56 = vpop.permute.xlu1 %4930 }
0x1ff8   : > { %v4957_v38 = vsel %vm2062_vm12, %v4931_v56, 0 }
0x1ff9   : > { %7785 = vmatpush3.bf16.xpose.msra.mxu1 %v4957_v38 }
0x1ffa   : > { %7786 = vmatprep.subr.bf16.mxu1 %v11075_v16 }
0x1fff   : > { %v4933_v29 = vpop.permute.xlu1 %4932 }
0x2000   : > { %v4960_v6 = vsel %vm2062_vm12, %v4933_v29, 0 }
0x2001   : > { %7787 = vmatpush3.bf16.xpose.msra.mxu1 %v4960_v6 }
0x2002   : > { %7788 = vmatprep.subr.bf16.mxu1 %v11075_v16 }
0x2007   : > { %v4935_v61 = vpop.permute.xlu0 %4934 }
0x2008   : > { %v4963_v28 = vsel %vm2062_vm12, %v4935_v61, 0 }
0x2009   : > { %7789 = vmatpush3.bf16.xpose.msra.mxu1 %v4963_v28 }
0x200a   : > { %7790 = vmatprep.subr.bf16.mxu1 %v11075_v16 }
0x200b   : > { %v5270_v40 = vpop.permute.xlu0 %5269 }
0x200c   : > { %v5295_v32 = vsel %vm2062_vm12, %v5270_v40, 0 }
0x200d   : > { %v4937_v31 = vpop.permute.xlu1 %4936 }
0x200e   : > { %v4966_v47 = vsel %vm2062_vm12, %v4937_v31, 0 }
0x200f   : > { %v5274_v34 = vpop.permute.xlu0 %5273 }
0x2010   : > { %v5301_v19 = vsel %vm2062_vm12, %v5274_v34, 0 }
0x2011   : > { %7791 = vmatpush3.bf16.xpose.msra.mxu1 %v4966_v47  ;;  %v5272_v18 = vpop.permute.xlu1 %5271 }
0x2012   : > { %7842 = vmatprep.subr.bf16.mxu1 %v11075_v16  ;;  %v5298_v21 = vsel %vm2062_vm12, %v5272_v18, 0 }
0x2013   : > { %v5278_v22 = vpop.permute.xlu0 %5277 }
0x2014   : > { %v5307_v33 = vsel %vm2062_vm12, %v5278_v22, 0 }
0x2015   : > { %v5276_v46 = vpop.permute.xlu1 %5275 }
0x2016   : > { %v5304_v53 = vsel %vm2062_vm12, %v5276_v46, 0 }
0x2017   : > { %v5609_v25 = vpop.permute.xlu0 %5608 }
0x2018   : > { %7793 = vmatmul.mubr.msk.bf16.vlgmr.msra.gmra.mrb[52].mxu1 %vm2062_vm12, %v10056_v20  ;;  %v5634_v6 = vsel %vm2062_vm12, %v5609_v25, 0 }
0x2019   : > { %7843 = vmatpush3.bf16.xpose.msra.mxu1 %v5295_v32  ;;  %v5260_v45 = vpop.permute.xlu1 %5259  ;;  %7796 = vmatprep.mubr.msk.bf16.mxu1 %vm8919_vm4, %v11075_v16 }
0x201a   : > { %7844 = vmatprep.subr.bf16.mxu1 %v11075_v16 }
0x201b   : > { %v5611_v15 = vpop.permute.xlu0 %5610 }
0x201c   : > { %v5637_v40 = vsel %vm2062_vm12, %v5611_v15, 0 }
0x201d   : > { %v5262_v13 = vpop.permute.xlu1 %5261 }
0x201f   : > { %v5613_v1 = vpop.permute.xlu0 %5612 }
0x2020   : > { %7797 = vmatmul.mubr.msk.bf16.gmra.mrb[56].mxu1 %vm2062_vm12, %v10066_v26  ;;  %v5640_v34 = vsel %vm2062_vm12, %v5613_v1, 0 }
0x2021   : > { %7845 = vmatpush3.bf16.xpose.msra.mxu1 %v5298_v21  ;;  %v5264_v57 = vpop.permute.xlu1 %5263  ;;  %7800 = vmatprep.mubr.msk.bf16.mxu1 %vm8919_vm4, %v11075_v16 }
0x2022   : > { %7846 = vmatprep.subr.bf16.mxu1 %v11075_v16 }
0x2023   : > { %v5615_v20 = vpop.permute.xlu0 %5614 }
0x2024   : > { %v5643_v47 = vsel %vm2062_vm12, %v5615_v20, 0 }
0x2025   : > { %v5266_v8 = vpop.permute.xlu1 %5265 }
0x2027   : > { %v5617_v63 = vpop.permute.xlu0 %5616 }
0x2028   : > { %7801 = vmatmul.mubr.msk.bf16.gmra.mrb[60].mxu1 %vm2062_vm12, %v10076_v52  ;;  %v5646_v18 = vsel %vm2062_vm12, %v5617_v63, 0 }
0x2029   : > { %7847 = vmatpush3.bf16.xpose.msra.mxu1 %v5301_v19  ;;  %v5268_v60 = vpop.permute.xlu1 %5267  ;;  %7804 = vmatprep.mubr.msk.bf16.mxu1 %vm8919_vm4, %v11075_v16 }
0x202a   : > { %7848 = vmatprep.subr.bf16.mxu1 %v11075_v16 }
0x202b   : > { %v5601_v10 = vpop.permute.xlu0 %5600 }
0x202d   : > { %v5599_v17 = vpop.permute.xlu1 %5598 }
0x202f   : > { %v5605_v24 = vpop.permute.xlu0 %5604 }
0x2030   : > { %7805 = vmatmul.mubr.msk.bf16.gmra.mrb[64].mxu1 %vm2062_vm12, %v10086_v2 }
0x2031   : > { %7849 = vmatpush3.bf16.xpose.msra.mxu1 %v5304_v53  ;;  %v5603_v58 = vpop.permute.xlu1 %5602  ;;  %7808 = vmatprep.mubr.msk.bf16.mxu1 %vm8919_vm4, %v11075_v16 }
0x2032   : > { %7850 = vmatprep.subr.bf16.mxu1 %v11075_v16 }
0x2033   : > { %v5158_v38 = vpop.permute.xlu0 %5157 }
0x2035   : > { %v5607_v51 = vpop.permute.xlu1 %5606 }
0x2037   : > { %v5162_v61 = vpop.permute.xlu0 %5161 }
0x2038   : > { %7809 = vmatmul.mubr.msk.bf16.gmra.mrb[68].mxu1 %vm2062_vm12, %v10094_v50 }
0x2039   : > { %7851 = vmatpush3.bf16.xpose.msra.mxu1 %v5307_v33  ;;  %v5156_v56 = vpop.permute.xlu1 %5155  ;;  %7852 = vmatprep.mubr.msk.bf16.mxu1 %vm8919_vm4, %v11075_v16 }
0x203a   : > { %7813 = vmatpush3.bf16.msra.mxu0 %v5156_v56  ;;  %7902 = vmatprep.subr.bf16.mxu1 %v11075_v16 }
0x203b   : > { %7814 = vmatprep.subr.bf16.mxu0 %v11075_v16 }
0x203d   : > { %v5160_v29 = vpop.permute.xlu1 %5159 }
0x203e   : > { %7815 = vmatpush3.bf16.msra.mxu0 %v5158_v38 }
0x203f   : > { %7816 = vmatprep.subr.bf16.mxu0 %v11075_v16 }
0x2040   : > { %7853 = vmatmul.mubr.msk.bf16.vlgmr.msra.gmra.mrb[72].mxu1 %vm2062_vm12, %v5260_v45 }
0x2041   : > { %7903 = vmatpush3.bf16.xpose.msra.mxu1 %v5634_v6  ;;  %7856 = vmatprep.mubr.msk.bf16.mxu1 %vm8919_vm4, %v11075_v16  ;;  %v5164_v28 = vpop.permute.xlu1 %5163 }
0x2042   : > { %7817 = vmatpush3.bf16.msra.mxu0 %v5160_v29  ;;  %7904 = vmatprep.subr.bf16.mxu1 %v11075_v16  ;;  %v5185_v31 = vand.u32 %v5164_v28, %v9447_v39 }
0x2043   : > { %7818 = vmatprep.subr.bf16.mxu0 %v11075_v16 }
0x2046   : > { %7819 = vmatpush3.bf16.msra.mxu0 %v5162_v61 }
0x2047   : > { %7820 = vmatprep.subr.bf16.mxu0 %v11075_v16 }
0x2048   : > { %7857 = vmatmul.mubr.msk.bf16.gmra.mrb[76].mxu1 %vm2062_vm12, %v5262_v13 }
0x2049   : > { %7905 = vmatpush3.bf16.xpose.msra.mxu1 %v5637_v40  ;;  %7860 = vmatprep.mubr.msk.bf16.mxu1 %vm8919_vm4, %v11075_v16 }
0x204a   : > { %7821 = vmatpush3.bf16.msra.mxu0 %v5185_v31  ;;  %7906 = vmatprep.subr.bf16.mxu1 %v11075_v16 }
0x204b   : > { %7872 = vmatprep.subr.bf16.mxu0 %v11075_v16 }
0x2050   : > { %7861 = vmatmul.mubr.msk.bf16.gmra.mrb[80].mxu1 %vm2062_vm12, %v5264_v57 }
0x2051   : > { %7907 = vmatpush3.bf16.xpose.msra.mxu1 %v5640_v34  ;;  %7864 = vmatprep.mubr.msk.bf16.mxu1 %vm8919_vm4, %v11075_v16 }
0x2052   : > { %7908 = vmatprep.subr.bf16.mxu1 %v11075_v16 }
0x2058   : > { %7865 = vmatmul.mubr.msk.bf16.gmra.mrb[84].mxu1 %vm2062_vm12, %v5266_v8 }
0x2059   : > { %7909 = vmatpush3.bf16.xpose.msra.mxu1 %v5643_v47  ;;  %7868 = vmatprep.mubr.msk.bf16.mxu1 %vm8919_vm4, %v11075_v16 }
0x205a   : > { %7910 = vmatprep.subr.bf16.mxu1 %v11075_v16 }
0x2060   : > { %7869 = vmatmul.mubr.msk.bf16.gmra.mrb[88].mxu1 %vm2062_vm12, %v5268_v60 }
0x2061   : > { %7911 = vmatpush3.bf16.xpose.msra.mxu1 %v5646_v18  ;;  %7912 = vmatprep.mubr.msk.bf16.mxu1 %vm8919_vm4, %v11075_v16 }
0x2062   : > { %7962 = vmatprep.subr.bf16.mxu1 %v11075_v16 }
0x2068   : > { %7913 = vmatmul.mubr.msk.bf16.vlgmr.msra.gmra.mrb[92].mxu1 %vm2062_vm12, %v5599_v17 }
0x2069   : > { %7916 = vmatprep.mubr.msk.bf16.mxu1 %vm8919_vm4, %v11075_v16 }
0x2070   : > { %7917 = vmatmul.mubr.msk.bf16.gmra.mrb[96].mxu1 %vm2062_vm12, %v5601_v10 }
0x2071   : > { %7920 = vmatprep.mubr.msk.bf16.mxu1 %vm8919_vm4, %v11075_v16 }
0x2078   : > { %7921 = vmatmul.mubr.msk.bf16.gmra.mrb[100].mxu1 %vm2062_vm12, %v5603_v58 }
0x2079   : > { %7924 = vmatprep.mubr.msk.bf16.mxu1 %vm8919_vm4, %v11075_v16 }
0x2080   : > { %7925 = vmatmul.mubr.msk.bf16.gmra.mrb[104].mxu1 %vm2062_vm12, %v5605_v24 }
0x2081   : > { %7928 = vmatprep.mubr.msk.bf16.mxu1 %vm8919_vm4, %v11075_v16 }
0x2088   : > { %7929 = vmatmul.mubr.msk.bf16.gmra.mrb[108].mxu1 %vm2062_vm12, %v5607_v51 }
0x2089   : > { %7968 = vmatprep.mubr.msk.bf16.mxu1 %vm8919_vm4, %v11075_v16 }
0x20eb   : > { %v5002_v22 = vpop.f32.mrb[52].mxu1 }
0x20ec   : > { %v10236_v46 = vmul.f32 0.25, %v5002_v22  ;;  %v7794_v25 = vpop.f32.mrb[53].mxu1 }
0x20ed   : > { %v5005_v32 = vpop.f32.mrb[54].mxu1 }
0x20ee   : > { %v10238_v45 = vmul.f32 0.25, %v5005_v32  ;;  %v7795_v15 = vpop.f32.mrb[55].mxu1  ;;  %v5050_v13 = vsel %vm5049_vm14, %v10236_v46, -inf }
0x20ef   : > { %5051 = vmax.xlane.f32.xlu0 %v5050_v13 }
0x20f0   : > { %v5053_v1 = vsel %vm5049_vm14, %v10238_v45, -inf }
0x20f1   : > { %5054 = vmax.xlane.f32.xlu1 %v5053_v1 }
0x20f3   : > { %v5010_v21 = vpop.f32.mrb[56].mxu1 }
0x20f4   : > { %v10244_v57 = vmul.f32 0.25, %v5010_v21  ;;  %v7798_v20 = vpop.f32.mrb[57].mxu1 }
0x20f5   : > { %v5013_v8 = vpop.f32.mrb[58].mxu1 }
0x20f6   : > { %v10246_v19 = vmul.f32 0.25, %v5013_v8  ;;  %v7799_v60 = vpop.f32.mrb[59].mxu1  ;;  %v5056_v63 = vsel %vm5049_vm14, %v10244_v57, -inf }
0x20f7   : > { %5057 = vmax.xlane.f32.xlu0 %v5056_v63 }
0x20f8   : > { %v5059_v17 = vsel %vm5049_vm14, %v10246_v19, -inf }
0x20fb   : > { %5060 = vmax.xlane.f32.xlu0 %v5059_v17  ;;  %v5018_v53 = vpop.f32.mrb[60].mxu1 }
0x20fc   : > { %v10252_v10 = vmul.f32 0.25, %v5018_v53  ;;  %v7802_v58 = vpop.f32.mrb[61].mxu1 }
0x20fd   : > { %v5021_v51 = vpop.f32.mrb[62].mxu1 }
0x20fe   : > { %v10254_v24 = vmul.f32 0.25, %v5021_v51  ;;  %v7803_v33 = vpop.f32.mrb[63].mxu1  ;;  %v5062_v56 = vsel %vm5049_vm14, %v10252_v10, -inf }
0x20ff   : > { %5063 = vmax.xlane.f32.xlu1 %v5062_v56 }
0x2100   : > { %v5065_v38 = vsel %vm5049_vm14, %v10254_v24, -inf }
0x2101   : > { %5066 = vmax.xlane.f32.xlu0 %v5065_v38 }
0x2103   : > { %v5026_v29 = vpop.f32.mrb[64].mxu1 }
0x2104   : > { %v10260_v6 = vmul.f32 0.25, %v5026_v29  ;;  %v7806_v61 = vpop.f32.mrb[65].mxu1 }
0x2105   : > { %v5029_v28 = vpop.f32.mrb[66].mxu1 }
0x2106   : > { %v10262_v40 = vmul.f32 0.25, %v5029_v28  ;;  %v7807_v31 = vpop.f32.mrb[67].mxu1  ;;  %v5068_v34 = vsel %vm5049_vm14, %v10260_v6, -inf }
0x2107   : > { %5069 = vmax.xlane.f32.xlu1 %v5068_v34 }
0x2108   : > { %v5071_v47 = vsel %vm5049_vm14, %v10262_v40, -inf }
0x2109   : > { %5072 = vmax.xlane.f32.xlu0 %v5071_v47 }
0x210b   : > { %v5034_v18 = vpop.f32.mrb[68].mxu1 }
0x210c   : > { %v10268_v22 = vmul.f32 0.25, %v5034_v18  ;;  %v7810_v25 = vpop.f32.mrb[69].mxu1 }
0x210d   : > { %v5037_v32 = vpop.f32.mrb[70].mxu1 }
0x210e   : > { %v7811_v15 = vpop.f32.mrb[71].mxu1  ;;  %v5075_v13 = vsel %vm5074_vm7, %v10268_v22, -inf }
0x210f   : > { %5076 = vmax.xlane.f32.xlu1 %v5075_v13 }
0x2113   : > { %v5343_v1 = vpop.f32.mrb[72].mxu1 }
0x2114   : > { %v7854_v21 = vpop.f32.mrb[73].mxu1 }
0x2115   : > { %v5346_v20 = vpop.f32.mrb[74].mxu1 }
0x2116   : > { %v10272_v8 = vmul.f32 0.25, %v5346_v20  ;;  %v7855_v60 = vpop.f32.mrb[75].mxu1 }
0x2118   : > { %v5393_v63 = vsel %vm5049_vm14, %v10272_v8, -inf }
0x2119   : > { %5394 = vmax.xlane.f32.xlu1 %v5393_v63 }
0x211b   : > { %v5351_v17 = vpop.f32.mrb[76].mxu1 }
0x211c   : > { %v7858_v53 = vpop.f32.mrb[77].mxu1  ;;  %v10286_v60 = vmul.f32 0.25, %v5351_v17 }
0x211d   : > { %v5354_v58 = vpop.f32.mrb[78].mxu1 }
0x211e   : > { %v10276_v51 = vmul.f32 0.25, %v5354_v58  ;;  %v7859_v33 = vpop.f32.mrb[79].mxu1 }
0x211f   : > { %5496 = vrot.lane.b32.xlu0 %v10066_v26, %s11147_s26  ;;  %v10284_v26 = vmul.f32 0.25, %v5343_v1 }
0x2120   : > { %v5399_v56 = vsel %vm5049_vm14, %v10276_v51, -inf }
0x2121   : > { %5400 = vmax.xlane.f32.xlu1 %v5399_v56  ;;  %v5390_v53 = vsel %vm5049_vm14, %v10284_v26, -inf }
0x2123   : > { %v5359_v38 = vpop.f32.mrb[80].mxu1 }
0x2124   : > { %v7862_v29 = vpop.f32.mrb[81].mxu1  ;;  %v10290_v33 = vmul.f32 0.25, %v5359_v38 }
0x2125   : > { %v5362_v61 = vpop.f32.mrb[82].mxu1 }
0x2126   : > { %v7863_v28 = vpop.f32.mrb[83].mxu1  ;;  %v5402_v17 = vsel %vm5049_vm14, %v10290_v33, -inf }
0x212b   : > { %v5367_v31 = vpop.f32.mrb[84].mxu1 }
0x212c   : > { %v7866_v34 = vpop.f32.mrb[85].mxu1  ;;  %v10294_v1 = vmul.f32 0.25, %v5367_v31 }
0x212d   : > { %v5370_v47 = vpop.f32.mrb[86].mxu1 }
0x212e   : > { %v7867_v18 = vpop.f32.mrb[87].mxu1  ;;  %v5408_v38 = vsel %vm5049_vm14, %v10294_v1, -inf }
0x2132   : > { %5498 = vrot.lane.b32.xlu1 %v10076_v52, %s11147_s26  ;;  %v5396_v52 = vsel %vm5049_vm14, %v10286_v60, -inf }
0x2133   : > { %v5375_v25 = vpop.f32.mrb[88].mxu1 }
0x2134   : > { %v7870_v32 = vpop.f32.mrb[89].mxu1  ;;  %v10298_v18 = vmul.f32 0.25, %v5375_v25 }
0x2135   : > { %v5378_v15 = vpop.f32.mrb[90].mxu1 }
0x2136   : > { %v7871_v13 = vpop.f32.mrb[91].mxu1  ;;  %v5414_v31 = vsel %vm5074_vm7, %v10298_v18, -inf }
0x213b   : > { %v5682_v21 = vpop.f32.mrb[92].mxu1 }
0x213c   : > { %v7914_v20 = vpop.f32.mrb[93].mxu1 }
0x213d   : > { %v5685_v63 = vpop.f32.mrb[94].mxu1 }
0x213e   : > { %5391 = vmax.xlane.f32.xlu0 %v5390_v53  ;;  %v7915_v58 = vpop.f32.mrb[95].mxu1  ;;  %v10302_v13 = vmul.f32 0.25, %v5685_v63 }
0x213f   : > { %v10306_v58 = vmul.f32 0.25, %v5362_v61 }
0x2140   : > { %v5732_v25 = vsel %vm5049_vm14, %v10302_v13, -inf }
0x2142   : > { %5397 = vmax.xlane.f32.xlu0 %v5396_v52 }
0x2143   : > { %v5690_v56 = vpop.f32.mrb[96].mxu1 }
0x2144   : > { %v7918_v29 = vpop.f32.mrb[97].mxu1  ;;  %v10328_v0 = vmul.f32 0.25, %v5690_v56 }
0x2145   : > { %v5693_v28 = vpop.f32.mrb[98].mxu1 }
0x2146   : > { %5403 = vmax.xlane.f32.xlu0 %v5402_v17  ;;  %v7919_v34 = vpop.f32.mrb[99].mxu1  ;;  %v10308_v52 = vmul.f32 0.25, %v5693_v28 }
0x2147   : > { %v10312_v34 = vmul.f32 0.25, %v5370_v47 }
0x2148   : > { %v5738_v61 = vsel %vm5049_vm14, %v10308_v52, -inf }
0x2149   : > { %v5411_v47 = vsel %vm5049_vm14, %v10312_v34, -inf }
0x214a   : > { %5409 = vmax.xlane.f32.xlu0 %v5408_v38 }
0x214b   : > { %v5698_v32 = vpop.f32.mrb[100].mxu1 }
0x214c   : > { %v7922_v15 = vpop.f32.mrb[101].mxu1 }
0x214d   : > { %v5701_v20 = vpop.f32.mrb[102].mxu1  ;;  %v5405_v15 = vsel %vm5049_vm14, %v10306_v58, -inf }
0x214e   : > { %5415 = vmax.xlane.f32.xlu0 %v5414_v31  ;;  %v7923_v53 = vpop.f32.mrb[103].mxu1  ;;  %v10314_v63 = vmul.f32 0.25, %v5701_v20  ;;  %v10320_v31 = vmul.f32 0.25, %v5682_v21 }
0x2150   : > { %v5744_v20 = vsel %vm5049_vm14, %v10314_v63, -inf  ;;  %v5729_v21 = vsel %vm5049_vm14, %v10320_v31, -inf }
0x2152   : > { %5733 = vmax.xlane.f32.xlu0 %v5732_v25 }
0x2153   : > { %v5706_v29 = vpop.f32.mrb[104].mxu1 }
0x2154   : > { %v7926_v17 = vpop.f32.mrb[105].mxu1 }
0x2155   : > { %v5709_v38 = vpop.f32.mrb[106].mxu1 }
0x2156   : > { %5406 = vmax.xlane.f32.xlu1 %v5405_v15  ;;  %5739 = vmax.xlane.f32.xlu0 %v5738_v61  ;;  %v7927_v28 = vpop.f32.mrb[107].mxu1  ;;  %v10322_v53 = vmul.f32 0.25, %v5709_v38 }
0x2157   : > { %v10336_v28 = vmul.f32 0.25, %v5698_v32  ;;  %v10348_v32 = vpop.permute.xlu0 %5494 }
0x2158   : > { %v5750_v38 = vsel %vm5049_vm14, %v10322_v53, -inf }
0x215a   : > { %5412 = vmax.xlane.f32.xlu1 %v5411_v47  ;;  %5745 = vmax.xlane.f32.xlu0 %v5744_v20  ;;  %v5735_v47 = vsel %vm5049_vm14, %v10328_v0, -inf  ;;  %v10342_v20 = vmul.f32 0.25, %v5706_v29 }
0x215b   : > { %v5714_v25 = vpop.f32.mrb[108].mxu1 }
0x215c   : > { %v7930_v17 = vpop.f32.mrb[109].mxu1  ;;  %v10330_v9 = vmul.f32 0.25, %v5714_v25  ;;  %v5741_v25 = vsel %vm5049_vm14, %v10336_v28, -inf }
0x215d   : > { %v5717_v15 = vpop.f32.mrb[110].mxu1  ;;  %v5747_v17 = vsel %vm5049_vm14, %v10342_v20, -inf }
0x215e   : > { %5730 = vmax.xlane.f32.xlu1 %v5729_v21  ;;  %5751 = vmax.xlane.f32.xlu0 %v5750_v38  ;;  %v7931_v61 = vpop.f32.mrb[111].mxu1  ;;  %v5753_v56 = vsel %vm5074_vm7, %v10330_v9, -inf }
0x2162   : > { %5736 = vmax.xlane.f32.xlu1 %v5735_v47  ;;  %5754 = vmax.xlane.f32.xlu0 %v5753_v56 }
0x2166   : > { %5742 = vmax.xlane.f32.xlu1 %v5741_v25 }
0x216a   : > { %5748 = vmax.xlane.f32.xlu1 %v5747_v17 }
0x217c   : > { %v5052_v15 = vpop.xlane.xlu0 %5051 }
0x217d   : > { %v5078_v21 = vsub.f32 %v10236_v46, %v5052_v15 }
0x217e   : > { %v5055_v38 = vpop.xlane.xlu1 %5054 }
0x217f   : > { %v5087_v61 = vmul.f32 1.442695, %v5078_v21  ;;  %v5079_v47 = vsub.f32 %v10238_v45, %v5055_v38 }
0x2181   : > { %8507 = vpow2.f32 %v5087_v61  ;;  %v5089_v29 = vmul.f32 1.442695, %v5079_v47 }
0x2183   : > { %8509 = vpow2.f32 %v5089_v29 }
0x2184   : > { %v5058_v56 = vpop.xlane.xlu0 %5057 }
0x2185   : > { %v5080_v54 = vsub.f32 %v10244_v57, %v5058_v56 }
0x2187   : > { %v5091_v25 = vmul.f32 1.442695, %v5080_v54 }
0x2188   : > { %v5061_v42 = vpop.xlane.xlu0 %5060 }
0x2189   : > { %8511 = vpow2.f32 %v5091_v25  ;;  %v5081_v17 = vsub.f32 %v10246_v19, %v5061_v42 }
0x218b   : > { %v10354_v30 = vpop.eup %8507  ;;  %v5093_v16 = vmul.f32 1.442695, %v5081_v17 }
0x218c   : > { %v5064_v5 = vpop.xlane.xlu1 %5063  ;;  %v5105_v46 = vsel %vm5049_vm14, %v10354_v30, 0.0 }
0x218d   : > { %v10358_v15 = vpop.eup %8509  ;;  %8513 = vpow2.f32 %v5093_v16  ;;  %v5082_v45 = vsub.f32 %v10252_v10, %v5064_v5  ;;  %5106 = vadd.xlane.f32.xlu1 %v5105_v46 }
0x218e   : > { %v5067_v21 = vpop.xlane.xlu0 %5066  ;;  %v5108_v54 = vsel %vm5049_vm14, %v10358_v15, 0.0 }
0x218f   : > { %v5095_v57 = vmul.f32 1.442695, %v5082_v45  ;;  %v5083_v42 = vsub.f32 %v10254_v24, %v5067_v21  ;;  %5109 = vadd.xlane.f32.xlu0 %v5108_v54 }
0x2191   : > { %8515 = vpow2.f32 %v5095_v57  ;;  %v5097_v19 = vmul.f32 1.442695, %v5083_v42 }
0x2193   : > { %v10364_v38 = vpop.eup %8511  ;;  %8517 = vpow2.f32 %v5097_v19 }
0x2194   : > { %v5070_v61 = vpop.xlane.xlu1 %5069  ;;  %v5111_v16 = vsel %vm5049_vm14, %v10364_v38, 0.0 }
0x2195   : > { %v5084_v5 = vsub.f32 %v10260_v6, %v5070_v61  ;;  %5112 = vadd.xlane.f32.xlu1 %v5111_v16 }
0x2196   : > { %v5073_v10 = vpop.xlane.xlu0 %5072 }
0x2197   : > { %v10369_v47 = vpop.eup %8513  ;;  %v5099_v29 = vmul.f32 1.442695, %v5084_v5  ;;  %v5085_v56 = vsub.f32 %v10262_v40, %v5073_v10 }
0x2198   : > { %v5114_v24 = vsel %vm5049_vm14, %v10369_v47, 0.0 }
0x2199   : > { %8519 = vpow2.f32 %v5099_v29  ;;  %v5101_v25 = vmul.f32 1.442695, %v5085_v56  ;;  %5115 = vadd.xlane.f32.xlu0 %v5114_v24 }
0x219a   : > { %v10395_v5 = vpop.permute.xlu0 %5496 }
0x219b   : > { %v10374_v17 = vpop.eup %8515  ;;  %8521 = vpow2.f32 %v5101_v25 }
0x219c   : > { %v5077_v46 = vpop.xlane.xlu1 %5076  ;;  %v5117_v6 = vsel %vm5049_vm14, %v10374_v17, 0.0 }
0x219d   : > { %v10378_v45 = vpop.eup %8517  ;;  %v5086_v21 = vsub.f32 %v10268_v22, %v5077_v46  ;;  %5118 = vadd.xlane.f32.xlu1 %v5117_v6 }
0x219e   : > { %v5120_v40 = vsel %vm5049_vm14, %v10378_v45, 0.0 }
0x219f   : > { %v5103_v54 = vmul.f32 1.442695, %v5086_v21  ;;  %5121 = vadd.xlane.f32.xlu0 %v5120_v40 }
0x21a1   : > { %8523 = vpow2.f32 %v5103_v54 }
0x21a3   : > { %v10383_v57 = vpop.eup %8519 }
0x21a4   : > { %v5123_v42 = vsel %vm5049_vm14, %v10383_v57, 0.0 }
0x21a5   : > { %v10387_v19 = vpop.eup %8521  ;;  %5124 = vadd.xlane.f32.xlu1 %v5123_v42 }
0x21a6   : > { %v5126_v61 = vsel %vm5049_vm14, %v10387_v19, 0.0  ;;  %v5395_v10 = vpop.xlane.xlu1 %5394 }
0x21a7   : > { %5127 = vadd.xlane.f32.xlu0 %v5126_v61  ;;  %v5418_v29 = vsub.f32 %v10272_v8, %v5395_v10 }
0x21a9   : > { %v5428_v46 = vmul.f32 1.442695, %v5418_v29 }
0x21ab   : > { %v10391_v22 = vpop.eup %8523 }
0x21ac   : > { %v5129_v16 = vsel %vm5074_vm7, %v10391_v22, 0.0 }
0x21ad   : > { %5130 = vadd.xlane.f32.xlu0 %v5129_v16 }
0x21ae   : > { %v5401_v56 = vpop.xlane.xlu1 %5400 }
0x21af   : > { %v5420_v6 = vsub.f32 %v10276_v51, %v5401_v56 }
0x21b1   : > { %v5432_v42 = vmul.f32 1.442695, %v5420_v6 }
0x21cb   : > { %v5392_v24 = vpop.xlane.xlu0 %5391 }
0x21cc   : > { %v5417_v25 = vsub.f32 %v10284_v26, %v5392_v24 }
0x21ce   : > { %v5426_v21 = vmul.f32 1.442695, %v5417_v25 }
0x21cf   : > { %v5398_v40 = vpop.xlane.xlu0 %5397 }
0x21d0   : > { %8525 = vpow2.f32 %v5426_v21  ;;  %v5419_v54 = vsub.f32 %v10286_v60, %v5398_v40  ;;  %v10410_v60 = vpop.permute.xlu1 %5498 }
0x21d1   : > { %8527 = vpow2.f32 %v5428_v46 }
0x21d2   : > { %v5430_v61 = vmul.f32 1.442695, %v5419_v54 }
0x21d3   : > { %v5404_v16 = vpop.xlane.xlu0 %5403 }
0x21d4   : > { %8529 = vpow2.f32 %v5430_v61  ;;  %v5421_v3 = vsub.f32 %v10290_v33, %v5404_v16 }
0x21d5   : > { %8531 = vpow2.f32 %v5432_v42 }
0x21d6   : > { %v5434_v8 = vmul.f32 1.442695, %v5421_v3 }
0x21d8   : > { %8533 = vpow2.f32 %v5434_v8 }
0x21da   : > { %v10402_v10 = vpop.eup %8525 }
0x21db   : > { %v5444_v51 = vsel %vm5049_vm14, %v10402_v10, 0.0  ;;  %v10406_v26 = vpop.eup %8527 }
0x21dc   : > { %5445 = vadd.xlane.f32.xlu0 %v5444_v51  ;;  %v5447_v33 = vsel %vm5049_vm14, %v10406_v26, 0.0  ;;  %v5410_v51 = vpop.xlane.xlu0 %5409 }
0x21de   : > { %v10408_v29 = vpop.eup %8529 }
0x21df   : > { %v5450_v56 = vsel %vm5049_vm14, %v10408_v29, 0.0  ;;  %v10416_v3 = vpop.eup %8531 }
0x21e0   : > { %5451 = vadd.xlane.f32.xlu1 %v5450_v56  ;;  %5448 = vadd.xlane.f32.xlu0 %v5447_v33  ;;  %v5453_v25 = vsel %vm5049_vm14, %v10416_v3, 0.0  ;;  %v5416_v33 = vpop.xlane.xlu0 %5415 }
0x21e1   : > { %v5425_v43 = vsub.f32 %v10298_v18, %v5416_v33 }
0x21e2   : > { %v10420_v46 = vpop.eup %8533 }
0x21e3   : > { %v5407_v24 = vpop.xlane.xlu1 %5406  ;;  %v5456_v54 = vsel %vm5049_vm14, %v10420_v46, 0.0  ;;  %v5442_v7 = vmul.f32 1.442695, %v5425_v43 }
0x21e4   : > { %v5422_v6 = vsub.f32 %v10306_v58, %v5407_v24  ;;  %5454 = vadd.xlane.f32.xlu0 %v5453_v25  ;;  %v5734_v24 = vpop.xlane.xlu0 %5733 }
0x21e5   : > { %v5757_v62 = vsub.f32 %v10302_v13, %v5734_v24 }
0x21e6   : > { %v5436_v21 = vmul.f32 1.442695, %v5422_v6 }
0x21e7   : > { %v5413_v40 = vpop.xlane.xlu1 %5412 }
0x21e8   : > { %8535 = vpow2.f32 %v5436_v21  ;;  %v5424_v42 = vsub.f32 %v10312_v34, %v5413_v40  ;;  %5457 = vadd.xlane.f32.xlu0 %v5456_v54  ;;  %v5740_v34 = vpop.xlane.xlu0 %5739  ;;  %v5423_v54 = vsub.f32 %v10294_v1, %v5410_v51  ;;  %v5767_v51 = vmul.f32 1.442695, %v5757_v62 }
0x21e9   : > { %v5759_v13 = vsub.f32 %v10308_v52, %v5740_v34 }
0x21ea   : > { %v5440_v61 = vmul.f32 1.442695, %v5424_v42 }
0x21eb   : > { %v5731_v25 = vpop.xlane.xlu1 %5730  ;;  %v5771_v62 = vmul.f32 1.442695, %v5759_v13 }
0x21ec   : > { %8537 = vpow2.f32 %v5440_v61  ;;  %v10436_v21 = vpop.xlane.xlu0 %5745  ;;  %v5438_v61 = vmul.f32 1.442695, %v5423_v54 }
0x21ee   : > { %8539 = vpow2.f32 %v5438_v61 }
0x21ef   : > { %v5737_v6 = vpop.xlane.xlu1 %5736 }
0x21f0   : > { %v10441_v42 = vpop.xlane.xlu0 %5751  ;;  %v5758_v1 = vsub.f32 %v10328_v0, %v5737_v6 }
0x21f2   : > { %v10426_v16 = vpop.eup %8535  ;;  %v5769_v33 = vmul.f32 1.442695, %v5758_v1 }
0x21f3   : > { %v5459_v8 = vsel %vm5049_vm14, %v10426_v16, 0.0  ;;  %v5743_v40 = vpop.xlane.xlu1 %5742 }
0x21f4   : > { %5460 = vadd.xlane.f32.xlu1 %v5459_v8  ;;  %v5755_v35 = vpop.xlane.xlu0 %5754 }
0x21f6   : > { %v10430_v58 = vpop.eup %8537 }
0x21f7   : > { %v5465_v56 = vsel %vm5049_vm14, %v10430_v58, 0.0  ;;  %v5749_v8 = vpop.xlane.xlu1 %5748 }
0x21f8   : > { %5466 = vadd.xlane.f32.xlu0 %v5465_v56  ;;  %v5756_v56 = vsub.f32 %v10320_v31, %v5731_v25  ;;  %v5764_v31 = vsub.f32 %v10330_v9, %v5755_v35  ;;  %v10450_v24 = vpop.eup %8539 }
0x21f9   : > { %v5462_v9 = vsel %vm5049_vm14, %v10450_v24, 0.0 }
0x21fa   : > { %v5765_v55 = vmul.f32 1.442695, %v5756_v56  ;;  %v5781_v43 = vmul.f32 1.442695, %v5764_v31 }
0x2205   : > { %5500 = vrot.lane.b32.xlu1 %v10086_v2, %s11147_s26 }
0x220e   : > { %5502 = vrot.lane.b32.xlu0 %v10094_v50, %s11147_s26  ;;  %v5762_v50 = vsub.f32 %v10342_v20, %v5749_v8 }
0x2210   : > { %v5777_v18 = vmul.f32 1.442695, %v5762_v50  ;;  %v5763_v50 = vsub.f32 %v10322_v53, %v10441_v42 }
0x221a   : > { %v5107_v2 = vpop.xlane.xlu1 %5106 }
0x221b   : > { %8541 = vrcp.f32 %v5107_v2 }
0x221c   : > { %v5110_v37 = vpop.xlane.xlu0 %5109 }
0x221d   : > { %8543 = vrcp.f32 %v5110_v37 }
0x221e   : > { %8545 = vpow2.f32 %v5765_v55 }
0x221f   : > { %8547 = vpow2.f32 %v5442_v7  ;;  %v5760_v7 = vsub.f32 %v10336_v28, %v5743_v40  ;;  %v5761_v28 = vsub.f32 %v10314_v63, %v10436_v21  ;;  %v11174_v63 = vmov 0.0  }
0x2220   : > { %8549 = vpow2.f32 %v5767_v51 }
0x2221   : > { %8551 = vpow2.f32 %v5777_v18  ;;  %v5773_v40 = vmul.f32 1.442695, %v5760_v7  ;;  %v5775_v2 = vmul.f32 1.442695, %v5761_v28 }
0x2222   : > { %v5113_v25 = vpop.xlane.xlu1 %5112 }
0x2223   : > { %8553 = vrcp.f32 %v5113_v25  ;;  %v5779_v25 = vmul.f32 1.442695, %v5763_v50 }
0x2224   : > { %8555 = vpow2.f32 %v5769_v33 }
0x2225   : > { %v8542_v20 = vpop.eup %8541 }
0x2226   : > { %v5116_v37 = vpop.xlane.xlu0 %5115  ;;  %v5133_v55 = vmul.f32 %v8542_v20, %v10354_v30 }
0x2227   : > { %v8544_v0 = vpop.eup %8543  ;;  %8557 = vrcp.f32 %v5116_v37 }
0x2228   : > { %8559 = vpow2.f32 %v5781_v43  ;;  %v5135_v35 = vmul.f32 %v8544_v0, %v10358_v15  ;;  %v10457_v52 = vpop.eup %8545 }
0x2229   : > { %5463 = vadd.xlane.f32.xlu1 %v5462_v9  ;;  %v10459_v34 = vpop.eup %8547  ;;  %8561 = vpow2.f32 %v5771_v62  ;;  %v5783_v15 = vsel %vm5049_vm14, %v10457_v52, 0.0 }
0x222a   : > { %v5150_v6 = vpack.c.bf16 %v5135_v35, %v5133_v55  ;;  %v5119_v54 = vpop.xlane.xlu1 %5118  ;;  %v10466_v61 = vpop.eup %8549  ;;  %v5468_v8 = vsel %vm5074_vm7, %v10459_v34, 0.0 }
0x222b   : > { %8563 = vrcp.f32 %v5119_v54  ;;  %v10471_v56 = vpop.eup %8551  ;;  %v5786_v1 = vsel %vm5049_vm14, %v10466_v61, 0.0 }
0x222c   : > { %7823 = vmatmul.mubr.msk.bf16.vlgmr.msra.gmra.mrb[108].mxu0 %vm5049_vm14, %v5150_v6  ;;  %v5122_v30 = vpop.xlane.xlu0 %5121  ;;  %v5801_v31 = vsel %vm5049_vm14, %v10471_v56, 0.0 }
0x222d   : > { %7873 = vmatpush3.bf16.msra.mxu0 %v10348_v32  ;;  %8565 = vrcp.f32 %v5122_v30  ;;  %5784 = vadd.xlane.f32.xlu1 %v5783_v15  ;;  %v8554_v21 = vpop.eup %8553 }
0x222e   : > { %5469 = vadd.xlane.f32.xlu0 %v5468_v8  ;;  %7874 = vmatprep.subr.bf16.mxu0 %v11174_v63  ;;  %8567 = vpow2.f32 %v5773_v40  ;;  %v10478_v32 = vpop.eup %8555  ;;  %v5137_v42 = vmul.f32 %v8554_v21, %v10364_v38 }
0x222f   : > { %7826 = vmatprep.mubr.msk.bf16.mxu0 %vm8919_vm4, %v11174_v63  ;;  %8569 = vpow2.f32 %v5775_v2 }
0x2231   : > { %v8558_v51 = vpop.eup %8557  ;;  %7875 = vmatpush3.bf16.msra.mxu0 %v10395_v5  ;;  %5787 = vadd.xlane.f32.xlu1 %v5786_v1  ;;  %v5789_v5 = vsel %vm5049_vm14, %v10478_v32, 0.0 }
0x2232   : > { %v10485_v18 = vpop.eup %8559  ;;  %5802 = vadd.xlane.f32.xlu0 %v5801_v31  ;;  %v5125_v53 = vpop.xlane.xlu1 %5124  ;;  %7876 = vmatprep.subr.bf16.mxu0 %v11174_v63  ;;  %v5139_v33 = vmul.f32 %v8558_v51, %v10369_v47 }
0x2233   : > { %8571 = vrcp.f32 %v5125_v53  ;;  %v10492_v20 = vpop.eup %8561  ;;  %v5807_v37 = vsel %vm5074_vm7, %v10485_v18, 0.0 }
0x2234   : > { %v5128_v13 = vpop.xlane.xlu0 %5127  ;;  %v5151_v43 = vpack.c.bf16 %v5139_v33, %v5137_v42  ;;  %v5792_v0 = vsel %vm5049_vm14, %v10492_v20, 0.0 }
0x2235   : > { %7877 = vmatpush3.bf16.msra.mxu0 %v10410_v60  ;;  %8573 = vrcp.f32 %v5128_v13  ;;  %5790 = vadd.xlane.f32.xlu1 %v5789_v5  ;;  %v8564_v38 = vpop.eup %8563 }
0x2236   : > { %5808 = vadd.xlane.f32.xlu0 %v5807_v37  ;;  %7827 = vmatmul.mubr.msk.bf16.gmra.mrb[112].mxu0 %vm5049_vm14, %v5151_v43  ;;  %8575 = vpow2.f32 %v5779_v25  ;;  %v5141_v55 = vmul.f32 %v8564_v38, %v10374_v17 }
0x2237   : > { %v8566_v47 = vpop.eup %8565  ;;  %7830 = vmatprep.mubr.msk.bf16.mxu0 %vm8919_vm4, %v11174_v63  ;;  %7878 = vmatprep.subr.bf16.mxu0 %v11174_v63 }
0x2238   : > { %v5143_v60 = vmul.f32 %v8566_v47, %v10378_v45  ;;  %v10504_v62 = vpop.eup %8567 }
0x2239   : > { %5793 = vadd.xlane.f32.xlu1 %v5792_v0  ;;  %v5795_v35 = vsel %vm5049_vm14, %v10504_v62, 0.0  ;;  %v10509_v6 = vpop.eup %8569 }
0x223a   : > { %v5131_v7 = vpop.xlane.xlu0 %5130  ;;  %v5152_v9 = vpack.c.bf16 %v5143_v60, %v5141_v55  ;;  %v5798_v45 = vsel %vm5049_vm14, %v10509_v6, 0.0  ;;  %v11175_v60 = vpack.c.bf16 %v10054_v14, %v10052_v4  ;;  %v11177_v14 = vpack.c.bf16 %v10074_v49, %v10072_v23 }
0x223b   : > { %8577 = vrcp.f32 %v5131_v7  ;;  %v11176_v7 = vpack.c.bf16 %v10064_v41, %v10062_v36  ;;  %v4922_v36 = vpack.c.bf16 %v10092_v11, %v10092_v11 }
0x223d   : > { %5796 = vadd.xlane.f32.xlu1 %v5795_v35  ;;  %v8572_v54 = vpop.eup %8571  ;;  %v5849_v23 = vand.u32 %v4922_v36, %v9447_v39 }
0x223e   : > { %7831 = vmatmul.mubr.msk.bf16.gmra.mrb[116].mxu0 %vm5049_vm14, %v5152_v9  ;;  %v5145_v30 = vmul.f32 %v8572_v54, %v10383_v57 }
0x223f   : > { %v8574_v28 = vpop.eup %8573  ;;  %7834 = vmatprep.mubr.msk.bf16.mxu0 %vm8919_vm4, %v11174_v63 }
0x2240   : > { %v5147_v17 = vmul.f32 %v8574_v28, %v10387_v19  ;;  %v10517_v40 = vpop.eup %8575 }
0x2241   : > { %5799 = vadd.xlane.f32.xlu1 %v5798_v45  ;;  %v5804_v15 = vsel %vm5049_vm14, %v10517_v40, 0.0 }
0x2242   : > { %v5153_v8 = vpack.c.bf16 %v5147_v17, %v5145_v30 }
0x2245   : > { %v8578_v21 = vpop.eup %8577  ;;  %5805 = vadd.xlane.f32.xlu1 %v5804_v15 }
0x2246   : > { %7835 = vmatmul.mubr.msk.bf16.gmra.mrb[120].mxu0 %vm5049_vm14, %v5153_v8  ;;  %v5149_v2 = vmul.f32 %v8578_v21, %v10391_v22 }
0x2247   : > { %7838 = vmatprep.mubr.msk.bf16.mxu0 %vm8919_vm4, %v11174_v63 }
0x2248   : > { %v5154_v50 = vpack.c.bf16 %v5149_v2, %v5149_v2 }
0x224e   : > { %7839 = vmatmul.mubr.msk.bf16.gmra.mrb[124].mxu0 %vm5049_vm14, %v5154_v50 }
0x224f   : > { %7882 = vmatprep.mubr.msk.bf16.mxu0 %vm8919_vm4, %v11174_v63 }
0x2269   : > { %v5446_v57 = vpop.xlane.xlu0 %5445 }
0x226d   : > { %v5449_v19 = vpop.xlane.xlu0 %5448  ;;  %v5452_v51 = vpop.xlane.xlu1 %5451 }
0x226e   : > { %8579 = vrcp.f32 %v5449_v19 }
0x226f   : > { %8581 = vrcp.f32 %v5446_v57 }
0x2271   : > { %v5455_v1 = vpop.xlane.xlu0 %5454 }
0x2272   : > { %8583 = vrcp.f32 %v5455_v1 }
0x2273   : > { %8585 = vrcp.f32 %v5452_v51 }
0x2275   : > { %v5458_v31 = vpop.xlane.xlu0 %5457 }
0x2278   : > { %v8580_v25 = vpop.eup %8579 }
0x2279   : > { %v8582_v22 = vpop.eup %8581  ;;  %v5474_v13 = vmul.f32 %v8580_v25, %v10406_v26 }
0x227a   : > { %v5472_v37 = vmul.f32 %v8582_v22, %v10402_v10 }
0x227c   : > { %v5489_v38 = vpack.c.bf16 %v5474_v13, %v5472_v37  ;;  %v8584_v47 = vpop.eup %8583 }
0x227d   : > { %v8586_v0 = vpop.eup %8585  ;;  %v5478_v10 = vmul.f32 %v8584_v47, %v10416_v3  ;;  %v11178_v3 = vpack.c.bf16 %v10084_v12, %v10082_v59 }
0x227e   : > { %v5476_v26 = vmul.f32 %v8586_v0, %v10408_v29  ;;  %v11179_v0 = vmov 0  }
0x2280   : > { %v5490_v55 = vpack.c.bf16 %v5478_v10, %v5476_v26 }
0x2281   : > { %v5461_v53 = vpop.xlane.xlu1 %5460 }
0x2282   : > { %8587 = vrcp.f32 %v5461_v53 }
0x2283   : > { %8589 = vrcp.f32 %v5458_v31 }
0x2285   : > { %v5501_v42 = vpop.permute.xlu1 %5500  ;;  %v5467_v33 = vpop.xlane.xlu0 %5466 }
0x2286   : > { %7879 = vmatpush3.bf16.msra.mxu0 %v5501_v42  ;;  %8591 = vrcp.f32 %v5467_v33 }
0x2287   : > { %7880 = vmatprep.subr.bf16.mxu0 %v11174_v63 }
0x2289   : > { %v5503_v5 = vpop.permute.xlu0 %5502 }
0x228a   : > { %v5524_v43 = vand.u32 %v5503_v5, %v9447_v39 }
0x228c   : > { %7881 = vmatpush3.bf16.msra.mxu0 %v5524_v43  ;;  %v8588_v35 = vpop.eup %8587 }
0x228d   : > { %7932 = vmatprep.subr.bf16.mxu0 %v11174_v63  ;;  %v8590_v4 = vpop.eup %8589  ;;  %v5482_v29 = vmul.f32 %v8588_v35, %v10426_v16 }
0x228e   : > { %v5480_v41 = vmul.f32 %v8590_v4, %v10420_v46 }
0x228f   : > { %7883 = vmatmul.mubr.msk.bf16.vlgmr.msra.gmra.mrb[128].mxu0 %vm5049_vm14, %v5489_v38 }
0x2290   : > { %7933 = vmatpush3.bf16.msra.mxu0 %v11175_v60  ;;  %7886 = vmatprep.mubr.msk.bf16.mxu0 %vm8919_vm4, %v11174_v63  ;;  %v5491_v9 = vpack.c.bf16 %v5482_v29, %v5480_v41  ;;  %v8592_v59 = vpop.eup %8591 }
0x2291   : > { %7934 = vmatprep.subr.bf16.mxu0 %v11174_v63  ;;  %v5486_v39 = vmul.f32 %v8592_v59, %v10430_v58 }
0x2294   : > { %7935 = vmatpush3.bf16.msra.mxu0 %v11176_v7 }
0x2295   : > { %7936 = vmatprep.subr.bf16.mxu0 %v11174_v63 }
0x2297   : > { %7887 = vmatmul.mubr.msk.bf16.gmra.mrb[132].mxu0 %vm5049_vm14, %v5490_v55 }
0x2298   : > { %7937 = vmatpush3.bf16.msra.mxu0 %v11177_v14  ;;  %7890 = vmatprep.mubr.msk.bf16.mxu0 %vm8919_vm4, %v11174_v63 }
0x2299   : > { %7938 = vmatprep.subr.bf16.mxu0 %v11174_v63 }
0x229c   : > { %7939 = vmatpush3.bf16.msra.mxu0 %v11178_v3 }
0x229d   : > { %7940 = vmatprep.subr.bf16.mxu0 %v11174_v63 }
0x229f   : > { %7891 = vmatmul.mubr.msk.bf16.gmra.mrb[136].mxu0 %vm5049_vm14, %v5491_v9 }
0x22a0   : > { %7941 = vmatpush3.bf16.msra.mxu0 %v5849_v23  ;;  %7894 = vmatprep.mubr.msk.bf16.mxu0 %vm8919_vm4, %v11174_v63 }
0x22b6   : > { %v5464_v49 = vpop.xlane.xlu1 %5463 }
0x22b7   : > { %8593 = vrcp.f32 %v5464_v49 }
0x22ba   : > { %v5785_v11 = vpop.xlane.xlu1 %5784 }
0x22bb   : > { %v5470_v46 = vpop.xlane.xlu0 %5469 }
0x22bc   : > { %8595 = vrcp.f32 %v5470_v46 }
0x22be   : > { %v5788_v16 = vpop.xlane.xlu1 %5787 }
0x22bf   : > { %8597 = vrcp.f32 %v5788_v16  ;;  %v5803_v53 = vpop.xlane.xlu0 %5802 }
0x22c0   : > { %8599 = vrcp.f32 %v5785_v11 }
0x22c1   : > { %v8594_v12 = vpop.eup %8593 }
0x22c2   : > { %v5791_v54 = vpop.xlane.xlu1 %5790  ;;  %v5484_v28 = vmul.f32 %v8594_v12, %v10450_v24 }
0x22c3   : > { %v5809_v25 = vpop.xlane.xlu0 %5808 }
0x22c4   : > { %v5492_v45 = vpack.c.bf16 %v5486_v39, %v5484_v28 }
0x22c6   : > { %v8596_v17 = vpop.eup %8595  ;;  %v5794_v30 = vpop.xlane.xlu1 %5793  ;;  %7895 = vmatmul.mubr.msk.bf16.gmra.mrb[140].mxu0 %vm5049_vm14, %v5492_v45  ;;  %v8337_v45 = vld [vmem:[%s11180_s3 + $0x8] sm:$0xff]  }
0x22c7   : > { %7898 = vmatprep.mubr.msk.bf16.mxu0 %vm8919_vm4, %v11174_v63  ;;  %v5488_v15 = vmul.f32 %v8596_v17, %v10459_v34  ;;  %8601 = vrcp.f32 %v5794_v30  ;;  %v8338_v30 = vld [vmem:[%s11180_s3 + $0x10] sm:$0xff]  }
0x22c8   : > { %8603 = vrcp.f32 %v5791_v54  ;;  %v8336_v54 = vld [vmem:[%s11180_s3] sm:$0xff]  }
0x22c9   : > { %v5493_v21 = vpack.c.bf16 %v5488_v15, %v5488_v15  ;;  %v8598_v2 = vpop.eup %8597  ;;  %7963 = vmatpush3.bf16.msra.mxu1 %v8336_v54 }
0x22ca   : > { %v5797_v8 = vpop.xlane.xlu1 %5796  ;;  %v8600_v58 = vpop.eup %8599  ;;  %v5813_v24 = vmul.f32 %v8598_v2, %v10466_v61  ;;  %7964 = vmatprep.subr.bf16.mxu1 %v11174_v63 }
0x22cb   : > { %v5811_v57 = vmul.f32 %v8600_v58, %v10457_v52 }
0x22cd   : > { %v5828_v19 = vpack.c.bf16 %v5813_v24, %v5811_v57  ;;  %7965 = vmatpush3.bf16.msra.mxu1 %v8337_v45 }
0x22ce   : > { %7899 = vmatmul.mubr.msk.bf16.gmra.mrb[144].mxu0 %vm5049_vm14, %v5493_v21  ;;  %v5800_v50 = vpop.xlane.xlu1 %5799  ;;  %7966 = vmatprep.subr.bf16.mxu1 %v11174_v63 }
0x22cf   : > { %7942 = vmatprep.mubr.msk.bf16.mxu0 %vm8919_vm4, %v11174_v63  ;;  %8605 = vrcp.f32 %v5800_v50 }
0x22d0   : > { %8607 = vrcp.f32 %v5797_v8 }
0x22d1   : > { %v8602_v1 = vpop.eup %8601  ;;  %7967 = vmatpush3.bf16.msra.mxu1 %v8338_v30 }
0x22d2   : > { %v8604_v34 = vpop.eup %8603  ;;  %v5806_v51 = vpop.xlane.xlu1 %5805  ;;  %v5817_v31 = vmul.f32 %v8602_v1, %v10492_v20  ;;  %6735 = vmatprep.subr.bf16.mxu1 %v11179_v0 }
0x22d3   : > { %v5815_v42 = vmul.f32 %v8604_v34, %v10478_v32  ;;  %8609 = vrcp.f32 %v5806_v51 }
0x22d4   : > { %8611 = vrcp.f32 %v5803_v53 }
0x22d5   : > { %v5829_v61 = vpack.c.bf16 %v5817_v31, %v5815_v42  ;;  %8613 = vrcp.f32 %v5809_v25 }
0x22d6   : > { %7943 = vmatmul.mubr.msk.bf16.vlgmr.msra.gmra.mrb[148].mxu0 %vm5049_vm14, %v5828_v19 }
0x22d7   : > { %7946 = vmatprep.mubr.msk.bf16.mxu0 %vm8919_vm4, %v11174_v63 }
0x22d9   : > { %v8606_v33 = vpop.eup %8605 }
0x22da   : > { %v8608_v52 = vpop.eup %8607  ;;  %v5821_v22 = vmul.f32 %v8606_v33, %v10509_v6 }
0x22db   : > { %v5819_v13 = vmul.f32 %v8608_v52, %v10504_v62 }
0x22dd   : > { %v5830_v20 = vpack.c.bf16 %v5821_v22, %v5819_v13  ;;  %v8610_v5 = vpop.eup %8609 }
0x22de   : > { %7947 = vmatmul.mubr.msk.bf16.gmra.mrb[152].mxu0 %vm5049_vm14, %v5829_v61  ;;  %v8612_v32 = vpop.eup %8611  ;;  %v5825_v43 = vmul.f32 %v8610_v5, %v10517_v40 }
0x22df   : > { %7950 = vmatprep.mubr.msk.bf16.mxu0 %vm8919_vm4, %v11174_v63  ;;  %v5823_v37 = vmul.f32 %v8612_v32, %v10471_v56  ;;  %v8614_v47 = vpop.eup %8613 }
0x22e0   : > { %v5827_v62 = vmul.f32 %v8614_v47, %v10485_v18 }
0x22e1   : > { %v5831_v38 = vpack.c.bf16 %v5825_v43, %v5823_v37 }
0x22e2   : > { %v5832_v6 = vpack.c.bf16 %v5827_v62, %v5827_v62 }
0x22e6   : > { %7951 = vmatmul.mubr.msk.bf16.gmra.mrb[156].mxu0 %vm5049_vm14, %v5830_v20 }
0x22e7   : > { %7954 = vmatprep.mubr.msk.bf16.mxu0 %vm8919_vm4, %v11174_v63 }
0x22ee   : > { %7955 = vmatmul.mubr.msk.bf16.gmra.mrb[160].mxu0 %vm5049_vm14, %v5831_v38 }
0x22ef   : > { %7958 = vmatprep.mubr.msk.bf16.mxu0 %vm8919_vm4, %v11174_v63 }
0x22f6   : > { %7959 = vmatmul.mubr.msk.bf16.gmra.mrb[164].mxu0 %vm5049_vm14, %v5832_v6 }
0x22f7   : > { %6403 = vmatprep.mubr.bf16.mxu0 %v11179_v0 }
0x22ff   : > { %v10598_v60 = vpop.f32.mrb[108].mxu0 }
0x2300   : > { %v7824_v10 = vpop.f32.mrb[109].mxu0 }
0x2301   : > { %v10600_v40 = vpop.f32.mrb[110].mxu0 }
0x2302   : > { %v7825_v56 = vpop.f32.mrb[111].mxu0 }
0x2309   : > { %v10602_v26 = vpop.f32.mrb[112].mxu0 }
0x230a   : > { %v7828_v7 = vpop.f32.mrb[113].mxu0 }
0x230b   : > { %v10604_v55 = vpop.f32.mrb[114].mxu0 }
0x230c   : > { %v7829_v35 = vpop.f32.mrb[115].mxu0 }
0x2311   : > { %v10606_v4 = vpop.f32.mrb[116].mxu0 }
0x2312   : > { %v7832_v18 = vpop.f32.mrb[117].mxu0 }
0x2313   : > { %v10608_v14 = vpop.f32.mrb[118].mxu0 }
0x2314   : > { %v7833_v29 = vpop.f32.mrb[119].mxu0 }
0x2319   : > { %v10610_v36 = vpop.f32.mrb[120].mxu0 }
0x231a   : > { %v7836_v41 = vpop.f32.mrb[121].mxu0 }
0x231b   : > { %v10612_v3 = vpop.f32.mrb[122].mxu0 }
0x231c   : > { %v7837_v9 = vpop.f32.mrb[123].mxu0 }
0x2321   : > { %v10614_v23 = vpop.f32.mrb[124].mxu0 }
0x2322   : > { %v7840_v49 = vpop.f32.mrb[125].mxu0 }
0x2323   : > { %v5256_v11 = vpop.f32.mrb[126].mxu0 }
0x2324   : > { %v7841_v46 = vpop.f32.mrb[127].mxu0 }
0x2362   : > { %v5560_v16 = vpop.f32.mrb[128].mxu0 }
0x2363   : > { %v7884_v59 = vpop.f32.mrb[129].mxu0 }
0x2364   : > { %v5563_v12 = vpop.f32.mrb[130].mxu0 }
0x2365   : > { %v8221_v28 = vpack.i.bf16 %v5563_v12, %v5560_v16  ;;  %v7885_v39 = vpop.f32.mrb[131].mxu0 }
0x2367   : > { %8222 = vrot.lane.b32.xlu1 %v8221_v28, %s11147_s26 }
0x236a   : > { %v5568_v17 = vpop.f32.mrb[132].mxu0 }
0x236b   : > { %v7888_v15 = vpop.f32.mrb[133].mxu0 }
0x236c   : > { %v5571_v8 = vpop.f32.mrb[134].mxu0 }
0x236d   : > { %v8231_v21 = vpack.i.bf16 %v5571_v8, %v5568_v17  ;;  %v7889_v2 = vpop.f32.mrb[135].mxu0 }
0x236f   : > { %8232 = vrot.lane.b32.xlu1 %v8231_v21, %s11147_s26 }
0x2372   : > { %v5576_v58 = vpop.f32.mrb[136].mxu0 }
0x2373   : > { %v7892_v24 = vpop.f32.mrb[137].mxu0 }
0x2374   : > { %v5579_v50 = vpop.f32.mrb[138].mxu0 }
0x2375   : > { %v8241_v57 = vpack.i.bf16 %v5579_v50, %v5576_v58  ;;  %v7893_v19 = vpop.f32.mrb[139].mxu0 }
0x2399   : > { %v5584_v1 = vpop.f32.mrb[140].mxu0 }
0x239a   : > { %v7896_v34 = vpop.f32.mrb[141].mxu0 }
0x239b   : > { %v5587_v51 = vpop.f32.mrb[142].mxu0 }
0x239c   : > { %v8251_v31 = vpack.i.bf16 %v5587_v51, %v5584_v1  ;;  %v7897_v53 = vpop.f32.mrb[143].mxu0 }
0x23a1   : > { %v5592_v42 = vpop.f32.mrb[144].mxu0 }
0x23a2   : > { %v7900_v61 = vpop.f32.mrb[145].mxu0 }
0x23a3   : > { %v5595_v33 = vpop.f32.mrb[146].mxu0 }
0x23a4   : > { %v7901_v52 = vpop.f32.mrb[147].mxu0 }
0x23a9   : > { %v5885_v25 = vpop.f32.mrb[148].mxu0 }
0x23aa   : > { %v7944_v22 = vpop.f32.mrb[149].mxu0 }
0x23ab   : > { %v5888_v13 = vpop.f32.mrb[150].mxu0 }
0x23ac   : > { %v8226_v20 = vpack.i.bf16 %v5888_v13, %v5885_v25  ;;  %v7945_v5 = vpop.f32.mrb[151].mxu0 }
0x23ae   : > { %8227 = vrot.lane.b32.xlu0 %v8226_v20, %s11173_s0 }
0x23b1   : > { %v5893_v32 = vpop.f32.mrb[152].mxu0 }
0x23b2   : > { %8242 = vrot.lane.b32.xlu0 %v8241_v57, %s11147_s26  ;;  %v7948_v43 = vpop.f32.mrb[153].mxu0 }
0x23b3   : > { %v5896_v37 = vpop.f32.mrb[154].mxu0 }
0x23b4   : > { %v8236_v38 = vpack.i.bf16 %v5896_v37, %v5893_v32  ;;  %v7949_v47 = vpop.f32.mrb[155].mxu0 }
0x23b6   : > { %8252 = vrot.lane.b32.xlu0 %v8251_v31, %s11147_s26  ;;  %8237 = vrot.lane.b32.xlu1 %v8236_v38, %s11173_s0 }
0x23b9   : > { %v5901_v62 = vpop.f32.mrb[156].mxu0 }
0x23ba   : > { %5948 = vrot.lane.b32.xlu0 %v5592_v42, %s11147_s26  ;;  %v7952_v6 = vpop.f32.mrb[157].mxu0  ;;  %s11189_s26 = sld [smem:[#allocation47_spill]] }
0x23bb   : > { %v5904_v10 = vpop.f32.mrb[158].mxu0 }
0x23bc   : > { %v8246_v56 = vpack.i.bf16 %v5904_v10, %v5901_v62  ;;  %v7953_v7 = vpop.f32.mrb[159].mxu0 }
0x23be   : > { %8247 = vrot.lane.b32.xlu1 %v8246_v56, %s11173_s0 }
0x23c1   : > { %v5909_v35 = vpop.f32.mrb[160].mxu0 }
0x23c2   : > { %v7956_v18 = vpop.f32.mrb[161].mxu0 }
0x23c3   : > { %v5912_v29 = vpop.f32.mrb[162].mxu0  ;;  %v7381_v18 = vld [vmem:[#allocation4] ss:$0 sm:$0xff] }
0x23c4   : > { %v8256_v41 = vpack.i.bf16 %v5912_v29, %v5909_v35  ;;  %v7957_v9 = vpop.f32.mrb[163].mxu0 }
0x23c6   : > { %8257 = vrot.lane.b32.xlu1 %v8256_v41, %s11173_s0 }
0x23c9   : > { %v5917_v49 = vpop.f32.mrb[164].mxu0 }
0x23ca   : > { %5984 = vrot.lane.b32.xlu1 %v5917_v49, %s11173_s0  ;;  %v7960_v11 = vpop.f32.mrb[165].mxu0  ;;  %s11018_s0 = scalar_lea.vmem %s9181_s30, %s11192_s1 }
0x23cb   : > { %v5920_v46 = vpop.f32.mrb[166].mxu0 }
0x23cc   : > { %v7961_v16 = vpop.f32.mrb[167].mxu0 }
0x23d9   : > { %v8223_v59 = vpop.permute.xlu1 %8222 }
0x23da   : > { %v8225_v12 = vunpack.i.h.bf16 %v8223_v59  ;;  %v8224_v54 = vunpack.i.l.bf16 %v8223_v59 }
0x23dc   : > { %v5996_v17 = vsel %vm2062_vm12, %v10600_v40, %v8225_v12  ;;  %v5995_v30 = vsel %vm2062_vm12, %v10598_v60, %v8224_v54 }
0x23e1   : > { %v8233_v15 = vpop.permute.xlu1 %8232 }
0x23e2   : > { %v8235_v58 = vunpack.i.h.bf16 %v8233_v15  ;;  %v8234_v24 = vunpack.i.l.bf16 %v8233_v15 }
0x23e4   : > { %v5998_v40 = vsel %vm2062_vm12, %v10604_v55, %v8235_v58  ;;  %v5997_v60 = vsel %vm2062_vm12, %v10602_v26, %v8234_v24 }
0x2420   : > { %v8228_v28 = vpop.permute.xlu0 %8227 }
0x2421   : > { %v8230_v39 = vunpack.i.h.bf16 %v8228_v28  ;;  %v8229_v45 = vunpack.i.l.bf16 %v8228_v28 }
0x2423   : > { %v6005_v8 = vsel %vm2586_vm0, %v5996_v17, %v8230_v39  ;;  %v6004_v21 = vsel %vm2586_vm0, %v5995_v30, %v8229_v45  ;;  %v11181_v45 = vld [vmem:[#allocation51_spill] sm:$0xff] }
0x2424   : > { %v6019_v2 = vpack.c.bf16 %v6005_v8, %v6004_v21  ;;  %v8243_v1 = vpop.permute.xlu0 %8242  ;;  %v11182_v21 = vld [vmem:[#allocation52_spill] sm:$0xff] }
0x2425   : > { %v8245_v53 = vunpack.i.h.bf16 %v8243_v1  ;;  %v8244_v42 = vunpack.i.l.bf16 %v8243_v1 }
0x2426   : > { %7969 = vmatmul.mubr.msk.bf16.vlgmr.msra.gmra.mrb[112].mxu1 %vm1885_vm10, %v6019_v2 }
0x2427   : > { %7972 = vmatprep.mubr.msk.bf16.mxu1 %vm8919_vm4, %v11174_v63  ;;  %v6000_v55 = vsel %vm2062_vm12, %v10608_v14, %v8245_v53  ;;  %v5999_v26 = vsel %vm2062_vm12, %v10606_v4, %v8244_v42 }
0x2428   : > { %v8238_v50 = vpop.permute.xlu1 %8237  ;;  %v8253_v25 = vpop.permute.xlu0 %8252 }
0x2429   : > { %v8240_v57 = vunpack.i.h.bf16 %v8238_v50  ;;  %v8239_v19 = vunpack.i.l.bf16 %v8238_v50  ;;  %v8255_v5 = vunpack.i.h.bf16 %v8253_v25  ;;  %v8254_v32 = vunpack.i.l.bf16 %v8253_v25 }
0x242b   : > { %v6007_v34 = vsel %vm2586_vm0, %v5998_v40, %v8240_v57  ;;  %v6006_v51 = vsel %vm2586_vm0, %v5997_v60, %v8239_v19  ;;  %v6002_v14 = vsel %vm2062_vm12, %v10612_v3, %v8255_v5  ;;  %v6001_v4 = vsel %vm2062_vm12, %v10610_v36, %v8254_v32  ;;  %v11183_v57 = vld [vmem:[#allocation53_spill] sm:$0xff]  ;;  %v11187_v5 = vld [vmem:[#allocation56_spill] sm:$0xff] }
0x242c   : > { %v6020_v31 = vpack.c.bf16 %v6007_v34, %v6006_v51  ;;  %v5949_v10 = vpop.permute.xlu0 %5948 }
0x242d   : > { %v6003_v7 = vsel %vm2062_vm12, %v10614_v23, %v5949_v10 }
0x242e   : > { %7973 = vmatmul.mubr.msk.bf16.gmra.mrb[116].mxu1 %vm1885_vm10, %v6020_v31  ;;  %v11184_v31 = vld [vmem:[#allocation54_spill] sm:$0xff] }
0x242f   : > { %7976 = vmatprep.mubr.msk.bf16.mxu1 %vm8919_vm4, %v11174_v63 }
0x2430   : > { %v8248_v61 = vpop.permute.xlu1 %8247 }
0x2431   : > { %v8250_v33 = vunpack.i.h.bf16 %v8248_v61  ;;  %v8249_v52 = vunpack.i.l.bf16 %v8248_v61 }
0x2433   : > { %v6008_v22 = vsel %vm2586_vm0, %v5999_v26, %v8249_v52  ;;  %v6009_v13 = vsel %vm2586_vm0, %v6000_v55, %v8250_v33  ;;  %v11185_v52 = vld [vmem:[#allocation55_spill] sm:$0xff] }
0x2434   : > { %v6021_v20 = vpack.c.bf16 %v6009_v13, %v6008_v22 }
0x2436   : > { %7977 = vmatmul.mubr.msk.bf16.gmra.mrb[120].mxu1 %vm1885_vm10, %v6021_v20 }
0x2437   : > { %7980 = vmatprep.mubr.msk.bf16.mxu1 %vm8919_vm4, %v11174_v63 }
0x2438   : > { %v8258_v43 = vpop.permute.xlu1 %8257 }
0x2439   : > { %v8260_v37 = vunpack.i.h.bf16 %v8258_v43  ;;  %v8259_v38 = vunpack.i.l.bf16 %v8258_v43 }
0x243b   : > { %v6010_v47 = vsel %vm2586_vm0, %v6001_v4, %v8259_v38  ;;  %v6011_v62 = vsel %vm2586_vm0, %v6002_v14, %v8260_v37 }
0x243c   : > { %v6022_v6 = vpack.c.bf16 %v6011_v62, %v6010_v47  ;;  %v5985_v56 = vpop.permute.xlu1 %5984  ;;  %v8339_v47 = vld [vmem:[%s11186_s2] ss:$8 sps:$4 sm:$0xff]   ;;  %v8341_v62 = vld [vmem:[%s11186_s2 + $0x4] ss:$8 sps:$4 sm:$0xff]  }
0x243d   : > { %v6012_v3 = vsel %vm2586_vm0, %v6003_v7, %v5985_v56  ;;  %6371 = vmatprep.subr.bf16.mxu0 %v8341_v62 }
0x243e   : > { %7981 = vmatmul.mubr.msk.bf16.gmra.mrb[124].mxu1 %vm1885_vm10, %v6022_v6  ;;  %v6023_v35 = vpack.c.bf16 %v6012_v3, %v6012_v3  ;;  %6372 = vmatpush1.bf16.msra.mxu0 %v8339_v47  ;;  %v8350_v47 = vld [vmem:[%s11188_s22 + $0x10] sm:$0xff]  }
0x243f   : > { %7984 = vmatprep.mubr.msk.bf16.mxu1 %vm8919_vm4, %v11174_v63 }
0x2446   : > { %7985 = vmatmul.mubr.msk.bf16.gmra.mrb[128].mxu1 %vm1885_vm10, %v6023_v35 }
0x24f9   : > { %v6091_v36 = vpop.f32.mrb[112].mxu1 }
0x24fa   : > { %v6129_v29 = vadd.f32 %v6091_v36, %v9904_v44  ;;  %v7970_v41 = vpop.f32.mrb[113].mxu1 }
0x24fb   : > { %v6094_v9 = vpop.f32.mrb[114].mxu1 }
0x24fc   : > { %v10673_v49 = vadd.f32 %v7381_v18, %v6129_v29  ;;  %v6130_v11 = vadd.f32 %v6094_v9, %v9910_v27  ;;  %v7971_v46 = vpop.f32.mrb[115].mxu1 }
0x24fe   : > { %v10676_v16 = vadd.f32 %v7381_v18, %v6130_v11  ;;  %v6156_v23 = vsel %vm1885_vm10, %v10673_v49, 0.0 }
0x24ff   : > { %6157 = vadd.xlane.f32.xlu0 %v6156_v23 }
0x2500   : > { %v6159_v59 = vsel %vm1885_vm10, %v10676_v16, 0.0 }
0x2501   : > { %6160 = vadd.xlane.f32.xlu1 %v6159_v59  ;;  %v6099_v12 = vpop.f32.mrb[116].mxu1 }
0x2502   : > { %v6131_v44 = vadd.f32 %v6099_v12, %v9916_v48  ;;  %v7974_v54 = vpop.f32.mrb[117].mxu1 }
0x2503   : > { %v6102_v28 = vpop.f32.mrb[118].mxu1 }
0x2504   : > { %v10683_v39 = vadd.f32 %v7381_v18, %v6131_v44  ;;  %v6132_v27 = vadd.f32 %v6102_v28, %v11181_v45  ;;  %v7975_v17 = vpop.f32.mrb[119].mxu1 }
0x2506   : > { %v10686_v30 = vadd.f32 %v7381_v18, %v6132_v27  ;;  %v6162_v15 = vsel %vm1885_vm10, %v10683_v39, 0.0 }
0x2507   : > { %6163 = vadd.xlane.f32.xlu0 %v6162_v15 }
0x2508   : > { %v6165_v48 = vsel %vm1885_vm10, %v10686_v30, 0.0 }
0x2509   : > { %v6107_v8 = vpop.f32.mrb[120].mxu1 }
0x250a   : > { %v6133_v2 = vadd.f32 %v6107_v8, %v11182_v21  ;;  %v7978_v58 = vpop.f32.mrb[121].mxu1 }
0x250b   : > { %6166 = vadd.xlane.f32.xlu0 %v6165_v48  ;;  %v6110_v24 = vpop.f32.mrb[122].mxu1 }
0x250c   : > { %v10693_v50 = vadd.f32 %v7381_v18, %v6133_v2  ;;  %v6134_v19 = vadd.f32 %v6110_v24, %v11183_v57  ;;  %v7979_v40 = vpop.f32.mrb[123].mxu1 }
0x250e   : > { %v10696_v60 = vadd.f32 %v7381_v18, %v6134_v19  ;;  %v6168_v1 = vsel %vm1885_vm10, %v10693_v50, 0.0 }
0x250f   : > { %6169 = vadd.xlane.f32.xlu1 %v6168_v1 }
0x2510   : > { %v6171_v34 = vsel %vm1885_vm10, %v10696_v60, 0.0 }
0x2511   : > { %6172 = vadd.xlane.f32.xlu0 %v6171_v34  ;;  %v6115_v51 = vpop.f32.mrb[124].mxu1 }
0x2512   : > { %v6135_v53 = vadd.f32 %v6115_v51, %v11184_v31  ;;  %v7982_v42 = vpop.f32.mrb[125].mxu1 }
0x2513   : > { %v6118_v61 = vpop.f32.mrb[126].mxu1 }
0x2514   : > { %v10703_v33 = vadd.f32 %v7381_v18, %v6135_v53  ;;  %v6136_v55 = vadd.f32 %v6118_v61, %v11185_v52  ;;  %v7983_v26 = vpop.f32.mrb[127].mxu1 }
0x2516   : > { %v10706_v25 = vadd.f32 %v7381_v18, %v6136_v55  ;;  %v6174_v22 = vsel %vm1885_vm10, %v10703_v33, 0.0 }
0x2517   : > { %6175 = vadd.xlane.f32.xlu1 %v6174_v22 }
0x2518   : > { %v6177_v13 = vsel %vm1885_vm10, %v10706_v25, 0.0 }
0x2519   : > { %6178 = vadd.xlane.f32.xlu0 %v6177_v13  ;;  %v6123_v20 = vpop.f32.mrb[128].mxu1 }
0x251a   : > { %v6137_v32 = vadd.f32 %v6123_v20, %v11187_v5  ;;  %v7986_v43 = vpop.f32.mrb[129].mxu1  ;;  %v8344_v20 = vld [vmem:[%s11186_s2 + $0x14] ss:$8 sps:$4 sm:$0xff]  }
0x251b   : > { %v6126_v37 = vpop.f32.mrb[130].mxu1  ;;  %6373 = vmatprep.subr.bf16.mxu0 %v8344_v20  ;;  %v8347_v43 = vld [vmem:[%s11186_s2 + $0x24] ss:$8 sps:$4 sm:$0xff]  }
0x251c   : > { %v10713_v38 = vadd.f32 %v7381_v18, %v6137_v32  ;;  %v7987_v14 = vpop.f32.mrb[131].mxu1  ;;  %v8342_v32 = vld [vmem:[%s11186_s2 + $0x10] ss:$8 sps:$4 sm:$0xff]   ;;  %v8345_v37 = vld [vmem:[%s11186_s2 + $0x20] ss:$8 sps:$4 sm:$0xff]  }
0x251d   : > { %6374 = vmatpush1.bf16.msra.mxu0 %v8342_v32  ;;  %v8348_v14 = vld [vmem:[%s11188_s22] sm:$0xff]  }
0x251e   : > { %v6180_v4 = vsel %vm1892_vm11, %v10713_v38, 0.0  ;;  %6375 = vmatprep.subr.bf16.mxu0 %v8347_v43  ;;  %6736 = vmatpush1.bf16.msra.mxu1 %v8348_v14 }
0x251f   : > { %6181 = vadd.xlane.f32.xlu1 %v6180_v4  ;;  %v8349_v4 = vld [vmem:[%s11188_s22 + $0x8] sm:$0xff]   ;;  %6737 = vmatprep.subr.bf16.mxu1 %v11179_v0 }
0x2521   : > { %6376 = vmatpush1.bf16.msra.mxu0 %v8345_v37 }
0x2522   : > { %7988 = vmatprep.subr.bf16.mxu0 %v11174_v63  ;;  %6738 = vmatpush1.bf16.msra.mxu1 %v8349_v4 }
0x2523   : > { %6739 = vmatprep.subr.bf16.mxu1 %v11179_v0 }
0x2526   : > { %6740 = vmatpush1.bf16.msra.mxu1 %v8350_v47 }
0x2527   : > { %6741 = vmatprep.subr.bf16.mxu1 %v11179_v0 }
0x258c   : > { %v6158_v6 = vpop.xlane.xlu0 %6157 }
0x258d   : > { %v6183_v10 = vmul.f32 0.020833334, %v6158_v6 }
0x258e   : > { %v6161_v56 = vpop.xlane.xlu1 %6160 }
0x258f   : > { %v10720_v7 = vsub.f32 %v10673_v49, %v6183_v10  ;;  %v6184_v3 = vmul.f32 0.020833334, %v6161_v56 }
0x2591   : > { %v10723_v35 = vsub.f32 %v10676_v16, %v6184_v3  ;;  %v6201_v36 = vmul.f32 %v10720_v7, %v10720_v7 }
0x2593   : > { %v6210_v18 = vsel %vm1885_vm10, %v6201_v36, 0.0  ;;  %v6202_v29 = vmul.f32 %v10723_v35, %v10723_v35 }
0x2594   : > { %v6164_v41 = vpop.xlane.xlu0 %6163  ;;  %6211 = vadd.xlane.f32.xlu0 %v6210_v18 }
0x2595   : > { %v6185_v9 = vmul.f32 0.020833334, %v6164_v41  ;;  %v6213_v11 = vsel %vm1885_vm10, %v6202_v29, 0.0 }
0x2596   : > { %6214 = vadd.xlane.f32.xlu1 %v6213_v11 }
0x2597   : > { %v10732_v46 = vsub.f32 %v10683_v39, %v6185_v9 }
0x2598   : > { %v6167_v23 = vpop.xlane.xlu0 %6166 }
0x2599   : > { %v6186_v59 = vmul.f32 0.020833334, %v6167_v23  ;;  %v6203_v12 = vmul.f32 %v10732_v46, %v10732_v46 }
0x259b   : > { %v10737_v44 = vsub.f32 %v10686_v30, %v6186_v59  ;;  %v6216_v54 = vsel %vm1885_vm10, %v6203_v12, 0.0  ;;  %v10784_v59 = vld [vmem:[#allocation6] ss:$0 sm:$0xff] }
0x259c   : > { %v6170_v28 = vpop.xlane.xlu1 %6169  ;;  %6217 = vadd.xlane.f32.xlu0 %v6216_v54 }
0x259d   : > { %v6187_v45 = vmul.f32 0.020833334, %v6170_v28  ;;  %v6204_v27 = vmul.f32 %v10737_v44, %v10737_v44 }
0x259e   : > { %v6173_v17 = vpop.xlane.xlu0 %6172 }
0x259f   : > { %v10743_v15 = vsub.f32 %v10693_v50, %v6187_v45  ;;  %v6188_v8 = vmul.f32 0.020833334, %v6173_v17  ;;  %v6219_v21 = vsel %vm1885_vm10, %v6204_v27, 0.0 }
0x25a0   : > { %6220 = vadd.xlane.f32.xlu1 %v6219_v21 }
0x25a1   : > { %v10747_v2 = vsub.f32 %v10696_v60, %v6188_v8  ;;  %v6205_v58 = vmul.f32 %v10743_v15, %v10743_v15 }
0x25a3   : > { %v6222_v48 = vsel %vm1885_vm10, %v6205_v58, 0.0  ;;  %v6206_v24 = vmul.f32 %v10747_v2, %v10747_v2  ;;  %v7383_v58 = vld [vmem:[#allocation7] ss:$0 sm:$0xff] }
0x25a4   : > { %v6176_v57 = vpop.xlane.xlu1 %6175  ;;  %6223 = vadd.xlane.f32.xlu0 %v6222_v48 }
0x25a5   : > { %v6189_v19 = vmul.f32 0.020833334, %v6176_v57  ;;  %v6225_v40 = vsel %vm1885_vm10, %v6206_v24, 0.0 }
0x25a6   : > { %v6179_v1 = vpop.xlane.xlu0 %6178  ;;  %6226 = vadd.xlane.f32.xlu1 %v6225_v40 }
0x25a7   : > { %v10756_v34 = vsub.f32 %v10703_v33, %v6189_v19  ;;  %v6190_v51 = vmul.f32 0.020833334, %v6179_v1 }
0x25a9   : > { %v10759_v31 = vsub.f32 %v10706_v25, %v6190_v51  ;;  %v6207_v53 = vmul.f32 %v10756_v34, %v10756_v34 }
0x25ab   : > { %v6228_v42 = vsel %vm1885_vm10, %v6207_v53, 0.0  ;;  %v6208_v61 = vmul.f32 %v10759_v31, %v10759_v31 }
0x25ac   : > { %6229 = vadd.xlane.f32.xlu0 %v6228_v42  ;;  %v6182_v52 = vpop.xlane.xlu1 %6181 }
0x25ad   : > { %v6191_v55 = vmul.f32 0.020833334, %v6182_v52  ;;  %v6231_v26 = vsel %vm1885_vm10, %v6208_v61, 0.0 }
0x25ae   : > { %6232 = vadd.xlane.f32.xlu1 %v6231_v26 }
0x25af   : > { %v10768_v22 = vsub.f32 %v10713_v38, %v6191_v55 }
0x25b1   : > { %v6209_v13 = vmul.f32 %v10768_v22, %v10768_v22 }
0x25b3   : > { %v6234_v5 = vsel %vm1892_vm11, %v6209_v13, 0.0 }
0x25b4   : > { %6235 = vadd.xlane.f32.xlu0 %v6234_v5 }
0x2621   : > { %v6212_v62 = vpop.xlane.xlu0 %6211 }
0x2622   : > { %v6237_v6 = vmul.f32 0.020833334, %v6212_v62 }
0x2623   : > { %v6215_v10 = vpop.xlane.xlu1 %6214 }
0x2624   : > { %v6246_v56 = vadd.f32 1e-05, %v6237_v6  ;;  %v6238_v3 = vmul.f32 0.020833334, %v6215_v10 }
0x2626   : > { %8615 = vrsqrt.f32 %v6246_v56  ;;  %v6247_v36 = vadd.f32 1e-05, %v6238_v3 }
0x2628   : > { %8617 = vrsqrt.f32 %v6247_v36 }
0x2629   : > { %v6218_v18 = vpop.xlane.xlu0 %6217 }
0x262a   : > { %v6239_v29 = vmul.f32 0.020833334, %v6218_v18 }
0x262c   : > { %v6248_v41 = vadd.f32 1e-05, %v6239_v29 }
0x262d   : > { %v6221_v9 = vpop.xlane.xlu1 %6220 }
0x262e   : > { %8619 = vrsqrt.f32 %v6248_v41  ;;  %v6240_v11 = vmul.f32 0.020833334, %v6221_v9 }
0x2630   : > { %v8616_v23 = vpop.eup %8615  ;;  %v6249_v12 = vadd.f32 1e-05, %v6240_v11 }
0x2631   : > { %v6264_v54 = vmul.f32 %v8616_v23, %v10720_v7  ;;  %v6224_v28 = vpop.xlane.xlu0 %6223 }
0x2632   : > { %v8618_v45 = vpop.eup %8617  ;;  %8621 = vrsqrt.f32 %v6249_v12  ;;  %v6241_v27 = vmul.f32 0.020833334, %v6224_v28 }
0x2633   : > { %v6279_v17 = vmul.f32 %v10784_v59, %v6264_v54  ;;  %v6265_v8 = vmul.f32 %v8618_v45, %v10723_v35  ;;  %v6227_v21 = vpop.xlane.xlu1 %6226 }
0x2634   : > { %v6250_v48 = vadd.f32 1e-05, %v6241_v27  ;;  %v6242_v24 = vmul.f32 0.020833334, %v6227_v21  ;;  %v8354_v21 = vld [vmem:[%s11188_s22 + $0x30] sm:$0xff]  }
0x2635   : > { %v6280_v57 = vmul.f32 %v10784_v59, %v6265_v8  ;;  %v6294_v40 = vadd.f32 %v7383_v58, %v6279_v17  ;;  %v8353_v8 = vld [vmem:[%s11188_s22 + $0x28] sm:$0xff]  }
0x2636   : > { %8623 = vrsqrt.f32 %v6250_v48  ;;  %v6251_v19 = vadd.f32 1e-05, %v6242_v24  ;;  %v8356_v48 = vld [vmem:[%s11188_s22 + $0x40] sm:$0xff]   ;;  %v8357_v24 = vld [vmem:[%s11188_s22 + $0x48] sm:$0xff]  }
0x2637   : > { %v6295_v1 = vadd.f32 %v7383_v58, %v6280_v57  ;;  %v8358_v57 = vld [vmem:[%s11188_s22 + $0x50] sm:$0xff]  }
0x2638   : > { %v8620_v51 = vpop.eup %8619  ;;  %8625 = vrsqrt.f32 %v6251_v19  ;;  %v8359_v19 = vld [vmem:[%s11188_s22 + $0x58] sm:$0xff]  }
0x2639   : > { %v6266_v7 = vmul.f32 %v8620_v51, %v10732_v46  ;;  %v6230_v53 = vpop.xlane.xlu0 %6229  ;;  %v6309_v42 = vpack.c.bf16 %v6295_v1, %v6294_v40  ;;  %v8360_v40 = vld [vmem:[%s9171_s12] sm:$0xff]   ;;  %v8361_v1 = vld [vmem:[%s9171_s12 + $0x8] sm:$0xff]  }
0x263a   : > { %v6243_v61 = vmul.f32 0.020833334, %v6230_v53  ;;  %v6314_v51 = vld [vmem:[%s11189_s26] sm:$0x3] }
0x263b   : > { %7390 = vmatmul.mubr.msk.bf16.vlgmr.msra.gmra.mrb[168].mxu0 %vm1885_vm10, %v6309_v42  ;;  %v6233_v35 = vpop.xlane.xlu1 %6232  ;;  %v6281_v20 = vmul.f32 %v10784_v59, %v6266_v7  ;;  %v11190_v7 = vld [vmem:[#allocation49_spill] sm:$0xff]  ;;  %v11191_v42 = vld [vmem:[#allocation50_spill] sm:$0xff] }
0x263c   : > { %v8622_v52 = vpop.eup %8621  ;;  %v6252_v55 = vadd.f32 1e-05, %v6243_v61  ;;  %v6244_v26 = vmul.f32 0.020833334, %v6233_v35  ;;  %6413 = vmatprep.mubr.bf16.mxu0 %v11179_v0  ;;  %7989 = vmatpush3.bf16.msra.mxu0 %v8360_v40  ;;  %v10838_v53 = vrot.slane %v6314_v51, %v11190_v7  ;;  %v10841_v61 = vrot.slane %v6314_v51, %v11191_v42 }
0x263d   : > { %v6267_v13 = vmul.f32 %v8622_v52, %v10737_v44  ;;  %v6296_v14 = vadd.f32 %v7383_v58, %v6281_v20  ;;  %7990 = vmatprep.subr.bf16.mxu0 %v11174_v63 }
0x263e   : > { %8627 = vrsqrt.f32 %v6252_v55  ;;  %v6253_v5 = vadd.f32 1e-05, %v6244_v26 }
0x263f   : > { %v6282_v32 = vmul.f32 %v10784_v59, %v6267_v13 }
0x2640   : > { %v8624_v46 = vpop.eup %8623  ;;  %8629 = vrsqrt.f32 %v6253_v5  ;;  %7991 = vmatpush3.bf16.msra.mxu0 %v8361_v1 }
0x2641   : > { %v6268_v43 = vmul.f32 %v8624_v46, %v10743_v15  ;;  %v6236_v37 = vpop.xlane.xlu0 %6235  ;;  %v6297_v4 = vadd.f32 %v7383_v58, %v6282_v32  ;;  %7992 = vmatprep.subr.bf16.mxu0 %v11174_v63 }
0x2642   : > { %v8626_v47 = vpop.eup %8625  ;;  %v6245_v62 = vmul.f32 0.020833334, %v6236_v37 }
0x2643   : > { %v6269_v6 = vmul.f32 %v8626_v47, %v10747_v2  ;;  %v6310_v10 = vpack.c.bf16 %v6297_v4, %v6296_v14  ;;  %v6283_v44 = vmul.f32 %v10784_v59, %v6268_v43 }
0x2644   : > { %v6254_v56 = vadd.f32 1e-05, %v6245_v62 }
0x2645   : > { %7391 = vmatmul.mubr.msk.bf16.gmra.mrb[172].mxu0 %vm1885_vm10, %v6310_v10  ;;  %v6284_v3 = vmul.f32 %v10784_v59, %v6269_v6  ;;  %v6298_v29 = vadd.f32 %v7383_v58, %v6283_v44 }
0x2646   : > { %8631 = vrsqrt.f32 %v6254_v56  ;;  %6423 = vmatprep.mubr.bf16.mxu0 %v11179_v0 }
0x2647   : > { %v6299_v36 = vadd.f32 %v7383_v58, %v6284_v3 }
0x2648   : > { %v8628_v15 = vpop.eup %8627 }
0x2649   : > { %v6270_v18 = vmul.f32 %v8628_v15, %v10756_v34  ;;  %v6311_v2 = vpack.c.bf16 %v6299_v36, %v6298_v29 }
0x264a   : > { %v8630_v41 = vpop.eup %8629 }
0x264b   : > { %v6271_v9 = vmul.f32 %v8630_v41, %v10759_v31  ;;  %v6285_v11 = vmul.f32 %v10784_v59, %v6270_v18 }
0x264d   : > { %7392 = vmatmul.mubr.msk.bf16.gmra.mrb[176].mxu0 %vm1885_vm10, %v6311_v2  ;;  %v6286_v23 = vmul.f32 %v10784_v59, %v6271_v9  ;;  %v6300_v34 = vadd.f32 %v7383_v58, %v6285_v11 }
0x264e   : > { %6433 = vmatprep.mubr.bf16.mxu0 %v11179_v0 }
0x264f   : > { %v6301_v12 = vadd.f32 %v7383_v58, %v6286_v23 }
0x2650   : > { %v8632_v54 = vpop.eup %8631 }
0x2651   : > { %v6272_v28 = vmul.f32 %v8632_v54, %v10768_v22  ;;  %v6312_v45 = vpack.c.bf16 %v6301_v12, %v6300_v34  ;;  %v8351_v22 = vld [vmem:[%s11188_s22 + $0x18] sm:$0xff]  }
0x2652   : > { %6742 = vmatpush1.bf16.msra.mxu1 %v8351_v22 }
0x2653   : > { %v6287_v31 = vmul.f32 %v10784_v59, %v6272_v28  ;;  %6743 = vmatprep.subr.bf16.mxu1 %v11179_v0  ;;  %v8352_v59 = vld [vmem:[%s11188_s22 + $0x20] sm:$0xff]  }
0x2655   : > { %7393 = vmatmul.mubr.msk.bf16.gmra.mrb[180].mxu0 %vm1885_vm10, %v6312_v45  ;;  %v6302_v27 = vadd.f32 %v7383_v58, %v6287_v31  ;;  %v8355_v58 = vld [vmem:[%s11188_s22 + $0x38] sm:$0xff]  }
0x2656   : > { %6443 = vmatprep.mubr.bf16.mxu0 %v11179_v0  ;;  %6744 = vmatpush1.bf16.msra.mxu1 %v8352_v59 }
0x2657   : > { %v6313_v17 = vpack.c.bf16 %v6302_v27, %v6302_v27  ;;  %6745 = vmatprep.subr.bf16.mxu1 %v11179_v0 }
0x265a   : > { %6746 = vmatpush1.bf16.msra.mxu1 %v8353_v8 }
0x265b   : > { %6747 = vmatprep.subr.bf16.mxu1 %v11179_v0 }
0x265d   : > { %7394 = vmatmul.mubr.msk.bf16.gmra.mrb[184].mxu0 %vm1885_vm10, %v6313_v17 }
0x265e   : > { %7994 = vmatprep.mubr.msk.bf16.mxu0 %vm8919_vm4, %v11174_v63  ;;  %6748 = vmatpush1.bf16.msra.mxu1 %v8354_v21 }
0x265f   : > { %6749 = vmatprep.subr.bf16.mxu1 %v11179_v0 }
0x2662   : > { %6750 = vmatpush1.bf16.msra.mxu1 %v8355_v58 }
0x2663   : > { %6751 = vmatprep.subr.bf16.mxu1 %v11179_v0 }
0x2666   : > { %6752 = vmatpush1.bf16.msra.mxu1 %v8356_v48 }
0x2667   : > { %6753 = vmatprep.subr.bf16.mxu1 %v11179_v0 }
0x266a   : > { %6754 = vmatpush1.bf16.msra.mxu1 %v8357_v24 }
0x266b   : > { %6755 = vmatprep.subr.bf16.mxu1 %v11179_v0 }
0x266e   : > { %6756 = vmatpush1.bf16.msra.mxu1 %v8358_v57 }
0x266f   : > { %6757 = vmatprep.subr.bf16.mxu1 %v11179_v0 }
0x2672   : > { %6758 = vmatpush1.bf16.msra.mxu1 %v8359_v19 }
0x270e   : > { %v6405_v35 = vpop.f32.mrb[168].mxu0 }
0x270f   : > { %v10844_v0 = vadd.f32 %v6405_v35, %v10838_v53  ;;  %v6407_v52 = vpop.f32.mrb[169].mxu0 }
0x2710   : > { %v10847_v55 = vadd.f32 %v6407_v52, %v10841_v61  ;;  %v6409_v26 = vpop.f32.mrb[170].mxu0 }
0x2711   : > { %v6452_v13 = vmul.f32 %v10844_v0, %v10844_v0  ;;  %v10852_v20 = vadd.f32 %v6409_v26, %v10838_v53  ;;  %v6411_v5 = vpop.f32.mrb[171].mxu0 }
0x2712   : > { %v6453_v32 = vmul.f32 %v10847_v55, %v10847_v55  ;;  %v10857_v46 = vadd.f32 %v6411_v5, %v10841_v61 }
0x2713   : > { %v6470_v43 = vmul.f32 %v6452_v13, %v10844_v0  ;;  %v6454_v37 = vmul.f32 %v10852_v20, %v10852_v20 }
0x2714   : > { %v6471_v14 = vmul.f32 %v6453_v32, %v10847_v55  ;;  %v6455_v4 = vmul.f32 %v10857_v46, %v10857_v46 }
0x2715   : > { %v6488_v47 = vmul.f32 0.044715, %v6470_v43  ;;  %v6472_v62 = vmul.f32 %v6454_v37, %v10852_v20 }
0x2716   : > { %v6489_v6 = vmul.f32 0.044715, %v6471_v14  ;;  %v6473_v10 = vmul.f32 %v6455_v4, %v10857_v46 }
0x2717   : > { %v6506_v56 = vadd.f32 %v6488_v47, %v10844_v0  ;;  %v6490_v44 = vmul.f32 0.044715, %v6472_v62 }
0x2718   : > { %v6507_v3 = vadd.f32 %v6489_v6, %v10847_v55  ;;  %v6491_v36 = vmul.f32 0.044715, %v6473_v10  ;;  %v6415_v15 = vpop.f32.mrb[172].mxu0 }
0x2719   : > { %v6524_v18 = vmul.f32 0.7978846, %v6506_v56  ;;  %v6508_v29 = vadd.f32 %v6490_v44, %v10852_v20  ;;  %v10871_v41 = vadd.f32 %v6415_v15, %v10838_v53  ;;  %v6417_v9 = vpop.f32.mrb[173].mxu0 }
0x271a   : > { %v6525_v2 = vmul.f32 0.7978846, %v6507_v3  ;;  %v6509_v11 = vadd.f32 %v6491_v36, %v10857_v46  ;;  %v10875_v23 = vadd.f32 %v6417_v9, %v10841_v61  ;;  %v6419_v12 = vpop.f32.mrb[174].mxu0 }
0x271b   : > { %8633 = vtanh.f32 %v6524_v18  ;;  %v6526_v54 = vmul.f32 0.7978846, %v6508_v29  ;;  %v6456_v28 = vmul.f32 %v10871_v41, %v10871_v41  ;;  %v10880_v34 = vadd.f32 %v6419_v12, %v10838_v53  ;;  %v6421_v45 = vpop.f32.mrb[175].mxu0 }
0x271c   : > { %8635 = vtanh.f32 %v6525_v2  ;;  %v6527_v31 = vmul.f32 0.7978846, %v6509_v11  ;;  %v6457_v27 = vmul.f32 %v10875_v23, %v10875_v23  ;;  %v10885_v17 = vadd.f32 %v6421_v45, %v10841_v61 }
0x271d   : > { %8637 = vtanh.f32 %v6526_v54  ;;  %v6474_v22 = vmul.f32 %v6456_v28, %v10871_v41  ;;  %v6458_v59 = vmul.f32 %v10880_v34, %v10880_v34 }
0x271e   : > { %8639 = vtanh.f32 %v6527_v31  ;;  %v6475_v8 = vmul.f32 %v6457_v27, %v10875_v23  ;;  %v6459_v21 = vmul.f32 %v10885_v17, %v10885_v17 }
0x271f   : > { %v6492_v58 = vmul.f32 0.044715, %v6474_v22  ;;  %v6476_v48 = vmul.f32 %v6458_v59, %v10880_v34 }
0x2720   : > { %v6493_v24 = vmul.f32 0.044715, %v6475_v8  ;;  %v6477_v57 = vmul.f32 %v6459_v21, %v10885_v17  ;;  %v6425_v19 = vpop.f32.mrb[176].mxu0 }
0x2721   : > { %v6510_v40 = vadd.f32 %v6492_v58, %v10871_v41  ;;  %v6494_v1 = vmul.f32 0.044715, %v6476_v48  ;;  %v10897_v51 = vadd.f32 %v6425_v19, %v10838_v53  ;;  %v6427_v7 = vpop.f32.mrb[177].mxu0 }
0x2722   : > { %v6511_v42 = vadd.f32 %v6493_v24, %v10875_v23  ;;  %v6495_v35 = vmul.f32 0.044715, %v6477_v57  ;;  %v10901_v52 = vadd.f32 %v6427_v7, %v10841_v61  ;;  %v6429_v26 = vpop.f32.mrb[178].mxu0 }
0x2723   : > { %v6528_v13 = vmul.f32 0.7978846, %v6510_v40  ;;  %v6512_v5 = vadd.f32 %v6494_v1, %v10880_v34  ;;  %v6460_v32 = vmul.f32 %v10897_v51, %v10897_v51  ;;  %v10907_v43 = vadd.f32 %v6429_v26, %v10838_v53  ;;  %v6431_v37 = vpop.f32.mrb[179].mxu0 }
0x2724   : > { %v6529_v14 = vmul.f32 0.7978846, %v6511_v42  ;;  %v6513_v4 = vadd.f32 %v6495_v35, %v10885_v17  ;;  %v6461_v47 = vmul.f32 %v10901_v52, %v10901_v52  ;;  %v10913_v62 = vadd.f32 %v6431_v37, %v10841_v61 }
0x2725   : > { %v8634_v6 = vpop.eup %8633  ;;  %8641 = vtanh.f32 %v6528_v13  ;;  %v6530_v10 = vmul.f32 0.7978846, %v6512_v5  ;;  %v6478_v56 = vmul.f32 %v6460_v32, %v10897_v51  ;;  %v6462_v44 = vmul.f32 %v10907_v43, %v10907_v43 }
0x2726   : > { %v8636_v3 = vpop.eup %8635  ;;  %v6560_v36 = vadd.f32 1.0, %v8634_v6  ;;  %8643 = vtanh.f32 %v6529_v14  ;;  %v6531_v15 = vmul.f32 0.7978846, %v6513_v4  ;;  %v6479_v18 = vmul.f32 %v6461_v47, %v10901_v52 }
0x2727   : > { %v8638_v29 = vpop.eup %8637  ;;  %v6561_v9 = vadd.f32 1.0, %v8636_v3  ;;  %8645 = vtanh.f32 %v6530_v10  ;;  %v6496_v2 = vmul.f32 0.044715, %v6478_v56  ;;  %v6480_v11 = vmul.f32 %v6462_v44, %v10907_v43 }
0x2728   : > { %v8640_v12 = vpop.eup %8639  ;;  %v6578_v54 = vmul.f32 0.5, %v6560_v36  ;;  %v6562_v28 = vadd.f32 1.0, %v8638_v29  ;;  %8647 = vtanh.f32 %v6531_v15  ;;  %v6497_v45 = vmul.f32 0.044715, %v6479_v18  ;;  %v6435_v31 = vpop.f32.mrb[180].mxu0 }
0x2729   : > { %v6579_v27 = vmul.f32 0.5, %v6561_v9  ;;  %v6563_v22 = vadd.f32 1.0, %v8640_v12  ;;  %v6514_v59 = vadd.f32 %v6496_v2, %v10897_v51  ;;  %v6498_v8 = vmul.f32 0.044715, %v6480_v11  ;;  %v6437_v21 = vpop.f32.mrb[181].mxu0 }
0x272a   : > { %v6596_v58 = vmul.f32 %v6578_v54, %v10844_v0  ;;  %v6580_v48 = vmul.f32 0.5, %v6562_v28  ;;  %v6515_v24 = vadd.f32 %v6497_v45, %v10901_v52  ;;  %v6463_v57 = vmul.f32 %v10913_v62, %v10913_v62  ;;  %v6439_v19 = vpop.f32.mrb[182].mxu0 }
0x272b   : > { %v6597_v40 = vmul.f32 %v6579_v27, %v10847_v55  ;;  %v6581_v1 = vmul.f32 0.5, %v6563_v22  ;;  %v6532_v7 = vmul.f32 0.7978846, %v6514_v59  ;;  %v6516_v42 = vadd.f32 %v6498_v8, %v10907_v43  ;;  %v6441_v35 = vpop.f32.mrb[183].mxu0 }
0x272c   : > { %v6598_v26 = vmul.f32 %v6580_v48, %v10852_v20  ;;  %v6533_v13 = vmul.f32 0.7978846, %v6515_v24  ;;  %v6481_v5 = vmul.f32 %v6463_v57, %v10913_v62  ;;  %v10930_v0 = vadd.f32 %v6435_v31, %v10838_v53 }
0x272d   : > { %v6599_v32 = vmul.f32 %v6581_v1, %v10857_v46  ;;  %8649 = vtanh.f32 %v6532_v7  ;;  %v6534_v37 = vmul.f32 0.7978846, %v6516_v42  ;;  %v10934_v14 = vadd.f32 %v6437_v21, %v10841_v61 }
0x272e   : > { %v6638_v55 = vpack.c.bf16 %v6598_v26, %v6596_v58  ;;  %8651 = vtanh.f32 %v6533_v13  ;;  %v6499_v4 = vmul.f32 0.044715, %v6481_v5  ;;  %v6464_v47 = vmul.f32 %v10930_v0, %v10930_v0 }
0x272f   : > { %v8642_v20 = vpop.eup %8641  ;;  %8653 = vtanh.f32 %v6534_v37  ;;  %v6465_v6 = vmul.f32 %v10934_v14, %v10934_v14  ;;  %v10941_v10 = vadd.f32 %v6439_v19, %v10838_v53  ;;  %v10944_v46 = vadd.f32 %v6441_v35, %v10841_v61 }
0x2730   : > { %v8644_v56 = vpop.eup %8643  ;;  %v6517_v44 = vadd.f32 %v6499_v4, %v10913_v62  ;;  %v6482_v3 = vmul.f32 %v6464_v47, %v10930_v0  ;;  %v6445_v36 = vpop.f32.mrb[184].mxu0  ;;  %v6639_v15 = vpack.c.bf16 %v6599_v32, %v6597_v40  ;;  %v6564_v18 = vadd.f32 1.0, %v8642_v20 }
0x2731   : > { %v8646_v29 = vpop.eup %8645  ;;  %v6565_v9 = vadd.f32 1.0, %v8644_v56  ;;  %v6483_v2 = vmul.f32 %v6465_v6, %v10934_v14  ;;  %v6466_v11 = vmul.f32 %v10941_v10, %v10941_v10  ;;  %v6467_v12 = vmul.f32 %v10944_v46, %v10944_v46  ;;  %v6447_v54 = vpop.f32.mrb[185].mxu0 }
0x2732   : > { %v8648_v28 = vpop.eup %8647  ;;  %v6535_v45 = vmul.f32 0.7978846, %v6517_v44  ;;  %v6500_v31 = vmul.f32 0.044715, %v6482_v3  ;;  %v10954_v27 = vadd.f32 %v6445_v36, %v10838_v53  ;;  %v10957_v22 = vadd.f32 %v6447_v54, %v10841_v61  ;;  %7407 = vmatprep.mubr.msk.bf16.mxu1 %vm1793_vm6, %v6639_v15  ;;  %v6449_v59 = vpop.f32.mrb[186].mxu0 }
0x2733   : > { %v6583_v8 = vmul.f32 0.5, %v6565_v9  ;;  %v6567_v21 = vadd.f32 1.0, %v8648_v28  ;;  %v6501_v58 = vmul.f32 0.044715, %v6483_v2  ;;  %v6484_v48 = vmul.f32 %v6466_v11, %v10941_v10  ;;  %6768 = vmatmul.mubr.bf16.vlgmr.msra.gmra.mrb[132].mxu1 %v6638_v55  ;;  %v6450_v24 = vpop.f32.mrb[187].mxu0 }
0x2734   : > { %8655 = vtanh.f32 %v6535_v45  ;;  %v6518_v57 = vadd.f32 %v6500_v31, %v10930_v0  ;;  %v6485_v19 = vmul.f32 %v6467_v12, %v10944_v46  ;;  %v6468_v53 = vmul.f32 %v10954_v27, %v10954_v27 }
0x2735   : > { %v6601_v61 = vmul.f32 %v6583_v8, %v10875_v23  ;;  %v6585_v40 = vmul.f32 0.5, %v6567_v21  ;;  %v6519_v1 = vadd.f32 %v6501_v58, %v10934_v14  ;;  %v6502_v7 = vmul.f32 0.044715, %v6484_v48 }
0x2736   : > { %v6536_v42 = vmul.f32 0.7978846, %v6518_v57  ;;  %v6503_v35 = vmul.f32 0.044715, %v6485_v19  ;;  %v6486_v26 = vmul.f32 %v6468_v53, %v10954_v27  ;;  %v6469_v13 = vmul.f32 %v10957_v22, %v10957_v22 }
0x2737   : > { %v8650_v5 = vpop.eup %8649  ;;  %v6603_v32 = vmul.f32 %v6585_v40, %v10885_v17  ;;  %v6537_v37 = vmul.f32 0.7978846, %v6519_v1  ;;  %v6520_v55 = vadd.f32 %v6502_v7, %v10941_v10  ;;  %v6566_v4 = vadd.f32 1.0, %v8646_v29 }
0x2738   : > { %v8652_v47 = vpop.eup %8651  ;;  %8657 = vtanh.f32 %v6536_v42  ;;  %v6521_v23 = vadd.f32 %v6503_v35, %v10944_v46  ;;  %v6504_v20 = vmul.f32 0.044715, %v6486_v26  ;;  %v6487_v6 = vmul.f32 %v6469_v13, %v10957_v22 }
0x2739   : > { %v8654_v56 = vpop.eup %8653  ;;  %8659 = vtanh.f32 %v6537_v37  ;;  %v6538_v44 = vmul.f32 0.7978846, %v6520_v55  ;;  %v6641_v3 = vpack.c.bf16 %v6603_v32, %v6601_v61  ;;  %v6582_v17 = vmul.f32 0.5, %v6564_v18 }
0x273a   : > { %v6539_v36 = vmul.f32 0.7978846, %v6521_v23  ;;  %v6522_v15 = vadd.f32 %v6504_v20, %v10954_v27  ;;  %v6505_v9 = vmul.f32 0.044715, %v6487_v6  ;;  %v6569_v2 = vadd.f32 1.0, %v8652_v47 }
0x273b   : > { %8661 = vtanh.f32 %v6538_v44  ;;  %7408 = vmatprep.mubr.msk.bf16.mxu1 %vm1793_vm6, %v6641_v3  ;;  %v6584_v29 = vmul.f32 0.5, %v6566_v4  ;;  %v6568_v11 = vadd.f32 1.0, %v8650_v5  ;;  %v6600_v28 = vmul.f32 %v6582_v17, %v10871_v41 }
0x273c   : > { %8663 = vtanh.f32 %v6539_v36  ;;  %v6540_v12 = vmul.f32 0.7978846, %v6522_v15  ;;  %v6523_v54 = vadd.f32 %v6505_v9, %v10957_v22  ;;  %v6570_v31 = vadd.f32 1.0, %v8654_v56 }
0x273d   : > { %v6602_v45 = vmul.f32 %v6584_v29, %v10880_v34  ;;  %v6586_v59 = vmul.f32 0.5, %v6568_v11  ;;  %v6587_v18 = vmul.f32 0.5, %v6569_v2  ;;  %v7412_v11 = vld [vmem:[#allocation9] ss:$0 sm:$0xff] }
0x273e   : > { %v8656_v8 = vpop.eup %8655  ;;  %8665 = vtanh.f32 %v6540_v12  ;;  %v6541_v21 = vmul.f32 0.7978846, %v6523_v54  ;;  %v6588_v24 = vmul.f32 0.5, %v6570_v31 }
0x273f   : > { %v6571_v58 = vadd.f32 1.0, %v8656_v8  ;;  %v6640_v48 = vpack.c.bf16 %v6602_v45, %v6600_v28  ;;  %v6604_v19 = vmul.f32 %v6586_v59, %v10897_v51  ;;  %v6605_v34 = vmul.f32 %v6587_v18, %v10901_v52 }
0x2740   : > { %8667 = vtanh.f32 %v6541_v21  ;;  %v6606_v53 = vmul.f32 %v6588_v24, %v10907_v43 }
0x2741   : > { %v6589_v57 = vmul.f32 0.5, %v6571_v58  ;;  %6776 = vmatmul.mubr.bf16.gmra.mrb[136].mxu1 %v6640_v48 }
0x2742   : > { %v8658_v61 = vpop.eup %8657  ;;  %v6642_v1 = vpack.c.bf16 %v6606_v53, %v6604_v19 }
0x2743   : > { %v8660_v41 = vpop.eup %8659  ;;  %v6607_v40 = vmul.f32 %v6589_v57, %v10913_v62  ;;  %v6572_v7 = vadd.f32 1.0, %v8658_v61 }
0x2744   : > { %v6573_v42 = vadd.f32 1.0, %v8660_v41 }
0x2745   : > { %v8662_v35 = vpop.eup %8661  ;;  %v6643_v26 = vpack.c.bf16 %v6607_v40, %v6605_v34  ;;  %v6590_v32 = vmul.f32 0.5, %v6572_v7 }
0x2746   : > { %v8664_v13 = vpop.eup %8663  ;;  %v6574_v5 = vadd.f32 1.0, %v8662_v35  ;;  %v6591_v37 = vmul.f32 0.5, %v6573_v42 }
0x2747   : > { %v6575_v55 = vadd.f32 1.0, %v8664_v13  ;;  %7409 = vmatprep.mubr.msk.bf16.mxu1 %vm1793_vm6, %v6643_v26  ;;  %v6608_v52 = vmul.f32 %v6590_v32, %v10930_v0 }
0x2748   : > { %v8666_v51 = vpop.eup %8665  ;;  %v6592_v43 = vmul.f32 0.5, %v6574_v5  ;;  %v6609_v23 = vmul.f32 %v6591_v37, %v10934_v14 }
0x2749   : > { %v6593_v4 = vmul.f32 0.5, %v6575_v55  ;;  %6784 = vmatmul.mubr.bf16.gmra.mrb[140].mxu1 %v6642_v1  ;;  %v6576_v56 = vadd.f32 1.0, %v8666_v51 }
0x274a   : > { %v8668_v47 = vpop.eup %8667  ;;  %v6610_v62 = vmul.f32 %v6592_v43, %v10941_v10  ;;  %v8362_v10 = vld [vmem:[%s9171_s12 + $0x10] sm:$0xff]  }
0x274b   : > { %v6611_v20 = vmul.f32 %v6593_v4, %v10944_v46  ;;  %v6577_v6 = vadd.f32 1.0, %v8668_v47  ;;  %v6594_v9 = vmul.f32 0.5, %v6576_v56  ;;  %7993 = vmatpush3.bf16.msra.mxu0 %v8362_v10 }
0x274c   : > { %v6644_v44 = vpack.c.bf16 %v6610_v62, %v6608_v52 }
0x274d   : > { %v6645_v3 = vpack.c.bf16 %v6611_v20, %v6609_v23  ;;  %v6595_v36 = vmul.f32 0.5, %v6577_v6  ;;  %v6612_v0 = vmul.f32 %v6594_v9, %v10954_v27 }
0x274f   : > { %7410 = vmatprep.mubr.msk.bf16.mxu1 %vm1793_vm6, %v6645_v3  ;;  %v6613_v15 = vmul.f32 %v6595_v36, %v10957_v22  ;;  %v6646_v14 = vpack.c.bf16 %v6612_v0, %v6612_v0 }
0x2751   : > { %6792 = vmatmul.mubr.bf16.gmra.mrb[144].mxu1 %v6644_v44  ;;  %v6647_v17 = vpack.c.bf16 %v6613_v15, %v6613_v15 }
0x2753   : > { %7411 = vmatprep.mubr.msk.bf16.mxu1 %vm1793_vm6, %v6647_v17 }
0x2759   : > { %6800 = vmatmul.mubr.bf16.gmra.mrb[148].mxu1 %v6646_v14 }
0x2806   : > { %v6769_v46 = vpop.f32.mrb[132].mxu1 }
0x2807   : > { %v6807_v2 = vadd.f32 %v6769_v46, %v10673_v49  ;;  %v6771_v29 = vpop.f32.mrb[133].mxu1 }
0x2808   : > { %v6772_v12 = vpop.f32.mrb[134].mxu1 }
0x2809   : > { %v6808_v54 = vadd.f32 %v6772_v12, %v10676_v16  ;;  %v6774_v22 = vpop.f32.mrb[135].mxu1  ;;  %v6823_v28 = vadd.f32 %v7412_v11, %v6807_v2 }
0x280b   : > { %v6824_v45 = vadd.f32 %v7412_v11, %v6808_v54 }
0x280d   : > { %v6838_v31 = vpack.c.bf16 %v6824_v45, %v6823_v28 }
0x280f   : > { %7995 = vmatmul.mubr.msk.bf16.vlgmr.msra.gmra.mrb[188].mxu0 %vm1885_vm10, %v6838_v31 }
0x2810   : > { %7998 = vmatprep.mubr.msk.bf16.mxu0 %vm8919_vm4, %v11174_v63 }
0x2814   : > { %v6777_v27 = vpop.f32.mrb[136].mxu1 }
0x2815   : > { %v6809_v59 = vadd.f32 %v6777_v27, %v10683_v39  ;;  %v6779_v8 = vpop.f32.mrb[137].mxu1 }
0x2816   : > { %v6780_v21 = vpop.f32.mrb[138].mxu1 }
0x2817   : > { %v6810_v49 = vadd.f32 %v6780_v21, %v10686_v30  ;;  %v6782_v18 = vpop.f32.mrb[139].mxu1  ;;  %v6825_v58 = vadd.f32 %v7412_v11, %v6809_v59 }
0x2819   : > { %v6826_v48 = vadd.f32 %v7412_v11, %v6810_v49 }
0x281b   : > { %v6839_v16 = vpack.c.bf16 %v6826_v48, %v6825_v58 }
0x281c   : > { %v6785_v24 = vpop.f32.mrb[140].mxu1 }
0x281d   : > { %v6811_v57 = vadd.f32 %v6785_v24, %v10693_v50  ;;  %v6787_v19 = vpop.f32.mrb[141].mxu1  ;;  %7999 = vmatmul.mubr.msk.bf16.gmra.mrb[192].mxu0 %vm1885_vm10, %v6839_v16 }
0x281e   : > { %v6788_v53 = vpop.f32.mrb[142].mxu1  ;;  %8002 = vmatprep.mubr.msk.bf16.mxu0 %vm8919_vm4, %v11174_v63 }
0x281f   : > { %v6812_v39 = vadd.f32 %v6788_v53, %v10696_v60  ;;  %v6790_v61 = vpop.f32.mrb[143].mxu1  ;;  %v6827_v41 = vadd.f32 %v7412_v11, %v6811_v57 }
0x2821   : > { %v6828_v34 = vadd.f32 %v7412_v11, %v6812_v39 }
0x2823   : > { %v6840_v30 = vpack.c.bf16 %v6828_v34, %v6827_v41 }
0x2824   : > { %v6793_v40 = vpop.f32.mrb[144].mxu1 }
0x2825   : > { %v6813_v1 = vadd.f32 %v6793_v40, %v10703_v33  ;;  %v6795_v7 = vpop.f32.mrb[145].mxu1  ;;  %8003 = vmatmul.mubr.msk.bf16.gmra.mrb[196].mxu0 %vm1885_vm10, %v6840_v30 }
0x2826   : > { %v6796_v50 = vpop.f32.mrb[146].mxu1  ;;  %8006 = vmatprep.mubr.msk.bf16.mxu0 %vm8919_vm4, %v11174_v63 }
0x2827   : > { %v6814_v42 = vadd.f32 %v6796_v50, %v10706_v25  ;;  %v6798_v35 = vpop.f32.mrb[147].mxu1  ;;  %v6829_v60 = vadd.f32 %v7412_v11, %v6813_v1  ;;  %v7413_v25 = vld [vmem:[#allocation10] ss:$0 sm:$0xff] }
0x2829   : > { %v6830_v26 = vadd.f32 %v7412_v11, %v6814_v42 }
0x282b   : > { %v6841_v13 = vpack.c.bf16 %v6830_v26, %v6829_v60 }
0x282c   : > { %v6801_v5 = vpop.f32.mrb[148].mxu1 }
0x282d   : > { %v6815_v32 = vadd.f32 %v6801_v5, %v10713_v38  ;;  %v6803_v37 = vpop.f32.mrb[149].mxu1  ;;  %8007 = vmatmul.mubr.msk.bf16.gmra.mrb[200].mxu0 %vm1885_vm10, %v6841_v13 }
0x282e   : > { %v6804_v33 = vpop.f32.mrb[150].mxu1  ;;  %8010 = vmatprep.mubr.msk.bf16.mxu0 %vm8919_vm4, %v11174_v63  ;;  %vm6963_vm4 = vcmask 90112  }
0x282f   : > { %v6831_v55 = vadd.f32 %v7412_v11, %v6815_v32  ;;  %v6805_v51 = vpop.f32.mrb[151].mxu1 }
0x2831   : > { %v6842_v43 = vpack.c.bf16 %v6831_v55, %v6831_v55 }
0x2835   : > { %8011 = vmatmul.mubr.msk.bf16.gmra.mrb[204].mxu0 %vm1885_vm10, %v6842_v43 }
0x28e2   : > { %v6917_v38 = vpop.f32.mrb[188].mxu0 }
0x28e3   : > { %v6918_v4 = vadd.f32 %v7413_v25, %v6917_v38  ;;  %v7996_v47 = vpop.f32.mrb[189].mxu0 }
0x28e4   : > { %v6920_v52 = vpop.f32.mrb[190].mxu0 }
0x28e5   : > { %6955 = vst.msk [vmem:[%s11018_s0] sm:$0xff] %vm1597_vm1, %v6918_v4  ;;  %v6921_v63 = vadd.f32 %v7413_v25, %v6920_v52  ;;  %v7997_v62 = vpop.f32.mrb[191].mxu0 }
0x28e7   : > { %6956 = vst.msk [vmem:[%s11018_s0 + $0x8] sm:$0xff] %vm1597_vm1, %v6921_v63 }
0x28f0   : > { %v6925_v23 = vpop.f32.mrb[192].mxu0 }
0x28f1   : > { %v6926_v20 = vadd.f32 %v7413_v25, %v6925_v23  ;;  %v8000_v6 = vpop.f32.mrb[193].mxu0 }
0x28f2   : > { %v6928_v56 = vpop.f32.mrb[194].mxu0 }
0x28f3   : > { %6957 = vst.msk [vmem:[%s11018_s0 + $0x10] sm:$0xff] %vm1597_vm1, %v6926_v20  ;;  %v6929_v44 = vadd.f32 %v7413_v25, %v6928_v56  ;;  %v8001_v3 = vpop.f32.mrb[195].mxu0 }
0x28f5   : > { %6958 = vst.msk [vmem:[%s11018_s0 + $0x18] sm:$0xff] %vm1597_vm1, %v6929_v44 }
0x28f8   : > { %v6933_v36 = vpop.f32.mrb[196].mxu0 }
0x28f9   : > { %v6934_v15 = vadd.f32 %v7413_v25, %v6933_v36  ;;  %v8004_v9 = vpop.f32.mrb[197].mxu0 }
0x28fa   : > { %v6936_v17 = vpop.f32.mrb[198].mxu0 }
0x28fb   : > { %6959 = vst.msk [vmem:[%s11018_s0 + $0x20] sm:$0xff] %vm1597_vm1, %v6934_v15  ;;  %v6937_v0 = vadd.f32 %v7413_v25, %v6936_v17  ;;  %v8005_v14 = vpop.f32.mrb[199].mxu0 }
0x28fd   : > { %6960 = vst.msk [vmem:[%s11018_s0 + $0x28] sm:$0xff] %vm1597_vm1, %v6937_v0 }
0x2900   : > { %v6941_v10 = vpop.f32.mrb[200].mxu0 }
0x2901   : > { %v6942_v46 = vadd.f32 %v7413_v25, %v6941_v10  ;;  %v8008_v2 = vpop.f32.mrb[201].mxu0 }
0x2902   : > { %v6944_v29 = vpop.f32.mrb[202].mxu0 }
0x2903   : > { %6961 = vst.msk [vmem:[%s11018_s0 + $0x30] sm:$0xff] %vm1597_vm1, %v6942_v46  ;;  %v6945_v11 = vadd.f32 %v7413_v25, %v6944_v29  ;;  %v8009_v12 = vpop.f32.mrb[203].mxu0 }
0x2905   : > { %6962 = vst.msk [vmem:[%s11018_s0 + $0x38] sm:$0xff] %vm1597_vm1, %v6945_v11 }
0x2908   : > { %v6949_v54 = vpop.f32.mrb[204].mxu0 }
0x2909   : > { %v6950_v22 = vadd.f32 %v7413_v25, %v6949_v54  ;;  %v8012_v28 = vpop.f32.mrb[205].mxu0 }
0x290a   : > { %v6952_v45 = vpop.f32.mrb[206].mxu0 }
0x290b   : > { %6964 = vst.msk [vmem:[%s11018_s0 + $0x40] sm:$0x1] %vm6963_vm4, %v6950_v22  ;;  %v8013_v31 = vpop.f32.mrb[207].mxu0 }
0x290c PF: > { %s113_s7 = sadd.s32 1, %s8859_s7  }
0x290d   : > { %p110_p6 = scmp.ge.s32.totalorder %s113_s7, 4  }
0x290f   :  { %112 = sbr.rel (!%p110_p6) target bundleno = 96 (0x60), region = 326 }
0x2916   :  { %6986 = vsyncpa [#allocation3], 1 }
0x2917   :  { %6988 = vsyncpa [#allocation3 + $0x1], 1 }
0x2918   :  { %6989 = vsyncpa [#allocation5], 1 }
0x2919   :  { %6990 = vsyncpa [#allocation8], 1 }
0x291a   :  { %6991 = vsyncpa [#allocation11], 1 }

</bundles_post_ra>
